<compile_context>
chip_gen: v5e
topology: v5e:2x2
jax: 0.10.0
libtpu: 0.0.40
codegen_flags: <defaults>
</compile_context>

<pallas_src>
import jax
import jax.numpy as jnp
from jax.experimental import pallas as pl
from jax.experimental.pallas import tpu as pltpu

LEAKY_SLOPE = 0.2
# nn.BatchNorm1d(out_feat, 0.8): the 0.8 is passed positionally as *eps* (PyTorch-GAN quirk),
# NOT as momentum. Reproduced faithfully.
BN_EPS = 0.8


def _round_up(x, m):
    return (x + m - 1) // m * m


# ---------------------------------------------------------------------------
# in-kernel helpers (traced inside the Pallas body)
# ---------------------------------------------------------------------------
def _leaky_relu(x):
    return jnp.where(x >= 0, x, LEAKY_SLOPE * x)


def _batchnorm_train(x, gamma, beta):
    # training-mode BatchNorm1d: biased batch statistics over the (full) batch axis.
    mean = jnp.mean(x, axis=0, keepdims=True)
    var = jnp.mean((x - mean) ** 2, axis=0, keepdims=True)
    return (x - mean) * jax.lax.rsqrt(var + BN_EPS) * gamma + beta


def _sigmoid(x):
    # exact, numerically stable sigmoid via tanh (EUP path, guaranteed Mosaic lowering).
    return 0.5 * (jnp.tanh(0.5 * x) + 1.0)


def _mm(x, w_ref):
    # bf16 MXU matmul with f32 accumulation (weights are stored bf16).
    return jnp.dot(x.astype(jnp.bfloat16), w_ref[...], preferred_element_type=jnp.float32)


# ---------------------------------------------------------------------------
# fused GAN forward kernel (whole problem fits in VMEM; no grid blocking needed)
# ---------------------------------------------------------------------------
def _gan_kernel(imgs_ref, z_ref,
                # generator params
                gw1, gb1,
                gw2, gb2, gg2, gbe2,
                gw3, gb3, gg3, gbe3,
                gw4, gb4, gg4, gbe4,
                gw5, gb5,
                # discriminator params
                dw1, db1, dw2, db2, dw3, db3,
                # outputs
                gen_ref, d_real_ref, d_fake_ref):
    # ---- Generator: Linear -> LeakyReLU, 3x [Linear -> BN(eps=0.8) -> LeakyReLU], Linear -> Tanh
    h = _leaky_relu(_mm(z_ref[...], gw1) + gb1[...])
    for w, b, g, be in ((gw2, gb2, gg2, gbe2),
                        (gw3, gb3, gg3, gbe3),
                        (gw4, gb4, gg4, gbe4)):
        h = _mm(h, w) + b[...]
        h = _leaky_relu(_batchnorm_train(h, g[...], be[...]))
    gen_flat = jnp.tanh(_mm(h, gw5) + gb5[...])        # (B, img_dim_padded), f32, lane-dense
    gen_ref[...] = gen_flat

    # ---- Discriminator chain: weights resident once in VMEM, applied to real + fake images.
    def disc(x):
        h1 = _leaky_relu(_mm(x, dw1) + db1[...])
        h2 = _leaky_relu(_mm(h1, dw2) + db2[...])
        return _sigmoid(_mm(h2, dw3) + db3[...])

    d_real_ref[...] = disc(imgs_ref[...])
    d_fake_ref[...] = disc(gen_flat)                   # fused: no HBM round trip of gen_imgs


# ---------------------------------------------------------------------------
# wrapper: parameter/operand padding, pallas_call plumbing
# ---------------------------------------------------------------------------
def _pad_cols(x, width):
    pad = width - x.shape[1]
    if pad:
        x = jnp.pad(x, ((0, 0), (0, pad)))
    return x


def gan_forward(imgs, noise, gen_params, disc_params, img_shape):
    """Mirrors GenerativeAdversarialNetworks.forward: returns dict of outputs."""
    batch = imgs.shape[0]
    img_dim = 1
    for d in img_shape:
        img_dim *= d

    lat_pad = gen_params[0].shape[0]        # padded latent width (K of first matmul)
    img_dim_pad = disc_params[0].shape[0]   # padded image width (lane-dense, multiple of 128)

    imgs_flat = _pad_cols(imgs.reshape(batch, -1).astype(jnp.float32), img_dim_pad)
    noise_pad = _pad_cols(noise.astype(jnp.float32), lat_pad)

    n_in = 2 + len(gen_params) + len(disc_params)
    gen_flat, d_real, d_fake = pl.pallas_call(
        _gan_kernel,
        out_shape=(
            jax.ShapeDtypeStruct((batch, img_dim_pad), jnp.float32),
            jax.ShapeDtypeStruct((batch, 1), jnp.float32),
            jax.ShapeDtypeStruct((batch, 1), jnp.float32),
        ),
        in_specs=[pl.BlockSpec(memory_space=pltpu.MemorySpace.VMEM)] * n_in,
        out_specs=(
            pl.BlockSpec(memory_space=pltpu.MemorySpace.VMEM),
            pl.BlockSpec(memory_space=pltpu.MemorySpace.VMEM),
            pl.BlockSpec(memory_space=pltpu.MemorySpace.VMEM),
        ),
        compiler_params=pltpu.CompilerParams(vmem_limit_bytes=64 * 1024 * 1024),
    )(imgs_flat, noise_pad, *gen_params, *disc_params)

    gen_imgs = gen_flat[:, :img_dim].reshape((batch,) + tuple(img_shape))
    return {"gen_imgs": gen_imgs, "discr_real": d_real, "discr_fake": d_fake}


# ---------------------------------------------------------------------------
# deterministic parameter initialization (PyTorch nn.Linear default: U(-k, k),
# k = 1/sqrt(fan_in); BatchNorm gamma=1, beta=0). Weights stored bf16 for the MXU,
# biases / BN params stay f32. Zero padding on latent/img dims preserves semantics.
# ---------------------------------------------------------------------------
def _linear_init(key, fan_in, fan_out, pad_in=0, pad_out=0):
    kw, kb = jax.random.split(key)
    bound = 1.0 / jnp.sqrt(float(fan_in))
    w = jax.random.uniform(kw, (fan_in, fan_out), jnp.float32, -bound, bound)
    b = jax.random.uniform(kb, (1, fan_out), jnp.float32, -bound, bound)
    if pad_in or pad_out:
        w = jnp.pad(w, ((0, pad_in), (0, pad_out)))
        b = jnp.pad(b, ((0, 0), (0, pad_out)))
    return w.astype(jnp.bfloat16), b


def init_params(key, latent_dim, img_shape):
    img_dim = 1
    for d in img_shape:
        img_dim *= d
    lat_pad = _round_up(latent_dim, 128)
    img_dim_pad = _round_up(img_dim, 128)

    keys = jax.random.split(key, 8)
    # generator
    w1, b1 = _linear_init(keys[0], latent_dim, 128, pad_in=lat_pad - latent_dim)
    w2, b2 = _linear_init(keys[1], 128, 256)
    w3, b3 = _linear_init(keys[2], 256, 512)
    w4, b4 = _linear_init(keys[3], 512, 1024)
    w5, b5 = _linear_init(keys[4], 1024, img_dim, pad_out=img_dim_pad - img_dim)
    ones = lambda n: jnp.ones((1, n), jnp.float32)
    zeros = lambda n: jnp.zeros((1, n), jnp.float32)
    gen_params = (
        w1, b1,
        w2, b2, ones(256), zeros(256),
        w3, b3, ones(512), zeros(512),
        w4, b4, ones(1024), zeros(1024),
        w5, b5,
    )
    # discriminator (input rows padded to img_dim_pad with zeros -> padded cols are inert)
    dw1, db1 = _linear_init(keys[5], img_dim, 512, pad_in=img_dim_pad - img_dim)
    dw2, db2 = _linear_init(keys[6], 512, 256)
    dw3, db3 = _linear_init(keys[7], 256, 1)
    disc_params = (dw1, db1, dw2, db2, dw3, db3)
    return gen_params, disc_params


if __name__ == "__main__":
    latent_dim = 32
    img_shape = (1, 16, 16)   # (C, H, W) -> 256 features flat
    batch = 2

    key = jax.random.PRNGKey(0)
    k_img, k_noise, k_param = jax.random.split(key, 3)

    imgs = jax.random.normal(k_img, (batch,) + img_shape, jnp.float32)
    # the torch module would sample noise if not given; we sample it explicitly here
    noise = jax.random.normal(k_noise, (batch, latent_dim), jnp.float32)

    gen_params, disc_params = init_params(k_param, latent_dim, img_shape)

    out = gan_forward(imgs, noise, gen_params, disc_params, img_shape)
    jax.block_until_ready(out)

    assert out["gen_imgs"].shape == (batch,) + img_shape
    assert out["discr_real"].shape == (batch, 1)
    assert out["discr_fake"].shape == (batch, 1)
    assert bool(jnp.all(jnp.isfinite(out["gen_imgs"])))
    assert bool(jnp.all((out["discr_real"] >= 0) & (out["discr_real"] <= 1)))
    assert bool(jnp.all((out["discr_fake"] >= 0) & (out["discr_fake"] <= 1)))
    print("KERNEL_OK")
</pallas_src>

<mosaic_0001>
module attributes {stable_mosaic.version = 11 : i64} {
  func.func @_gan_kernel(%arg0: memref<2x256xf32, #tpu.memory_space<vmem>>, %arg1: memref<2x128xf32, #tpu.memory_space<vmem>>, %arg2: memref<128x128xbf16, #tpu.memory_space<vmem>>, %arg3: memref<1x128xf32, #tpu.memory_space<vmem>>, %arg4: memref<128x256xbf16, #tpu.memory_space<vmem>>, %arg5: memref<1x256xf32, #tpu.memory_space<vmem>>, %arg6: memref<1x256xf32, #tpu.memory_space<vmem>>, %arg7: memref<1x256xf32, #tpu.memory_space<vmem>>, %arg8: memref<256x512xbf16, #tpu.memory_space<vmem>>, %arg9: memref<1x512xf32, #tpu.memory_space<vmem>>, %arg10: memref<1x512xf32, #tpu.memory_space<vmem>>, %arg11: memref<1x512xf32, #tpu.memory_space<vmem>>, %arg12: memref<512x1024xbf16, #tpu.memory_space<vmem>>, %arg13: memref<1x1024xf32, #tpu.memory_space<vmem>>, %arg14: memref<1x1024xf32, #tpu.memory_space<vmem>>, %arg15: memref<1x1024xf32, #tpu.memory_space<vmem>>, %arg16: memref<1024x256xbf16, #tpu.memory_space<vmem>>, %arg17: memref<1x256xf32, #tpu.memory_space<vmem>>, %arg18: memref<256x512xbf16, #tpu.memory_space<vmem>>, %arg19: memref<1x512xf32, #tpu.memory_space<vmem>>, %arg20: memref<512x256xbf16, #tpu.memory_space<vmem>>, %arg21: memref<1x256xf32, #tpu.memory_space<vmem>>, %arg22: memref<256x1xbf16, #tpu.memory_space<vmem>>, %arg23: memref<1x1xf32, #tpu.memory_space<vmem>>, %arg24: memref<2x256xf32, #tpu.memory_space<vmem>>, %arg25: memref<2x1xf32, #tpu.memory_space<vmem>>, %arg26: memref<2x1xf32, #tpu.memory_space<vmem>>) attributes {dimension_semantics = [], scalar_prefetch = 0 : i64, scratch_operands = 0 : i64, tpu.core_type = #tpu.core_type<tc>} {
    %c0 = arith.constant 0 : index
    %c0_0 = arith.constant 0 : index
    %0 = vector.load %arg1[%c0, %c0_0] : memref<2x128xf32, #tpu.memory_space<vmem>>, vector<2x128xf32>
    %1 = arith.truncf %0 : vector<2x128xf32> to vector<2x128xbf16>
    %c0_1 = arith.constant 0 : index
    %c0_2 = arith.constant 0 : index
    %2 = vector.load %arg2[%c0_1, %c0_2] : memref<128x128xbf16, #tpu.memory_space<vmem>>, vector<128x128xbf16>
    %cst = arith.constant dense<0.000000e+00> : vector<2x128xf32>
    %3 = tpu.matmul %1, %2, %cst {dimension_numbers = #tpu.dot_dimension_numbers<[1], [0], [0], [1], [0, 0, 1, 1], [], []>} : vector<2x128xbf16>, vector<128x128xbf16>, vector<2x128xf32> -> vector<2x128xf32>
    %c0_3 = arith.constant 0 : index
    %c0_4 = arith.constant 0 : index
    %4 = vector.load %arg3[%c0_3, %c0_4] : memref<1x128xf32, #tpu.memory_space<vmem>>, vector<1x128xf32>
    %5 = vector.broadcast %4 : vector<1x128xf32> to vector<2x128xf32>
    %6 = arith.addf %3, %5 : vector<2x128xf32>
    %cst_5 = arith.constant 0.000000e+00 : f32
    %7 = vector.broadcast %cst_5 : f32 to vector<2x128xf32>
    %8 = arith.cmpf oge, %6, %7 : vector<2x128xf32>
    %cst_6 = arith.constant 2.000000e-01 : f32
    %9 = vector.broadcast %cst_6 : f32 to vector<2x128xf32>
    %10 = arith.mulf %9, %6 : vector<2x128xf32>
    %11 = arith.select %8, %6, %10 : vector<2x128xi1>, vector<2x128xf32>
    %12 = arith.truncf %11 : vector<2x128xf32> to vector<2x128xbf16>
    %c0_7 = arith.constant 0 : index
    %c0_8 = arith.constant 0 : index
    %13 = vector.load %arg4[%c0_7, %c0_8] : memref<128x256xbf16, #tpu.memory_space<vmem>>, vector<128x256xbf16>
    %cst_9 = arith.constant dense<0.000000e+00> : vector<2x256xf32>
    %14 = tpu.matmul %12, %13, %cst_9 {dimension_numbers = #tpu.dot_dimension_numbers<[1], [0], [0], [1], [0, 0, 1, 1], [], []>} : vector<2x128xbf16>, vector<128x256xbf16>, vector<2x256xf32> -> vector<2x256xf32>
    %c0_10 = arith.constant 0 : index
    %c0_11 = arith.constant 0 : index
    %15 = vector.load %arg5[%c0_10, %c0_11] : memref<1x256xf32, #tpu.memory_space<vmem>>, vector<1x256xf32>
    %16 = vector.broadcast %15 : vector<1x256xf32> to vector<2x256xf32>
    %17 = arith.addf %14, %16 : vector<2x256xf32>
    %c0_12 = arith.constant 0 : index
    %c0_13 = arith.constant 0 : index
    %18 = vector.load %arg6[%c0_12, %c0_13] : memref<1x256xf32, #tpu.memory_space<vmem>>, vector<1x256xf32>
    %c0_14 = arith.constant 0 : index
    %c0_15 = arith.constant 0 : index
    %19 = vector.load %arg7[%c0_14, %c0_15] : memref<1x256xf32, #tpu.memory_space<vmem>>, vector<1x256xf32>
    %cst_16 = arith.constant dense<0.000000e+00> : vector<256xf32>
    %20 = vector.multi_reduction <add>, %17, %cst_16 [0] : vector<2x256xf32> to vector<256xf32>
    %21 = vector.shape_cast %20 : vector<256xf32> to vector<1x256xf32>
    %cst_17 = arith.constant 2.000000e+00 : f32
    %22 = vector.broadcast %cst_17 : f32 to vector<1x256xf32>
    %23 = arith.divf %21, %22 : vector<1x256xf32>
    %24 = vector.broadcast %23 : vector<1x256xf32> to vector<2x256xf32>
    %25 = arith.subf %17, %24 : vector<2x256xf32>
    %26 = arith.mulf %25, %25 : vector<2x256xf32>
    %cst_18 = arith.constant dense<0.000000e+00> : vector<256xf32>
    %27 = vector.multi_reduction <add>, %26, %cst_18 [0] : vector<2x256xf32> to vector<256xf32>
    %28 = vector.shape_cast %27 : vector<256xf32> to vector<1x256xf32>
    %cst_19 = arith.constant 2.000000e+00 : f32
    %29 = vector.broadcast %cst_19 : f32 to vector<1x256xf32>
    %30 = arith.divf %28, %29 : vector<1x256xf32>
    %31 = vector.broadcast %23 : vector<1x256xf32> to vector<2x256xf32>
    %32 = arith.subf %17, %31 : vector<2x256xf32>
    %cst_20 = arith.constant 8.000000e-01 : f32
    %33 = vector.broadcast %cst_20 : f32 to vector<1x256xf32>
    %34 = arith.addf %30, %33 : vector<1x256xf32>
    %35 = math.rsqrt %34 : vector<1x256xf32>
    %36 = vector.broadcast %35 : vector<1x256xf32> to vector<2x256xf32>
    %37 = arith.mulf %32, %36 : vector<2x256xf32>
    %38 = vector.broadcast %18 : vector<1x256xf32> to vector<2x256xf32>
    %39 = arith.mulf %37, %38 : vector<2x256xf32>
    %40 = vector.broadcast %19 : vector<1x256xf32> to vector<2x256xf32>
    %41 = arith.addf %39, %40 : vector<2x256xf32>
    %cst_21 = arith.constant 0.000000e+00 : f32
    %42 = vector.broadcast %cst_21 : f32 to vector<2x256xf32>
    %43 = arith.cmpf oge, %41, %42 : vector<2x256xf32>
    %cst_22 = arith.constant 2.000000e-01 : f32
    %44 = vector.broadcast %cst_22 : f32 to vector<2x256xf32>
    %45 = arith.mulf %44, %41 : vector<2x256xf32>
    %46 = arith.select %43, %41, %45 : vector<2x256xi1>, vector<2x256xf32>
    %47 = arith.truncf %46 : vector<2x256xf32> to vector<2x256xbf16>
    %c0_23 = arith.constant 0 : index
    %c0_24 = arith.constant 0 : index
    %48 = vector.load %arg8[%c0_23, %c0_24] : memref<256x512xbf16, #tpu.memory_space<vmem>>, vector<256x512xbf16>
    %cst_25 = arith.constant dense<0.000000e+00> : vector<2x512xf32>
    %49 = tpu.matmul %47, %48, %cst_25 {dimension_numbers = #tpu.dot_dimension_numbers<[1], [0], [0], [1], [0, 0, 1, 1], [], []>} : vector<2x256xbf16>, vector<256x512xbf16>, vector<2x512xf32> -> vector<2x512xf32>
    %c0_26 = arith.constant 0 : index
    %c0_27 = arith.constant 0 : index
    %50 = vector.load %arg9[%c0_26, %c0_27] : memref<1x512xf32, #tpu.memory_space<vmem>>, vector<1x512xf32>
    %51 = vector.broadcast %50 : vector<1x512xf32> to vector<2x512xf32>
    %52 = arith.addf %49, %51 : vector<2x512xf32>
    %c0_28 = arith.constant 0 : index
    %c0_29 = arith.constant 0 : index
    %53 = vector.load %arg10[%c0_28, %c0_29] : memref<1x512xf32, #tpu.memory_space<vmem>>, vector<1x512xf32>
    %c0_30 = arith.constant 0 : index
    %c0_31 = arith.constant 0 : index
    %54 = vector.load %arg11[%c0_30, %c0_31] : memref<1x512xf32, #tpu.memory_space<vmem>>, vector<1x512xf32>
    %cst_32 = arith.constant dense<0.000000e+00> : vector<512xf32>
    %55 = vector.multi_reduction <add>, %52, %cst_32 [0] : vector<2x512xf32> to vector<512xf32>
    %56 = vector.shape_cast %55 : vector<512xf32> to vector<1x512xf32>
    %cst_33 = arith.constant 2.000000e+00 : f32
    %57 = vector.broadcast %cst_33 : f32 to vector<1x512xf32>
    %58 = arith.divf %56, %57 : vector<1x512xf32>
    %59 = vector.broadcast %58 : vector<1x512xf32> to vector<2x512xf32>
    %60 = arith.subf %52, %59 : vector<2x512xf32>
    %61 = arith.mulf %60, %60 : vector<2x512xf32>
    %cst_34 = arith.constant dense<0.000000e+00> : vector<512xf32>
    %62 = vector.multi_reduction <add>, %61, %cst_34 [0] : vector<2x512xf32> to vector<512xf32>
    %63 = vector.shape_cast %62 : vector<512xf32> to vector<1x512xf32>
    %cst_35 = arith.constant 2.000000e+00 : f32
    %64 = vector.broadcast %cst_35 : f32 to vector<1x512xf32>
    %65 = arith.divf %63, %64 : vector<1x512xf32>
    %66 = vector.broadcast %58 : vector<1x512xf32> to vector<2x512xf32>
    %67 = arith.subf %52, %66 : vector<2x512xf32>
    %cst_36 = arith.constant 8.000000e-01 : f32
    %68 = vector.broadcast %cst_36 : f32 to vector<1x512xf32>
    %69 = arith.addf %65, %68 : vector<1x512xf32>
    %70 = math.rsqrt %69 : vector<1x512xf32>
    %71 = vector.broadcast %70 : vector<1x512xf32> to vector<2x512xf32>
    %72 = arith.mulf %67, %71 : vector<2x512xf32>
    %73 = vector.broadcast %53 : vector<1x512xf32> to vector<2x512xf32>
    %74 = arith.mulf %72, %73 : vector<2x512xf32>
    %75 = vector.broadcast %54 : vector<1x512xf32> to vector<2x512xf32>
    %76 = arith.addf %74, %75 : vector<2x512xf32>
    %cst_37 = arith.constant 0.000000e+00 : f32
    %77 = vector.broadcast %cst_37 : f32 to vector<2x512xf32>
    %78 = arith.cmpf oge, %76, %77 : vector<2x512xf32>
    %cst_38 = arith.constant 2.000000e-01 : f32
    %79 = vector.broadcast %cst_38 : f32 to vector<2x512xf32>
    %80 = arith.mulf %79, %76 : vector<2x512xf32>
    %81 = arith.select %78, %76, %80 : vector<2x512xi1>, vector<2x512xf32>
    %82 = arith.truncf %81 : vector<2x512xf32> to vector<2x512xbf16>
    %c0_39 = arith.constant 0 : index
    %c0_40 = arith.constant 0 : index
    %83 = vector.load %arg12[%c0_39, %c0_40] : memref<512x1024xbf16, #tpu.memory_space<vmem>>, vector<512x1024xbf16>
    %cst_41 = arith.constant dense<0.000000e+00> : vector<2x1024xf32>
    %84 = tpu.matmul %82, %83, %cst_41 {dimension_numbers = #tpu.dot_dimension_numbers<[1], [0], [0], [1], [0, 0, 1, 1], [], []>} : vector<2x512xbf16>, vector<512x1024xbf16>, vector<2x1024xf32> -> vector<2x1024xf32>
    %c0_42 = arith.constant 0 : index
    %c0_43 = arith.constant 0 : index
    %85 = vector.load %arg13[%c0_42, %c0_43] : memref<1x1024xf32, #tpu.memory_space<vmem>>, vector<1x1024xf32>
    %86 = vector.broadcast %85 : vector<1x1024xf32> to vector<2x1024xf32>
    %87 = arith.addf %84, %86 : vector<2x1024xf32>
    %c0_44 = arith.constant 0 : index
    %c0_45 = arith.constant 0 : index
    %88 = vector.load %arg14[%c0_44, %c0_45] : memref<1x1024xf32, #tpu.memory_space<vmem>>, vector<1x1024xf32>
    %c0_46 = arith.constant 0 : index
    %c0_47 = arith.constant 0 : index
    %89 = vector.load %arg15[%c0_46, %c0_47] : memref<1x1024xf32, #tpu.memory_space<vmem>>, vector<1x1024xf32>
    %cst_48 = arith.constant dense<0.000000e+00> : vector<1024xf32>
    %90 = vector.multi_reduction <add>, %87, %cst_48 [0] : vector<2x1024xf32> to vector<1024xf32>
    %91 = vector.shape_cast %90 : vector<1024xf32> to vector<1x1024xf32>
    %cst_49 = arith.constant 2.000000e+00 : f32
    %92 = vector.broadcast %cst_49 : f32 to vector<1x1024xf32>
    %93 = arith.divf %91, %92 : vector<1x1024xf32>
    %94 = vector.broadcast %93 : vector<1x1024xf32> to vector<2x1024xf32>
    %95 = arith.subf %87, %94 : vector<2x1024xf32>
    %96 = arith.mulf %95, %95 : vector<2x1024xf32>
    %cst_50 = arith.constant dense<0.000000e+00> : vector<1024xf32>
    %97 = vector.multi_reduction <add>, %96, %cst_50 [0] : vector<2x1024xf32> to vector<1024xf32>
    %98 = vector.shape_cast %97 : vector<1024xf32> to vector<1x1024xf32>
    %cst_51 = arith.constant 2.000000e+00 : f32
    %99 = vector.broadcast %cst_51 : f32 to vector<1x1024xf32>
    %100 = arith.divf %98, %99 : vector<1x1024xf32>
    %101 = vector.broadcast %93 : vector<1x1024xf32> to vector<2x1024xf32>
    %102 = arith.subf %87, %101 : vector<2x1024xf32>
    %cst_52 = arith.constant 8.000000e-01 : f32
    %103 = vector.broadcast %cst_52 : f32 to vector<1x1024xf32>
    %104 = arith.addf %100, %103 : vector<1x1024xf32>
    %105 = math.rsqrt %104 : vector<1x1024xf32>
    %106 = vector.broadcast %105 : vector<1x1024xf32> to vector<2x1024xf32>
    %107 = arith.mulf %102, %106 : vector<2x1024xf32>
    %108 = vector.broadcast %88 : vector<1x1024xf32> to vector<2x1024xf32>
    %109 = arith.mulf %107, %108 : vector<2x1024xf32>
    %110 = vector.broadcast %89 : vector<1x1024xf32> to vector<2x1024xf32>
    %111 = arith.addf %109, %110 : vector<2x1024xf32>
    %cst_53 = arith.constant 0.000000e+00 : f32
    %112 = vector.broadcast %cst_53 : f32 to vector<2x1024xf32>
    %113 = arith.cmpf oge, %111, %112 : vector<2x1024xf32>
    %cst_54 = arith.constant 2.000000e-01 : f32
    %114 = vector.broadcast %cst_54 : f32 to vector<2x1024xf32>
    %115 = arith.mulf %114, %111 : vector<2x1024xf32>
    %116 = arith.select %113, %111, %115 : vector<2x1024xi1>, vector<2x1024xf32>
    %117 = arith.truncf %116 : vector<2x1024xf32> to vector<2x1024xbf16>
    %c0_55 = arith.constant 0 : index
    %c0_56 = arith.constant 0 : index
    %118 = vector.load %arg16[%c0_55, %c0_56] : memref<1024x256xbf16, #tpu.memory_space<vmem>>, vector<1024x256xbf16>
    %cst_57 = arith.constant dense<0.000000e+00> : vector<2x256xf32>
    %119 = tpu.matmul %117, %118, %cst_57 {dimension_numbers = #tpu.dot_dimension_numbers<[1], [0], [0], [1], [0, 0, 1, 1], [], []>} : vector<2x1024xbf16>, vector<1024x256xbf16>, vector<2x256xf32> -> vector<2x256xf32>
    %c0_58 = arith.constant 0 : index
    %c0_59 = arith.constant 0 : index
    %120 = vector.load %arg17[%c0_58, %c0_59] : memref<1x256xf32, #tpu.memory_space<vmem>>, vector<1x256xf32>
    %121 = vector.broadcast %120 : vector<1x256xf32> to vector<2x256xf32>
    %122 = arith.addf %119, %121 : vector<2x256xf32>
    %123 = math.tanh %122 : vector<2x256xf32>
    %c0_60 = arith.constant 0 : index
    %c0_61 = arith.constant 0 : index
    %124 = vector.load %arg24[%c0_60, %c0_61] : memref<2x256xf32, #tpu.memory_space<vmem>>, vector<2x256xf32>
    tpu.vector_store %arg24[%c0_60, %c0_61], %123 {strides = array<i32>} : memref<2x256xf32, #tpu.memory_space<vmem>>, vector<2x256xf32>,
    %c0_62 = arith.constant 0 : index
    %c0_63 = arith.constant 0 : index
    %125 = vector.load %arg0[%c0_62, %c0_63] : memref<2x256xf32, #tpu.memory_space<vmem>>, vector<2x256xf32>
    %126 = arith.truncf %125 : vector<2x256xf32> to vector<2x256xbf16>
    %c0_64 = arith.constant 0 : index
    %c0_65 = arith.constant 0 : index
    %127 = vector.load %arg18[%c0_64, %c0_65] : memref<256x512xbf16, #tpu.memory_space<vmem>>, vector<256x512xbf16>
    %cst_66 = arith.constant dense<0.000000e+00> : vector<2x512xf32>
    %128 = tpu.matmul %126, %127, %cst_66 {dimension_numbers = #tpu.dot_dimension_numbers<[1], [0], [0], [1], [0, 0, 1, 1], [], []>} : vector<2x256xbf16>, vector<256x512xbf16>, vector<2x512xf32> -> vector<2x512xf32>
    %c0_67 = arith.constant 0 : index
    %c0_68 = arith.constant 0 : index
    %129 = vector.load %arg19[%c0_67, %c0_68] : memref<1x512xf32, #tpu.memory_space<vmem>>, vector<1x512xf32>
    %130 = vector.broadcast %129 : vector<1x512xf32> to vector<2x512xf32>
    %131 = arith.addf %128, %130 : vector<2x512xf32>
    %cst_69 = arith.constant 0.000000e+00 : f32
    %132 = vector.broadcast %cst_69 : f32 to vector<2x512xf32>
    %133 = arith.cmpf oge, %131, %132 : vector<2x512xf32>
    %cst_70 = arith.constant 2.000000e-01 : f32
    %134 = vector.broadcast %cst_70 : f32 to vector<2x512xf32>
    %135 = arith.mulf %134, %131 : vector<2x512xf32>
    %136 = arith.select %133, %131, %135 : vector<2x512xi1>, vector<2x512xf32>
    %137 = arith.truncf %136 : vector<2x512xf32> to vector<2x512xbf16>
    %c0_71 = arith.constant 0 : index
    %c0_72 = arith.constant 0 : index
    %138 = vector.load %arg20[%c0_71, %c0_72] : memref<512x256xbf16, #tpu.memory_space<vmem>>, vector<512x256xbf16>
    %cst_73 = arith.constant dense<0.000000e+00> : vector<2x256xf32>
    %139 = tpu.matmul %137, %138, %cst_73 {dimension_numbers = #tpu.dot_dimension_numbers<[1], [0], [0], [1], [0, 0, 1, 1], [], []>} : vector<2x512xbf16>, vector<512x256xbf16>, vector<2x256xf32> -> vector<2x256xf32>
    %c0_74 = arith.constant 0 : index
    %c0_75 = arith.constant 0 : index
    %140 = vector.load %arg21[%c0_74, %c0_75] : memref<1x256xf32, #tpu.memory_space<vmem>>, vector<1x256xf32>
    %141 = vector.broadcast %140 : vector<1x256xf32> to vector<2x256xf32>
    %142 = arith.addf %139, %141 : vector<2x256xf32>
    %cst_76 = arith.constant 0.000000e+00 : f32
    %143 = vector.broadcast %cst_76 : f32 to vector<2x256xf32>
    %144 = arith.cmpf oge, %142, %143 : vector<2x256xf32>
    %cst_77 = arith.constant 2.000000e-01 : f32
    %145 = vector.broadcast %cst_77 : f32 to vector<2x256xf32>
    %146 = arith.mulf %145, %142 : vector<2x256xf32>
    %147 = arith.select %144, %142, %146 : vector<2x256xi1>, vector<2x256xf32>
    %148 = arith.truncf %147 : vector<2x256xf32> to vector<2x256xbf16>
    %c0_78 = arith.constant 0 : index
    %c0_79 = arith.constant 0 : index
    %149 = vector.load %arg22[%c0_78, %c0_79] : memref<256x1xbf16, #tpu.memory_space<vmem>>, vector<256x1xbf16>
    %cst_80 = arith.constant dense<0.000000e+00> : vector<2x1xf32>
    %150 = tpu.matmul %148, %149, %cst_80 {dimension_numbers = #tpu.dot_dimension_numbers<[1], [0], [0], [1], [0, 0, 1, 1], [], []>} : vector<2x256xbf16>, vector<256x1xbf16>, vector<2x1xf32> -> vector<2x1xf32>
    %c0_81 = arith.constant 0 : index
    %c0_82 = arith.constant 0 : index
    %151 = vector.load %arg23[%c0_81, %c0_82] : memref<1x1xf32, #tpu.memory_space<vmem>>, vector<1x1xf32>
    %152 = vector.broadcast %151 : vector<1x1xf32> to vector<2x1xf32>
    %153 = arith.addf %150, %152 : vector<2x1xf32>
    %cst_83 = arith.constant 5.000000e-01 : f32
    %154 = vector.broadcast %cst_83 : f32 to vector<2x1xf32>
    %155 = arith.mulf %154, %153 : vector<2x1xf32>
    %156 = math.tanh %155 : vector<2x1xf32>
    %cst_84 = arith.constant 1.000000e+00 : f32
    %157 = vector.broadcast %cst_84 : f32 to vector<2x1xf32>
    %158 = arith.addf %156, %157 : vector<2x1xf32>
    %cst_85 = arith.constant 5.000000e-01 : f32
    %159 = vector.broadcast %cst_85 : f32 to vector<2x1xf32>
    %160 = arith.mulf %159, %158 : vector<2x1xf32>
    %c0_86 = arith.constant 0 : index
    %c0_87 = arith.constant 0 : index
    %161 = vector.load %arg25[%c0_86, %c0_87] : memref<2x1xf32, #tpu.memory_space<vmem>>, vector<2x1xf32>
    tpu.vector_store %arg25[%c0_86, %c0_87], %160 {strides = array<i32>} : memref<2x1xf32, #tpu.memory_space<vmem>>, vector<2x1xf32>,
    %162 = arith.truncf %123 : vector<2x256xf32> to vector<2x256xbf16>
    %c0_88 = arith.constant 0 : index
    %c0_89 = arith.constant 0 : index
    %163 = vector.load %arg18[%c0_88, %c0_89] : memref<256x512xbf16, #tpu.memory_space<vmem>>, vector<256x512xbf16>
    %cst_90 = arith.constant dense<0.000000e+00> : vector<2x512xf32>
    %164 = tpu.matmul %162, %163, %cst_90 {dimension_numbers = #tpu.dot_dimension_numbers<[1], [0], [0], [1], [0, 0, 1, 1], [], []>} : vector<2x256xbf16>, vector<256x512xbf16>, vector<2x512xf32> -> vector<2x512xf32>
    %c0_91 = arith.constant 0 : index
    %c0_92 = arith.constant 0 : index
    %165 = vector.load %arg19[%c0_91, %c0_92] : memref<1x512xf32, #tpu.memory_space<vmem>>, vector<1x512xf32>
    %166 = vector.broadcast %165 : vector<1x512xf32> to vector<2x512xf32>
    %167 = arith.addf %164, %166 : vector<2x512xf32>
    %cst_93 = arith.constant 0.000000e+00 : f32
    %168 = vector.broadcast %cst_93 : f32 to vector<2x512xf32>
    %169 = arith.cmpf oge, %167, %168 : vector<2x512xf32>
    %cst_94 = arith.constant 2.000000e-01 : f32
    %170 = vector.broadcast %cst_94 : f32 to vector<2x512xf32>
    %171 = arith.mulf %170, %167 : vector<2x512xf32>
    %172 = arith.select %169, %167, %171 : vector<2x512xi1>, vector<2x512xf32>
    %173 = arith.truncf %172 : vector<2x512xf32> to vector<2x512xbf16>
    %c0_95 = arith.constant 0 : index
    %c0_96 = arith.constant 0 : index
    %174 = vector.load %arg20[%c0_95, %c0_96] : memref<512x256xbf16, #tpu.memory_space<vmem>>, vector<512x256xbf16>
    %cst_97 = arith.constant dense<0.000000e+00> : vector<2x256xf32>
    %175 = tpu.matmul %173, %174, %cst_97 {dimension_numbers = #tpu.dot_dimension_numbers<[1], [0], [0], [1], [0, 0, 1, 1], [], []>} : vector<2x512xbf16>, vector<512x256xbf16>, vector<2x256xf32> -> vector<2x256xf32>
    %c0_98 = arith.constant 0 : index
    %c0_99 = arith.constant 0 : index
    %176 = vector.load %arg21[%c0_98, %c0_99] : memref<1x256xf32, #tpu.memory_space<vmem>>, vector<1x256xf32>
    %177 = vector.broadcast %176 : vector<1x256xf32> to vector<2x256xf32>
    %178 = arith.addf %175, %177 : vector<2x256xf32>
    %cst_100 = arith.constant 0.000000e+00 : f32
    %179 = vector.broadcast %cst_100 : f32 to vector<2x256xf32>
    %180 = arith.cmpf oge, %178, %179 : vector<2x256xf32>
    %cst_101 = arith.constant 2.000000e-01 : f32
    %181 = vector.broadcast %cst_101 : f32 to vector<2x256xf32>
    %182 = arith.mulf %181, %178 : vector<2x256xf32>
    %183 = arith.select %180, %178, %182 : vector<2x256xi1>, vector<2x256xf32>
    %184 = arith.truncf %183 : vector<2x256xf32> to vector<2x256xbf16>
    %c0_102 = arith.constant 0 : index
    %c0_103 = arith.constant 0 : index
    %185 = vector.load %arg22[%c0_102, %c0_103] : memref<256x1xbf16, #tpu.memory_space<vmem>>, vector<256x1xbf16>
    %cst_104 = arith.constant dense<0.000000e+00> : vector<2x1xf32>
    %186 = tpu.matmul %184, %185, %cst_104 {dimension_numbers = #tpu.dot_dimension_numbers<[1], [0], [0], [1], [0, 0, 1, 1], [], []>} : vector<2x256xbf16>, vector<256x1xbf16>, vector<2x1xf32> -> vector<2x1xf32>
    %c0_105 = arith.constant 0 : index
    %c0_106 = arith.constant 0 : index
    %187 = vector.load %arg23[%c0_105, %c0_106] : memref<1x1xf32, #tpu.memory_space<vmem>>, vector<1x1xf32>
    %188 = vector.broadcast %187 : vector<1x1xf32> to vector<2x1xf32>
    %189 = arith.addf %186, %188 : vector<2x1xf32>
    %cst_107 = arith.constant 5.000000e-01 : f32
    %190 = vector.broadcast %cst_107 : f32 to vector<2x1xf32>
    %191 = arith.mulf %190, %189 : vector<2x1xf32>
    %192 = math.tanh %191 : vector<2x1xf32>
    %cst_108 = arith.constant 1.000000e+00 : f32
    %193 = vector.broadcast %cst_108 : f32 to vector<2x1xf32>
    %194 = arith.addf %192, %193 : vector<2x1xf32>
    %cst_109 = arith.constant 5.000000e-01 : f32
    %195 = vector.broadcast %cst_109 : f32 to vector<2x1xf32>
    %196 = arith.mulf %195, %194 : vector<2x1xf32>
    %c0_110 = arith.constant 0 : index
    %c0_111 = arith.constant 0 : index
    %197 = vector.load %arg26[%c0_110, %c0_111] : memref<2x1xf32, #tpu.memory_space<vmem>>, vector<2x1xf32>
    tpu.vector_store %arg26[%c0_110, %c0_111], %196 {strides = array<i32>} : memref<2x1xf32, #tpu.memory_space<vmem>>, vector<2x1xf32>,
    return
  }
}

</mosaic_0001>

<bundles_post_ra>
// kernel: tpu_custom_call.1
= control target key start
LH: loop header
LB: loop body
LE: loop exit
PB: predicated region body
PF: predicated region fallthrough
CT: control target
= control target key end

     0   :  { %s12239_s0 = inlined_call_operand.hbm [shape: f32[2,256], index: 0, kind: input, shape index: {}]   ;;  %s12240_s1 = inlined_call_operand.vmem [shape: f32[2,128], index: 1, kind: input, shape index: {}]   ;;  %s12241_s2 = inlined_call_operand.hbm [shape: bf16[128,128], index: 2, kind: input, shape index: {}]   ;;  %s12242_s3 = inlined_call_operand.vmem [shape: f32[1,128], index: 3, kind: input, shape index: {}]   ;;  %s12243_s4 = inlined_call_operand.vmem [shape: bf16[128,256], index: 4, kind: input, shape index: {}]   ;;  %s12244_s5 = inlined_call_operand.hbm [shape: f32[1,256], index: 5, kind: input, shape index: {}]   ;;  %s12245_s6 = inlined_call_operand.hbm [shape: f32[1,256], index: 6, kind: input, shape index: {}]   ;;  %s12246_s7 = inlined_call_operand.hbm [shape: f32[1,256], index: 7, kind: input, shape index: {}]   ;;  %s12247_s8 = inlined_call_operand.hbm [shape: bf16[256,512], index: 8, kind: input, shape index: {}]   ;;  %s12248_s9 = inlined_call_operand.hbm [shape: f32[1,512], index: 9, kind: input, shape index: {}]   ;;  %s12249_s10 = inlined_call_operand.hbm [shape: f32[1,512], index: 10, kind: input, shape index: {}]   ;;  %s12250_s11 = inlined_call_operand.hbm [shape: f32[1,512], index: 11, kind: input, shape index: {}]   ;;  %s12251_s12 = inlined_call_operand.hbm [shape: bf16[512,1024], index: 12, kind: input, shape index: {}]   ;;  %s12252_s13 = inlined_call_operand.vmem [shape: f32[1,1024], index: 13, kind: input, shape index: {}]   ;;  %s12253_s14 = inlined_call_operand.hbm [shape: f32[1,1024], index: 14, kind: input, shape index: {}]   ;;  %s12254_s15 = inlined_call_operand.hbm [shape: f32[1,1024], index: 15, kind: input, shape index: {}]   ;;  %s12255_s16 = inlined_call_operand.hbm [shape: bf16[1024,256], index: 16, kind: input, shape index: {}]   ;;  %s12256_s17 = inlined_call_operand.vmem [shape: f32[1,256], index: 17, kind: input, shape index: {}]   ;;  %s12257_s18 = inlined_call_operand.hbm [shape: bf16[256,512], index: 18, kind: input, shape index: {}]   ;;  %s12258_s19 = inlined_call_operand.vmem [shape: f32[1,512], index: 19, kind: input, shape index: {}]   ;;  %s12259_s20 = inlined_call_operand.hbm [shape: bf16[512,256], index: 20, kind: input, shape index: {}]   ;;  %s12260_s21 = inlined_call_operand.vmem [shape: f32[1,256], index: 21, kind: input, shape index: {}]   ;;  %s12261_s22 = inlined_call_operand.vmem [shape: bf16[256,1], index: 22, kind: input, shape index: {}]   ;;  %s12262_s23 = inlined_call_operand.<no memory space> [shape: f32[1,1], index: 23, kind: input, shape index: {}]   ;;  %s12263_s24 = inlined_call_operand.hbm [shape: f32[2,256], index: 24, kind: output, shape index: {0}]   ;;  %s12264_s25 = inlined_call_operand.vmem [shape: f32[2,1], index: 25, kind: output, shape index: {1}]   ;;  %s12265_s26 = inlined_call_operand.vmem [shape: f32[2,1], index: 26, kind: output, shape index: {2}]  }
   0x1   :  { %12267 = sst [smem:[#allocation37_spill]] %s12239_s0  ;;  %v32_v0 = vstv %s12262_s23 }
   0x2   :  { %12268 = sst [smem:[#allocation38_spill]] %s12240_s1  ;;  %33 = vst [vmem:[#allocation2] sm:$0x1] %v32_v0 }
   0x3   :  { %12269 = sst [smem:[#allocation39_spill]] %s12241_s2 }
   0x4   :  { %12270 = sst [smem:[#allocation40_spill]] %s12242_s3 }
   0x5   :  { %12271 = sst [smem:[#allocation41_spill]] %s12243_s4 }
   0x6   :  { %12272 = sst [smem:[#allocation42_spill]] %s12244_s5 }
   0x7   :  { %12273 = sst [smem:[#allocation43_spill]] %s12245_s6 }
   0x8   :  { %12274 = sst [smem:[#allocation44_spill]] %s12246_s7 }
   0x9   :  { %12275 = sst [smem:[#allocation45_spill]] %s12247_s8 }
   0xa   :  { %12276 = sst [smem:[#allocation46_spill]] %s12248_s9 }
   0xb   :  { %12277 = sst [smem:[#allocation47_spill]] %s12249_s10 }
   0xc   :  { %12278 = sst [smem:[#allocation48_spill]] %s12263_s24 }
   0xd   :  { %12279 = sst [smem:[#allocation49_spill]] %s12264_s25 }
   0xe   :  { %12280 = sst [smem:[#allocation50_spill]] %s12265_s26 }
   0xf   :  { %34 = vsyncpa [#allocation4], 0 }
  0x10   :  { %35 = vsyncpa [#allocation7], 0 }
  0x11   :  { %36 = vsyncpa [#allocation10], 0 }
  0x12   :  { %37 = vsyncpa [#allocation13], 0 }
  0x13   :  { %38 = vsyncpa [#allocation16], 0 }
  0x14   :  { %39 = vsyncpa [#allocation19], 0 }
  0x15   :  { %40 = vsyncpa [#allocation22], 0 }
  0x16   :  { %41 = vsyncpa [#allocation25], 0  ;;  %s12281_s8 = sld [smem:[#allocation39_spill]] }
  0x1c   :  { %s60_s4 = sshll.u32 %s12281_s8, 4  ;;  %s61_s4 = int_to_ptr.hbm [resolvable:$true] %s60_s4 }
  0x1d   :  { %42 = vsyncpa [#allocation5], 0  ;;  %s11224_s29 = smov [#allocation6]   ;;  %s12282_s30 = sld [smem:[#allocation43_spill]] }
  0x1e   :  { %s62_s0 = sshll.u32 %s11224_s29, 4  ;;  %s11225_s5 = smov 64   ;;  %s63_s0 = int_to_ptr.vmem [resolvable:$true] %s62_s0 }
  0x1f   :  { %s11226_s10 = smov 4   ;;  %s11227_s6 = smov [#allocation9]  }
  0x20   :  { %68 = dma.hbm_to_vmem [thread:$0]  %s61_s4, 1024, %s63_s0, [#allocation7], %s11225_s5, %s11225_s5, %s11226_s10  }
  0x21   :  { %s91_s1 = sshll.u32 %s11227_s6, 4  ;;  %s12283_s26 = sld [smem:[#allocation45_spill]]  ;;  %s92_s1 = int_to_ptr.vmem [resolvable:$true] %s91_s1 }
  0x22   :  { %s11228_s28 = smov [#allocation12]   ;;  %s12284_s9 = sld [smem:[#allocation47_spill]] }
  0x23   :  { %s89_s2 = sshll.u32 %s12282_s30, 4  ;;  %s112_s8 = sshll.u32 %s11228_s28, 4  ;;  %s90_s2 = int_to_ptr.hbm [resolvable:$true] %s89_s2  ;;  %s113_s8 = int_to_ptr.vmem [resolvable:$true] %s112_s8 }
  0x24   :  { %94 = dma.hbm_to_vmem [thread:$0]  %s90_s2, 32, %s92_s1, [#allocation10]  }
  0x25   :  { %s11229_s30 = smov 256   ;;  %s11230_s25 = smov 16  }
  0x26   :  { %s11231_s4 = smov [#allocation15]   ;;  %s156_s2 = sshll.u32 %s12251_s12, 4  ;;  %s157_s2 = int_to_ptr.hbm [resolvable:$true] %s156_s2 }
  0x27   :  { %s110_s7 = sshll.u32 %s12283_s26, 4  ;;  %s137_s0 = sshll.u32 %s11231_s4, 4  ;;  %s111_s7 = int_to_ptr.hbm [resolvable:$true] %s110_s7  ;;  %s138_s0 = int_to_ptr.vmem [resolvable:$true] %s137_s0 }
  0x28   :  { %s135_s23 = sshll.u32 %s12284_s9, 4  ;;  %s11232_s10 = smov [#allocation18]   ;;  %s136_s23 = int_to_ptr.hbm [resolvable:$true] %s135_s23 }
  0x29   :  { %118 = dma.hbm_to_vmem [thread:$0]  %s111_s7, 8192, %s113_s8, [#allocation13], %s11229_s30, %s11229_s30, %s11230_s25  }
  0x2a   :  { %140 = dma.hbm_to_vmem [thread:$0]  %s136_s23, 64, %s138_s0, [#allocation16]  }
  0x2b   :  { %s158_s6 = sshll.u32 %s11232_s10, 4  ;;  %s183_s27 = sshll.u32 %s12254_s15, 4  ;;  %s159_s6 = int_to_ptr.vmem [resolvable:$true] %s158_s6  ;;  %s184_s27 = int_to_ptr.hbm [resolvable:$true] %s183_s27 }
  0x2c   :  { %s11233_s3 = smov 512   ;;  %s11234_s28 = smov 32  }
  0x2d   :  { %164 = dma.hbm_to_vmem [thread:$0]  %s157_s2, 32768, %s159_s6, [#allocation19], %s11233_s3, %s11233_s3, %s11234_s28  }
  0x2e   :  { %s11235_s7 = smov [#allocation21]   ;;  %s208_s12 = sshll.u32 %s12257_s18, 4  ;;  %s209_s12 = int_to_ptr.hbm [resolvable:$true] %s208_s12 }
  0x2f   :  { %s185_s8 = sshll.u32 %s11235_s7, 4  ;;  %s12285_s0 = sld [smem:[#allocation37_spill]]  ;;  %s186_s8 = int_to_ptr.vmem [resolvable:$true] %s185_s8 }
  0x30   :  { %188 = dma.hbm_to_vmem [thread:$0]  %s184_s27, 128, %s186_s8, [#allocation22]  }
  0x31   :  { %s11236_s5 = smov [#allocation24]   ;;  %s11237_s15 = smov [#allocation3]  }
  0x32   :  { %s210_s10 = sshll.u32 %s11236_s5, 4  ;;  %s50_s2 = sshll.u32 %s11237_s15, 4  ;;  %s211_s10 = int_to_ptr.vmem [resolvable:$true] %s210_s10  ;;  %s51_s2 = int_to_ptr.vmem [resolvable:$true] %s50_s2 }
  0x33   :  { %216 = dma.hbm_to_vmem [thread:$0]  %s209_s12, 8192, %s211_s10, [#allocation25], %s11229_s30, %s11229_s30, %s11230_s25  }
  0x34   :  { %s12286_s18 = sld [smem:[#allocation42_spill]]  ;;  %s11238_s8 = smov [#allocation8]  }
  0x35   :  { %s48_s26 = sshll.u32 %s12285_s0, 4  ;;  %s12287_s28 = sld [smem:[#allocation44_spill]]  ;;  %s49_s26 = int_to_ptr.hbm [resolvable:$true] %s48_s26 }
  0x36   :  { %53 = dma.hbm_to_vmem [thread:$0]  %s49_s26, 64, %s51_s2, [#allocation4]  }
  0x37   :  { %s80_s29 = sshll.u32 %s11238_s8, 4  ;;  %s11239_s9 = smov [#allocation11]   ;;  %s81_s29 = int_to_ptr.vmem [resolvable:$true] %s80_s29 }
  0x38   :  { %s102_s25 = sshll.u32 %s11239_s9, 4  ;;  %s12288_s23 = sld [smem:[#allocation46_spill]]  ;;  %s103_s25 = int_to_ptr.vmem [resolvable:$true] %s102_s25 }
  0x39   :  { %s146_s5 = sshll.u32 %s12250_s11, 4  ;;  %s11240_s10 = smov [#allocation14]   ;;  %s147_s5 = int_to_ptr.hbm [resolvable:$true] %s146_s5 }
  0x3a   :  { %s78_s1 = sshll.u32 %s12286_s18, 4  ;;  %s126_s15 = sshll.u32 %s11240_s10, 4  ;;  %s79_s1 = int_to_ptr.hbm [resolvable:$true] %s78_s1  ;;  %s127_s15 = int_to_ptr.vmem [resolvable:$true] %s126_s15 }
  0x3b   :  { %s100_s7 = sshll.u32 %s12287_s28, 4  ;;  %s11241_s2 = smov [#allocation17]   ;;  %s101_s7 = int_to_ptr.hbm [resolvable:$true] %s100_s7 }
  0x3c   :  { %83 = dma.hbm_to_vmem [thread:$0]  %s79_s1, 32, %s81_s29, [#allocation7]  }
  0x3d   :  { %105 = dma.hbm_to_vmem [thread:$0]  %s101_s7, 32, %s103_s25, [#allocation10]  }
  0x3e   :  { %s124_s4 = sshll.u32 %s12288_s23, 4  ;;  %s148_s6 = sshll.u32 %s11241_s2, 4  ;;  %s125_s4 = int_to_ptr.hbm [resolvable:$true] %s124_s4  ;;  %s149_s6 = int_to_ptr.vmem [resolvable:$true] %s148_s6 }
  0x3f   :  { %129 = dma.hbm_to_vmem [thread:$0]  %s125_s4, 64, %s127_s15, [#allocation13]  }
  0x40   :  { %s172_s1 = sshll.u32 %s12253_s14, 4  ;;  %s193_s28 = sshll.u32 %s12255_s16, 4  ;;  %s173_s1 = int_to_ptr.hbm [resolvable:$true] %s172_s1  ;;  %s194_s28 = int_to_ptr.hbm [resolvable:$true] %s193_s28 }
  0x41   :  { %151 = dma.hbm_to_vmem [thread:$0]  %s147_s5, 64, %s149_s6, [#allocation16]  }
  0x42   :  { %s11242_s7 = smov [#allocation20]   ;;  %s11243_s8 = smov [#allocation23]  }
  0x43   :  { %s174_s11 = sshll.u32 %s11242_s7, 4  ;;  %s195_s29 = sshll.u32 %s11243_s8, 4  ;;  %s175_s11 = int_to_ptr.vmem [resolvable:$true] %s174_s11  ;;  %s196_s29 = int_to_ptr.vmem [resolvable:$true] %s195_s29 }
  0x44   :  { %177 = dma.hbm_to_vmem [thread:$0]  %s173_s1, 128, %s175_s11, [#allocation19]  }
  0x45   :  { %s11244_s9 = smov 128   ;;  %s11245_s25 = smov 8  }
  0x46   :  { %201 = dma.hbm_to_vmem [thread:$0]  %s194_s28, 16384, %s196_s29, [#allocation22], %s11244_s9, %s11244_s9, %s11245_s25  }
  0x47   :  { %s223_s12 = sshll.u32 %s12259_s20, 4  ;;  %s11246_s23 = smov [#allocation26]   ;;  %s224_s12 = int_to_ptr.hbm [resolvable:$true] %s223_s12 }
  0x48   :  { %s225_s4 = sshll.u32 %s11246_s23, 4  ;;  %s226_s4 = int_to_ptr.vmem [resolvable:$true] %s225_s4 }
  0x49   :  { %231 = dma.hbm_to_vmem [thread:$0]  %s224_s12, 8192, %s226_s4, [#allocation25], %s11244_s9, %s11244_s9, %s11245_s25  }
  0x4a   :  { %11206 = dma.done.wait [#allocation4], 64  }
  0x4b   :  { %11207 = vsyncadd [#allocation4], 4294967232 }
  0x4c   :  { %11208 = dma.done.wait [#allocation7], 1056  }
  0x4d   :  { %11209 = vsyncadd [#allocation7], 4294966240 }
  0x4e   :  { %11210 = dma.done.wait [#allocation10], 64  }
  0x4f   :  { %11211 = vsyncadd [#allocation10], 4294967232 }
  0x50   :  { %11212 = dma.done.wait [#allocation13], 8256  }
  0x51   :  { %11213 = vsyncadd [#allocation13], 4294959040 }
  0x52   :  { %11214 = dma.done.wait [#allocation16], 128  }
  0x53   :  { %11215 = vsyncadd [#allocation16], 4294967168 }
  0x54   :  { %11216 = dma.done.wait [#allocation19], 32896  }
  0x55   :  { %11217 = vsyncadd [#allocation19], 4294934400 }
  0x56   :  { %11218 = dma.done.wait [#allocation22], 16512  }
  0x57   :  { %11219 = vsyncadd [#allocation22], 4294950784 }
  0x58   :  { %11220 = dma.done.wait [#allocation25], 16384  }
  0x59   :  { %11221 = vsyncadd [#allocation25], 4294950912  ;;  %v10000_v1 = vld [vmem:[#allocation6 + $0x38] sm:$0xff]  ;;  %v9999_v2 = vld [vmem:[#allocation6 + $0x30] sm:$0xff]  ;;  %s12289_s0 = sld [smem:[#allocation41_spill]]  ;;  %vm515_vm1 = vcmask 1041408  }
  0x5a   :  { %368 = vmatpush.bf16.msra.mxu0 %v10000_v1  ;;  %v9998_v13 = vld [vmem:[#allocation6 + $0x28] sm:$0xff]  ;;  %v9997_v20 = vld [vmem:[#allocation6 + $0x20] sm:$0xff]  ;;  %v9996_v27 = vld [vmem:[#allocation6 + $0x18] sm:$0xff]  ;;  %s12290_s16 = sld [smem:[#allocation38_spill]] }
  0x5b   :  { %v9995_v34 = vld [vmem:[#allocation6 + $0x10] sm:$0xff]  ;;  %v9994_v41 = vld [vmem:[#allocation6 + $0x8] sm:$0xff]  ;;  %v9993_v44 = vld [vmem:[#allocation6] sm:$0xff]  ;;  %s12291_s25 = sld [smem:[#allocation40_spill]] }
  0x5c   :  { %s12292_s18 = sld [smem:[#allocation49_spill]] }
  0x5d   :  { %s12293_s29 = sld [smem:[#allocation48_spill]] }
  0x5e   :  { %369 = vmatpush.bf16.msra.mxu0 %v9999_v2  ;;  %v11247_v2 = vmov 2.0   ;;  %s12294_s30 = sld [smem:[#allocation50_spill]] }
  0x5f   :  { %v7043_v3 = vld [vmem:[%s12289_s0 + $0x70] sm:$0xf]  ;;  %v10016_v4 = vld [vmem:[%s12289_s0 + $0x74] sm:$0xf0]  ;;  %v10015_v5 = vld [vmem:[%s12289_s0 + $0x74] sm:$0xf]  ;;  %10781 = vrcp.f32 %v11247_v2 }
  0x60   :  { %v7044_v6 = vor.u32 %v10016_v4, %v7043_v3  ;;  %v7045_v7 = vld [vmem:[%s12289_s0 + $0x78] sm:$0xf0]  ;;  %v7035_v8 = vld [vmem:[%s12289_s0 + $0x60] sm:$0xf]  ;;  %v10014_v9 = vld [vmem:[%s12289_s0 + $0x64] sm:$0xf0] }
  0x61   :  { %v7048_v10 = vor.u32 %v10015_v5, %v7045_v7  ;;  %v10013_v11 = vld [vmem:[%s12289_s0 + $0x64] sm:$0xf]  ;;  %v7037_v12 = vld [vmem:[%s12289_s0 + $0x68] sm:$0xf0]  ;;  %v7036_v14 = vor.u32 %v10014_v9, %v7035_v8  ;;  %v7027_v16 = vld [vmem:[%s12289_s0 + $0x50] sm:$0xf] }
  0x62   :  { %487 = vmatpush.bf16.msra.mxu1 %v7044_v6  ;;  %v7040_v15 = vor.u32 %v10013_v11, %v7037_v12  ;;  %v10012_v17 = vld [vmem:[%s12289_s0 + $0x54] sm:$0xf0]  ;;  %v10011_v18 = vld [vmem:[%s12289_s0 + $0x54] sm:$0xf]  ;;  %v7029_v19 = vld [vmem:[%s12289_s0 + $0x58] sm:$0xf0]  ;;  %370 = vmatpush.bf16.msra.mxu0 %v9998_v13 }
  0x63   :  { %500 = vmatpush.bf16.msra.mxu2 %v7048_v10  ;;  %v7028_v21 = vor.u32 %v10012_v17, %v7027_v16  ;;  %v7019_v22 = vld [vmem:[%s12289_s0 + $0x40] sm:$0xf]  ;;  %v7032_v23 = vor.u32 %v10011_v18, %v7029_v19  ;;  %v10010_v24 = vld [vmem:[%s12289_s0 + $0x44] sm:$0xf0]  ;;  %v10009_v25 = vld [vmem:[%s12289_s0 + $0x44] sm:$0xf] }
  0x64   :  { %v7021_v26 = vld [vmem:[%s12289_s0 + $0x48] sm:$0xf0]  ;;  %v7020_v28 = vor.u32 %v10010_v24, %v7019_v22  ;;  %v7011_v30 = vld [vmem:[%s12289_s0 + $0x30] sm:$0xf]  ;;  %v10008_v31 = vld [vmem:[%s12289_s0 + $0x34] sm:$0xf0] }
  0x65   :  { %v7024_v29 = vor.u32 %v10009_v25, %v7021_v26  ;;  %v10007_v32 = vld [vmem:[%s12289_s0 + $0x34] sm:$0xf]  ;;  %v7013_v33 = vld [vmem:[%s12289_s0 + $0x38] sm:$0xf0]  ;;  %v7012_v35 = vor.u32 %v10008_v31, %v7011_v30  ;;  %v7003_v37 = vld [vmem:[%s12289_s0 + $0x20] sm:$0xf]  ;;  %v11542_v10 = vpop.eup %10781 }
  0x66   :  { %488 = vmatpush.bf16.msra.mxu1 %v7036_v14  ;;  %371 = vmatpush.bf16.msra.mxu0 %v9997_v20  ;;  %v7016_v36 = vor.u32 %v10007_v32, %v7013_v33  ;;  %v10006_v38 = vld [vmem:[%s12289_s0 + $0x24] sm:$0xf0]  ;;  %v10005_v39 = vld [vmem:[%s12289_s0 + $0x24] sm:$0xf]  ;;  %v7005_v40 = vld [vmem:[%s12289_s0 + $0x28] sm:$0xf0]  ;;  %vm535_vm2 = vweird.f32 %v11542_v10 }
  0x67   :  { %501 = vmatpush.bf16.msra.mxu2 %v7040_v15  ;;  %v7004_v42 = vor.u32 %v10006_v38, %v7003_v37  ;;  %v7008_v43 = vor.u32 %v10005_v39, %v7005_v40  ;;  %v298_v45 = vld [vmem:[%s12290_s16] sm:$0x3]  ;;  %v6995_v47 = vld [vmem:[%s12289_s0 + $0x10] sm:$0xf]  ;;  %v10004_v48 = vld [vmem:[%s12289_s0 + $0x14] sm:$0xf0] }
  0x68   :  { %v299_v46 = vpack.c.bf16 %v298_v45, %v298_v45  ;;  %v10003_v49 = vld [vmem:[%s12289_s0 + $0x14] sm:$0xf]  ;;  %v6996_v50 = vor.u32 %v10004_v48, %v6995_v47  ;;  %v6997_v51 = vld [vmem:[%s12289_s0 + $0x18] sm:$0xf0]  ;;  %v6987_v53 = vld [vmem:[%s12289_s0] sm:$0xf] }
  0x69   :  { %v7000_v52 = vor.u32 %v10003_v49, %v6997_v51  ;;  %v10002_v54 = vld [vmem:[%s12289_s0 + $0x4] sm:$0xf0]  ;;  %v10001_v55 = vld [vmem:[%s12289_s0 + $0x4] sm:$0xf]  ;;  %v6989_v57 = vld [vmem:[%s12289_s0 + $0x8] sm:$0xf0] }
  0x6a   :  { %489 = vmatpush.bf16.msra.mxu1 %v7028_v21  ;;  %372 = vmatpush.bf16.msra.mxu0 %v9996_v27  ;;  %v6988_v56 = vor.u32 %v10002_v54, %v6987_v53  ;;  %v6992_v58 = vor.u32 %v10001_v55, %v6989_v57  ;;  %v10778_v59 = vld [vmem:[%s12291_s25] ss:$0 sm:$0xff]  ;;  %v7163_v3 = vld [vmem:[#allocation12 + $0xe0] sm:$0xf]  ;;  %v10047_v4 = vld [vmem:[#allocation12 + $0xec] sm:$0xf0] }
  0x6b   :  { %502 = vmatpush.bf16.msra.mxu2 %v7032_v23  ;;  %v10045_v5 = vld [vmem:[#allocation12 + $0xe4] sm:$0xf]  ;;  %v7164_v6 = vor.u32 %v10047_v4, %v7163_v3  ;;  %v7165_v7 = vld [vmem:[#allocation12 + $0xf0] sm:$0xf0]  ;;  %v11540_v9 = vld [vmem:[#allocation8] sm:$0x3] }
  0x6c   :  { %v7168_v8 = vor.u32 %v10045_v5, %v7165_v7  ;;  %v7147_v11 = vld [vmem:[#allocation12 + $0xc0] sm:$0xf]  ;;  %v10043_v12 = vld [vmem:[#allocation12 + $0xcc] sm:$0xf0]  ;;  %v10041_v13 = vld [vmem:[#allocation12 + $0xc4] sm:$0xf] }
  0x6d   :  { %999 = vmatpush.bf16.msra.mxu3 %v7164_v6  ;;  %v7148_v14 = vor.u32 %v10043_v12, %v7147_v11  ;;  %v7149_v15 = vld [vmem:[#allocation12 + $0xd0] sm:$0xf0]  ;;  %v7291_v17 = vld [vmem:[#allocation12 + $0x1e0] sm:$0xf]  ;;  %v10079_v18 = vld [vmem:[#allocation12 + $0x1ec] sm:$0xf0] }
  0x6e   :  { %490 = vmatpush.bf16.msra.mxu1 %v7020_v28  ;;  %373 = vmatpush.bf16.msra.mxu0 %v9995_v34  ;;  %v7152_v16 = vor.u32 %v10041_v13, %v7149_v15  ;;  %v10077_v19 = vld [vmem:[#allocation12 + $0x1e4] sm:$0xf]  ;;  %v403_v20 = vperm.slane %v11540_v9, 0  ;;  %v531_v21 = vmul.f32 2.0, %v11542_v10  ;;  %v7292_v22 = vor.u32 %v10079_v18, %v7291_v17  ;;  %v7293_v23 = vld [vmem:[#allocation12 + $0x1f0] sm:$0xf0] }
  0x6f   :  { %503 = vmatpush.bf16.msra.mxu2 %v7024_v29  ;;  %v7296_v24 = vor.u32 %v10077_v19, %v7293_v23  ;;  %v7131_v25 = vld [vmem:[#allocation12 + $0xa0] sm:$0xf]  ;;  %v10039_v26 = vld [vmem:[#allocation12 + $0xac] sm:$0xf0]  ;;  %v10037_v27 = vld [vmem:[#allocation12 + $0xa4] sm:$0xf] }
  0x70   :  { %v7132_v28 = vor.u32 %v10039_v26, %v7131_v25  ;;  %v7133_v29 = vld [vmem:[#allocation12 + $0xb0] sm:$0xf0]  ;;  %v7275_v31 = vld [vmem:[#allocation12 + $0x1c0] sm:$0xf]  ;;  %v10075_v32 = vld [vmem:[#allocation12 + $0x1cc] sm:$0xf0] }
  0x71   :  { %1000 = vmatpush.bf16.msra.mxu3 %v7148_v14  ;;  %v7136_v30 = vor.u32 %v10037_v27, %v7133_v29  ;;  %v10073_v33 = vld [vmem:[#allocation12 + $0x1c4] sm:$0xf]  ;;  %v7277_v37 = vld [vmem:[#allocation12 + $0x1d0] sm:$0xf0]  ;;  %v7115_v40 = vld [vmem:[#allocation12 + $0x80] sm:$0xf] }
  0x72   :  { %491 = vmatpush.bf16.msra.mxu1 %v7012_v35  ;;  %374 = vmatpush.bf16.msra.mxu0 %v9994_v41  ;;  %v532_v35 = vsub.f32 1.0, %v531_v21  ;;  %v7280_v39 = vor.u32 %v10073_v33, %v7277_v37  ;;  %v10035_v41 = vld [vmem:[#allocation12 + $0x8c] sm:$0xf0]  ;;  %v7259_v48 = vld [vmem:[#allocation12 + $0x1a0] sm:$0xf]  ;;  %s6928_s9 = sshll.u32 %s12293_s29, 4  ;;  %s6929_s9 = int_to_ptr.hbm [resolvable:$true] %s6928_s9 }
  0x73   :  { %504 = vmatpush.bf16.msra.mxu2 %v7016_v36  ;;  %v7276_v36 = vor.u32 %v10075_v32, %v7275_v31  ;;  %v10071_v49 = vld [vmem:[#allocation12 + $0x1ac] sm:$0xf0]  ;;  %v7261_v53 = vld [vmem:[#allocation12 + $0x1b0] sm:$0xf0]  ;;  %v10065_v3 = vld [vmem:[#allocation12 + $0x184] sm:$0xf] }
  0x74   :  { %v7260_v51 = vor.u32 %v10071_v49, %v7259_v48  ;;  %v533_v54 = vmul.f32 %v11542_v10, %v532_v35  ;;  %v10031_v57 = vld [vmem:[#allocation12 + $0x6c] sm:$0xf0]  ;;  %v7245_v7 = vld [vmem:[#allocation12 + $0x190] sm:$0xf0]  ;;  %v7083_v12 = vld [vmem:[#allocation12 + $0x40] sm:$0xf] }
  0x75   :  { %1001 = vmatpush.bf16.msra.mxu3 %v7132_v28  ;;  %v10067_v2 = vld [vmem:[#allocation12 + $0x18c] sm:$0xf0]  ;;  %v7248_v11 = vor.u32 %v10065_v3, %v7245_v7  ;;  %v10025_v17 = vld [vmem:[#allocation12 + $0x44] sm:$0xf]  ;;  %v7085_v18 = vld [vmem:[#allocation12 + $0x50] sm:$0xf0] }
  0x76   :  { %492 = vmatpush.bf16.msra.mxu1 %v7004_v42  ;;  %375 = vmatpush.bf16.msra.mxu0 %v9993_v44  ;;  %v10033_v42 = vld [vmem:[#allocation12 + $0x84] sm:$0xf]  ;;  %v7117_v44 = vld [vmem:[#allocation12 + $0x90] sm:$0xf0]  ;;  %v10027_v13 = vld [vmem:[#allocation12 + $0x4c] sm:$0xf0]  ;;  %v7088_v19 = vor.u32 %v10025_v17, %v7085_v18 }
  0x77   :  { %505 = vmatpush.bf16.msra.mxu2 %v7008_v43  ;;  %v7116_v43 = vor.u32 %v10035_v41, %v7115_v40  ;;  %v7120_v47 = vor.u32 %v10033_v42, %v7117_v44  ;;  %v10063_v21 = vld [vmem:[#allocation12 + $0x16c] sm:$0xf0]  ;;  %v7229_v26 = vld [vmem:[#allocation12 + $0x170] sm:$0xf0]  ;;  %v7067_v29 = vld [vmem:[#allocation12 + $0x20] sm:$0xf] }
  0x78   :  { %v10021_v31 = vld [vmem:[#allocation12 + $0x24] sm:$0xf]  ;;  %v10059_v40 = vld [vmem:[#allocation12 + $0x14c] sm:$0xf0]  ;;  %v7213_v44 = vld [vmem:[#allocation12 + $0x150] sm:$0xf0] }
  0x79   :  { %376 = vmatmul.bf16.vlgmr.msra.gmra.mxu0 %v299_v46  ;;  %v404_v46 = vperm.slane %v11540_v9, 1  ;;  %1002 = vmatpush.bf16.msra.mxu3 %v7116_v43  ;;  %v10057_v41 = vld [vmem:[#allocation12 + $0x144] sm:$0xf]  ;;  %v10044_v7 = vld [vmem:[#allocation12 + $0xd4] sm:$0xf0] }
  0x7a   :  { %493 = vmatpush.bf16.msra.mxu1 %v6996_v50  ;;  %1012 = vmatpush.bf16.msrb.mxu0 %v7292_v22  ;;  %v10061_v22 = vld [vmem:[#allocation12 + $0x164] sm:$0xf] }
  0x7b   :  { %506 = vmatpush.bf16.msra.mxu2 %v7000_v52  ;;  %v10069_v52 = vld [vmem:[#allocation12 + $0x1a4] sm:$0xf]  ;;  %v7232_v28 = vor.u32 %v10061_v22, %v7229_v26  ;;  %v7301_v26 = vld [vmem:[#allocation12 + $0x1f8] sm:$0xf0] }
  0x7c   :  { %v7264_v55 = vor.u32 %v10069_v52, %v7261_v53  ;;  %v10017_v48 = vld [vmem:[#allocation12 + $0x4] sm:$0xf]  ;;  %v7053_v52 = vld [vmem:[#allocation12 + $0x10] sm:$0xf0]  ;;  %v7171_v53 = vld [vmem:[#allocation12 + $0xe8] sm:$0xf] }
  0x7d   :  { %v10049_v17 = vld [vmem:[#allocation12 + $0x104] sm:$0xf] }
  0x7e   :  { %494 = vmatpush.bf16.msra.mxu1 %v6988_v56  ;;  %1013 = vmatpush.bf16.msrb.mxu0 %v7276_v36  ;;  %v7099_v56 = vld [vmem:[#allocation12 + $0x60] sm:$0xf]  ;;  %v7069_v36 = vld [vmem:[#allocation12 + $0x30] sm:$0xf0] }
  0x7f   :  { %507 = vmatpush.bf16.msra.mxu2 %v6992_v58  ;;  %v10029_v58 = vld [vmem:[#allocation12 + $0x64] sm:$0xf]  ;;  %v7072_v37 = vor.u32 %v10021_v31, %v7069_v36  ;;  %v10040_v31 = vld [vmem:[#allocation12 + $0xb4] sm:$0xf0] }
  0x82   :  { %1025 = vmatpush.bf16.msrb.mxu1 %v7168_v8  ;;  %1014 = vmatpush.bf16.msrb.mxu0 %v7260_v51  ;;  %v534_v8 = vadd.f32 %v11542_v10, %v533_v54  ;;  %v7056_v54 = vor.u32 %v10017_v48, %v7053_v52  ;;  %v10036_v48 = vld [vmem:[#allocation12 + $0x94] sm:$0xf0]  ;;  %v7125_v52 = vld [vmem:[#allocation12 + $0x98] sm:$0xf0] }
  0x83   :  { %1038 = vmatpush.bf16.msrb.mxu2 %v7296_v24 }
  0x84   :  { %v11561_v27 = vsel %vm535_vm2, %v11542_v10, %v534_v8 }
  0x86   :  { %1026 = vmatpush.bf16.msrb.mxu1 %v7152_v16  ;;  %v7084_v16 = vor.u32 %v10027_v13, %v7083_v12  ;;  %v7157_v12 = vld [vmem:[#allocation12 + $0xd8] sm:$0xf0] }
  0x87   :  { %1039 = vmatpush.bf16.msrb.mxu2 %v7280_v39  ;;  %v7211_v39 = vld [vmem:[#allocation12 + $0x140] sm:$0xf] }
  0x88   :  { %v7212_v43 = vor.u32 %v10059_v40, %v7211_v39  ;;  %v7283_v40 = vld [vmem:[#allocation12 + $0x1c8] sm:$0xf] }
  0x8a   :  { %1027 = vmatpush.bf16.msrb.mxu1 %v7136_v30  ;;  %v10023_v30 = vld [vmem:[#allocation12 + $0x2c] sm:$0xf0] }
  0x8b   :  { %1040 = vmatpush.bf16.msrb.mxu2 %v7264_v55  ;;  %v7068_v35 = vor.u32 %v10023_v30, %v7067_v29  ;;  %v10048_v55 = vld [vmem:[#allocation12 + $0xf4] sm:$0xf0]  ;;  %v7139_v30 = vld [vmem:[#allocation12 + $0xa8] sm:$0xf] }
  0x8e   :  { %1028 = vmatpush.bf16.msrb.mxu1 %v7120_v47  ;;  %v10019_v47 = vld [vmem:[#allocation12 + $0xc] sm:$0xf0] }
  0x8f   :  { %1041 = vmatpush.bf16.msrb.mxu2 %v7248_v11  ;;  %v10042_v11 = vld [vmem:[#allocation12 + $0xcc] sm:$0xf] }
  0x93   :  { %1042 = vmatpush.bf16.msrb.mxu2 %v7232_v28 }
  0xf6   :  { %v377_v60 = vpop.f32.mrf.mxu0 }
  0xf7   :  { %v378_v61 = vadd.f32 %v10778_v59, %v377_v60 }
  0xf9   :  { %v382_v62 = vmul.f32 0.2, %v378_v61  ;;  %vm381_vm0 = vcmp.ge.f32.partialorder %v378_v61, 0.0 }
  0xfb   :  { %v383_v63 = vsel %vm381_vm0, %v378_v61, %v382_v62  ;;  %v7100_v61 = vor.u32 %v10031_v57, %v7099_v56  ;;  %v7101_v62 = vld [vmem:[#allocation12 + $0x70] sm:$0xf0]  ;;  %v10046_v56 = vld [vmem:[#allocation12 + $0xec] sm:$0xf]  ;;  %v7173_v57 = vld [vmem:[#allocation12 + $0xf8] sm:$0xf0] }
  0xfc   :  { %v384_v0 = vpack.c.bf16 %v383_v63, %v383_v63 }
  0xfd   :  { %1003 = vmatpush.bf16.msra.mxu3 %v7100_v61  ;;  %v7176_v61 = vor.u32 %v10046_v56, %v7173_v57 }
  0xfe   :  { %v379_v1 = vpop.f32.mrf.mxu0  ;;  %495 = vmatmul.bf16.vlgmr.msra.gmra.mxu1 %v384_v0  ;;  %508 = vmatmul.bf16.vlgmr.msra.gmra.mxu2 %v384_v0  ;;  %v7104_v0 = vor.u32 %v10029_v58, %v7101_v62  ;;  %v7195_v62 = vld [vmem:[#allocation12 + $0x120] sm:$0xf] }
  0xff   :  { %v7243_v1 = vld [vmem:[#allocation12 + $0x180] sm:$0xf] }
 0x100   :  { %v7244_v6 = vor.u32 %v10067_v2, %v7243_v1  ;;  %1029 = vmatpush.bf16.msrb.mxu1 %v7104_v0  ;;  %v10053_v0 = vld [vmem:[#allocation12 + $0x124] sm:$0xf]  ;;  %v7197_v2 = vld [vmem:[#allocation12 + $0x130] sm:$0xf0] }
 0x101   :  { %1004 = vmatpush.bf16.msra.mxu3 %v7084_v16  ;;  %v10051_v16 = vld [vmem:[#allocation12 + $0x10c] sm:$0xf0] }
 0x102   :  { %1015 = vmatpush.bf16.msrb.mxu0 %v7244_v6  ;;  %v7155_v6 = vld [vmem:[#allocation12 + $0xc8] sm:$0xf] }
 0x104   :  { %1030 = vmatpush.bf16.msrb.mxu1 %v7088_v19 }
 0x105   :  { %1005 = vmatpush.bf16.msra.mxu3 %v7068_v35  ;;  %v7141_v35 = vld [vmem:[#allocation12 + $0xb8] sm:$0xf0] }
 0x108   :  { %1031 = vmatpush.bf16.msrb.mxu1 %v7072_v37 }
 0x10c   :  { %1032 = vmatpush.bf16.msrb.mxu1 %v7056_v54  ;;  %v10072_v54 = vld [vmem:[#allocation12 + $0x1b4] sm:$0xf0] }
 0x110   :  { %1077 = vmatpush.bf16.msra.mxu1 %v7176_v61 }
 0x17b   :  { %v496_v34 = vpop.f32.mrf.mxu1 }
 0x17c   :  { %v11546_v38 = vadd.f32 %v496_v34, %v403_v20  ;;  %v7227_v20 = vld [vmem:[#allocation12 + $0x160] sm:$0xf] }
 0x17d   :  { %v7228_v25 = vor.u32 %v10063_v21, %v7227_v20  ;;  %v7181_v20 = vld [vmem:[#allocation12 + $0x110] sm:$0xf0]  ;;  %v7299_v21 = vld [vmem:[#allocation12 + $0x1e8] sm:$0xf] }
 0x17e   :  { %v516_v45 = vsel %vm515_vm1, %v11546_v38, 0.0 }
 0x17f   :  { %v517_v50 = vrot.slane %v516_v45, 4  ;;  %1016 = vmatpush.bf16.msrb.mxu0 %v7228_v25  ;;  %v10078_v25 = vld [vmem:[#allocation12 + $0x1ec] sm:$0xf] }
 0x180   :  { %v7304_v29 = vor.u32 %v10078_v25, %v7301_v26  ;;  %v10062_v25 = vld [vmem:[#allocation12 + $0x16c] sm:$0xf] }
 0x181   :  { %v518_v59 = vadd.f32 %v517_v50, %v516_v45  ;;  %v509_v60 = vpop.f32.mrf.mxu2  ;;  %v7216_v45 = vor.u32 %v10057_v41, %v7213_v44  ;;  %v10076_v41 = vld [vmem:[#allocation12 + $0x1d4] sm:$0xf0]  ;;  %v7123_v44 = vld [vmem:[#allocation12 + $0x88] sm:$0xf] }
 0x182   :  { %v11552_v63 = vadd.f32 %v509_v60, %v404_v46  ;;  %v7051_v46 = vld [vmem:[#allocation12] sm:$0xf]  ;;  %v7172_v60 = vor.u32 %v10048_v55, %v7171_v53  ;;  %v7267_v53 = vld [vmem:[#allocation12 + $0x1a8] sm:$0xf] }
 0x183   :  { %v519_v4 = vrot.slane %v518_v59, 2  ;;  %v498_v5 = vpop.f32.mrf.mxu1  ;;  %1017 = vmatpush.bf16.msrb.mxu0 %v7212_v43  ;;  %v7052_v51 = vor.u32 %v10019_v47, %v7051_v46  ;;  %1043 = vmatpush.bf16.msrb.mxu2 %v7216_v45  ;;  %v7285_v43 = vld [vmem:[#allocation12 + $0x1d8] sm:$0xf0] }
 0x184   :  { %v523_v9 = vsel %vm515_vm1, %v11552_v63, 0.0  ;;  %v7200_v5 = vor.u32 %v10053_v0, %v7197_v2  ;;  %v10030_v0 = vld [vmem:[#allocation12 + $0x6c] sm:$0xf] }
 0x185   :  { %v520_v14 = vadd.f32 %v519_v4, %v518_v59  ;;  %v524_v15 = vrot.slane %v523_v9, 4  ;;  %1006 = vmatpush.bf16.msra.mxu3 %v7052_v51  ;;  %v7124_v51 = vor.u32 %v10036_v48, %v7123_v44  ;;  %v7059_v44 = vld [vmem:[#allocation12 + $0x8] sm:$0xf] }
 0x187   :  { %v521_v23 = vrot.slane %v520_v14, 1  ;;  %v525_v24 = vadd.f32 %v524_v15, %v523_v9  ;;  %v7156_v9 = vor.u32 %v10044_v7, %v7155_v6  ;;  %1044 = vmatpush.bf16.msrb.mxu2 %v7200_v5  ;;  %v7179_v15 = vld [vmem:[#allocation12 + $0x100] sm:$0xf]  ;;  %v7251_v6 = vld [vmem:[#allocation12 + $0x188] sm:$0xf] }
 0x188   :  { %v7180_v19 = vor.u32 %v10051_v16, %v7179_v15  ;;  %v10068_v7 = vld [vmem:[#allocation12 + $0x194] sm:$0xf0]  ;;  %v7091_v16 = vld [vmem:[#allocation12 + $0x48] sm:$0xf] }
 0x189   :  { %v522_v32 = vadd.f32 %v521_v23, %v520_v14  ;;  %v526_v33 = vrot.slane %v525_v24, 2  ;;  %v511_v34 = vpop.f32.mrf.mxu2  ;;  %1051 = vmatpush.bf16.msrb.mxu3 %v7172_v60  ;;  %v7160_v14 = vor.u32 %v10042_v11, %v7157_v12  ;;  %v7184_v23 = vor.u32 %v10049_v17, %v7181_v20  ;;  %v10028_v17 = vld [vmem:[#allocation12 + $0x54] sm:$0xf0] }
 0x18a   :  { %v10038_v34 = vld [vmem:[#allocation12 + $0xac] sm:$0xf]  ;;  %v7268_v60 = vor.u32 %v10072_v54, %v7267_v53  ;;  %v7252_v12 = vor.u32 %v10068_v7, %v7251_v6  ;;  %v7092_v20 = vor.u32 %v10028_v17, %v7091_v16 }
 0x18b   :  { %v537_v42 = vmul.f32 %v11561_v27, %v522_v32  ;;  %v527_v10 = vadd.f32 %v526_v33, %v525_v24  ;;  %1078 = vmatpush.bf16.msra.mxu1 %v7160_v14  ;;  %v10080_v24 = vld [vmem:[#allocation12 + $0x1f4] sm:$0xf0]  ;;  %1045 = vmatpush.bf16.msrb.mxu2 %v7184_v23  ;;  %v7140_v33 = vor.u32 %v10040_v31, %v7139_v30  ;;  %v7253_v14 = vld [vmem:[#allocation12 + $0x198] sm:$0xf0]  ;;  %v7235_v23 = vld [vmem:[#allocation12 + $0x168] sm:$0xf] }
 0x18c   :  { %v7300_v28 = vor.u32 %v10080_v24, %v7299_v21  ;;  %v7144_v39 = vor.u32 %v10038_v34, %v7141_v35  ;;  %v7093_v21 = vld [vmem:[#allocation12 + $0x58] sm:$0xf0]  ;;  %v10064_v24 = vld [vmem:[#allocation12 + $0x174] sm:$0xf0]  ;;  %v7075_v30 = vld [vmem:[#allocation12 + $0x28] sm:$0xf] }
 0x18d   :  { %v11565_v49 = vsub.f32 %v11546_v38, %v537_v42  ;;  %v528_v50 = vrot.slane %v527_v10, 1  ;;  %v10055_v38 = vld [vmem:[#allocation12 + $0x12c] sm:$0xf0]  ;;  %1052 = vmatpush.bf16.msrb.mxu3 %v7156_v9  ;;  %v7284_v42 = vor.u32 %v10076_v41, %v7283_v40  ;;  %v10024_v31 = vld [vmem:[#allocation12 + $0x34] sm:$0xf0] }
 0x18e   :  { %v7196_v1 = vor.u32 %v10055_v38, %v7195_v62  ;;  %v7107_v62 = vld [vmem:[#allocation12 + $0x68] sm:$0xf]  ;;  %v10032_v38 = vld [vmem:[#allocation12 + $0x74] sm:$0xf0]  ;;  %v7076_v34 = vor.u32 %v10024_v31, %v7075_v30  ;;  %v7077_v35 = vld [vmem:[#allocation12 + $0x38] sm:$0xf0] }
 0x18f   :  { %v541_v58 = vmul.f32 %v11565_v49, %v11565_v49  ;;  %v529_v59 = vadd.f32 %v528_v50, %v527_v10  ;;  %1090 = vmatpush.bf16.msra.mxu2 %v7304_v29  ;;  %v10074_v10 = vld [vmem:[#allocation12 + $0x1cc] sm:$0xf]  ;;  %1079 = vmatpush.bf16.msra.mxu1 %v7144_v39  ;;  %v10060_v39 = vld [vmem:[#allocation12 + $0x154] sm:$0xf0]  ;;  %v7221_v41 = vld [vmem:[#allocation12 + $0x158] sm:$0xf0] }
 0x190   :  { %1018 = vmatpush.bf16.msrb.mxu0 %v7196_v1  ;;  %v7288_v47 = vor.u32 %v10074_v10, %v7285_v43  ;;  %v10034_v50 = vld [vmem:[#allocation12 + $0x8c] sm:$0xf] }
 0x191   :  { %v543_v3 = vsel %vm515_vm1, %v541_v58, 0.0  ;;  %v538_v4 = vmul.f32 %v11561_v27, %v529_v59  ;;  %1053 = vmatpush.bf16.msrb.mxu3 %v7140_v33  ;;  %v7128_v57 = vor.u32 %v10034_v50, %v7125_v52  ;;  %v10070_v58 = vld [vmem:[#allocation12 + $0x1ac] sm:$0xf]  ;;  %v7269_v59 = vld [vmem:[#allocation12 + $0x1b8] sm:$0xf0] }
 0x192   :  { %v544_v8 = vrot.slane %v543_v3, 4  ;;  %v7272_v61 = vor.u32 %v10070_v58, %v7269_v59  ;;  %v10058_v40 = vld [vmem:[#allocation12 + $0x14c] sm:$0xf]  ;;  %v7061_v50 = vld [vmem:[#allocation12 + $0x18] sm:$0xf0] }
 0x193   :  { %v11572_v13 = vsub.f32 %v11552_v63, %v538_v4  ;;  %1091 = vmatpush.bf16.msra.mxu2 %v7288_v47  ;;  %1080 = vmatpush.bf16.msra.mxu1 %v7128_v57  ;;  %v7109_v4 = vld [vmem:[#allocation12 + $0x78] sm:$0xf0]  ;;  %v7224_v43 = vor.u32 %v10058_v40, %v7221_v41  ;;  %v10056_v52 = vld [vmem:[#allocation12 + $0x134] sm:$0xf0]  ;;  %v10054_v54 = vld [vmem:[#allocation12 + $0x12c] sm:$0xf] }
 0x194   :  { %v545_v18 = vadd.f32 %v544_v8, %v543_v3  ;;  %1019 = vmatpush.bf16.msrb.mxu0 %v7180_v19  ;;  %v7108_v3 = vor.u32 %v10032_v38, %v7107_v62  ;;  %v7112_v5 = vor.u32 %v10030_v0, %v7109_v4  ;;  %v10066_v8 = vld [vmem:[#allocation12 + $0x18c] sm:$0xf]  ;;  %v7187_v0 = vld [vmem:[#allocation12 + $0x108] sm:$0xf]  ;;  %v7189_v4 = vld [vmem:[#allocation12 + $0x118] sm:$0xf0] }
 0x195   :  { %v542_v22 = vmul.f32 %v11572_v13, %v11572_v13  ;;  %1054 = vmatpush.bf16.msrb.mxu3 %v7124_v51  ;;  %v7256_v15 = vor.u32 %v10066_v8, %v7253_v14  ;;  %v7203_v51 = vld [vmem:[#allocation12 + $0x128] sm:$0xf]  ;;  %v10141_v31 = vld [vmem:[#allocation18 + $0x1dc] sm:$0xf0] }
 0x196   :  { %v546_v63 = vrot.slane %v545_v18, 2  ;;  %v7204_v57 = vor.u32 %v10056_v52, %v7203_v51  ;;  %v7467_v40 = vld [vmem:[#allocation18 + $0x140] sm:$0xf] }
 0x197   :  { %v550_v32 = vsel %vm515_vm1, %v542_v22, 0.0  ;;  %1092 = vmatpush.bf16.msra.mxu2 %v7272_v61  ;;  %1081 = vmatpush.bf16.msra.mxu1 %v7112_v5  ;;  %v513_v61 = vld [vmem:[#allocation9] sm:$0x3]  ;;  %v514_v5 = vld [vmem:[#allocation11] sm:$0x3] }
 0x198   :  { %v547_v36 = vadd.f32 %v546_v63, %v545_v18  ;;  %v551_v37 = vrot.slane %v550_v32, 4  ;;  %1064 = vmatpush.bf16.msra.mxu0 %v7300_v28  ;;  %v10026_v18 = vld [vmem:[#allocation12 + $0x4c] sm:$0xf]  ;;  %v7236_v63 = vor.u32 %v10064_v24, %v7235_v23  ;;  %v7237_v28 = vld [vmem:[#allocation12 + $0x178] sm:$0xf0]  ;;  %v591_v16 = vperm.slane %v514_v5, 0 }
 0x199   :  { %1055 = vmatpush.bf16.msrb.mxu3 %v7108_v3  ;;  %v7096_v22 = vor.u32 %v10026_v18, %v7093_v21  ;;  %v7240_v29 = vor.u32 %v10062_v25, %v7237_v28  ;;  %v10050_v3 = vld [vmem:[#allocation12 + $0x10c] sm:$0xf]  ;;  %v592_v23 = vperm.slane %v514_v5, 1 }
 0x19a   :  { %v548_v45 = vrot.slane %v547_v36, 1  ;;  %v552_v46 = vadd.f32 %v551_v37, %v550_v32  ;;  %v10022_v32 = vld [vmem:[#allocation12 + $0x2c] sm:$0xf]  ;;  %v7192_v8 = vor.u32 %v10050_v3, %v7189_v4 }
 0x19b   :  { %1093 = vmatpush.bf16.msra.mxu2 %v7256_v15  ;;  %1082 = vmatpush.bf16.msra.mxu1 %v7096_v22  ;;  %v7080_v37 = vor.u32 %v10022_v32, %v7077_v35  ;;  %v7787_v35 = vld [vmem:[#allocation18 + $0x3c0] sm:$0xf] }
 0x19c   :  { %v549_v55 = vadd.f32 %v548_v45, %v547_v36  ;;  %v553_v56 = vrot.slane %v552_v46, 2  ;;  %1065 = vmatpush.bf16.msra.mxu0 %v7284_v42  ;;  %v7219_v36 = vld [vmem:[#allocation12 + $0x148] sm:$0xf]  ;;  %v10020_v45 = vld [vmem:[#allocation12 + $0x14] sm:$0xf0] }
 0x19d   :  { %1056 = vmatpush.bf16.msrb.mxu3 %v7092_v20  ;;  %v7220_v10 = vor.u32 %v10060_v39, %v7219_v36  ;;  %v7060_v48 = vor.u32 %v10020_v45, %v7059_v44  ;;  %v10125_v41 = vld [vmem:[#allocation18 + $0x15c] sm:$0xf0] }
 0x19e   :  { %v557_v1 = vmul.f32 %v549_v55, %v11561_v27  ;;  %v554_v2 = vadd.f32 %v553_v56, %v552_v46  ;;  %v10018_v46 = vld [vmem:[#allocation12 + $0xc] sm:$0xf]  ;;  %v7205_v55 = vld [vmem:[#allocation12 + $0x138] sm:$0xf0] }
 0x19f   :  { %1094 = vmatpush.bf16.msra.mxu2 %v7240_v29  ;;  %1083 = vmatpush.bf16.msra.mxu1 %v7080_v37  ;;  %v7064_v53 = vor.u32 %v10018_v46, %v7061_v50  ;;  %v7208_v58 = vor.u32 %v10054_v54, %v7205_v55  ;;  %v10205_v37 = vld [vmem:[#allocation18 + $0x3dc] sm:$0xf0] }
 0x1a0   :  { %v11578_v9 = vadd.f32 0.8, %v557_v1  ;;  %v555_v11 = vrot.slane %v554_v2, 1  ;;  %1066 = vmatpush.bf16.msra.mxu0 %v7268_v60  ;;  %v10052_v1 = vld [vmem:[#allocation12 + $0x114] sm:$0xf0]  ;;  %v7788_v39 = vor.u32 %v10205_v37, %v7787_v35 }
 0x1a1   :  { %1057 = vmatpush.bf16.msrb.mxu3 %v7076_v34  ;;  %v10133_v34 = vld [vmem:[#allocation18 + $0x19c] sm:$0xf0] }
 0x1a2   :  { %10783 = vrsqrt.f32 %v11578_v9  ;;  %v556_v19 = vadd.f32 %v555_v11, %v554_v2  ;;  %v7188_v2 = vor.u32 %v10052_v1, %v7187_v0  ;;  %vm567_vm4 = vweird.f32 %v11578_v9  ;;  %v7435_v45 = vld [vmem:[#allocation18 + $0x100] sm:$0xf] }
 0x1a3   :  { %1095 = vmatpush.bf16.msra.mxu2 %v7224_v43  ;;  %1084 = vmatpush.bf16.msra.mxu1 %v7064_v53  ;;  %v584_v11 = vperm.slane %v513_v61, 0  ;;  %v10197_v43 = vld [vmem:[#allocation18 + $0x39c] sm:$0xf0] }
 0x1a4   :  { %v558_v26 = vmul.f32 %v556_v19, %v11561_v27  ;;  %1067 = vmatpush.bf16.msra.mxu0 %v7252_v12  ;;  %v10117_v46 = vld [vmem:[#allocation18 + $0x11c] sm:$0xf0] }
 0x1a5   :  { %1058 = vmatpush.bf16.msrb.mxu3 %v7060_v48  ;;  %v7436_v48 = vor.u32 %v10117_v46, %v7435_v45  ;;  %v10189_v50 = vld [vmem:[#allocation18 + $0x35c] sm:$0xf0] }
 0x1a6   :  { %v11582_v33 = vadd.f32 0.8, %v558_v26  ;;  %v7403_v53 = vld [vmem:[#allocation18 + $0xc0] sm:$0xf] }
 0x1a7   :  { %1096 = vmatpush.bf16.msra.mxu2 %v7208_v58  ;;  %v10109_v54 = vld [vmem:[#allocation18 + $0xdc] sm:$0xf0] }
 0x1a8   :  { %v10784_v42 = vpop.eup %10783  ;;  %10785 = vrsqrt.f32 %v11582_v33  ;;  %1068 = vmatpush.bf16.msra.mxu0 %v7236_v63  ;;  %vm577_vm7 = vweird.f32 %v11582_v33  ;;  %v7691_v55 = vld [vmem:[#allocation18 + $0x300] sm:$0xf] }
 0x1a9   :  { %v562_v47 = vmul.f32 %v10784_v42, %v11578_v9  ;;  %vm568_vm3 = vweird.f32 %v10784_v42  ;;  %v585_v9 = vperm.slane %v513_v61, 1  ;;  %v8043_v58 = vld [vmem:[#allocation18 + $0x5c0] sm:$0xf] }
 0x1aa   :  { %vm569_vm5 = vmor %vm567_vm4, %vm568_vm3  ;;  %v7371_v0 = vld [vmem:[#allocation18 + $0x80] sm:$0xf] }
 0x1ab   :  { %v563_v56 = vmul.f32 %v10784_v42, %v562_v47  ;;  %1097 = vmatpush.bf16.msra.mxu2 %v7192_v8  ;;  %v7723_v47 = vld [vmem:[#allocation18 + $0x340] sm:$0xf] }
 0x1ac   :  { %1069 = vmatpush.bf16.msra.mxu0 %v7220_v10  ;;  %v7468_v10 = vor.u32 %v10125_v41, %v7467_v40  ;;  %v7724_v51 = vor.u32 %v10189_v50, %v7723_v47  ;;  %v10101_v1 = vld [vmem:[#allocation18 + $0x9c] sm:$0xf0] }
 0x1ad   :  { %v564_v59 = vmul.f32 0.5, %v563_v56  ;;  %v7404_v56 = vor.u32 %v10109_v54, %v7403_v53  ;;  %v7372_v3 = vor.u32 %v10101_v1, %v7371_v0  ;;  %v10173_v4 = vld [vmem:[#allocation18 + $0x2dc] sm:$0xf0]  ;;  %v7533_v53 = vld [vmem:[#allocation18 + $0x1e0] sm:$0xf0] }
 0x1ae   :  { %v10786_v60 = vpop.eup %10785  ;;  %v8011_v5 = vld [vmem:[#allocation18 + $0x580] sm:$0xf] }
 0x1af   :  { %v565_v62 = vsub.f32 1.5, %v564_v59  ;;  %v572_v38 = vmul.f32 %v10786_v60, %v11582_v33  ;;  %vm578_vm6 = vweird.f32 %v10786_v60  ;;  %v7499_v33 = vld [vmem:[#allocation18 + $0x180] sm:$0xf] }
 0x1b0   :  { %1070 = vmatpush.bf16.msra.mxu0 %v7204_v57  ;;  %vm579_vm8 = vmor %vm577_vm7, %vm578_vm6  ;;  %v7500_v36 = vor.u32 %v10133_v34, %v7499_v33  ;;  %v10181_v57 = vld [vmem:[#allocation18 + $0x31c] sm:$0xf0] }
 0x1b1   :  { %v566_v6 = vmul.f32 %v10784_v42, %v565_v62  ;;  %v573_v7 = vmul.f32 %v10786_v60, %v572_v38  ;;  %v10269_v59 = vld [vmem:[#allocation18 + $0x5dc] sm:$0xf0]  ;;  %v7692_v61 = vor.u32 %v10181_v57, %v7691_v55 }
 0x1b2   :  { %v8044_v62 = vor.u32 %v10269_v59, %v8043_v58  ;;  %v7307_v34 = vld [vmem:[#allocation18] sm:$0xf] }
 0x1b3   :  { %v570_v12 = vsel %vm569_vm5, %v10784_v42, %v566_v6  ;;  %v574_v14 = vmul.f32 0.5, %v573_v7  ;;  %v7755_v42 = vld [vmem:[#allocation18 + $0x380] sm:$0xf] }
 0x1b4   :  { %v581_v15 = vmul.f32 %v570_v12, %v11565_v49  ;;  %1071 = vmatpush.bf16.msra.mxu0 %v7188_v2  ;;  %v7756_v44 = vor.u32 %v10197_v43, %v7755_v42  ;;  %v7659_v2 = vld [vmem:[#allocation18 + $0x2c0] sm:$0xf] }
 0x1b5   :  { %v575_v17 = vsub.f32 1.5, %v574_v14  ;;  %v10261_v6 = vld [vmem:[#allocation18 + $0x59c] sm:$0xf0] }
 0x1b6   :  { %v588_v18 = vmul.f32 %v584_v11, %v581_v15  ;;  %v7660_v11 = vor.u32 %v10173_v4, %v7659_v2  ;;  %v8012_v12 = vor.u32 %v10261_v6, %v8011_v5  ;;  %v8299_v14 = vld [vmem:[#allocation18 + $0x7c0] sm:$0xf]  ;;  %v10129_v5 = vld [vmem:[#allocation18 + $0x184] sm:$0xf] }
 0x1b7   :  { %v576_v19 = vmul.f32 %v10786_v60, %v575_v17  ;;  %v10333_v15 = vld [vmem:[#allocation18 + $0x7dc] sm:$0xf0]  ;;  %v7501_v6 = vld [vmem:[#allocation18 + $0x1a0] sm:$0xf0] }
 0x1b8   :  { %v595_v20 = vadd.f32 %v591_v16, %v588_v18  ;;  %v8300_v18 = vor.u32 %v10333_v15, %v8299_v14  ;;  %v10085_v35 = vld [vmem:[#allocation18 + $0x1c] sm:$0xf0]  ;;  %v7789_v14 = vld [vmem:[#allocation18 + $0x3e0] sm:$0xf0] }
 0x1b9   :  { %v580_v21 = vsel %vm579_vm8, %v10786_v60, %v576_v19  ;;  %v11591_v60 = vld [vmem:[#allocation14] sm:$0xf]  ;;  %v7308_v37 = vor.u32 %v10085_v35, %v7307_v34  ;;  %v10157_v40 = vld [vmem:[#allocation18 + $0x25c] sm:$0xf0] }
 0x1ba   :  { %v582_v22 = vmul.f32 %v580_v21, %v11572_v13  ;;  %vm597_vm9 = vcmp.ge.f32.partialorder %v595_v20, 0.0  ;;  %v599_v24 = vmul.f32 0.2, %v595_v20  ;;  %v7531_v13 = vld [vmem:[#allocation18 + $0x1c0] sm:$0xf]  ;;  %v671_v38 = vperm.slane %v11591_v60, 0 }
 0x1bb   :  { %v7532_v32 = vor.u32 %v10141_v31, %v7531_v13  ;;  %v672_v16 = vperm.slane %v11591_v60, 1  ;;  %v7627_v21 = vld [vmem:[#allocation18 + $0x280] sm:$0xf] }
 0x1bc   :  { %v589_v25 = vmul.f32 %v585_v9, %v582_v22  ;;  %v601_v49 = vsel %vm597_vm9, %v595_v20, %v599_v24  ;;  %v7339_v20 = vld [vmem:[#allocation18 + $0x40] sm:$0xf] }
 0x1bd   :  { %v603_v26 = vpack.c.bf16 %v601_v49, %v601_v49  ;;  %v10093_v9 = vld [vmem:[#allocation18 + $0x5c] sm:$0xf0] }
 0x1be   :  { %v596_v63 = vadd.f32 %v592_v23, %v589_v25  ;;  %v7340_v23 = vor.u32 %v10093_v9, %v7339_v20  ;;  %v10165_v24 = vld [vmem:[#allocation18 + $0x29c] sm:$0xf0] }
 0x1bf   :  { %1007 = vmatmul.bf16.vlgmr.msra.gmra.mxu3 %v603_v26  ;;  %1033 = vmatmul.bf16.vlgmr.msrb.gmra.mxu1 %v603_v26  ;;  %v7979_v25 = vld [vmem:[#allocation18 + $0x540] sm:$0xf] }
 0x1c0   :  { %vm598_vm10 = vcmp.ge.f32.partialorder %v596_v63, 0.0  ;;  %v600_v28 = vmul.f32 0.2, %v596_v63  ;;  %2821 = vmatpush.bf16.msra.mxu3 %v7532_v32  ;;  %2847 = vmatpush.bf16.msrb.mxu1 %v8044_v62  ;;  %v10253_v49 = vld [vmem:[#allocation18 + $0x55c] sm:$0xf0] }
 0x1c1   :  { %v7947_v41 = vld [vmem:[#allocation18 + $0x500] sm:$0xf] }
 0x1c2   :  { %v602_v29 = vsel %vm598_vm10, %v596_v63, %v600_v28  ;;  %v7980_v63 = vor.u32 %v10253_v49, %v7979_v25  ;;  %v8267_v28 = vld [vmem:[#allocation18 + $0x780] sm:$0xf] }
 0x1c3   :  { %v604_v30 = vpack.c.bf16 %v602_v29, %v602_v29  ;;  %v10325_v29 = vld [vmem:[#allocation18 + $0x79c] sm:$0xf0] }
 0x1c4   :  { %2822 = vmatpush.bf16.msra.mxu3 %v7500_v36  ;;  %2848 = vmatpush.bf16.msrb.mxu1 %v8012_v12  ;;  %v8268_v31 = vor.u32 %v10325_v29, %v8267_v28  ;;  %v10245_v45 = vld [vmem:[#allocation18 + $0x51c] sm:$0xf0]  ;;  %v10201_v12 = vld [vmem:[#allocation18 + $0x3c4] sm:$0xf] }
 0x1c5   :  { %1020 = vmatmul.bf16.vlgmr.msrb.gmra.mxu0 %v604_v30  ;;  %1046 = vmatmul.bf16.vlgmr.msrb.gmra.mxu2 %v604_v30  ;;  %v8235_v46 = vld [vmem:[#allocation18 + $0x740] sm:$0xf]  ;;  %v7948_v50 = vor.u32 %v10245_v45, %v7947_v41  ;;  %v7469_v29 = vld [vmem:[#allocation18 + $0x160] sm:$0xf0] }
 0x1c6   :  { %2834 = vmatpush.bf16.msrb.mxu0 %v7788_v39  ;;  %2860 = vmatpush.bf16.msrb.mxu2 %v8300_v18  ;;  %v7595_v39 = vld [vmem:[#allocation18 + $0x240] sm:$0xf]  ;;  %v7792_v18 = vor.u32 %v10201_v12, %v7789_v14  ;;  %v10113_v45 = vld [vmem:[#allocation18 + $0x104] sm:$0xf] }
 0x1c7   :  { %v10317_v47 = vld [vmem:[#allocation18 + $0x75c] sm:$0xf0]  ;;  %v10177_v12 = vld [vmem:[#allocation18 + $0x304] sm:$0xf] }
 0x1c8   :  { %2823 = vmatpush.bf16.msra.mxu3 %v7468_v10  ;;  %2849 = vmatpush.bf16.msrb.mxu1 %v7980_v63  ;;  %v7563_v58 = vld [vmem:[#allocation18 + $0x200] sm:$0xf] }
 0x1c9   :  { %v10149_v59 = vld [vmem:[#allocation18 + $0x21c] sm:$0xf0] }
 0x1ca   :  { %2835 = vmatpush.bf16.msrb.mxu0 %v7756_v44  ;;  %2861 = vmatpush.bf16.msrb.mxu2 %v8268_v31  ;;  %v7596_v44 = vor.u32 %v10157_v40, %v7595_v39  ;;  %v7915_v62 = vld [vmem:[#allocation18 + $0x4c0] sm:$0xf]  ;;  %v674_v31 = vperm.slane %v11591_v60, 3 }
 0x1cb   :  { %v8203_v0 = vld [vmem:[#allocation18 + $0x700] sm:$0xf] }
 0x1cc   :  { %2824 = vmatpush.bf16.msra.mxu3 %v7436_v48  ;;  %2850 = vmatpush.bf16.msrb.mxu1 %v7948_v50  ;;  %v10309_v4 = vld [vmem:[#allocation18 + $0x71c] sm:$0xf0]  ;;  %v10185_v50 = vld [vmem:[#allocation18 + $0x344] sm:$0xf] }
 0x1cd   :  { %v10229_v20 = vld [vmem:[#allocation18 + $0x49c] sm:$0xf0] }
 0x1ce   :  { %2836 = vmatpush.bf16.msrb.mxu0 %v7724_v51  ;;  %v8236_v51 = vor.u32 %v10317_v47, %v8235_v46  ;;  %v7851_v40 = vld [vmem:[#allocation18 + $0x440] sm:$0xf] }
 0x1cf   :  { %1059 = vmatmul.bf16.vlgmr.msrb.gmra.mxu3 %v603_v26  ;;  %1085 = vmatmul.bf16.vlgmr.msra.gmra.mxu1 %v603_v26  ;;  %v7628_v26 = vor.u32 %v10165_v24, %v7627_v21  ;;  %v8171_v21 = vld [vmem:[#allocation18 + $0x6c0] sm:$0xf]  ;;  %v10121_v24 = vld [vmem:[#allocation18 + $0x144] sm:$0xf] }
 0x1d0   :  { %2825 = vmatpush.bf16.msra.mxu3 %v7404_v56  ;;  %2862 = vmatpush.bf16.msrb.mxu2 %v8236_v51  ;;  %v10221_v41 = vld [vmem:[#allocation18 + $0x45c] sm:$0xf0]  ;;  %v7725_v51 = vld [vmem:[#allocation18 + $0x360] sm:$0xf0] }
 0x1d2   :  { %2837 = vmatpush.bf16.msrb.mxu0 %v7692_v61  ;;  %v7564_v61 = vor.u32 %v10149_v59, %v7563_v58 }
 0x1d4   :  { %2826 = vmatpush.bf16.msra.mxu3 %v7372_v3 }
 0x1d5   :  { %1072 = vmatmul.bf16.vlgmr.msra.gmra.mxu0 %v604_v30  ;;  %1098 = vmatmul.bf16.vlgmr.msra.gmra.mxu2 %v604_v30 }
 0x1d6   :  { %2838 = vmatpush.bf16.msrb.mxu0 %v7660_v11  ;;  %v7504_v11 = vor.u32 %v10129_v5, %v7501_v6 }
 0x1d8   :  { %2827 = vmatpush.bf16.msra.mxu3 %v7340_v23  ;;  %v10301_v23 = vld [vmem:[#allocation18 + $0x6dc] sm:$0xf0] }
 0x1d9   :  { %v8172_v28 = vor.u32 %v10301_v23, %v8171_v21  ;;  %v8045_v21 = vld [vmem:[#allocation18 + $0x5e0] sm:$0xf0]  ;;  %v8075_v23 = vld [vmem:[#allocation18 + $0x600] sm:$0xf] }
 0x1da   :  { %2839 = vmatpush.bf16.msrb.mxu0 %v7628_v26 }
 0x1dc   :  { %2828 = vmatpush.bf16.msra.mxu3 %v7308_v37 }
 0x1de   :  { %2840 = vmatpush.bf16.msrb.mxu0 %v7596_v44  ;;  %v10293_v44 = vld [vmem:[#allocation18 + $0x69c] sm:$0xf0] }
 0x1e2   :  { %2841 = vmatpush.bf16.msrb.mxu0 %v7564_v61  ;;  %v7819_v61 = vld [vmem:[#allocation18 + $0x400] sm:$0xf] }
 0x1e6   :  { %2886 = vmatpush.bf16.msra.mxu0 %v7792_v18  ;;  %v10265_v18 = vld [vmem:[#allocation18 + $0x5c4] sm:$0xf] }
 0x23c   :  { %v1034_v52 = vpop.f32.mrf.mxu1 }
 0x23d   :  { %v1035_v30 = vadd.f32 %v1034_v52, %v672_v16  ;;  %v10137_v52 = vld [vmem:[#allocation18 + $0x1c4] sm:$0xf] }
 0x23e   :  { %v7536_v57 = vor.u32 %v10137_v52, %v7533_v53 }
 0x240   :  { %2873 = vmatpush.bf16.msrb.mxu3 %v7536_v57 }
 0x242   :  { %v1008_v7 = vpop.f32.mrf.mxu3  ;;  %v1021_v8 = vpop.f32.mrf.mxu0 }
 0x243   :  { %v1009_v17 = vadd.f32 %v1008_v7, %v671_v38  ;;  %v10237_v38 = vld [vmem:[#allocation18 + $0x4dc] sm:$0xf0]  ;;  %v673_v7 = vperm.slane %v11591_v60, 2 }
 0x244   :  { %v1036_v19 = vpop.f32.mrf.mxu1  ;;  %v7916_v3 = vor.u32 %v10237_v38, %v7915_v62  ;;  %2874 = vmatpush.bf16.msrb.mxu3 %v7504_v11  ;;  %v10213_v62 = vld [vmem:[#allocation18 + $0x41c] sm:$0xf0]  ;;  %v7405_v11 = vld [vmem:[#allocation18 + $0xe0] sm:$0xf0] }
 0x245   :  { %v11595_v22 = vadd.f32 %v1021_v8, %v1009_v17  ;;  %v8204_v8 = vor.u32 %v10309_v4, %v8203_v0  ;;  %v7883_v19 = vld [vmem:[#allocation18 + $0x480] sm:$0xf]  ;;  %v7820_v0 = vor.u32 %v10213_v62, %v7819_v61 }
 0x246   :  { %2851 = vmatpush.bf16.msrb.mxu1 %v7916_v3  ;;  %v7884_v9 = vor.u32 %v10229_v20, %v7883_v19 }
 0x247   :  { %v1105_v13 = vsel %vm515_vm1, %v11595_v22, 0.0  ;;  %2863 = vmatpush.bf16.msrb.mxu2 %v8204_v8 }
 0x248   :  { %v1106_v32 = vrot.slane %v1105_v13, 4  ;;  %v1047_v33 = vpop.f32.mrf.mxu2 }
 0x249   :  { %v11599_v36 = vadd.f32 %v1047_v33, %v1035_v30  ;;  %v10193_v30 = vld [vmem:[#allocation18 + $0x384] sm:$0xf]  ;;  %v7472_v33 = vor.u32 %v10121_v24, %v7469_v29 }
 0x24a   :  { %v1107_v42 = vadd.f32 %v1106_v32, %v1105_v13  ;;  %v1010_v10 = vpop.f32.mrf.mxu3  ;;  %v1023_v43 = vpop.f32.mrf.mxu0  ;;  %v7757_v13 = vld [vmem:[#allocation18 + $0x3a0] sm:$0xf0]  ;;  %2852 = vmatpush.bf16.msrb.mxu1 %v7884_v9 }
 0x24b   :  { %v1112_v48 = vsel %vm515_vm1, %v11599_v36, 0.0  ;;  %v7760_v34 = vor.u32 %v10193_v30, %v7757_v13  ;;  %2864 = vmatpush.bf16.msrb.mxu2 %v8172_v28  ;;  %v7852_v10 = vor.u32 %v10221_v41, %v7851_v40  ;;  %v8139_v43 = vld [vmem:[#allocation18 + $0x680] sm:$0xf]  ;;  %2875 = vmatpush.bf16.msrb.mxu3 %v7472_v33  ;;  %v7373_v13 = vld [vmem:[#allocation18 + $0xa0] sm:$0xf0] }
 0x24c   :  { %v1108_v54 = vrot.slane %v1107_v42, 2  ;;  %v1113_v55 = vrot.slane %v1112_v48, 4  ;;  %v11603_v56 = vpop.f32.mrf.mxu1  ;;  %v8140_v47 = vor.u32 %v10293_v44, %v8139_v43  ;;  %v8013_v43 = vld [vmem:[#allocation18 + $0x5a0] sm:$0xf0] }
 0x24d   :  { %2887 = vmatpush.bf16.msra.mxu0 %v7760_v34  ;;  %v1087_v52 = vadd.f32 %v11603_v56, %v674_v31  ;;  %v8107_v56 = vld [vmem:[#allocation18 + $0x640] sm:$0xf]  ;;  %v10169_v31 = vld [vmem:[#allocation18 + $0x2c4] sm:$0xf] }
 0x24e   :  { %v1109_v1 = vadd.f32 %v1108_v54, %v1107_v42  ;;  %v1114_v2 = vadd.f32 %v1113_v55, %v1112_v48  ;;  %v7437_v48 = vld [vmem:[#allocation18 + $0x120] sm:$0xf0]  ;;  %v7728_v55 = vor.u32 %v10185_v50, %v7725_v51  ;;  %2853 = vmatpush.bf16.msrb.mxu1 %v7852_v10 }
 0x24f   :  { %v7440_v54 = vor.u32 %v10113_v45, %v7437_v48  ;;  %2865 = vmatpush.bf16.msrb.mxu2 %v8140_v47  ;;  %v10257_v10 = vld [vmem:[#allocation18 + $0x584] sm:$0xf] }
 0x250   :  { %v1110_v15 = vrot.slane %v1109_v1, 1  ;;  %v1115_v16 = vrot.slane %v1114_v2, 2  ;;  %v1049_v17 = vpop.f32.mrf.mxu2  ;;  %v10329_v47 = vld [vmem:[#allocation18 + $0x7c4] sm:$0xf] }
 0x251   :  { %2876 = vmatpush.bf16.msrb.mxu3 %v7440_v54  ;;  %2888 = vmatpush.bf16.msra.mxu0 %v7728_v55  ;;  %v7693_v17 = vld [vmem:[#allocation18 + $0x320] sm:$0xf0] }
 0x252   :  { %v1111_v25 = vadd.f32 %v1110_v15, %v1109_v1  ;;  %v1116_v49 = vadd.f32 %v1115_v16, %v1114_v2  ;;  %v1060_v26 = vpop.f32.mrf.mxu3  ;;  %v1073_v63 = vpop.f32.mrf.mxu0  ;;  %v10285_v1 = vld [vmem:[#allocation18 + $0x65c] sm:$0xf0]  ;;  %v10105_v2 = vld [vmem:[#allocation18 + $0xc4] sm:$0xf]  ;;  %v7696_v9 = vor.u32 %v10177_v12, %v7693_v17  ;;  %2854 = vmatpush.bf16.msrb.mxu1 %v7820_v0 }
 0x253   :  { %v1061_v32 = vadd.f32 %v1060_v26, %v673_v7  ;;  %v8108_v8 = vor.u32 %v10285_v1, %v8107_v56  ;;  %v7408_v16 = vor.u32 %v10105_v2, %v7405_v11  ;;  %v10097_v26 = vld [vmem:[#allocation18 + $0x84] sm:$0xf] }
 0x254   :  { %v1133_v35 = vmul.f32 %v1111_v25, %v11561_v27  ;;  %v1117_v37 = vrot.slane %v1116_v49, 1  ;;  %v1088_v39 = vpop.f32.mrf.mxu1  ;;  %v8048_v25 = vor.u32 %v10265_v18, %v8045_v21  ;;  %v7376_v34 = vor.u32 %v10097_v26, %v7373_v13  ;;  %v8301_v48 = vld [vmem:[#allocation18 + $0x7e0] sm:$0xf0] }
 0x255   :  { %v11608_v42 = vadd.f32 %v1073_v63, %v1061_v32  ;;  %2866 = vmatpush.bf16.msrb.mxu2 %v8108_v8  ;;  %2877 = vmatpush.bf16.msrb.mxu3 %v7408_v16  ;;  %v7341_v54 = vld [vmem:[#allocation18 + $0x60] sm:$0xf0] }
 0x256   :  { %v11611_v46 = vsub.f32 %v11595_v22, %v1133_v35  ;;  %v1118_v60 = vadd.f32 %v1117_v37, %v1116_v49  ;;  %v10277_v49 = vld [vmem:[#allocation18 + $0x61c] sm:$0xf0]  ;;  %2889 = vmatpush.bf16.msra.mxu0 %v7696_v9  ;;  %2899 = vmatpush.bf16.msra.mxu1 %v8048_v25  ;;  %v7661_v35 = vld [vmem:[#allocation18 + $0x2e0] sm:$0xf0] }
 0x257   :  { %v1119_v53 = vsel %vm515_vm1, %v11608_v42, 0.0  ;;  %v8076_v30 = vor.u32 %v10277_v49, %v8075_v23  ;;  %v7664_v41 = vor.u32 %v10169_v31, %v7661_v35  ;;  %v10161_v55 = vld [vmem:[#allocation18 + $0x284] sm:$0xf] }
 0x258   :  { %v1141_v57 = vmul.f32 %v11611_v46, %v11611_v46  ;;  %v1134_v22 = vmul.f32 %v1118_v60, %v11561_v27  ;;  %v1120_v58 = vrot.slane %v1119_v53, 4  ;;  %v1099_v59 = vpop.f32.mrf.mxu2  ;;  %v8016_v60 = vor.u32 %v10257_v10, %v8013_v43  ;;  %v10249_v56 = vld [vmem:[#allocation18 + $0x544] sm:$0xf] }
 0x259   :  { %v11619_v38 = vadd.f32 %v1099_v59, %v1087_v52  ;;  %2867 = vmatpush.bf16.msrb.mxu2 %v8076_v30  ;;  %2878 = vmatpush.bf16.msrb.mxu3 %v7376_v34  ;;  %v8304_v52 = vor.u32 %v10329_v47, %v8301_v48  ;;  %v7629_v59 = vld [vmem:[#allocation18 + $0x2a0] sm:$0xf0] }
 0x25a   :  { %v1145_v3 = vsel %vm515_vm1, %v1141_v57, 0.0  ;;  %v11623_v4 = vsub.f32 %v11599_v36, %v1134_v22  ;;  %v1121_v5 = vadd.f32 %v1120_v58, %v1119_v53  ;;  %v1062_v6 = vpop.f32.mrf.mxu3  ;;  %v1075_v7 = vpop.f32.mrf.mxu0  ;;  %2890 = vmatpush.bf16.msra.mxu0 %v7664_v41  ;;  %v10089_v53 = vld [vmem:[#allocation18 + $0x44] sm:$0xf]  ;;  %2900 = vmatpush.bf16.msra.mxu1 %v8016_v60  ;;  %v7632_v0 = vor.u32 %v10161_v55, %v7629_v59 }
 0x25b   :  { %v1146_v14 = vrot.slane %v1145_v3, 4  ;;  %v1126_v15 = vsel %vm515_vm1, %v11619_v38, 0.0  ;;  %v7344_v58 = vor.u32 %v10089_v53, %v7341_v54  ;;  %v7981_v1 = vld [vmem:[#allocation18 + $0x560] sm:$0xf0] }
 0x25c   :  { %v1142_v19 = vmul.f32 %v11623_v4, %v11623_v4  ;;  %v1122_v36 = vrot.slane %v1121_v5, 2  ;;  %v1127_v20 = vrot.slane %v1126_v15, 4  ;;  %v10321_v6 = vld [vmem:[#allocation18 + $0x784] sm:$0xf] }
 0x25d   :  { %v1147_v24 = vadd.f32 %v1146_v14, %v1145_v3  ;;  %2912 = vmatpush.bf16.msra.mxu2 %v8304_v52  ;;  %v8269_v7 = vld [vmem:[#allocation18 + $0x7a0] sm:$0xf0]  ;;  %2879 = vmatpush.bf16.msrb.mxu3 %v7344_v58 }
 0x25e   :  { %v1152_v63 = vsel %vm515_vm1, %v1142_v19, 0.0  ;;  %v1123_v28 = vadd.f32 %v1122_v36, %v1121_v5  ;;  %v1128_v29 = vadd.f32 %v1127_v20, %v1126_v15  ;;  %v7984_v5 = vor.u32 %v10249_v56, %v7981_v1  ;;  %v10081_v8 = vld [vmem:[#allocation18 + $0x4] sm:$0xf]  ;;  %2891 = vmatpush.bf16.msra.mxu0 %v7632_v0 }
 0x25f   :  { %v1148_v32 = vrot.slane %v1147_v24, 2  ;;  %v1153_v33 = vrot.slane %v1152_v63, 4  ;;  %v8272_v14 = vor.u32 %v10321_v6, %v8269_v7  ;;  %v7309_v15 = vld [vmem:[#allocation18 + $0x20] sm:$0xf0] }
 0x260   :  { %v1124_v37 = vrot.slane %v1123_v28, 1  ;;  %v1129_v39 = vrot.slane %v1128_v29, 2  ;;  %v1101_v40 = vpop.f32.mrf.mxu2  ;;  %v10153_v16 = vld [vmem:[#allocation18 + $0x244] sm:$0xf]  ;;  %2901 = vmatpush.bf16.msra.mxu1 %v7984_v5  ;;  %v7312_v36 = vor.u32 %v10081_v8, %v7309_v15 }
 0x261   :  { %v1149_v44 = vadd.f32 %v1148_v32, %v1147_v24  ;;  %v1154_v45 = vadd.f32 %v1153_v33, %v1152_v63  ;;  %v7597_v17 = vld [vmem:[#allocation18 + $0x260] sm:$0xf0]  ;;  %2913 = vmatpush.bf16.msra.mxu2 %v8272_v14 }
 0x262   :  { %v1125_v50 = vadd.f32 %v1124_v37, %v1123_v28  ;;  %v1130_v51 = vadd.f32 %v1129_v39, %v1128_v29  ;;  %v7600_v20 = vor.u32 %v10153_v16, %v7597_v17  ;;  %v10241_v9 = vld [vmem:[#allocation18 + $0x504] sm:$0xf]  ;;  %2880 = vmatpush.bf16.msrb.mxu3 %v7312_v36 }
 0x263   :  { %v1150_v57 = vrot.slane %v1149_v44, 1  ;;  %v1155_v22 = vrot.slane %v1154_v45, 2  ;;  %v7949_v21 = vld [vmem:[#allocation18 + $0x520] sm:$0xf0] }
 0x264   :  { %v1135_v61 = vmul.f32 %v1125_v50, %v11561_v27  ;;  %v1131_v62 = vrot.slane %v1130_v51, 1  ;;  %v7952_v24 = vor.u32 %v10241_v9, %v7949_v21  ;;  %v10313_v25 = vld [vmem:[#allocation18 + $0x744] sm:$0xf]  ;;  %2892 = vmatpush.bf16.msra.mxu0 %v7600_v20  ;;  %v11655_v20 = vld [vmem:[#allocation15] sm:$0xf] }
 0x265   :  { %v1151_v2 = vadd.f32 %v1150_v57, %v1149_v44  ;;  %v1156_v3 = vadd.f32 %v1155_v22, %v1154_v45  ;;  %v8237_v49 = vld [vmem:[#allocation18 + $0x760] sm:$0xf0] }
 0x266   :  { %v11632_v11 = vsub.f32 %v11608_v42, %v1135_v61  ;;  %v1132_v12 = vadd.f32 %v1131_v62, %v1130_v51  ;;  %v8240_v28 = vor.u32 %v10313_v25, %v8237_v49  ;;  %v10145_v29 = vld [vmem:[#allocation18 + $0x204] sm:$0xf]  ;;  %2902 = vmatpush.bf16.msra.mxu1 %v7952_v24  ;;  %v11659_v25 = vld [vmem:[#allocation17] sm:$0xf] }
 0x267   :  { %v1173_v18 = vmul.f32 %v1151_v2, %v11561_v27  ;;  %v1157_v19 = vrot.slane %v1156_v3, 1  ;;  %v7565_v31 = vld [vmem:[#allocation18 + $0x220] sm:$0xf0] }
 0x268   :  { %v1143_v23 = vmul.f32 %v11632_v11, %v11632_v11  ;;  %v1136_v42 = vmul.f32 %v1132_v12, %v11561_v27  ;;  %v10233_v32 = vld [vmem:[#allocation18 + $0x4c4] sm:$0xf]  ;;  %2914 = vmatpush.bf16.msra.mxu2 %v8240_v28  ;;  %v7568_v40 = vor.u32 %v10145_v29, %v7565_v31 }
 0x269   :  { %v11638_v26 = vadd.f32 0.8, %v1173_v18  ;;  %v1158_v63 = vadd.f32 %v1157_v19, %v1156_v3  ;;  %v7917_v35 = vld [vmem:[#allocation18 + $0x4e0] sm:$0xf0] }
 0x26a   :  { %v1159_v30 = vsel %vm515_vm1, %v1143_v23, 0.0  ;;  %v11642_v13 = vsub.f32 %v11619_v38, %v1136_v42  ;;  %v10305_v37 = vld [vmem:[#allocation18 + $0x704] sm:$0xf]  ;;  %v7920_v41 = vor.u32 %v10233_v32, %v7917_v35  ;;  %2893 = vmatpush.bf16.msra.mxu0 %v7568_v40 }
 0x26b   :  { %10787 = vrsqrt.f32 %v11638_v26  ;;  %v1174_v33 = vmul.f32 %v1158_v63, %v11561_v27  ;;  %v1160_v34 = vrot.slane %v1159_v30, 4  ;;  %v8205_v38 = vld [vmem:[#allocation18 + $0x720] sm:$0xf0]  ;;  %vm1187_vm12 = vweird.f32 %v11638_v26 }
 0x26c   :  { %v1144_v39 = vmul.f32 %v11642_v13, %v11642_v13  ;;  %v8208_v44 = vor.u32 %v10305_v37, %v8205_v38  ;;  %v10225_v60 = vld [vmem:[#allocation18 + $0x484] sm:$0xf]  ;;  %2903 = vmatpush.bf16.msra.mxu1 %v7920_v41  ;;  %v1239_v37 = vperm.slane %v11659_v25, 0  ;;  %v1227_v38 = vperm.slane %v11655_v20, 1 }
 0x26d   :  { %v11648_v10 = vadd.f32 0.8, %v1174_v33  ;;  %v1161_v43 = vadd.f32 %v1160_v34, %v1159_v30  ;;  %v7885_v48 = vld [vmem:[#allocation18 + $0x4a0] sm:$0xf0]  ;;  %v1226_v30 = vperm.slane %v11655_v20, 0 }
 0x26e   :  { %v1166_v45 = vsel %vm515_vm1, %v1144_v39, 0.0  ;;  %v10297_v50 = vld [vmem:[#allocation18 + $0x6c4] sm:$0xf]  ;;  %2915 = vmatpush.bf16.msra.mxu2 %v8208_v44  ;;  %v7888_v52 = vor.u32 %v10225_v60, %v7885_v48  ;;  %v1240_v60 = vperm.slane %v11659_v25, 1  ;;  %v10142_v48 = vld [vmem:[#allocation18 + $0x1e4] sm:$0xf0] }
 0x26f   :  { %10789 = vrsqrt.f32 %v11648_v10  ;;  %v1162_v47 = vrot.slane %v1161_v43, 2  ;;  %v1167_v51 = vrot.slane %v1166_v45, 4  ;;  %v8173_v53 = vld [vmem:[#allocation18 + $0x6e0] sm:$0xf0]  ;;  %vm1197_vm15 = vweird.f32 %v11648_v10 }
 0x270   :  { %v8176_v57 = vor.u32 %v10297_v50, %v8173_v53  ;;  %v10217_v59 = vld [vmem:[#allocation18 + $0x444] sm:$0xf]  ;;  %2904 = vmatpush.bf16.msra.mxu1 %v7888_v52 }
 0x271   :  { %v10788_v54 = vpop.eup %10787  ;;  %v1163_v55 = vadd.f32 %v1162_v47, %v1161_v43  ;;  %v1168_v58 = vadd.f32 %v1167_v51, %v1166_v45  ;;  %v7853_v61 = vld [vmem:[#allocation18 + $0x460] sm:$0xf0] }
 0x272   :  { %v1182_v22 = vmul.f32 %v10788_v54, %v11638_v26  ;;  %v7856_v0 = vor.u32 %v10217_v59, %v7853_v61  ;;  %v10289_v56 = vld [vmem:[#allocation18 + $0x684] sm:$0xf]  ;;  %2916 = vmatpush.bf16.msra.mxu2 %v8176_v57  ;;  %vm1188_vm11 = vweird.f32 %v10788_v54  ;;  %v7507_v57 = vld [vmem:[#allocation18 + $0x188] sm:$0xf] }
 0x273   :  { %v1164_v62 = vrot.slane %v1163_v55, 1  ;;  %v8141_v1 = vld [vmem:[#allocation18 + $0x6a0] sm:$0xf0]  ;;  %v1169_v3 = vrot.slane %v1168_v58, 2  ;;  %vm1189_vm13 = vmor %vm1187_vm12, %vm1188_vm11 }
 0x274   :  { %v1183_v2 = vmul.f32 %v10788_v54, %v1182_v22  ;;  %v8144_v5 = vor.u32 %v10289_v56, %v8141_v1  ;;  %v10209_v8 = vld [vmem:[#allocation18 + $0x404] sm:$0xf]  ;;  %2905 = vmatpush.bf16.msra.mxu1 %v7856_v0  ;;  %v10134_v22 = vld [vmem:[#allocation18 + $0x1a4] sm:$0xf0] }
 0x275   :  { %v10790_v6 = vpop.eup %10789  ;;  %v1165_v7 = vadd.f32 %v1164_v62, %v1163_v55  ;;  %v1170_v15 = vadd.f32 %v1169_v3, %v1168_v58  ;;  %v7821_v16 = vld [vmem:[#allocation18 + $0x420] sm:$0xf0]  ;;  %v10206_v62 = vld [vmem:[#allocation18 + $0x3e4] sm:$0xf0] }
 0x276   :  { %v1184_v12 = vmul.f32 0.5, %v1183_v2  ;;  %v1192_v14 = vmul.f32 %v10790_v6, %v11648_v10  ;;  %v10281_v17 = vld [vmem:[#allocation18 + $0x644] sm:$0xf]  ;;  %v7824_v19 = vor.u32 %v10209_v8, %v7821_v16  ;;  %2917 = vmatpush.bf16.msra.mxu2 %v8144_v5  ;;  %vm1198_vm14 = vweird.f32 %v10790_v6  ;;  %v7539_v10 = vld [vmem:[#allocation18 + $0x1c8] sm:$0xf] }
 0x277   :  { %v1175_v18 = vmul.f32 %v1165_v7, %v11561_v27  ;;  %v8109_v36 = vld [vmem:[#allocation18 + $0x660] sm:$0xf0]  ;;  %v1171_v23 = vrot.slane %v1170_v15, 1  ;;  %vm1199_vm0 = vmor %vm1197_vm15, %vm1198_vm14  ;;  %v7540_v55 = vor.u32 %v10142_v48, %v7539_v10  ;;  %v7508_v5 = vor.u32 %v10134_v22, %v7507_v57  ;;  %v7475_v7 = vld [vmem:[#allocation18 + $0x148] sm:$0xf] }
 0x278   :  { %v1185_v9 = vsub.f32 1.5, %v1184_v12  ;;  %v1193_v21 = vmul.f32 %v10790_v6, %v1192_v14  ;;  %v8112_v42 = vor.u32 %v10281_v17, %v8109_v36  ;;  %v10273_v29 = vld [vmem:[#allocation18 + $0x604] sm:$0xf]  ;;  %2906 = vmatpush.bf16.msra.mxu1 %v7824_v19  ;;  %v10126_v8 = vld [vmem:[#allocation18 + $0x164] sm:$0xf0]  ;;  %v1228_v17 = vperm.slane %v11655_v20, 2 }
 0x279   :  { %v11657_v24 = vadd.f32 0.8, %v1175_v18  ;;  %v1172_v28 = vadd.f32 %v1171_v23, %v1170_v15  ;;  %v8077_v31 = vld [vmem:[#allocation18 + $0x620] sm:$0xf0]  ;;  %v7763_v15 = vld [vmem:[#allocation18 + $0x388] sm:$0xf] }
 0x27a   :  { %v1186_v49 = vmul.f32 %v10788_v54, %v1185_v9  ;;  %v1194_v63 = vmul.f32 0.5, %v1193_v21  ;;  %2918 = vmatpush.bf16.msra.mxu2 %v8112_v42  ;;  %v8080_v35 = vor.u32 %v10273_v29, %v8077_v31  ;;  %v10198_v16 = vld [vmem:[#allocation18 + $0x3a4] sm:$0xf0]  ;;  %v1241_v36 = vperm.slane %v11659_v25, 2 }
 0x27b   :  { %10791 = vrsqrt.f32 %v11657_v24  ;;  %v1176_v34 = vmul.f32 %v1172_v28, %v11561_v27  ;;  %vm1207_vm5 = vweird.f32 %v11657_v24  ;;  %v7476_v9 = vor.u32 %v10126_v8, %v7475_v7  ;;  %v10190_v28 = vld [vmem:[#allocation18 + $0x364] sm:$0xf0] }
 0x27c   :  { %v1190_v32 = vsel %vm1189_vm13, %v10788_v54, %v1186_v49  ;;  %v1195_v33 = vsub.f32 1.5, %v1194_v63  ;;  %v7764_v42 = vor.u32 %v10198_v16, %v7763_v15  ;;  %v10118_v49 = vld [vmem:[#allocation18 + $0x124] sm:$0xf0]  ;;  %v1229_v31 = vperm.slane %v11655_v20, 3 }
 0x27d   :  { %v1221_v26 = vmul.f32 %v1190_v32, %v11611_v46  ;;  %v11669_v40 = vadd.f32 0.8, %v1176_v34  ;;  %v7731_v63 = vld [vmem:[#allocation18 + $0x348] sm:$0xf] }
 0x27e   :  { %v1196_v39 = vmul.f32 %v10790_v6, %v1195_v33  ;;  %2919 = vmatpush.bf16.msra.mxu2 %v8080_v35  ;;  %v7732_v35 = vor.u32 %v10190_v28, %v7731_v63  ;;  %v10334_v57 = vld [vmem:[#allocation18 + $0x7e4] sm:$0xf0]  ;;  %v7541_v63 = vld [vmem:[#allocation18 + $0x1e8] sm:$0xf0] }
 0x27f   :  { %v1234_v41 = vmul.f32 %v1226_v30, %v1221_v26  ;;  %10793 = vrsqrt.f32 %v11669_v40  ;;  %vm1217_vm8 = vweird.f32 %v11669_v40  ;;  %v7411_v26 = vld [vmem:[#allocation18 + $0xc8] sm:$0xf] }
 0x280   :  { %v1200_v43 = vsel %vm1199_vm0, %v10790_v6, %v1196_v39  ;;  %v8275_v7 = vld [vmem:[#allocation18 + $0x788] sm:$0xf] }
 0x281   :  { %v10792_v44 = vpop.eup %10791  ;;  %v1247_v45 = vadd.f32 %v1239_v37, %v1234_v41  ;;  %v1222_v46 = vmul.f32 %v1200_v43, %v11623_v4  ;;  %v7795_v4 = vld [vmem:[#allocation18 + $0x3c8] sm:$0xf] }
 0x282   :  { %v1202_v47 = vmul.f32 %v10792_v44, %v11657_v24  ;;  %vm1208_vm4 = vweird.f32 %v10792_v44  ;;  %v7796_v6 = vor.u32 %v10206_v62, %v7795_v4  ;;  %v7443_v24 = vld [vmem:[#allocation18 + $0x108] sm:$0xf] }
 0x283   :  { %vm1251_vm2 = vcmp.ge.f32.partialorder %v1247_v45, 0.0  ;;  %v1255_v50 = vmul.f32 0.2, %v1247_v45  ;;  %v1235_v51 = vmul.f32 %v1227_v38, %v1222_v46  ;;  %vm1209_vm6 = vmor %vm1207_vm5, %vm1208_vm4  ;;  %v7444_v32 = vor.u32 %v10118_v49, %v7443_v24  ;;  %v10110_v37 = vld [vmem:[#allocation18 + $0xe4] sm:$0xf0] }
 0x284   :  { %v1203_v52 = vmul.f32 %v10792_v44, %v1202_v47  ;;  %v7699_v41 = vld [vmem:[#allocation18 + $0x308] sm:$0xf]  ;;  %v7412_v46 = vor.u32 %v10110_v37, %v7411_v26  ;;  %v10138_v49 = vld [vmem:[#allocation18 + $0x1cc] sm:$0xf] }
 0x285   :  { %v1259_v53 = vsel %vm1251_vm2, %v1247_v45, %v1255_v50  ;;  %v1248_v54 = vadd.f32 %v1240_v60, %v1235_v51  ;;  %v10794_v58 = vpop.eup %10793  ;;  %v10182_v38 = vld [vmem:[#allocation18 + $0x324] sm:$0xf0] }
 0x286   :  { %v11677_v59 = vpack.c.bf16 %v1259_v53, %v1259_v53  ;;  %v1204_v61 = vmul.f32 0.5, %v1203_v52  ;;  %v1212_v56 = vmul.f32 %v10794_v58, %v11669_v40  ;;  %vm1218_vm7 = vweird.f32 %v10794_v58  ;;  %v8051_v43 = vld [vmem:[#allocation18 + $0x5c8] sm:$0xf] }
 0x287   :  { %vm1252_vm3 = vcmp.ge.f32.partialorder %v1248_v54, 0.0  ;;  %v1256_v0 = vmul.f32 0.2, %v1248_v54  ;;  %vm1219_vm9 = vmor %vm1217_vm8, %vm1218_vm7  ;;  %v7700_v60 = vor.u32 %v10182_v38, %v7699_v41  ;;  %v10102_v50 = vld [vmem:[#allocation18 + $0xa4] sm:$0xf0] }
 0x288   :  { %v1205_v1 = vsub.f32 1.5, %v1204_v61  ;;  %2829 = vmatmul.bf16.vlgmr.msra.gmra.mxu3 %v11677_v59  ;;  %v1213_v3 = vmul.f32 %v10794_v58, %v1212_v56  ;;  %v7667_v51 = vld [vmem:[#allocation18 + $0x2c8] sm:$0xf]  ;;  %v7509_v41 = vld [vmem:[#allocation18 + $0x1a8] sm:$0xf0] }
 0x289   :  { %v1260_v2 = vsel %vm1252_vm3, %v1248_v54, %v1256_v0  ;;  %2925 = vmatpush.bf16.msra.mxu3 %v7540_v55  ;;  %v8019_v52 = vld [vmem:[#allocation18 + $0x588] sm:$0xf]  ;;  %v10202_v38 = vld [vmem:[#allocation18 + $0x3cc] sm:$0xf] }
 0x28a   :  { %v11681_v12 = vpack.c.bf16 %v1260_v2, %v1260_v2  ;;  %v1206_v14 = vmul.f32 %v10792_v44, %v1205_v1  ;;  %v1214_v18 = vmul.f32 0.5, %v1213_v3  ;;  %v10262_v53 = vld [vmem:[#allocation18 + $0x5a4] sm:$0xf0] }
 0x28b   :  { %v8307_v54 = vld [vmem:[#allocation18 + $0x7c8] sm:$0xf]  ;;  %v8020_v4 = vor.u32 %v10262_v53, %v8019_v52  ;;  %v7765_v52 = vld [vmem:[#allocation18 + $0x3a8] sm:$0xf0] }
 0x28c   :  { %v1210_v19 = vsel %vm1209_vm6, %v10792_v44, %v1206_v14  ;;  %2842 = vmatmul.bf16.vlgmr.msrb.gmra.mxu0 %v11681_v12  ;;  %v1215_v23 = vsub.f32 1.5, %v1214_v18  ;;  %v10270_v44 = vld [vmem:[#allocation18 + $0x5e4] sm:$0xf0]  ;;  %v8308_v2 = vor.u32 %v10334_v57, %v8307_v54 }
 0x28d   :  { %v1223_v21 = vmul.f32 %v1210_v19, %v11632_v11  ;;  %2926 = vmatpush.bf16.msra.mxu3 %v7508_v5  ;;  %2938 = vmatpush.bf16.msrb.mxu0 %v7796_v6  ;;  %v1242_v11 = vperm.slane %v11659_v25, 3  ;;  %v7379_v25 = vld [vmem:[#allocation18 + $0x88] sm:$0xf]  ;;  %v8052_v48 = vor.u32 %v10270_v44, %v8051_v43  ;;  %v7797_v43 = vld [vmem:[#allocation18 + $0x3e8] sm:$0xf0] }
 0x28e   :  { %v1216_v30 = vmul.f32 %v10794_v58, %v1215_v23  ;;  %v7380_v22 = vor.u32 %v10102_v50, %v7379_v25  ;;  %v7347_v62 = vld [vmem:[#allocation18 + $0x48] sm:$0xf]  ;;  %v10122_v50 = vld [vmem:[#allocation18 + $0x14c] sm:$0xf] }
 0x28f   :  { %v1236_v29 = vmul.f32 %v1228_v17, %v1223_v21  ;;  %v10094_v0 = vld [vmem:[#allocation18 + $0x64] sm:$0xf0] }
 0x290   :  { %v1220_v34 = vsel %vm1219_vm9, %v10794_v58, %v1216_v30  ;;  %v7635_v56 = vld [vmem:[#allocation18 + $0x288] sm:$0xf]  ;;  %v7348_v14 = vor.u32 %v10094_v0, %v7347_v62  ;;  %v10114_v62 = vld [vmem:[#allocation18 + $0x10c] sm:$0xf] }
 0x291   :  { %v1249_v33 = vadd.f32 %v1241_v36, %v1236_v29  ;;  %2927 = vmatpush.bf16.msra.mxu3 %v7476_v9  ;;  %2939 = vmatpush.bf16.msrb.mxu0 %v7764_v42  ;;  %v1224_v39 = vmul.f32 %v1220_v34, %v11642_v13  ;;  %v10174_v13 = vld [vmem:[#allocation18 + $0x2e4] sm:$0xf0]  ;;  %v7544_v34 = vor.u32 %v10138_v49, %v7541_v63  ;;  %v7445_v0 = vld [vmem:[#allocation18 + $0x128] sm:$0xf0] }
 0x292   :  { %v7668_v61 = vor.u32 %v10174_v13, %v7667_v51  ;;  %v10166_v3 = vld [vmem:[#allocation18 + $0x2a4] sm:$0xf0]  ;;  %v7477_v51 = vld [vmem:[#allocation18 + $0x168] sm:$0xf0] }
 0x293   :  { %vm1253_vm10 = vcmp.ge.f32.partialorder %v1249_v33, 0.0  ;;  %v1257_v40 = vmul.f32 0.2, %v1249_v33  ;;  %v1237_v45 = vmul.f32 %v1229_v31, %v1224_v39  ;;  %v7987_v5 = vld [vmem:[#allocation18 + $0x548] sm:$0xf]  ;;  %v7636_v16 = vor.u32 %v10166_v3, %v7635_v56 }
 0x294   :  { %v10254_v6 = vld [vmem:[#allocation18 + $0x564] sm:$0xf0]  ;;  %v10130_v39 = vld [vmem:[#allocation18 + $0x18c] sm:$0xf] }
 0x295   :  { %v1261_v20 = vsel %vm1253_vm10, %v1249_v33, %v1257_v40  ;;  %2928 = vmatpush.bf16.msra.mxu3 %v7444_v32  ;;  %2940 = vmatpush.bf16.msrb.mxu0 %v7732_v35  ;;  %v1250_v10 = vadd.f32 %v1242_v11, %v1237_v45  ;;  %v10326_v8 = vld [vmem:[#allocation18 + $0x7a4] sm:$0xf0]  ;;  %v7988_v17 = vor.u32 %v10254_v6, %v7987_v5  ;;  %v10194_v13 = vld [vmem:[#allocation18 + $0x38c] sm:$0xf] }
 0x296   :  { %v11692_v47 = vpack.c.bf16 %v1261_v20, %v1261_v20  ;;  %v7315_v15 = vld [vmem:[#allocation18 + $0x8] sm:$0xf]  ;;  %v8276_v9 = vor.u32 %v10326_v8, %v8275_v7  ;;  %v7512_v20 = vor.u32 %v10130_v39, %v7509_v41  ;;  %v10186_v56 = vld [vmem:[#allocation18 + $0x34c] sm:$0xf]  ;;  %v7448_v7 = vor.u32 %v10114_v62, %v7445_v0  ;;  %v10143_v62 = vld [vmem:[#allocation18 + $0x1ec] sm:$0xf0] }
 0x297   :  { %vm1254_vm11 = vcmp.ge.f32.partialorder %v1250_v10, 0.0  ;;  %v1258_v55 = vmul.f32 0.2, %v1250_v10  ;;  %v10086_v18 = vld [vmem:[#allocation18 + $0x24] sm:$0xf0] }
 0x298   :  { %2855 = vmatmul.bf16.vlgmr.msrb.gmra.mxu1 %v11692_v47  ;;  %2881 = vmatmul.bf16.vlgmr.msrb.gmra.mxu3 %v11677_v59  ;;  %v7603_v19 = vld [vmem:[#allocation18 + $0x248] sm:$0xf]  ;;  %v7316_v28 = vor.u32 %v10086_v18, %v7315_v15  ;;  %v7413_v18 = vld [vmem:[#allocation18 + $0xe8] sm:$0xf0] }
 0x299   :  { %2929 = vmatpush.bf16.msra.mxu3 %v7412_v46  ;;  %2941 = vmatpush.bf16.msrb.mxu0 %v7700_v60  ;;  %v1262_v58 = vsel %vm1254_vm11, %v1250_v10, %v1258_v55  ;;  %v10158_v36 = vld [vmem:[#allocation18 + $0x264] sm:$0xf0]  ;;  %v7800_v10 = vor.u32 %v10202_v38, %v7797_v43  ;;  %v7480_v55 = vor.u32 %v10122_v50, %v7477_v51  ;;  %v10090_v43 = vld [vmem:[#allocation18 + $0x4c] sm:$0xf] }
 0x29a   :  { %2951 = vmatpush.bf16.msrb.mxu1 %v8052_v48  ;;  %v11696_v1 = vpack.c.bf16 %v1262_v58, %v1262_v58  ;;  %v7955_v21 = vld [vmem:[#allocation18 + $0x508] sm:$0xf]  ;;  %v7604_v29 = vor.u32 %v10158_v36, %v7603_v19  ;;  %v10178_v19 = vld [vmem:[#allocation18 + $0x30c] sm:$0xf] }
 0x29b   :  { %v10246_v23 = vld [vmem:[#allocation18 + $0x524] sm:$0xf0]  ;;  %v7701_v36 = vld [vmem:[#allocation18 + $0x328] sm:$0xf0] }
 0x29c   :  { %2894 = vmatmul.bf16.vlgmr.msra.gmra.mxu0 %v11681_v12  ;;  %2868 = vmatmul.bf16.vlgmr.msrb.gmra.mxu2 %v11696_v1  ;;  %v8243_v42 = vld [vmem:[#allocation18 + $0x748] sm:$0xf]  ;;  %v7956_v30 = vor.u32 %v10246_v23, %v7955_v21  ;;  %v8053_v21 = vld [vmem:[#allocation18 + $0x5e8] sm:$0xf0] }
 0x29d   :  { %2930 = vmatpush.bf16.msra.mxu3 %v7380_v22  ;;  %2942 = vmatpush.bf16.msrb.mxu0 %v7668_v61  ;;  %v10318_v24 = vld [vmem:[#allocation18 + $0x764] sm:$0xf0]  ;;  %v7768_v61 = vor.u32 %v10194_v13, %v7765_v52  ;;  %v10082_v50 = vld [vmem:[#allocation18 + $0xc] sm:$0xf] }
 0x29e   :  { %2952 = vmatpush.bf16.msrb.mxu1 %v8020_v4  ;;  %2964 = vmatpush.bf16.msrb.mxu2 %v8308_v2  ;;  %v7571_v31 = vld [vmem:[#allocation18 + $0x208] sm:$0xf]  ;;  %v8244_v33 = vor.u32 %v10318_v24, %v8243_v42  ;;  %v7733_v2 = vld [vmem:[#allocation18 + $0x368] sm:$0xf0] }
 0x29f   :  { %v10150_v32 = vld [vmem:[#allocation18 + $0x224] sm:$0xf0]  ;;  %v7317_v52 = vld [vmem:[#allocation18 + $0x28] sm:$0xf0] }
 0x2a0   :  { %v7923_v11 = vld [vmem:[#allocation18 + $0x4c8] sm:$0xf]  ;;  %v7572_v40 = vor.u32 %v10150_v32, %v7571_v31  ;;  %v7381_v31 = vld [vmem:[#allocation18 + $0xa8] sm:$0xf0]  ;;  %v7320_v0 = vor.u32 %v10082_v50, %v7317_v52  ;;  %v10111_v52 = vld [vmem:[#allocation18 + $0xec] sm:$0xf0] }
 0x2a1   :  { %2931 = vmatpush.bf16.msra.mxu3 %v7348_v14  ;;  %2943 = vmatpush.bf16.msrb.mxu0 %v7636_v16  ;;  %v10238_v35 = vld [vmem:[#allocation18 + $0x4e4] sm:$0xf0]  ;;  %v7736_v16 = vor.u32 %v10186_v56, %v7733_v2  ;;  %v10170_v32 = vld [vmem:[#allocation18 + $0x2cc] sm:$0xf] }
 0x2a2   :  { %2953 = vmatpush.bf16.msrb.mxu1 %v7988_v17  ;;  %2965 = vmatpush.bf16.msrb.mxu2 %v8276_v9  ;;  %v8211_v26 = vld [vmem:[#allocation18 + $0x708] sm:$0xf]  ;;  %v7924_v44 = vor.u32 %v10238_v35, %v7923_v11  ;;  %v10106_v17 = vld [vmem:[#allocation18 + $0xcc] sm:$0xf] }
 0x2a3   :  { %v10310_v37 = vld [vmem:[#allocation18 + $0x724] sm:$0xf0]  ;;  %v10266_v9 = vld [vmem:[#allocation18 + $0x5cc] sm:$0xf]  ;;  %v7416_v24 = vor.u32 %v10106_v17, %v7413_v18  ;;  %v7515_v17 = vld [vmem:[#allocation18 + $0x190] sm:$0xf] }
 0x2a4   :  { %v8212_v45 = vor.u32 %v10310_v37, %v8211_v26  ;;  %v7891_v46 = vld [vmem:[#allocation18 + $0x488] sm:$0xf]  ;;  %v8021_v11 = vld [vmem:[#allocation18 + $0x5a8] sm:$0xf0]  ;;  %v10135_v18 = vld [vmem:[#allocation18 + $0x1ac] sm:$0xf0] }
 0x2a5   :  { %2932 = vmatpush.bf16.msra.mxu3 %v7316_v28  ;;  %2944 = vmatpush.bf16.msrb.mxu0 %v7604_v29  ;;  %v10230_v60 = vld [vmem:[#allocation18 + $0x4a4] sm:$0xf0]  ;;  %v7704_v28 = vor.u32 %v10178_v19, %v7701_v36  ;;  %v8056_v29 = vor.u32 %v10266_v9, %v8053_v21  ;;  %v10330_v35 = vld [vmem:[#allocation18 + $0x7cc] sm:$0xf]  ;;  %v7803_v19 = vld [vmem:[#allocation18 + $0x3d0] sm:$0xf] }
 0x2a6   :  { %2954 = vmatpush.bf16.msrb.mxu1 %v7956_v30  ;;  %2966 = vmatpush.bf16.msrb.mxu2 %v8244_v33  ;;  %v8179_v25 = vld [vmem:[#allocation18 + $0x6c8] sm:$0xf]  ;;  %v7892_v53 = vor.u32 %v10230_v60, %v7891_v46  ;;  %v10098_v30 = vld [vmem:[#allocation18 + $0x8c] sm:$0xf]  ;;  %v10207_v36 = vld [vmem:[#allocation18 + $0x3ec] sm:$0xf0] }
 0x2a7   :  { %v10302_v48 = vld [vmem:[#allocation18 + $0x6e4] sm:$0xf0]  ;;  %v7669_v33 = vld [vmem:[#allocation18 + $0x2e8] sm:$0xf0]  ;;  %v7384_v39 = vor.u32 %v10098_v30, %v7381_v31  ;;  %v7483_v30 = vld [vmem:[#allocation18 + $0x150] sm:$0xf] }
 0x2a8   :  { %2907 = vmatmul.bf16.vlgmr.msra.gmra.mxu1 %v11692_v47  ;;  %2933 = vmatmul.bf16.vlgmr.msra.gmra.mxu3 %v11677_v59  ;;  %v8180_v54 = vor.u32 %v10302_v48, %v8179_v25  ;;  %v7859_v57 = vld [vmem:[#allocation18 + $0x448] sm:$0xf]  ;;  %v8309_v26 = vld [vmem:[#allocation18 + $0x7e8] sm:$0xf0]  ;;  %v7672_v41 = vor.u32 %v10170_v32, %v7669_v33  ;;  %v10127_v31 = vld [vmem:[#allocation18 + $0x16c] sm:$0xf0] }
 0x2a9   :  { %2977 = vmatpush.bf16.msrb.mxu3 %v7544_v34  ;;  %2945 = vmatpush.bf16.msrb.mxu0 %v7572_v40  ;;  %v10222_v22 = vld [vmem:[#allocation18 + $0x464] sm:$0xf0]  ;;  %v10258_v34 = vld [vmem:[#allocation18 + $0x58c] sm:$0xf]  ;;  %v7771_v32 = vld [vmem:[#allocation18 + $0x390] sm:$0xf] }
 0x2aa   :  { %2955 = vmatpush.bf16.msrb.mxu1 %v7924_v44  ;;  %2967 = vmatpush.bf16.msrb.mxu2 %v8212_v45  ;;  %v8147_v58 = vld [vmem:[#allocation18 + $0x688] sm:$0xf]  ;;  %v7860_v3 = vor.u32 %v10222_v22, %v7859_v57  ;;  %v8024_v38 = vor.u32 %v10258_v34, %v8021_v11  ;;  %v7349_v40 = vld [vmem:[#allocation18 + $0x68] sm:$0xf0]  ;;  %v8312_v45 = vor.u32 %v10330_v35, %v8309_v26  ;;  %v10199_v33 = vld [vmem:[#allocation18 + $0x3ac] sm:$0xf0] }
 0x2ab   :  { %v10294_v4 = vld [vmem:[#allocation18 + $0x6a4] sm:$0xf0]  ;;  %v10162_v44 = vld [vmem:[#allocation18 + $0x28c] sm:$0xf]  ;;  %v7352_v48 = vor.u32 %v10090_v43, %v7349_v40  ;;  %v7484_v35 = vor.u32 %v10127_v31, %v7483_v30  ;;  %v7451_v43 = vld [vmem:[#allocation18 + $0x110] sm:$0xf] }
 0x2ac   :  { %2920 = vmatmul.bf16.vlgmr.msra.gmra.mxu2 %v11696_v1  ;;  %2946 = vmatmul.bf16.vlgmr.msrb.gmra.mxu0 %v11681_v12  ;;  %v7827_v5 = vld [vmem:[#allocation18 + $0x408] sm:$0xf]  ;;  %v8148_v6 = vor.u32 %v10294_v4, %v8147_v58  ;;  %v10250_v46 = vld [vmem:[#allocation18 + $0x54c] sm:$0xf]  ;;  %v7547_v4 = vld [vmem:[#allocation18 + $0x1d0] sm:$0xf] }
 0x2ad   :  { %2978 = vmatpush.bf16.msrb.mxu3 %v7512_v20  ;;  %2990 = vmatpush.bf16.msra.mxu0 %v7800_v10  ;;  %v10214_v8 = vld [vmem:[#allocation18 + $0x424] sm:$0xf0]  ;;  %v7637_v20 = vld [vmem:[#allocation18 + $0x2a8] sm:$0xf0]  ;;  %v10119_v40 = vld [vmem:[#allocation18 + $0x12c] sm:$0xf0] }
 0x2ae   :  { %2956 = vmatpush.bf16.msrb.mxu1 %v7892_v53  ;;  %2968 = vmatpush.bf16.msrb.mxu2 %v8180_v54  ;;  %v8115_v14 = vld [vmem:[#allocation18 + $0x648] sm:$0xf]  ;;  %v7828_v23 = vor.u32 %v10214_v8, %v7827_v5  ;;  %v7989_v60 = vld [vmem:[#allocation18 + $0x568] sm:$0xf0]  ;;  %v7640_v51 = vor.u32 %v10162_v44, %v7637_v20  ;;  %v7739_v44 = vld [vmem:[#allocation18 + $0x350] sm:$0xf] }
 0x2af   :  { %v10286_v15 = vld [vmem:[#allocation18 + $0x664] sm:$0xf0]  ;;  %v10322_v25 = vld [vmem:[#allocation18 + $0x78c] sm:$0xf]  ;;  %v7992_v13 = vor.u32 %v10250_v46, %v7989_v60  ;;  %v7323_v30 = vld [vmem:[#allocation18 + $0x10] sm:$0xf] }
 0x2b0   :  { %v8116_v42 = vor.u32 %v10286_v15, %v8115_v14  ;;  %v8083_v49 = vld [vmem:[#allocation18 + $0x608] sm:$0xf]  ;;  %v8277_v10 = vld [vmem:[#allocation18 + $0x7a8] sm:$0xf0] }
 0x2b1   :  { %2979 = vmatpush.bf16.msrb.mxu3 %v7480_v55  ;;  %2991 = vmatpush.bf16.msra.mxu0 %v7768_v61  ;;  %v10278_v63 = vld [vmem:[#allocation18 + $0x624] sm:$0xf0]  ;;  %v10154_v53 = vld [vmem:[#allocation18 + $0x24c] sm:$0xf]  ;;  %v8280_v55 = vor.u32 %v10322_v25, %v8277_v10  ;;  %v7452_v25 = vor.u32 %v10119_v40, %v7451_v43  ;;  %v7549_v43 = vld [vmem:[#allocation18 + $0x1f0] sm:$0xf0] }
 0x2b2   :  { %2957 = vmatpush.bf16.msrb.mxu1 %v7860_v3  ;;  %2969 = vmatpush.bf16.msrb.mxu2 %v8148_v6  ;;  %v8084_v37 = vor.u32 %v10278_v63, %v8083_v49  ;;  %v7605_v54 = vld [vmem:[#allocation18 + $0x268] sm:$0xf0] }
 0x2b3   :  { %v10242_v57 = vld [vmem:[#allocation18 + $0x50c] sm:$0xf]  ;;  %v7608_v56 = vor.u32 %v10154_v53, %v7605_v54  ;;  %v7707_v53 = vld [vmem:[#allocation18 + $0x310] sm:$0xf] }
 0x2b4   :  { %v7957_v22 = vld [vmem:[#allocation18 + $0x528] sm:$0xf0]  ;;  %v10183_v54 = vld [vmem:[#allocation18 + $0x32c] sm:$0xf0] }
 0x2b5   :  { %2980 = vmatpush.bf16.msrb.mxu3 %v7448_v7  ;;  %2992 = vmatpush.bf16.msra.mxu0 %v7736_v16  ;;  %v10314_v58 = vld [vmem:[#allocation18 + $0x74c] sm:$0xf]  ;;  %v7960_v2 = vor.u32 %v10242_v57, %v7957_v22  ;;  %v7548_v7 = vor.u32 %v10143_v62, %v7547_v4  ;;  %v10271_v57 = vld [vmem:[#allocation18 + $0x5ec] sm:$0xf0] }
 0x2b6   :  { %2958 = vmatpush.bf16.msrb.mxu1 %v7828_v23  ;;  %2970 = vmatpush.bf16.msrb.mxu2 %v8116_v42  ;;  %v8245_v61 = vld [vmem:[#allocation18 + $0x768] sm:$0xf0]  ;;  %v7516_v42 = vor.u32 %v10135_v18, %v7515_v17 }
 0x2b7   :  { %v10146_v3 = vld [vmem:[#allocation18 + $0x20c] sm:$0xf]  ;;  %v8248_v6 = vor.u32 %v10314_v58, %v8245_v61 }
 0x2b8   :  { %v7573_v5 = vld [vmem:[#allocation18 + $0x228] sm:$0xf0] }
 0x2b9   :  { %2981 = vmatpush.bf16.msrb.mxu3 %v7416_v24  ;;  %2993 = vmatpush.bf16.msra.mxu0 %v7704_v28  ;;  %v10234_v8 = vld [vmem:[#allocation18 + $0x4cc] sm:$0xf]  ;;  %v7576_v9 = vor.u32 %v10146_v3, %v7573_v5  ;;  %v7804_v28 = vor.u32 %v10207_v36, %v7803_v19  ;;  %v10103_v3 = vld [vmem:[#allocation18 + $0xac] sm:$0xf0] }
 0x2ba   :  { %3003 = vmatpush.bf16.msra.mxu1 %v8056_v29  ;;  %2971 = vmatpush.bf16.msrb.mxu2 %v8084_v37  ;;  %v7925_v14 = vld [vmem:[#allocation18 + $0x4e8] sm:$0xf0]  ;;  %v7675_v5 = vld [vmem:[#allocation18 + $0x2d0] sm:$0xf] }
 0x2bb   :  { %2959 = vmatmul.bf16.vlgmr.msrb.gmra.mxu1 %v11692_v47  ;;  %v10306_v15 = vld [vmem:[#allocation18 + $0x70c] sm:$0xf]  ;;  %v7928_v21 = vor.u32 %v10234_v8, %v7925_v14  ;;  %v10263_v8 = vld [vmem:[#allocation18 + $0x5ac] sm:$0xf0] }
 0x2bc   :  { %v8213_v16 = vld [vmem:[#allocation18 + $0x728] sm:$0xf0]  ;;  %v8315_v14 = vld [vmem:[#allocation18 + $0x7d0] sm:$0xf] }
 0x2bd   :  { %2982 = vmatpush.bf16.msrb.mxu3 %v7384_v39  ;;  %2994 = vmatpush.bf16.msra.mxu0 %v7672_v41  ;;  %v8216_v23 = vor.u32 %v10306_v15, %v8213_v16  ;;  %v10226_v24 = vld [vmem:[#allocation18 + $0x48c] sm:$0xf]  ;;  %v7772_v41 = vor.u32 %v10199_v33, %v7771_v32  ;;  %v10335_v15 = vld [vmem:[#allocation18 + $0x7ec] sm:$0xf0] }
 0x2be   :  { %3004 = vmatpush.bf16.msra.mxu1 %v8024_v38  ;;  %3016 = vmatpush.bf16.msra.mxu2 %v8312_v45  ;;  %v7893_v49 = vld [vmem:[#allocation18 + $0x4a8] sm:$0xf0]  ;;  %v10191_v45 = vld [vmem:[#allocation18 + $0x36c] sm:$0xf0] }
 0x2bf   :  { %2972 = vmatmul.bf16.vlgmr.msrb.gmra.mxu2 %v11696_v1  ;;  %v10298_v63 = vld [vmem:[#allocation18 + $0x6cc] sm:$0xf]  ;;  %v7896_v34 = vor.u32 %v10226_v24, %v7893_v49  ;;  %v7355_v36 = vld [vmem:[#allocation18 + $0x50] sm:$0xf] }
 0x2c0   :  { %v8181_v29 = vld [vmem:[#allocation18 + $0x6e8] sm:$0xf0]  ;;  %v7995_v24 = vld [vmem:[#allocation18 + $0x550] sm:$0xf] }
 0x2c1   :  { %2983 = vmatpush.bf16.msrb.mxu3 %v7352_v48  ;;  %2995 = vmatpush.bf16.msra.mxu0 %v7640_v51  ;;  %v8184_v11 = vor.u32 %v10298_v63, %v8181_v29  ;;  %v10218_v26 = vld [vmem:[#allocation18 + $0x44c] sm:$0xf]  ;;  %v7740_v51 = vor.u32 %v10191_v45, %v7739_v44  ;;  %v10255_v49 = vld [vmem:[#allocation18 + $0x56c] sm:$0xf0] }
 0x2c2   :  { %3005 = vmatpush.bf16.msra.mxu1 %v7992_v13  ;;  %3017 = vmatpush.bf16.msra.mxu2 %v8280_v55  ;;  %v7861_v37 = vld [vmem:[#allocation18 + $0x468] sm:$0xf0]  ;;  %v7419_v13 = vld [vmem:[#allocation18 + $0xd0] sm:$0xf]  ;;  %v7996_v32 = vor.u32 %v10255_v49, %v7995_v24 }
 0x2c3   :  { %v10290_v39 = vld [vmem:[#allocation18 + $0x68c] sm:$0xf]  ;;  %v7864_v20 = vor.u32 %v10218_v26, %v7861_v37  ;;  %v8059_v55 = vld [vmem:[#allocation18 + $0x5d0] sm:$0xf]  ;;  %v7420_v61 = vor.u32 %v10111_v52, %v7419_v13  ;;  %v10131_v13 = vld [vmem:[#allocation18 + $0x194] sm:$0xf] }
 0x2c4   :  { %v8149_v38 = vld [vmem:[#allocation18 + $0x6a8] sm:$0xf0]  ;;  %v8283_v63 = vld [vmem:[#allocation18 + $0x790] sm:$0xf]  ;;  %v7517_v52 = vld [vmem:[#allocation18 + $0x1b0] sm:$0xf0] }
 0x2c5   :  { %2984 = vmatpush.bf16.msrb.mxu3 %v7320_v0  ;;  %2996 = vmatpush.bf16.msra.mxu0 %v7608_v56  ;;  %v10210_v46 = vld [vmem:[#allocation18 + $0x40c] sm:$0xf]  ;;  %v8152_v60 = vor.u32 %v10290_v39, %v8149_v38  ;;  %v7708_v0 = vor.u32 %v10183_v54, %v7707_v53  ;;  %v8060_v56 = vor.u32 %v10271_v57, %v8059_v55  ;;  %v10087_v33 = vld [vmem:[#allocation18 + $0x2c] sm:$0xf0]  ;;  %v10139_v38 = vld [vmem:[#allocation18 + $0x1d4] sm:$0xf] }
 0x2c6   :  { %3006 = vmatpush.bf16.msra.mxu1 %v7960_v2  ;;  %3018 = vmatpush.bf16.msra.mxu2 %v8248_v6  ;;  %v7829_v10 = vld [vmem:[#allocation18 + $0x428] sm:$0xf0]  ;;  %v7387_v2 = vld [vmem:[#allocation18 + $0x90] sm:$0xf]  ;;  %v7324_v40 = vor.u32 %v10087_v33, %v7323_v30  ;;  %v10203_v53 = vld [vmem:[#allocation18 + $0x3d4] sm:$0xf] }
 0x2c7   :  { %v10282_v48 = vld [vmem:[#allocation18 + $0x64c] sm:$0xf]  ;;  %v7832_v22 = vor.u32 %v10210_v46, %v7829_v10  ;;  %v10175_v6 = vld [vmem:[#allocation18 + $0x2ec] sm:$0xf0]  ;;  %v7388_v17 = vor.u32 %v10103_v3, %v7387_v2  ;;  %v7805_v54 = vld [vmem:[#allocation18 + $0x3f0] sm:$0xf0] }
 0x2c8   :  { %2985 = vmatmul.bf16.vlgmr.msrb.gmra.mxu3 %v11677_v59  ;;  %v8117_v50 = vld [vmem:[#allocation18 + $0x668] sm:$0xf0]  ;;  %v7676_v18 = vor.u32 %v10175_v6, %v7675_v5  ;;  %v7963_v26 = vld [vmem:[#allocation18 + $0x510] sm:$0xf]  ;;  %v10123_v2 = vld [vmem:[#allocation18 + $0x154] sm:$0xf] }
 0x2c9   :  { %3029 = vmatpush.bf16.msra.mxu3 %v7548_v7  ;;  %2997 = vmatpush.bf16.msra.mxu0 %v7576_v9  ;;  %v8120_v58 = vor.u32 %v10282_v48, %v8117_v50  ;;  %v10274_v4 = vld [vmem:[#allocation18 + $0x60c] sm:$0xf]  ;;  %v8027_v7 = vld [vmem:[#allocation18 + $0x590] sm:$0xf]  ;;  %v7485_v3 = vld [vmem:[#allocation18 + $0x170] sm:$0xf0] }
 0x2ca   :  { %3007 = vmatpush.bf16.msra.mxu1 %v7928_v21  ;;  %3019 = vmatpush.bf16.msra.mxu2 %v8216_v23  ;;  %v8085_v62 = vld [vmem:[#allocation18 + $0x628] sm:$0xf0]  ;;  %v8028_v19 = vor.u32 %v10263_v8, %v8027_v7  ;;  %v10095_v9 = vld [vmem:[#allocation18 + $0x6c] sm:$0xf0]  ;;  %v8316_v23 = vor.u32 %v10335_v15, %v8315_v14  ;;  %v10195_v5 = vld [vmem:[#allocation18 + $0x394] sm:$0xf]  ;;  %v7488_v14 = vor.u32 %v10123_v2, %v7485_v3 }
 0x2cb   :  { %v8088_v16 = vor.u32 %v10274_v4, %v8085_v62  ;;  %v7643_v21 = vld [vmem:[#allocation18 + $0x290] sm:$0xf]  ;;  %v7356_v29 = vor.u32 %v10095_v9, %v7355_v36  ;;  %v7773_v6 = vld [vmem:[#allocation18 + $0x3b0] sm:$0xf0] }
 0x2cc   :  { %2998 = vmatmul.bf16.vlgmr.msra.gmra.mxu0 %v11681_v12  ;;  %v10247_v37 = vld [vmem:[#allocation18 + $0x52c] sm:$0xf0]  ;;  %v10115_v36 = vld [vmem:[#allocation18 + $0x114] sm:$0xf] }
 0x2cd   :  { %3030 = vmatpush.bf16.msra.mxu3 %v7516_v42  ;;  %3042 = vmatpush.bf16.msrb.mxu0 %v7804_v28  ;;  %v10167_v42 = vld [vmem:[#allocation18 + $0x2ac] sm:$0xf0]  ;;  %v7964_v45 = vor.u32 %v10247_v37, %v7963_v26  ;;  %v7453_v9 = vld [vmem:[#allocation18 + $0x130] sm:$0xf0] }
 0x2ce   :  { %3008 = vmatpush.bf16.msra.mxu1 %v7896_v34  ;;  %3020 = vmatpush.bf16.msra.mxu2 %v8184_v11  ;;  %v10327_v28 = vld [vmem:[#allocation18 + $0x7ac] sm:$0xf0]  ;;  %v7644_v31 = vor.u32 %v10167_v42, %v7643_v21  ;;  %v10187_v21 = vld [vmem:[#allocation18 + $0x354] sm:$0xf] }
 0x2cf   :  { %v7611_v34 = vld [vmem:[#allocation18 + $0x250] sm:$0xf]  ;;  %v7421_v33 = vld [vmem:[#allocation18 + $0xf0] sm:$0xf0] }
 0x2d0   :  { %v10159_v11 = vld [vmem:[#allocation18 + $0x26c] sm:$0xf0]  ;;  %v8061_v26 = vld [vmem:[#allocation18 + $0x5f0] sm:$0xf0] }
 0x2d1   :  { %3031 = vmatpush.bf16.msra.mxu3 %v7484_v35  ;;  %3043 = vmatpush.bf16.msrb.mxu0 %v7772_v41  ;;  %v8284_v35 = vor.u32 %v10327_v28, %v8283_v63  ;;  %v8251_v39 = vld [vmem:[#allocation18 + $0x750] sm:$0xf]  ;;  %v7612_v44 = vor.u32 %v10159_v11, %v7611_v34  ;;  %v7456_v63 = vor.u32 %v10115_v36, %v7453_v9  ;;  %v10179_v34 = vld [vmem:[#allocation18 + $0x314] sm:$0xf]  ;;  %v10144_v36 = vld [vmem:[#allocation18 + $0x1f4] sm:$0xf0] }
 0x2d2   :  { %3009 = vmatpush.bf16.msra.mxu1 %v7864_v20  ;;  %3021 = vmatpush.bf16.msra.mxu2 %v8152_v60  ;;  %v10319_v41 = vld [vmem:[#allocation18 + $0x76c] sm:$0xf0]  ;;  %v7709_v11 = vld [vmem:[#allocation18 + $0x330] sm:$0xf0] }
 0x2d3   :  { %v7579_v20 = vld [vmem:[#allocation18 + $0x210] sm:$0xf]  ;;  %v8252_v60 = vor.u32 %v10319_v41, %v8251_v39  ;;  %v10083_v2 = vld [vmem:[#allocation18 + $0x14] sm:$0xf] }
 0x2d4   :  { %v10151_v46 = vld [vmem:[#allocation18 + $0x22c] sm:$0xf0] }
 0x2d5   :  { %3032 = vmatpush.bf16.msra.mxu3 %v7452_v25  ;;  %3044 = vmatpush.bf16.msrb.mxu0 %v7740_v51  ;;  %v7552_v25 = vor.u32 %v10139_v38, %v7549_v43  ;;  %v7931_v10 = vld [vmem:[#allocation18 + $0x4d0] sm:$0xf]  ;;  %v7580_v55 = vor.u32 %v10151_v46, %v7579_v20  ;;  %v7389_v20 = vld [vmem:[#allocation18 + $0xb0] sm:$0xf0] }
 0x2d6   :  { %3010 = vmatpush.bf16.msra.mxu1 %v7832_v22  ;;  %3022 = vmatpush.bf16.msra.mxu2 %v8120_v58  ;;  %v10239_v48 = vld [vmem:[#allocation18 + $0x4ec] sm:$0xf0]  ;;  %v7520_v58 = vor.u32 %v10131_v13, %v7517_v52  ;;  %v10171_v46 = vld [vmem:[#allocation18 + $0x2d4] sm:$0xf] }
 0x2d7   :  { %v8219_v50 = vld [vmem:[#allocation18 + $0x710] sm:$0xf]  ;;  %v7932_v57 = vor.u32 %v10239_v48, %v7931_v10  ;;  %v8029_v10 = vld [vmem:[#allocation18 + $0x5b0] sm:$0xf0] }
 0x2d8   :  { %v10311_v51 = vld [vmem:[#allocation18 + $0x72c] sm:$0xf0]  ;;  %v10331_v48 = vld [vmem:[#allocation18 + $0x7d4] sm:$0xf] }
 0x2d9   :  { %3033 = vmatpush.bf16.msra.mxu3 %v7420_v61  ;;  %3045 = vmatpush.bf16.msrb.mxu0 %v7708_v0  ;;  %v8220_v22 = vor.u32 %v10311_v51, %v8219_v50  ;;  %v7899_v61 = vld [vmem:[#allocation18 + $0x490] sm:$0xf]  ;;  %v7808_v0 = vor.u32 %v10203_v53, %v7805_v54  ;;  %v8317_v50 = vld [vmem:[#allocation18 + $0x7f0] sm:$0xf0] }
 0x2da   :  { %3055 = vmatpush.bf16.msrb.mxu1 %v8060_v56  ;;  %3023 = vmatpush.bf16.msra.mxu2 %v8088_v16  ;;  %v10231_v4 = vld [vmem:[#allocation18 + $0x4ac] sm:$0xf0]  ;;  %v10091_v54 = vld [vmem:[#allocation18 + $0x54] sm:$0xf] }
 0x2db   :  { %3011 = vmatmul.bf16.vlgmr.msra.gmra.mxu1 %v11692_v47  ;;  %v8187_v62 = vld [vmem:[#allocation18 + $0x6d0] sm:$0xf]  ;;  %v7900_v7 = vor.u32 %v10231_v4, %v7899_v61  ;;  %v10251_v61 = vld [vmem:[#allocation18 + $0x554] sm:$0xf] }
 0x2dc   :  { %v10303_v56 = vld [vmem:[#allocation18 + $0x6ec] sm:$0xf0]  ;;  %v7997_v4 = vld [vmem:[#allocation18 + $0x570] sm:$0xf0] }
 0x2dd   :  { %3034 = vmatpush.bf16.msra.mxu3 %v7388_v17  ;;  %3046 = vmatpush.bf16.msrb.mxu0 %v7676_v18  ;;  %v8188_v8 = vor.u32 %v10303_v56, %v8187_v62  ;;  %v7867_v15 = vld [vmem:[#allocation18 + $0x450] sm:$0xf]  ;;  %v7776_v18 = vor.u32 %v10195_v5, %v7773_v6  ;;  %v10323_v62 = vld [vmem:[#allocation18 + $0x794] sm:$0xf]  ;;  %v8000_v5 = vor.u32 %v10251_v61, %v7997_v4 }
 0x2de   :  { %3056 = vmatpush.bf16.msrb.mxu1 %v8028_v19  ;;  %3068 = vmatpush.bf16.msrb.mxu2 %v8316_v23  ;;  %v10223_v16 = vld [vmem:[#allocation18 + $0x46c] sm:$0xf0]  ;;  %v7741_v23 = vld [vmem:[#allocation18 + $0x370] sm:$0xf0] }
 0x2df   :  { %3024 = vmatmul.bf16.vlgmr.msra.gmra.mxu2 %v11696_v1  ;;  %v8155_v17 = vld [vmem:[#allocation18 + $0x690] sm:$0xf]  ;;  %v7868_v42 = vor.u32 %v10223_v16, %v7867_v15  ;;  %v7325_v6 = vld [vmem:[#allocation18 + $0x30] sm:$0xf0] }
 0x2e0   :  { %v10295_v19 = vld [vmem:[#allocation18 + $0x6ac] sm:$0xf0]  ;;  %v10243_v15 = vld [vmem:[#allocation18 + $0x514] sm:$0xf]  ;;  %v7328_v9 = vor.u32 %v10083_v2, %v7325_v6  ;;  %v7427_v6 = vld [vmem:[#allocation18 + $0xd8] sm:$0xf] }
 0x2e1   :  { %3035 = vmatpush.bf16.msra.mxu3 %v7356_v29  ;;  %3047 = vmatpush.bf16.msrb.mxu0 %v7644_v31  ;;  %v7835_v24 = vld [vmem:[#allocation18 + $0x410] sm:$0xf]  ;;  %v8156_v49 = vor.u32 %v10295_v19, %v8155_v17  ;;  %v7744_v31 = vor.u32 %v10187_v21, %v7741_v23  ;;  %v7965_v16 = vld [vmem:[#allocation18 + $0x530] sm:$0xf0]  ;;  %v7555_v19 = vld [vmem:[#allocation18 + $0x1d8] sm:$0xf] }
 0x2e2   :  { %3057 = vmatpush.bf16.msrb.mxu1 %v7996_v32  ;;  %3069 = vmatpush.bf16.msrb.mxu2 %v8284_v35  ;;  %v10215_v28 = vld [vmem:[#allocation18 + $0x42c] sm:$0xf0]  ;;  %v10107_v32 = vld [vmem:[#allocation18 + $0xd4] sm:$0xf]  ;;  %v7968_v23 = vor.u32 %v10243_v15, %v7965_v16  ;;  %v10184_v15 = vld [vmem:[#allocation18 + $0x334] sm:$0xf0] }
 0x2e3   :  { %v8123_v29 = vld [vmem:[#allocation18 + $0x650] sm:$0xf]  ;;  %v10267_v35 = vld [vmem:[#allocation18 + $0x5d4] sm:$0xf]  ;;  %v7836_v37 = vor.u32 %v10215_v28, %v7835_v24  ;;  %v7424_v41 = vor.u32 %v10107_v32, %v7421_v33  ;;  %v7523_v32 = vld [vmem:[#allocation18 + $0x198] sm:$0xf] }
 0x2e4   :  { %v10287_v30 = vld [vmem:[#allocation18 + $0x66c] sm:$0xf0]  ;;  %v10315_v17 = vld [vmem:[#allocation18 + $0x754] sm:$0xf]  ;;  %v10136_v33 = vld [vmem:[#allocation18 + $0x1b4] sm:$0xf0] }
 0x2e5   :  { %3036 = vmatpush.bf16.msra.mxu3 %v7324_v40  ;;  %3048 = vmatpush.bf16.msrb.mxu0 %v7612_v44  ;;  %v8124_v39 = vor.u32 %v10287_v30, %v8123_v29  ;;  %v8091_v38 = vld [vmem:[#allocation18 + $0x610] sm:$0xf]  ;;  %v7712_v40 = vor.u32 %v10179_v34, %v7709_v11  ;;  %v8064_v44 = vor.u32 %v10267_v35, %v8061_v26  ;;  %v7581_v24 = vld [vmem:[#allocation18 + $0x230] sm:$0xf0]  ;;  %v7811_v34 = vld [vmem:[#allocation18 + $0x3d8] sm:$0xf] }
 0x2e6   :  { %3058 = vmatpush.bf16.msrb.mxu1 %v7964_v45  ;;  %3070 = vmatpush.bf16.msrb.mxu2 %v8252_v60  ;;  %v10279_v43 = vld [vmem:[#allocation18 + $0x62c] sm:$0xf0]  ;;  %v10099_v45 = vld [vmem:[#allocation18 + $0x94] sm:$0xf]  ;;  %v10208_v11 = vld [vmem:[#allocation18 + $0x3f4] sm:$0xf0] }
 0x2e7   :  { %v7677_v60 = vld [vmem:[#allocation18 + $0x2f0] sm:$0xf0]  ;;  %v8092_v51 = vor.u32 %v10279_v43, %v8091_v38  ;;  %v7392_v13 = vor.u32 %v10099_v45, %v7389_v20  ;;  %v7491_v45 = vld [vmem:[#allocation18 + $0x158] sm:$0xf] }
 0x2e8   :  { %3037 = vmatmul.bf16.vlgmr.msra.gmra.mxu3 %v11677_v59  ;;  %v7680_v52 = vor.u32 %v10171_v46, %v7677_v60  ;;  %v10235_v28 = vld [vmem:[#allocation18 + $0x4d4] sm:$0xf]  ;;  %v10128_v20 = vld [vmem:[#allocation18 + $0x174] sm:$0xf0] }
 0x2e9   :  { %3081 = vmatpush.bf16.msrb.mxu3 %v7552_v25  ;;  %3049 = vmatpush.bf16.msrb.mxu0 %v7580_v55  ;;  %v10259_v25 = vld [vmem:[#allocation18 + $0x594] sm:$0xf]  ;;  %v7779_v46 = vld [vmem:[#allocation18 + $0x398] sm:$0xf] }
 0x2ea   :  { %3059 = vmatpush.bf16.msrb.mxu1 %v7932_v57  ;;  %3071 = vmatpush.bf16.msrb.mxu2 %v8220_v22  ;;  %v8032_v53 = vor.u32 %v10259_v25, %v8029_v10  ;;  %v7357_v55 = vld [vmem:[#allocation18 + $0x70] sm:$0xf0]  ;;  %v8320_v22 = vor.u32 %v10331_v48, %v8317_v50  ;;  %v10200_v60 = vld [vmem:[#allocation18 + $0x3b4] sm:$0xf0]  ;;  %v7492_v48 = vor.u32 %v10128_v20, %v7491_v45 }
 0x2eb   :  { %v10163_v57 = vld [vmem:[#allocation18 + $0x294] sm:$0xf]  ;;  %v7360_v56 = vor.u32 %v10091_v54, %v7357_v55  ;;  %v7459_v54 = vld [vmem:[#allocation18 + $0x118] sm:$0xf] }
 0x2ec   :  { %3050 = vmatmul.bf16.vlgmr.msrb.gmra.mxu0 %v11681_v12  ;;  %v7933_v29 = vld [vmem:[#allocation18 + $0x4f0] sm:$0xf0]  ;;  %v10120_v55 = vld [vmem:[#allocation18 + $0x134] sm:$0xf0] }
 0x2ed   :  { %3082 = vmatpush.bf16.msrb.mxu3 %v7520_v58  ;;  %3094 = vmatpush.bf16.msra.mxu0 %v7808_v0  ;;  %v7645_v58 = vld [vmem:[#allocation18 + $0x2b0] sm:$0xf0]  ;;  %v7936_v26 = vor.u32 %v10235_v28, %v7933_v29  ;;  %v8067_v16 = vld [vmem:[#allocation18 + $0x5d8] sm:$0xf] }
 0x2ee   :  { %3060 = vmatpush.bf16.msrb.mxu1 %v7900_v7  ;;  %3072 = vmatpush.bf16.msrb.mxu2 %v8188_v8  ;;  %v8285_v0 = vld [vmem:[#allocation18 + $0x7b0] sm:$0xf0]  ;;  %v7648_v3 = vor.u32 %v10163_v57, %v7645_v58  ;;  %v7747_v57 = vld [vmem:[#allocation18 + $0x358] sm:$0xf] }
 0x2ef   :  { %v10155_v7 = vld [vmem:[#allocation18 + $0x254] sm:$0xf]  ;;  %v10176_v28 = vld [vmem:[#allocation18 + $0x2f4] sm:$0xf0] }
 0x2f0   :  { %v7613_v8 = vld [vmem:[#allocation18 + $0x270] sm:$0xf0]  ;;  %v8035_v29 = vld [vmem:[#allocation18 + $0x598] sm:$0xf] }
 0x2f1   :  { %3083 = vmatpush.bf16.msrb.mxu3 %v7488_v14  ;;  %3095 = vmatpush.bf16.msra.mxu0 %v7776_v18  ;;  %v8288_v14 = vor.u32 %v10323_v62, %v8285_v0  ;;  %v8253_v18 = vld [vmem:[#allocation18 + $0x770] sm:$0xf0]  ;;  %v7616_v21 = vor.u32 %v10155_v7, %v7613_v8  ;;  %v7460_v62 = vor.u32 %v10120_v55, %v7459_v54  ;;  %v10112_v7 = vld [vmem:[#allocation18 + $0xf4] sm:$0xf0] }
 0x2f2   :  { %3061 = vmatpush.bf16.msrb.mxu1 %v7868_v42  ;;  %3073 = vmatpush.bf16.msrb.mxu2 %v8156_v49  ;;  %v10147_v42 = vld [vmem:[#allocation18 + $0x214] sm:$0xf]  ;;  %v8256_v49 = vor.u32 %v10315_v17, %v8253_v18  ;;  %v7715_v8 = vld [vmem:[#allocation18 + $0x318] sm:$0xf] }
 0x2f3   :  { %v10307_v30 = vld [vmem:[#allocation18 + $0x714] sm:$0xf]  ;;  %v7584_v35 = vor.u32 %v10147_v42, %v7581_v24  ;;  %v10272_v17 = vld [vmem:[#allocation18 + $0x5f4] sm:$0xf0] }
 0x2f4   :  { %v7901_v38 = vld [vmem:[#allocation18 + $0x4b0] sm:$0xf0]  ;;  %v8068_v42 = vor.u32 %v10272_v17, %v8067_v16  ;;  %v7395_v24 = vld [vmem:[#allocation18 + $0x98] sm:$0xf] }
 0x2f5   :  { %3084 = vmatpush.bf16.msrb.mxu3 %v7456_v63  ;;  %3096 = vmatpush.bf16.msra.mxu0 %v7744_v31  ;;  %v7556_v63 = vor.u32 %v10144_v36, %v7555_v19  ;;  %v8221_v31 = vld [vmem:[#allocation18 + $0x730] sm:$0xf0]  ;;  %v7428_v36 = vor.u32 %v10112_v7, %v7427_v6  ;;  %v8003_v45 = vld [vmem:[#allocation18 + $0x558] sm:$0xf] }
 0x2f6   :  { %3062 = vmatpush.bf16.msrb.mxu1 %v7836_v37  ;;  %3074 = vmatpush.bf16.msrb.mxu2 %v8124_v39  ;;  %v8224_v37 = vor.u32 %v10307_v30, %v8221_v31  ;;  %v7524_v39 = vor.u32 %v10136_v33, %v7523_v32  ;;  %v10299_v43 = vld [vmem:[#allocation18 + $0x6d4] sm:$0xf]  ;;  %v10264_v30 = vld [vmem:[#allocation18 + $0x5b4] sm:$0xf0]  ;;  %v11723_v33 = vld [vmem:[%s12252_s13] sm:$0xff] }
 0x2f7   :  { %v10219_v50 = vld [vmem:[#allocation18 + $0x454] sm:$0xf]  ;;  %v8323_v31 = vld [vmem:[#allocation18 + $0x7d8] sm:$0xf] }
 0x2f8   :  { %v10211_v61 = vld [vmem:[#allocation18 + $0x414] sm:$0xf]  ;;  %v10336_v32 = vld [vmem:[#allocation18 + $0x7f4] sm:$0xf0] }
 0x2f9   :  { %3085 = vmatpush.bf16.msrb.mxu3 %v7424_v41  ;;  %3097 = vmatpush.bf16.msra.mxu0 %v7712_v40  ;;  %v10227_v41 = vld [vmem:[#allocation18 + $0x494] sm:$0xf]  ;;  %v7812_v40 = vor.u32 %v10208_v11, %v7811_v34  ;;  %v10256_v20 = vld [vmem:[#allocation18 + $0x574] sm:$0xf0] }
 0x2fa   :  { %3107 = vmatpush.bf16.msra.mxu1 %v8064_v44  ;;  %3075 = vmatpush.bf16.msrb.mxu2 %v8092_v51  ;;  %v8189_v44 = vld [vmem:[#allocation18 + $0x6f0] sm:$0xf0]  ;;  %v7904_v25 = vor.u32 %v10227_v41, %v7901_v38  ;;  %v10096_v41 = vld [vmem:[#allocation18 + $0x74] sm:$0xf0] }
 0x2fb   :  { %3063 = vmatmul.bf16.vlgmr.msrb.gmra.mxu1 %v11692_v47  ;;  %v8192_v10 = vor.u32 %v10299_v43, %v8189_v44  ;;  %v7869_v51 = vld [vmem:[#allocation18 + $0x470] sm:$0xf0]  ;;  %v7651_v38 = vld [vmem:[#allocation18 + $0x298] sm:$0xf]  ;;  %v8324_v43 = vor.u32 %v10336_v32, %v8323_v31 }
 0x2fc   :  { %v7872_v58 = vor.u32 %v10219_v50, %v7869_v51  ;;  %v10283_v2 = vld [vmem:[#allocation18 + $0x654] sm:$0xf]  ;;  %v10168_v44 = vld [vmem:[#allocation18 + $0x2b4] sm:$0xf0] }
 0x2fd   :  { %3086 = vmatpush.bf16.msrb.mxu3 %v7392_v13  ;;  %3098 = vmatpush.bf16.msra.mxu0 %v7680_v52  ;;  %v10291_v13 = vld [vmem:[#allocation18 + $0x694] sm:$0xf]  ;;  %v7780_v52 = vor.u32 %v10200_v60, %v7779_v46  ;;  %v8291_v46 = vld [vmem:[#allocation18 + $0x798] sm:$0xf]  ;;  %v7652_v51 = vor.u32 %v10168_v44, %v7651_v38 }
 0x2fe   :  { %3108 = vmatpush.bf16.msra.mxu1 %v8032_v53  ;;  %3120 = vmatpush.bf16.msra.mxu2 %v8320_v22  ;;  %v8157_v53 = vld [vmem:[#allocation18 + $0x6b0] sm:$0xf0]  ;;  %v10192_v22 = vld [vmem:[#allocation18 + $0x374] sm:$0xf0] }
 0x2ff   :  { %3076 = vmatmul.bf16.vlgmr.msrb.gmra.mxu2 %v11696_v1  ;;  %v8160_v4 = vor.u32 %v10291_v13, %v8157_v53  ;;  %v10328_v60 = vld [vmem:[#allocation18 + $0x7b4] sm:$0xf0]  ;;  %v8004_v13 = vor.u32 %v10256_v20, %v8003_v45 }
 0x300   :  { %v7331_v50 = vld [vmem:[#allocation18 + $0x18] sm:$0xf]  ;;  %v8292_v55 = vor.u32 %v10328_v60, %v8291_v46 }
 0x301   :  { %3087 = vmatpush.bf16.msrb.mxu3 %v7360_v56  ;;  %3099 = vmatpush.bf16.msra.mxu0 %v7648_v3  ;;  %v7837_v56 = vld [vmem:[#allocation18 + $0x430] sm:$0xf0]  ;;  %v7619_v53 = vld [vmem:[#allocation18 + $0x258] sm:$0xf] }
 0x302   :  { %3109 = vmatpush.bf16.msra.mxu1 %v8000_v5  ;;  %3121 = vmatpush.bf16.msra.mxu2 %v8288_v14  ;;  %v8125_v3 = vld [vmem:[#allocation18 + $0x670] sm:$0xf0]  ;;  %v7748_v5 = vor.u32 %v10192_v22, %v7747_v57  ;;  %v7840_v18 = vor.u32 %v10211_v61, %v7837_v56  ;;  %v10160_v54 = vld [vmem:[#allocation18 + $0x274] sm:$0xf0] }
 0x303   :  { %v8128_v19 = vor.u32 %v10283_v2, %v8125_v3  ;;  %v7971_v57 = vld [vmem:[#allocation18 + $0x518] sm:$0xf] }
 0x304   :  { %v10248_v22 = vld [vmem:[#allocation18 + $0x534] sm:$0xf0] }
 0x305   :  { %3088 = vmatpush.bf16.msrb.mxu3 %v7328_v9  ;;  %3100 = vmatpush.bf16.msra.mxu0 %v7616_v21  ;;  %v10275_v9 = vld [vmem:[#allocation18 + $0x614] sm:$0xf]  ;;  %v10320_v61 = vld [vmem:[#allocation18 + $0x774] sm:$0xf0]  ;;  %v7972_v6 = vor.u32 %v10248_v22, %v7971_v57  ;;  %v10188_v57 = vld [vmem:[#allocation18 + $0x35c] sm:$0xf] }
 0x306   :  { %3110 = vmatpush.bf16.msra.mxu1 %v7968_v23  ;;  %3122 = vmatpush.bf16.msra.mxu2 %v8256_v49  ;;  %v8093_v21 = vld [vmem:[#allocation18 + $0x630] sm:$0xf0]  ;;  %v7716_v23 = vor.u32 %v10184_v15, %v7715_v8  ;;  %v10104_v49 = vld [vmem:[#allocation18 + $0xb4] sm:$0xf0]  ;;  %v7749_v22 = vld [vmem:[#allocation18 + $0x378] sm:$0xf0] }
 0x307   :  { %v8096_v34 = vor.u32 %v10275_v9, %v8093_v21  ;;  %v7396_v11 = vor.u32 %v10104_v49, %v7395_v24  ;;  %v7587_v7 = vld [vmem:[#allocation18 + $0x218] sm:$0xf]  ;;  %v7525_v21 = vld [vmem:[#allocation18 + $0x1b8] sm:$0xf0] }
 0x308   :  { %3089 = vmatmul.bf16.vlgmr.msrb.gmra.mxu3 %v11677_v59  ;;  %v10152_v8 = vld [vmem:[#allocation18 + $0x234] sm:$0xf0]  ;;  %v10204_v24 = vld [vmem:[#allocation18 + $0x3dc] sm:$0xf] }
 0x309   :  { %3133 = vmatpush.bf16.msra.mxu3 %v7556_v63  ;;  %3101 = vmatpush.bf16.msra.mxu0 %v7584_v35  ;;  %v11716_v0 = vpop.f32.mrf.mxu0  ;;  %v7683_v63 = vld [vmem:[#allocation18 + $0x2d8] sm:$0xf]  ;;  %v7813_v49 = vld [vmem:[#allocation18 + $0x3f8] sm:$0xf0] }
 0x30a   :  { %3111 = vmatpush.bf16.msra.mxu1 %v7936_v26  ;;  %3123 = vmatpush.bf16.msra.mxu2 %v8224_v37  ;;  %v7684_v26 = vor.u32 %v10176_v28, %v7683_v63  ;;  %v8036_v37 = vor.u32 %v10264_v30, %v8035_v29  ;;  %v10312_v9 = vld [vmem:[#allocation18 + $0x734] sm:$0xf0]  ;;  %v7588_v63 = vor.u32 %v10152_v8, %v7587_v7  ;;  %v10108_v7 = vld [vmem:[#allocation18 + $0xdc] sm:$0xf] }
 0x30b   :  { %v11718_v14 = vpop.f32.mrf.mxu3  ;;  %v7907_v32 = vld [vmem:[#allocation18 + $0x498] sm:$0xf] }
 0x30c   :  { %3102 = vmatmul.bf16.vlgmr.msra.gmra.mxu0 %v11681_v12  ;;  %v7875_v45 = vld [vmem:[#allocation18 + $0x458] sm:$0xf] }
 0x30d   :  { %3134 = vmatpush.bf16.msra.mxu3 %v7524_v39  ;;  %3146 = vmatpush.bf16.msrb.mxu0 %v7812_v40  ;;  %v7363_v39 = vld [vmem:[#allocation18 + $0x58] sm:$0xf] }
 0x30e   :  { %3112 = vmatpush.bf16.msra.mxu1 %v7904_v25  ;;  %3124 = vmatpush.bf16.msra.mxu2 %v8192_v10  ;;  %v1525_v25 = vperm.slane %v11723_v33, 0  ;;  %v7364_v10 = vor.u32 %v10096_v41, %v7363_v39  ;;  %v7493_v39 = vld [vmem:[#allocation18 + $0x178] sm:$0xf0]  ;;  %v10224_v20 = vld [vmem:[#allocation18 + $0x474] sm:$0xf0] }
 0x310   :  { %v2831_v56 = vadd.f32 %v11718_v14, %v1525_v25  ;;  %v10132_v14 = vld [vmem:[#allocation18 + $0x19c] sm:$0xf] }
 0x311   :  { %3135 = vmatpush.bf16.msra.mxu3 %v7492_v48  ;;  %3147 = vmatpush.bf16.msrb.mxu0 %v7780_v52  ;;  %v2845_v35 = vpop.f32.mrf.mxu0  ;;  %v10088_v52 = vld [vmem:[#allocation18 + $0x34] sm:$0xf0]  ;;  %v7528_v31 = vor.u32 %v10132_v14, %v7525_v21  ;;  %v10268_v14 = vld [vmem:[#allocation18 + $0x5dc] sm:$0xf] }
 0x312   :  { %3113 = vmatpush.bf16.msra.mxu1 %v7872_v58  ;;  %3125 = vmatpush.bf16.msra.mxu2 %v8160_v4  ;;  %v8259_v58 = vld [vmem:[#allocation18 + $0x758] sm:$0xf]  ;;  %v10140_v4 = vld [vmem:[#allocation18 + $0x1dc] sm:$0xf]  ;;  %v7332_v2 = vor.u32 %v10088_v52, %v7331_v50  ;;  %v7816_v35 = vor.u32 %v10204_v24, %v7813_v49 }
 0x313   :  { %v2832_v40 = vpop.f32.mrf.mxu3  ;;  %v8260_v15 = vor.u32 %v10320_v61, %v8259_v58  ;;  %v10296_v50 = vld [vmem:[#allocation18 + $0x6b4] sm:$0xf0]  ;;  %v10116_v52 = vld [vmem:[#allocation18 + $0x11c] sm:$0xf]  ;;  %v7876_v61 = vor.u32 %v10224_v20, %v7875_v45 }
 0x314   :  { %v7781_v40 = vld [vmem:[#allocation18 + $0x3b8] sm:$0xf0] }
 0x315   :  { %3136 = vmatpush.bf16.msra.mxu3 %v7460_v62  ;;  %3148 = vmatpush.bf16.msrb.mxu0 %v7748_v5  ;;  %v2856_v48 = vpop.f32.mrf.mxu1  ;;  %v7557_v62 = vld [vmem:[#allocation18 + $0x1f8] sm:$0xf0]  ;;  %v7620_v5 = vor.u32 %v10160_v54, %v7619_v53  ;;  %v1526_v54 = vperm.slane %v11723_v33, 1 }
 0x316   :  { %3114 = vmatpush.bf16.msra.mxu1 %v7840_v18  ;;  %3126 = vmatpush.bf16.msra.mxu2 %v8128_v19  ;;  %v7560_v16 = vor.u32 %v10140_v4, %v7557_v62  ;;  %v7939_v18 = vld [vmem:[#allocation18 + $0x4d8] sm:$0xf]  ;;  %v7461_v53 = vld [vmem:[#allocation18 + $0x138] sm:$0xf0] }
 0x317   :  { %v10240_v19 = vld [vmem:[#allocation18 + $0x4f4] sm:$0xf0]  ;;  %v8069_v21 = vld [vmem:[#allocation18 + $0x5f8] sm:$0xf0] }
 0x318   :  { %v7940_v28 = vor.u32 %v10240_v19, %v7939_v18  ;;  %v7843_v4 = vld [vmem:[#allocation18 + $0x418] sm:$0xf]  ;;  %v7429_v18 = vld [vmem:[#allocation18 + $0xf8] sm:$0xf0] }
 0x319   :  { %3137 = vmatpush.bf16.msra.mxu3 %v7428_v36  ;;  %3149 = vmatpush.bf16.msrb.mxu0 %v7716_v23  ;;  %v11729_v3 = vpop.f32.mrf.mxu0  ;;  %v8227_v36 = vld [vmem:[#allocation18 + $0x718] sm:$0xf]  ;;  %v2844_v23 = vadd.f32 %v11716_v0, %v2831_v56  ;;  %v10180_v19 = vld [vmem:[#allocation18 + $0x31c] sm:$0xf] }
 0x31a   :  { %3159 = vmatpush.bf16.msrb.mxu1 %v8068_v42  ;;  %3127 = vmatpush.bf16.msra.mxu2 %v8096_v34  ;;  %v8228_v30 = vor.u32 %v10312_v9, %v8227_v36  ;;  %v10232_v34 = vld [vmem:[#allocation18 + $0x4b4] sm:$0xf0]  ;;  %v7717_v9 = vld [vmem:[#allocation18 + $0x338] sm:$0xf0] }
 0x31b   :  { %3115 = vmatmul.bf16.vlgmr.msra.gmra.mxu1 %v11692_v47  ;;  %v11731_v17 = vpop.f32.mrf.mxu3  ;;  %v2857_v29 = vadd.f32 %v2856_v48, %v2844_v23  ;;  %v7908_v44 = vor.u32 %v10232_v34, %v7907_v32  ;;  %v8163_v48 = vld [vmem:[#allocation18 + $0x698] sm:$0xf]  ;;  %v8072_v34 = vor.u32 %v10268_v14, %v8069_v21  ;;  %v8261_v14 = vld [vmem:[#allocation18 + $0x778] sm:$0xf0] }
 0x31c   :  { %v10216_v62 = vld [vmem:[#allocation18 + $0x434] sm:$0xf0]  ;;  %v8164_v56 = vor.u32 %v10296_v50, %v8163_v48  ;;  %v2883_v36 = vadd.f32 %v11731_v17, %v1526_v54  ;;  %v7720_v17 = vor.u32 %v10180_v19, %v7717_v9  ;;  %v10092_v48 = vld [vmem:[#allocation18 + $0x5c] sm:$0xf] }
 0x31d   :  { %3138 = vmatpush.bf16.msra.mxu3 %v7396_v11  ;;  %3150 = vmatpush.bf16.msrb.mxu0 %v7684_v26  ;;  %v2858_v42 = vpop.f32.mrf.mxu1  ;;  %v8195_v11 = vld [vmem:[#allocation18 + $0x6d8] sm:$0xf]  ;;  %v7365_v50 = vld [vmem:[#allocation18 + $0x78] sm:$0xf0] }
 0x31e   :  { %3160 = vmatpush.bf16.msrb.mxu1 %v8036_v37  ;;  %3172 = vmatpush.bf16.msrb.mxu2 %v8324_v43  ;;  %v10304_v26 = vld [vmem:[#allocation18 + $0x6f4] sm:$0xf0]  ;;  %v10124_v37 = vld [vmem:[#allocation18 + $0x15c] sm:$0xf]  ;;  %v7844_v42 = vor.u32 %v10216_v62, %v7843_v4 }
 0x31f   :  { %3128 = vmatmul.bf16.vlgmr.msra.gmra.mxu2 %v11696_v1  ;;  %v2869_v0 = vpop.f32.mrf.mxu2  ;;  %v10196_v43 = vld [vmem:[#allocation18 + $0x39c] sm:$0xf]  ;;  %v8196_v60 = vor.u32 %v10304_v26, %v8195_v11  ;;  %v7496_v25 = vor.u32 %v10124_v37, %v7493_v39 }
 0x320   :  { %v11735_v41 = vadd.f32 %v2869_v0, %v2857_v29  ;;  %v8099_v29 = vld [vmem:[#allocation18 + $0x618] sm:$0xf]  ;;  %v7397_v11 = vld [vmem:[#allocation18 + $0xb8] sm:$0xf0]  ;;  %v2896_v0 = vadd.f32 %v11729_v3, %v2883_v36 }
 0x321   :  { %3139 = vmatpush.bf16.msra.mxu3 %v7364_v10  ;;  %3151 = vmatpush.bf16.msrb.mxu0 %v7652_v51  ;;  %v2897_v38 = vpop.f32.mrf.mxu0  ;;  %v7685_v37 = vld [vmem:[#allocation18 + $0x2f8] sm:$0xf0] }
 0x322   :  { %3161 = vmatpush.bf16.msrb.mxu1 %v8004_v13  ;;  %3173 = vmatpush.bf16.msrb.mxu2 %v8292_v55  ;;  %v3239_v46 = vsel %vm515_vm1, %v11735_v41, 0.0  ;;  %v7784_v13 = vor.u32 %v10196_v43, %v7781_v40  ;;  %v10260_v39 = vld [vmem:[#allocation18 + $0x59c] sm:$0xf] }
 0x323   :  { %v2884_v10 = vpop.f32.mrf.mxu3  ;;  %v3240_v51 = vrot.slane %v3239_v46, 4  ;;  %v8037_v38 = vld [vmem:[#allocation18 + $0x5b8] sm:$0xf0] }
 0x324   :  { %v10332_v40 = vld [vmem:[#allocation18 + $0x7dc] sm:$0xf]  ;;  %v8040_v10 = vor.u32 %v10260_v39, %v8037_v38 }
 0x325   :  { %3140 = vmatpush.bf16.msra.mxu3 %v7332_v2  ;;  %3152 = vmatpush.bf16.msrb.mxu0 %v7620_v5  ;;  %v2908_v55 = vpop.f32.mrf.mxu1  ;;  %v3241_v58 = vadd.f32 %v3240_v51, %v3239_v46  ;;  %v7464_v2 = vor.u32 %v10116_v52, %v7461_v53  ;;  %v8131_v5 = vld [vmem:[#allocation18 + $0x658] sm:$0xf]  ;;  %v10164_v51 = vld [vmem:[#allocation18 + $0x29c] sm:$0xf] }
 0x326   :  { %3162 = vmatpush.bf16.msrb.mxu1 %v7972_v6  ;;  %3174 = vmatpush.bf16.msrb.mxu2 %v8260_v15  ;;  %v10288_v6 = vld [vmem:[#allocation18 + $0x674] sm:$0xf0]  ;;  %v7752_v15 = vor.u32 %v10188_v57, %v7749_v22  ;;  %v2909_v45 = vadd.f32 %v2908_v55, %v2896_v0  ;;  %v7653_v53 = vld [vmem:[#allocation18 + $0x2b8] sm:$0xf0] }
 0x327   :  { %v3242_v8 = vrot.slane %v3241_v58, 2  ;;  %v8132_v49 = vor.u32 %v10288_v6, %v8131_v5  ;;  %v10252_v54 = vld [vmem:[#allocation18 + $0x55c] sm:$0xf] }
 0x328   :  { %3141 = vmatmul.bf16.vlgmr.msra.gmra.mxu3 %v11677_v59  ;;  %v8005_v55 = vld [vmem:[#allocation18 + $0x578] sm:$0xf0] }
 0x329   :  { %3185 = vmatpush.bf16.msrb.mxu3 %v7560_v16  ;;  %3153 = vmatpush.bf16.msrb.mxu0 %v7588_v63  ;;  %v2871_v16 = vpop.f32.mrf.mxu2  ;;  %v3243_v23 = vadd.f32 %v3242_v8, %v3241_v58  ;;  %v11742_v24 = vpop.f32.mrf.mxu0  ;;  %v7432_v63 = vor.u32 %v10108_v7, %v7429_v18  ;;  %v10324_v58 = vld [vmem:[#allocation18 + $0x79c] sm:$0xf]  ;;  %v7656_v8 = vor.u32 %v10164_v51, %v7653_v53 }
 0x32a   :  { %3163 = vmatpush.bf16.msrb.mxu1 %v7940_v28  ;;  %3175 = vmatpush.bf16.msrb.mxu2 %v8228_v30  ;;  %v10280_v30 = vld [vmem:[#allocation18 + $0x634] sm:$0xf0]  ;;  %v10084_v4 = vld [vmem:[#allocation18 + $0x1c] sm:$0xf] }
 0x32b   :  { %v11744_v28 = vpop.f32.mrf.mxu3  ;;  %v3244_v32 = vrot.slane %v3243_v23, 1  ;;  %v8100_v20 = vor.u32 %v10280_v30, %v8099_v29  ;;  %v7333_v5 = vld [vmem:[#allocation18 + $0x38] sm:$0xf0]  ;;  %v10352_v29 = vld [vmem:[#allocation23 + $0x74] sm:$0xf0] }
 0x32c   :  { %3154 = vmatmul.bf16.vlgmr.msrb.gmra.mxu0 %v11681_v12  ;;  %v10156_v6 = vld [vmem:[#allocation18 + $0x25c] sm:$0xf] }
 0x32d   :  { %3186 = vmatpush.bf16.msrb.mxu3 %v7528_v31  ;;  %3198 = vmatpush.bf16.msra.mxu0 %v7816_v35  ;;  %v10100_v31 = vld [vmem:[#allocation18 + $0x9c] sm:$0xf]  ;;  %v2910_v26 = vpop.f32.mrf.mxu1  ;;  %v3245_v43 = vadd.f32 %v3244_v32, %v3243_v23  ;;  %v1527_v23 = vperm.slane %v11723_v33, 2 }
 0x32e   :  { %3164 = vmatpush.bf16.msrb.mxu1 %v7908_v44  ;;  %3176 = vmatpush.bf16.msrb.mxu2 %v8196_v60  ;;  %v10172_v35 = vld [vmem:[#allocation18 + $0x2dc] sm:$0xf]  ;;  %v7400_v46 = vor.u32 %v10100_v31, %v7397_v11  ;;  %v7336_v31 = vor.u32 %v10084_v4, %v7333_v5 }
 0x32f   :  { %v8325_v44 = vld [vmem:[#allocation18 + $0x7f8] sm:$0xf0]  ;;  %v3295_v60 = vmul.f32 %v3245_v43, %v11561_v27 }
 0x330   :  { %v7621_v16 = vld [vmem:[#allocation18 + $0x278] sm:$0xf0] }
 0x331   :  { %3187 = vmatpush.bf16.msrb.mxu3 %v7496_v25  ;;  %3199 = vmatpush.bf16.msra.mxu0 %v7784_v13  ;;  %v7688_v25 = vor.u32 %v10172_v35, %v7685_v37  ;;  %v2921_v3 = vpop.f32.mrf.mxu2  ;;  %v8328_v13 = vor.u32 %v10332_v40, %v8325_v44  ;;  %v11752_v57 = vsub.f32 %v11735_v41, %v3295_v60  ;;  %v2949_v22 = vpop.f32.mrf.mxu0  ;;  %v10244_v18 = vld [vmem:[#allocation18 + $0x51c] sm:$0xf]  ;;  %v10350_v60 = vld [vmem:[#allocation23 + $0x64] sm:$0xf0] }
 0x332   :  { %3165 = vmatpush.bf16.msrb.mxu1 %v7876_v61  ;;  %3177 = vmatpush.bf16.msrb.mxu2 %v8164_v56  ;;  %v11749_v52 = vadd.f32 %v2921_v3, %v2909_v45  ;;  %v8293_v61 = vld [vmem:[#allocation18 + $0x7b8] sm:$0xf0]  ;;  %v7368_v56 = vor.u32 %v10092_v48, %v7365_v50  ;;  %v2935_v44 = vadd.f32 %v11744_v28, %v1527_v23  ;;  %v10368_v3 = vld [vmem:[#allocation23 + $0xf4] sm:$0xf0] }
 0x333   :  { %v3311_v7 = vmul.f32 %v11752_v57, %v11752_v57  ;;  %v8296_v19 = vor.u32 %v10324_v58, %v8293_v61  ;;  %v7973_v36 = vld [vmem:[#allocation18 + $0x538] sm:$0xf0] }
 0x334   :  { %v3246_v62 = vsel %vm515_vm1, %v11749_v52, 0.0  ;;  %v10316_v9 = vld [vmem:[#allocation18 + $0x75c] sm:$0xf]  ;;  %v2948_v61 = vadd.f32 %v11742_v24, %v2935_v44  ;;  %v10344_v44 = vld [vmem:[#allocation23 + $0x34] sm:$0xf0] }
 0x335   :  { %3188 = vmatpush.bf16.msrb.mxu3 %v7464_v2  ;;  %3200 = vmatpush.bf16.msra.mxu0 %v7752_v15  ;;  %v2936_v2 = vpop.f32.mrf.mxu3  ;;  %v3247_v41 = vrot.slane %v3246_v62, 4  ;;  %v8008_v15 = vor.u32 %v10252_v54, %v8005_v55  ;;  %v3319_v21 = vsel %vm515_vm1, %v3311_v7, 0.0  ;;  %v10148_v35 = vld [vmem:[#allocation18 + $0x21c] sm:$0xf]  ;;  %v8264_v37 = vor.u32 %v10316_v9, %v8261_v14  ;;  %v8443_v7 = vld [vmem:[#allocation23 + $0xe0] sm:$0xf] }
 0x336   :  { %3166 = vmatpush.bf16.msrb.mxu1 %v7844_v42  ;;  %3178 = vmatpush.bf16.msrb.mxu2 %v8132_v49  ;;  %v3320_v30 = vrot.slane %v3319_v21, 4  ;;  %v7589_v0 = vld [vmem:[#allocation18 + $0x238] sm:$0xf0]  ;;  %v10348_v2 = vld [vmem:[#allocation23 + $0x54] sm:$0xf0] }
 0x337   :  { %v3248_v42 = vadd.f32 %v3247_v41, %v3246_v62  ;;  %v10236_v39 = vld [vmem:[#allocation18 + $0x4dc] sm:$0xf]  ;;  %v7592_v50 = vor.u32 %v10148_v35, %v7589_v0  ;;  %v10366_v41 = vld [vmem:[#allocation23 + $0xe4] sm:$0xf0] }
 0x338   :  { %v2960_v49 = vpop.f32.mrf.mxu1  ;;  %v3321_v26 = vadd.f32 %v3320_v30, %v3319_v21  ;;  %v7941_v38 = vld [vmem:[#allocation18 + $0x4f8] sm:$0xf0] }
 0x339   :  { %3189 = vmatpush.bf16.msrb.mxu3 %v7432_v63  ;;  %3201 = vmatpush.bf16.msra.mxu0 %v7720_v17  ;;  %v8387_v63 = vld [vmem:[#allocation23 + $0x70] sm:$0xf]  ;;  %v3249_v32 = vrot.slane %v3248_v42, 2  ;;  %v7624_v17 = vor.u32 %v10156_v6, %v7621_v16  ;;  %v2923_v11 = vpop.f32.mrf.mxu2  ;;  %v10308_v43 = vld [vmem:[#allocation18 + $0x71c] sm:$0xf]  ;;  %v7944_v51 = vor.u32 %v10236_v39, %v7941_v38 }
 0x33a   :  { %3211 = vmatpush.bf16.msra.mxu1 %v8072_v34  ;;  %3179 = vmatpush.bf16.msrb.mxu2 %v8100_v20  ;;  %v7976_v34 = vor.u32 %v10244_v18, %v7973_v36  ;;  %v8388_v40 = vor.u32 %v10352_v29, %v8387_v63  ;;  %v8229_v20 = vld [vmem:[#allocation18 + $0x738] sm:$0xf0]  ;;  %v8363_v63 = vld [vmem:[#allocation23 + $0x40] sm:$0xf]  ;;  %v8444_v29 = vor.u32 %v10366_v41, %v8443_v7 }
 0x33b   :  { %3167 = vmatmul.bf16.vlgmr.msrb.gmra.mxu1 %v11692_v47  ;;  %v3250_v45 = vadd.f32 %v3249_v32, %v3248_v42  ;;  %v8232_v53 = vor.u32 %v10308_v43, %v8229_v20  ;;  %v10228_v54 = vld [vmem:[#allocation18 + $0x49c] sm:$0xf]  ;;  %v8435_v32 = vld [vmem:[#allocation23 + $0xd0] sm:$0xf] }
 0x33c   :  { %v7909_v55 = vld [vmem:[#allocation18 + $0x4b8] sm:$0xf0] }
 0x33d   :  { %3190 = vmatpush.bf16.msrb.mxu3 %v7400_v46  ;;  %3202 = vmatpush.bf16.msra.mxu0 %v7688_v25  ;;  %v8379_v46 = vld [vmem:[#allocation23 + $0x60] sm:$0xf]  ;;  %v3322_v25 = vrot.slane %v3321_v26, 2  ;;  %v3251_v48 = vrot.slane %v3250_v45, 1  ;;  %v10300_v22 = vld [vmem:[#allocation18 + $0x6dc] sm:$0xf]  ;;  %v7912_v16 = vor.u32 %v10228_v54, %v7909_v55 }
 0x33e   :  { %3212 = vmatpush.bf16.msra.mxu1 %v8040_v10  ;;  %3224 = vmatpush.bf16.msra.mxu2 %v8328_v13  ;;  %v8451_v10 = vld [vmem:[#allocation23 + $0xf0] sm:$0xf]  ;;  %v8380_v28 = vor.u32 %v10350_v60, %v8379_v46  ;;  %v8197_v62 = vld [vmem:[#allocation18 + $0x6f8] sm:$0xf0]  ;;  %v8427_v60 = vld [vmem:[#allocation23 + $0xc0] sm:$0xf] }
 0x33f   :  { %3180 = vmatmul.bf16.vlgmr.msrb.gmra.mxu2 %v11696_v1  ;;  %v3323_v13 = vadd.f32 %v3322_v25, %v3321_v26  ;;  %v3252_v58 = vadd.f32 %v3251_v48, %v3250_v45  ;;  %v8452_v5 = vor.u32 %v10368_v3, %v8451_v10  ;;  %v10220_v36 = vld [vmem:[#allocation18 + $0x45c] sm:$0xf]  ;;  %v10362_v25 = vld [vmem:[#allocation23 + $0xc4] sm:$0xf0] }
 0x340   :  { %v2962_v4 = vpop.f32.mrf.mxu1  ;;  %v10292_v9 = vld [vmem:[#allocation18 + $0x69c] sm:$0xf] }
 0x341   :  { %3191 = vmatpush.bf16.msrb.mxu3 %v7368_v56  ;;  %3203 = vmatpush.bf16.msra.mxu0 %v7656_v8  ;;  %v8371_v56 = vld [vmem:[#allocation23 + $0x50] sm:$0xf]  ;;  %v3324_v6 = vrot.slane %v3323_v13, 1  ;;  %v3296_v8 = vmul.f32 %v3252_v58, %v11561_v27  ;;  %v8165_v42 = vld [vmem:[#allocation18 + $0x6b8] sm:$0xf0] }
 0x342   :  { %3213 = vmatpush.bf16.msra.mxu1 %v8008_v15  ;;  %3225 = vmatpush.bf16.msra.mxu2 %v8296_v19  ;;  %v2961_v15 = vadd.f32 %v2960_v49, %v2948_v61  ;;  %v8200_v19 = vor.u32 %v10300_v22, %v8197_v62  ;;  %v2973_v24 = vpop.f32.mrf.mxu2  ;;  %v8372_v14 = vor.u32 %v10348_v2, %v8371_v56  ;;  %v10346_v49 = vld [vmem:[#allocation23 + $0x44] sm:$0xf0]  ;;  %v7845_v35 = vld [vmem:[#allocation18 + $0x438] sm:$0xf0]  ;;  %v8515_v4 = vld [vmem:[#allocation23 + $0x170] sm:$0xf] }
 0x343   :  { %v3325_v18 = vadd.f32 %v3324_v6, %v3323_v13  ;;  %v11766_v21 = vsub.f32 %v11749_v52, %v3296_v8  ;;  %v10284_v0 = vld [vmem:[#allocation18 + $0x65c] sm:$0xf]  ;;  %v8168_v39 = vor.u32 %v10292_v9, %v8165_v42  ;;  %v10342_v58 = vld [vmem:[#allocation23 + $0x24] sm:$0xf0]  ;;  %v8428_v61 = vor.u32 %v10362_v25, %v8427_v60  ;;  %v10384_v62 = vld [vmem:[#allocation23 + $0x174] sm:$0xf0] }
 0x344   :  { %v11768_v23 = vadd.f32 %v2973_v24, %v2961_v15  ;;  %v8133_v38 = vld [vmem:[#allocation18 + $0x678] sm:$0xf0]  ;;  %v10360_v6 = vld [vmem:[#allocation23 + $0xb4] sm:$0xf0]  ;;  %v8516_v7 = vor.u32 %v10384_v62, %v8515_v4  ;;  %v8507_v9 = vld [vmem:[#allocation23 + $0x160] sm:$0xf] }
 0x345   :  { %3192 = vmatpush.bf16.msrb.mxu3 %v7336_v31  ;;  %3204 = vmatpush.bf16.msra.mxu0 %v7624_v17  ;;  %v3375_v30 = vmul.f32 %v3325_v18, %v11561_v27  ;;  %v10212_v31 = vld [vmem:[#allocation18 + $0x41c] sm:$0xf]  ;;  %v10364_v17 = vld [vmem:[#allocation23 + $0xd4] sm:$0xf0]  ;;  %v8136_v13 = vor.u32 %v10284_v0, %v8133_v38  ;;  %v8499_v0 = vld [vmem:[#allocation23 + $0x150] sm:$0xf] }
 0x346   :  { %3214 = vmatpush.bf16.msra.mxu1 %v7976_v34  ;;  %3226 = vmatpush.bf16.msra.mxu2 %v8264_v37  ;;  %v3312_v34 = vmul.f32 %v11766_v21, %v11766_v21  ;;  %v3253_v52 = vsel %vm515_vm1, %v11768_v23, 0.0  ;;  %v8436_v45 = vor.u32 %v10364_v17, %v8435_v32  ;;  %v7848_v3 = vor.u32 %v10212_v31, %v7845_v35  ;;  %v10276_v48 = vld [vmem:[#allocation18 + $0x61c] sm:$0xf]  ;;  %v8331_v35 = vld [vmem:[#allocation23] sm:$0xf] }
 0x347   :  { %v11776_v26 = vadd.f32 0.8, %v3375_v30  ;;  %v3254_v37 = vrot.slane %v3253_v52, 4  ;;  %v8101_v55 = vld [vmem:[#allocation18 + $0x638] sm:$0xf0] }
 0x348   :  { %3193 = vmatmul.bf16.vlgmr.msrb.gmra.mxu3 %v11677_v59  ;;  %v7877_v59 = vld [vmem:[#allocation18 + $0x478] sm:$0xf0]  ;;  %v3326_v43 = vsel %vm515_vm1, %v3312_v34, 0.0 }
 0x349   :  { %4335 = vmatpush.bf16.msra.mxu3 %v8388_v40  ;;  %3205 = vmatpush.bf16.msra.mxu0 %v7592_v50  ;;  %v7880_v11 = vor.u32 %v10220_v36, %v7877_v59  ;;  %v8355_v40 = vld [vmem:[#allocation23 + $0x30] sm:$0xf]  ;;  %10795 = vrsqrt.f32 %v11776_v26  ;;  %v3327_v20 = vrot.slane %v3326_v43, 4  ;;  %v3255_v46 = vadd.f32 %v3254_v37, %v3253_v52  ;;  %v11780_v10 = vpop.f32.mrf.mxu0  ;;  %v10340_v36 = vld [vmem:[#allocation23 + $0x14] sm:$0xf0] }
 0x34a   :  { %3215 = vmatpush.bf16.msra.mxu1 %v7944_v51  ;;  %3227 = vmatpush.bf16.msra.mxu2 %v8232_v53  ;;  %v2975_v53 = vpop.f32.mrf.mxu2  ;;  %v8356_v22 = vor.u32 %v10344_v44, %v8355_v40  ;;  %v1528_v44 = vperm.slane %v11723_v33, 3  ;;  %vm3397_vm13 = vweird.f32 %v11776_v26 }
 0x34b   :  { %v3328_v50 = vadd.f32 %v3327_v20, %v3326_v43  ;;  %v3256_v51 = vrot.slane %v3255_v46, 2  ;;  %v11782_v54 = vpop.f32.mrf.mxu3  ;;  %v10356_v20 = vld [vmem:[#allocation23 + $0x94] sm:$0xf0] }
 0x34c   :  { %3206 = vmatmul.bf16.vlgmr.msra.gmra.mxu0 %v11681_v12  ;;  %v8364_v12 = vor.u32 %v10346_v49, %v8363_v63  ;;  %v8411_v49 = vld [vmem:[#allocation23 + $0xa0] sm:$0xf] }
 0x34d   :  { %4336 = vmatpush.bf16.msra.mxu3 %v8380_v28  ;;  %4348 = vmatpush.bf16.msrb.mxu0 %v8452_v5  ;;  %v8347_v28 = vld [vmem:[#allocation23 + $0x20] sm:$0xf]  ;;  %v3329_v56 = vrot.slane %v3328_v50, 2  ;;  %v3257_v2 = vadd.f32 %v3256_v51, %v3255_v46  ;;  %v8419_v5 = vld [vmem:[#allocation23 + $0xb0] sm:$0xf] }
 0x34e   :  { %3216 = vmatpush.bf16.msra.mxu1 %v7912_v16  ;;  %3228 = vmatpush.bf16.msra.mxu2 %v8200_v19  ;;  %v8104_v16 = vor.u32 %v10276_v48, %v8101_v55  ;;  %v8348_v18 = vor.u32 %v10342_v58, %v8347_v28  ;;  %v8339_v19 = vld [vmem:[#allocation23 + $0x10] sm:$0xf]  ;;  %v8420_v59 = vor.u32 %v10360_v6, %v8419_v5  ;;  %v10378_v55 = vld [vmem:[#allocation23 + $0x144] sm:$0xf0]  ;;  %v8395_v58 = vld [vmem:[#allocation23 + $0x80] sm:$0xf] }
 0x34f   :  { %v11784_v41 = vpop.eup %10795  ;;  %v3330_v8 = vadd.f32 %v3329_v56, %v3328_v50  ;;  %v3258_v15 = vrot.slane %v3257_v2, 1  ;;  %v2987_v28 = vadd.f32 %v11782_v54, %v1528_v44  ;;  %v8483_v5 = vld [vmem:[#allocation23 + $0x130] sm:$0xf]  ;;  %v10376_v6 = vld [vmem:[#allocation23 + $0x134] sm:$0xf0] }
 0x350   :  { %v3392_v24 = vmul.f32 %v11784_v41, %v11776_v26  ;;  %vm3398_vm12 = vweird.f32 %v11784_v41  ;;  %v10370_v44 = vld [vmem:[#allocation23 + $0x104] sm:$0xf0] }
 0x351   :  { %4337 = vmatpush.bf16.msra.mxu3 %v8372_v14  ;;  %4349 = vmatpush.bf16.msrb.mxu0 %v8444_v29  ;;  %v10382_v14 = vld [vmem:[#allocation23 + $0x164] sm:$0xf0]  ;;  %v3331_v42 = vrot.slane %v3330_v8, 1  ;;  %v3259_v63 = vadd.f32 %v3258_v15, %v3257_v2  ;;  %v3001_v32 = vpop.f32.mrf.mxu0  ;;  %vm3399_vm14 = vmor %vm3397_vm13, %vm3398_vm12  ;;  %v8484_v15 = vor.u32 %v10376_v6, %v8483_v5  ;;  %v3000_v54 = vadd.f32 %v11780_v10, %v2987_v28  ;;  %v10416_v28 = vld [vmem:[#allocation23 + $0x274] sm:$0xf0] }
 0x352   :  { %3217 = vmatpush.bf16.msra.mxu1 %v7880_v11  ;;  %3229 = vmatpush.bf16.msra.mxu2 %v8168_v39  ;;  %v10358_v29 = vld [vmem:[#allocation23 + $0xa4] sm:$0xf0]  ;;  %v8508_v30 = vor.u32 %v10382_v14, %v8507_v9  ;;  %v3393_v31 = vmul.f32 %v11784_v41, %v3392_v24  ;;  %v8340_v11 = vor.u32 %v10340_v36, %v8339_v19  ;;  %v8467_v32 = vld [vmem:[#allocation23 + $0x110] sm:$0xf]  ;;  %v8635_v6 = vld [vmem:[#allocation23 + $0x260] sm:$0xf] }
 0x353   :  { %v3332_v17 = vadd.f32 %v3331_v42, %v3330_v8  ;;  %v3297_v34 = vmul.f32 %v3259_v63, %v11561_v27  ;;  %v2988_v52 = vpop.f32.mrf.mxu3  ;;  %v10338_v39 = vld [vmem:[#allocation23 + $0x4] sm:$0xf0]  ;;  %v8412_v38 = vor.u32 %v10358_v29, %v8411_v49 }
 0x354   :  { %v3394_v37 = vmul.f32 0.5, %v3393_v31  ;;  %v8332_v50 = vor.u32 %v10338_v39, %v8331_v35 }
 0x355   :  { %4338 = vmatpush.bf16.msra.mxu3 %v8364_v12  ;;  %4350 = vmatpush.bf16.msrb.mxu0 %v8436_v45  ;;  %v11791_v12 = vld [vmem:[#allocation20] sm:$0xff]  ;;  %v3376_v43 = vmul.f32 %v3332_v17, %v11561_v27  ;;  %v11795_v40 = vsub.f32 %v11768_v23, %v3297_v34  ;;  %v11804_v23 = vld [vmem:[#allocation21] sm:$0xff] }
 0x356   :  { %3218 = vmatpush.bf16.msra.mxu1 %v7848_v3  ;;  %3230 = vmatpush.bf16.msra.mxu2 %v8136_v13  ;;  %v8403_v45 = vld [vmem:[#allocation23 + $0x90] sm:$0xf]  ;;  %v3395_v60 = vsub.f32 1.5, %v3394_v37  ;;  %v3480_v13 = vperm.slane %v11791_v12, 0  ;;  %v3505_v2 = vperm.slane %v11804_v23, 0 }
 0x357   :  { %v11800_v3 = vadd.f32 0.8, %v3376_v43  ;;  %v3313_v48 = vmul.f32 %v11795_v40, %v11795_v40  ;;  %v8404_v53 = vor.u32 %v10356_v20, %v8403_v45  ;;  %v10372_v17 = vld [vmem:[#allocation23 + $0x114] sm:$0xf0]  ;;  %v8459_v43 = vld [vmem:[#allocation23 + $0x100] sm:$0xf] }
 0x358   :  { %v3012_v25 = vpop.f32.mrf.mxu1  ;;  %v3396_v51 = vmul.f32 %v11784_v41, %v3395_v60  ;;  %v8468_v37 = vor.u32 %v10372_v17, %v8467_v32  ;;  %v8579_v45 = vld [vmem:[#allocation23 + $0x1f0] sm:$0xf] }
 0x359   :  { %4339 = vmatpush.bf16.msra.mxu3 %v8356_v22  ;;  %4351 = vmatpush.bf16.msrb.mxu0 %v8428_v61  ;;  %10797 = vrsqrt.f32 %v11800_v3  ;;  %v3333_v22 = vsel %vm515_vm1, %v3313_v48, 0.0  ;;  %v10354_v61 = vld [vmem:[#allocation23 + $0x84] sm:$0xf0]  ;;  %v3013_v36 = vadd.f32 %v3012_v25, %v3000_v54  ;;  %vm3407_vm2 = vweird.f32 %v11800_v3  ;;  %v10400_v48 = vld [vmem:[#allocation23 + $0x1f4] sm:$0xf0] }
 0x35a   :  { %4361 = vmatpush.bf16.msrb.mxu1 %v8516_v7  ;;  %3231 = vmatpush.bf16.msra.mxu2 %v8104_v16  ;;  %v3400_v26 = vsel %vm3399_vm14, %v11784_v41, %v3396_v51  ;;  %v3334_v62 = vrot.slane %v3333_v22, 4  ;;  %v8396_v8 = vor.u32 %v10354_v61, %v8395_v58  ;;  %v8460_v25 = vor.u32 %v10370_v44, %v8459_v43  ;;  %v8563_v54 = vld [vmem:[#allocation23 + $0x1d0] sm:$0xf]  ;;  %v10392_v43 = vld [vmem:[#allocation23 + $0x1b4] sm:$0xf0] }
 0x35b   :  { %3219 = vmatmul.bf16.vlgmr.msra.gmra.mxu1 %v11692_v47  ;;  %v10380_v47 = vld [vmem:[#allocation23 + $0x154] sm:$0xf0]  ;;  %v3471_v56 = vmul.f32 %v3400_v26, %v11752_v57  ;;  %v10374_v57 = vld [vmem:[#allocation23 + $0x124] sm:$0xf0]  ;;  %v3506_v58 = vperm.slane %v11804_v23, 1 }
 0x35c   :  { %v8500_v46 = vor.u32 %v10380_v47, %v8499_v0  ;;  %v3335_v7 = vadd.f32 %v3334_v62, %v3333_v22  ;;  %v8643_v22 = vld [vmem:[#allocation23 + $0x270] sm:$0xf]  ;;  %v8571_v26 = vld [vmem:[#allocation23 + $0x1e0] sm:$0xf]  ;;  %v10398_v62 = vld [vmem:[#allocation23 + $0x1e4] sm:$0xf0] }
 0x35d   :  { %4340 = vmatpush.bf16.msra.mxu3 %v8348_v18  ;;  %4352 = vmatpush.bf16.msrb.mxu0 %v8420_v59  ;;  %v3496_v16 = vmul.f32 %v3480_v13, %v3471_v56  ;;  %v8475_v59 = vld [vmem:[#allocation23 + $0x120] sm:$0xf]  ;;  %v8572_v56 = vor.u32 %v10398_v62, %v8571_v26 }
 0x35e   :  { %4362 = vmatpush.bf16.msrb.mxu1 %v8508_v30  ;;  %3232 = vmatmul.bf16.vlgmr.msra.gmra.mxu2 %v11696_v1  ;;  %v8491_v1 = vld [vmem:[#allocation23 + $0x140] sm:$0xf]  ;;  %v3336_v18 = vrot.slane %v3335_v7, 2  ;;  %v8476_v42 = vor.u32 %v10374_v57, %v8475_v59 }
 0x35f   :  { %v8492_v4 = vor.u32 %v10378_v55, %v8491_v1  ;;  %v10798_v24 = vpop.eup %10797  ;;  %v3521_v41 = vadd.f32 %v3505_v2, %v3496_v16  ;;  %v8580_v1 = vor.u32 %v10400_v48, %v8579_v45  ;;  %v3482_v48 = vperm.slane %v11791_v12, 2 }
 0x360   :  { %v3014_v19 = vpop.f32.mrf.mxu1  ;;  %v3402_v9 = vmul.f32 %v10798_v24, %v11800_v3  ;;  %v3337_v14 = vadd.f32 %v3336_v18, %v3335_v7  ;;  %vm3408_vm0 = vweird.f32 %v10798_v24  ;;  %v10414_v7 = vld [vmem:[#allocation23 + $0x264] sm:$0xf0] }
 0x361   :  { %4341 = vmatpush.bf16.msra.mxu3 %v8340_v11  ;;  %4353 = vmatpush.bf16.msrb.mxu0 %v8412_v38  ;;  %vm3529_vm15 = vcmp.ge.f32.partialorder %v3521_v41, 0.0  ;;  %v3537_v49 = vmul.f32 0.2, %v3521_v41  ;;  %vm3409_vm3 = vmor %vm3407_vm2, %vm3408_vm0  ;;  %v8636_v16 = vor.u32 %v10414_v7, %v8635_v6 }
 0x362   :  { %4363 = vmatpush.bf16.msrb.mxu1 %v8500_v46  ;;  %v3025_v63 = vpop.f32.mrf.mxu2  ;;  %v3403_v29 = vmul.f32 %v10798_v24, %v3402_v9  ;;  %v3338_v30 = vrot.slane %v3337_v14, 1  ;;  %4374 = vmatpush.bf16.msrb.mxu2 %v8580_v1  ;;  %v8627_v9 = vld [vmem:[#allocation23 + $0x250] sm:$0xf] }
 0x363   :  { %v11819_v31 = vadd.f32 %v3025_v63, %v3013_v36  ;;  %v3545_v10 = vsel %vm3529_vm15, %v3521_v41, %v3537_v49 }
 0x364   :  { %v3404_v34 = vmul.f32 0.5, %v3403_v29  ;;  %v3339_v52 = vadd.f32 %v3338_v30, %v3337_v14  ;;  %v11823_v35 = vpack.c.bf16 %v3545_v10, %v3545_v10  ;;  %v10412_v14 = vld [vmem:[#allocation23 + $0x254] sm:$0xf0]  ;;  %v8555_v29 = vld [vmem:[#allocation23 + $0x1c0] sm:$0xf]  ;;  %v1529_v10 = vperm.slane %v11723_v33, 4 }
 0x365   :  { %4342 = vmatpush.bf16.msra.mxu3 %v8332_v50  ;;  %4354 = vmatpush.bf16.msrb.mxu0 %v8404_v53  ;;  %v3260_v11 = vsel %vm515_vm1, %v11819_v31, 0.0  ;;  %v3481_v50 = vperm.slane %v11791_v12, 1  ;;  %v8628_v49 = vor.u32 %v10412_v14, %v8627_v9  ;;  %v10394_v30 = vld [vmem:[#allocation23 + $0x1c4] sm:$0xf0] }
 0x366   :  { %4364 = vmatpush.bf16.msrb.mxu1 %v8492_v4  ;;  %v3261_v0 = vrot.slane %v3260_v11, 4  ;;  %v3405_v39 = vsub.f32 1.5, %v3404_v34  ;;  %v3377_v38 = vmul.f32 %v3339_v52, %v11561_v27  ;;  %v8644_v4 = vor.u32 %v10416_v28, %v8643_v22  ;;  %4375 = vmatpush.bf16.msrb.mxu2 %v8572_v56  ;;  %v8539_v28 = vld [vmem:[#allocation23 + $0x1a0] sm:$0xf] }
 0x367   :  { %v8556_v34 = vor.u32 %v10394_v30, %v8555_v29 }
 0x368   :  { %4343 = vmatmul.bf16.vlgmr.msra.gmra.mxu3 %v11823_v35  ;;  %v3262_v47 = vadd.f32 %v3261_v0, %v3260_v11  ;;  %v3406_v20 = vmul.f32 %v10798_v24, %v3405_v39  ;;  %v11828_v46 = vadd.f32 0.8, %v3377_v38  ;;  %v10410_v39 = vld [vmem:[#allocation23 + $0x244] sm:$0xf0] }
 0x369   :  { %4355 = vmatpush.bf16.msrb.mxu0 %v8396_v8  ;;  %v11830_v60 = vpop.f32.mrf.mxu0  ;;  %4387 = vmatpush.bf16.msrb.mxu3 %v8644_v4 }
 0x36a   :  { %4365 = vmatpush.bf16.msrb.mxu1 %v8484_v15  ;;  %v3263_v51 = vrot.slane %v3262_v47, 2  ;;  %v3027_v13 = vpop.f32.mrf.mxu2  ;;  %v3410_v55 = vsel %vm3409_vm3, %v10798_v24, %v3406_v20  ;;  %10799 = vrsqrt.f32 %v11828_v46  ;;  %vm3417_vm6 = vweird.f32 %v11828_v46 }
 0x36b   :  { %v3038_v53 = vpop.f32.mrf.mxu3  ;;  %v3472_v3 = vmul.f32 %v3410_v55, %v11766_v21  ;;  %v10396_v21 = vld [vmem:[#allocation23 + $0x1d4] sm:$0xf0]  ;;  %v3507_v55 = vperm.slane %v11804_v23, 2 }
 0x36c   :  { %v3264_v61 = vadd.f32 %v3263_v51, %v3262_v47  ;;  %v8564_v24 = vor.u32 %v10396_v21, %v8563_v54  ;;  %v8547_v47 = vld [vmem:[#allocation23 + $0x1b0] sm:$0xf]  ;;  %v3039_v45 = vadd.f32 %v3038_v53, %v1529_v10  ;;  %v10408_v13 = vld [vmem:[#allocation23 + $0x234] sm:$0xf0] }
 0x36d   :  { %v3497_v2 = vmul.f32 %v3481_v50, %v3472_v3  ;;  %4388 = vmatpush.bf16.msrb.mxu3 %v8636_v16  ;;  %v8548_v20 = vor.u32 %v10392_v43, %v8547_v47  ;;  %v8611_v51 = vld [vmem:[#allocation23 + $0x230] sm:$0xf]  ;;  %v10390_v3 = vld [vmem:[#allocation23 + $0x1a4] sm:$0xf0]  ;;  %v10351_v47 = vld [vmem:[#allocation23 + $0x74] sm:$0xf] }
 0x36e   :  { %4366 = vmatpush.bf16.msrb.mxu1 %v8476_v42  ;;  %v3265_v5 = vrot.slane %v3264_v61, 1  ;;  %4376 = vmatpush.bf16.msrb.mxu2 %v8564_v24  ;;  %v8612_v22 = vor.u32 %v10408_v13, %v8611_v51  ;;  %v8540_v4 = vor.u32 %v10390_v3, %v8539_v28  ;;  %v8595_v24 = vld [vmem:[#allocation23 + $0x210] sm:$0xf]  ;;  %v8389_v43 = vld [vmem:[#allocation23 + $0x78] sm:$0xf0] }
 0x36f   :  { %v3522_v8 = vadd.f32 %v3506_v58, %v3497_v2  ;;  %v8603_v2 = vld [vmem:[#allocation23 + $0x220] sm:$0xf]  ;;  %v10349_v51 = vld [vmem:[#allocation23 + $0x64] sm:$0xf]  ;;  %v8381_v13 = vld [vmem:[#allocation23 + $0x68] sm:$0xf0] }
 0x370   :  { %v3266_v15 = vadd.f32 %v3265_v5, %v3264_v61  ;;  %v10800_v18 = vpop.eup %10799  ;;  %v3052_v61 = vadd.f32 %v11830_v60, %v3039_v45  ;;  %v10406_v5 = vld [vmem:[#allocation23 + $0x224] sm:$0xf0]  ;;  %v8392_v45 = vor.u32 %v10351_v47, %v8389_v43  ;;  %v8691_v3 = vld [vmem:[#allocation23 + $0x2d0] sm:$0xf] }
 0x371   :  { %v3053_v19 = vpop.f32.mrf.mxu0  ;;  %v3412_v41 = vmul.f32 %v10800_v18, %v11828_v46  ;;  %vm3530_vm4 = vcmp.ge.f32.partialorder %v3522_v8, 0.0  ;;  %v3538_v57 = vmul.f32 0.2, %v3522_v8  ;;  %4389 = vmatpush.bf16.msrb.mxu3 %v8628_v49  ;;  %vm3418_vm5 = vweird.f32 %v10800_v18  ;;  %v10422_v47 = vld [vmem:[#allocation23 + $0x2a4] sm:$0xf0] }
 0x372   :  { %4367 = vmatpush.bf16.msrb.mxu1 %v8468_v37  ;;  %v3298_v36 = vmul.f32 %v3266_v15, %v11561_v27  ;;  %v8619_v37 = vld [vmem:[#allocation23 + $0x240] sm:$0xf]  ;;  %4377 = vmatpush.bf16.msrb.mxu2 %v8556_v34  ;;  %vm3419_vm7 = vmor %vm3417_vm6, %vm3418_vm5  ;;  %v8604_v7 = vor.u32 %v10406_v5, %v8603_v2  ;;  %v10388_v15 = vld [vmem:[#allocation23 + $0x194] sm:$0xf0] }
 0x373   :  { %v3040_v59 = vpop.f32.mrf.mxu3  ;;  %v3413_v42 = vmul.f32 %v10800_v18, %v3412_v41  ;;  %v3546_v17 = vsel %vm3530_vm4, %v3522_v8, %v3538_v57  ;;  %v8620_v33 = vor.u32 %v10410_v39, %v8619_v37  ;;  %v8531_v8 = vld [vmem:[#allocation23 + $0x190] sm:$0xf]  ;;  %v10402_v34 = vld [vmem:[#allocation23 + $0x204] sm:$0xf0] }
 0x374   :  { %v11839_v63 = vsub.f32 %v11819_v31, %v3298_v36  ;;  %v11844_v0 = vpack.c.bf16 %v3546_v17, %v3546_v17  ;;  %v10404_v36 = vld [vmem:[#allocation23 + $0x214] sm:$0xf0]  ;;  %v8523_v59 = vld [vmem:[#allocation23 + $0x180] sm:$0xf] }
 0x375   :  { %v3414_v52 = vmul.f32 0.5, %v3413_v42  ;;  %4390 = vmatpush.bf16.msrb.mxu3 %v8620_v33  ;;  %v8596_v14 = vor.u32 %v10404_v36, %v8595_v24  ;;  %v10386_v42 = vld [vmem:[#allocation23 + $0x184] sm:$0xf0]  ;;  %v8587_v17 = vld [vmem:[#allocation23 + $0x200] sm:$0xf] }
 0x376   :  { %4368 = vmatpush.bf16.msrb.mxu1 %v8460_v25  ;;  %v3314_v11 = vmul.f32 %v11839_v63, %v11839_v63  ;;  %4356 = vmatmul.bf16.vlgmr.msrb.gmra.mxu0 %v11844_v0  ;;  %v8524_v30 = vor.u32 %v10386_v42, %v8523_v59  ;;  %v8588_v39 = vor.u32 %v10402_v34, %v8587_v17  ;;  %v3483_v17 = vperm.slane %v11791_v12, 3 }
 0x377   :  { %v3415_v31 = vsub.f32 1.5, %v3414_v52  ;;  %4378 = vmatpush.bf16.msrb.mxu2 %v8548_v20  ;;  %v8699_v20 = vld [vmem:[#allocation23 + $0x2e0] sm:$0xf] }
 0x378   :  { %v3064_v32 = vpop.f32.mrf.mxu1  ;;  %v3340_v38 = vsel %vm515_vm1, %v3314_v11, 0.0 }
 0x379   :  { %v3341_v44 = vrot.slane %v3340_v38, 4  ;;  %v3416_v25 = vmul.f32 %v10800_v18, %v3415_v31  ;;  %4391 = vmatpush.bf16.msrb.mxu3 %v8612_v22  ;;  %v3065_v56 = vadd.f32 %v3064_v32, %v3052_v61  ;;  %v8707_v31 = vld [vmem:[#allocation23 + $0x2f0] sm:$0xf] }
 0x37b   :  { %v3342_v50 = vadd.f32 %v3341_v44, %v3340_v38  ;;  %v3420_v1 = vsel %vm3419_vm7, %v10800_v18, %v3416_v25  ;;  %4379 = vmatpush.bf16.msrb.mxu2 %v8540_v4  ;;  %v10432_v38 = vld [vmem:[#allocation23 + $0x2f4] sm:$0xf0]  ;;  %v10430_v25 = vld [vmem:[#allocation23 + $0x2e4] sm:$0xf0] }
 0x37c   :  { %v3473_v53 = vmul.f32 %v3420_v1, %v11795_v40  ;;  %v8532_v40 = vor.u32 %v10388_v15, %v8531_v8  ;;  %v8708_v33 = vor.u32 %v10432_v38, %v8707_v31  ;;  %v8384_v1 = vor.u32 %v10349_v51, %v8381_v13  ;;  %v8683_v15 = vld [vmem:[#allocation23 + $0x2c0] sm:$0xf] }
 0x37d   :  { %v3343_v58 = vrot.slane %v3342_v50, 2  ;;  %4392 = vmatpush.bf16.msrb.mxu3 %v8604_v7 }
 0x37e   :  { %v3498_v26 = vmul.f32 %v3482_v48, %v3473_v53  ;;  %4400 = vmatpush.bf16.msra.mxu0 %v8708_v33  ;;  %v10428_v53 = vld [vmem:[#allocation23 + $0x2d4] sm:$0xf0] }
 0x37f   :  { %v3344_v62 = vadd.f32 %v3343_v58, %v3342_v50  ;;  %4380 = vmatpush.bf16.msrb.mxu2 %v8532_v40  ;;  %v8700_v50 = vor.u32 %v10430_v25, %v8699_v20  ;;  %v8692_v4 = vor.u32 %v10428_v53, %v8691_v3  ;;  %v8341_v3 = vld [vmem:[#allocation23 + $0x18] sm:$0xf0] }
 0x380   :  { %v3066_v46 = vpop.f32.mrf.mxu1  ;;  %v3523_v16 = vadd.f32 %v3507_v55, %v3498_v26  ;;  %v10347_v26 = vld [vmem:[#allocation23 + $0x54] sm:$0xf] }
 0x381   :  { %v3345_v54 = vrot.slane %v3344_v62, 1  ;;  %4393 = vmatpush.bf16.msrb.mxu3 %v8596_v14 }
 0x382   :  { %v3077_v6 = vpop.f32.mrf.mxu2  ;;  %vm3531_vm8 = vcmp.ge.f32.partialorder %v3523_v16, 0.0  ;;  %v3539_v19 = vmul.f32 0.2, %v3523_v16  ;;  %4401 = vmatpush.bf16.msra.mxu0 %v8700_v50 }
 0x383   :  { %v11853_v21 = vadd.f32 %v3077_v6, %v3065_v56  ;;  %v3346_v60 = vadd.f32 %v3345_v54, %v3344_v62  ;;  %4381 = vmatpush.bf16.msrb.mxu2 %v8524_v30  ;;  %v8373_v62 = vld [vmem:[#allocation23 + $0x58] sm:$0xf0]  ;;  %v11874_v6 = vld [vmem:[%s12252_s13] sm:$0xff] }
 0x384   :  { %v3547_v9 = vsel %vm3531_vm8, %v3523_v16, %v3539_v19  ;;  %v8376_v56 = vor.u32 %v10347_v26, %v8373_v62  ;;  %v1530_v7 = vperm.slane %v11874_v6, 5  ;;  %v10426_v16 = vld [vmem:[#allocation23 + $0x2c4] sm:$0xf0]  ;;  %v8357_v30 = vld [vmem:[#allocation23 + $0x38] sm:$0xf0] }
 0x385   :  { %v3267_v18 = vsel %vm515_vm1, %v11853_v21, 0.0  ;;  %v3378_v57 = vmul.f32 %v3346_v60, %v11561_v27  ;;  %v11858_v29 = vpack.c.bf16 %v3547_v9, %v3547_v9  ;;  %4394 = vmatpush.bf16.msrb.mxu3 %v8588_v39  ;;  %v8684_v60 = vor.u32 %v10426_v16, %v8683_v15  ;;  %v10424_v9 = vld [vmem:[#allocation23 + $0x2b4] sm:$0xf0]  ;;  %v10337_v16 = vld [vmem:[#allocation23 + $0x4] sm:$0xf] }
 0x386   :  { %v3268_v41 = vrot.slane %v3267_v18, 4  ;;  %4402 = vmatpush.bf16.msra.mxu0 %v8692_v4 }
 0x387   :  { %v11860_v10 = vadd.f32 0.8, %v3378_v57  ;;  %4369 = vmatmul.bf16.vlgmr.msrb.gmra.mxu1 %v11858_v29  ;;  %v8675_v57 = vld [vmem:[#allocation23 + $0x2b0] sm:$0xf] }
 0x388   :  { %v3269_v49 = vadd.f32 %v3268_v41, %v3267_v18  ;;  %v10345_v18 = vld [vmem:[#allocation23 + $0x44] sm:$0xf]  ;;  %v8676_v42 = vor.u32 %v10424_v9, %v8675_v57  ;;  %v8771_v57 = vld [vmem:[#allocation23 + $0x370] sm:$0xf]  ;;  %v10448_v9 = vld [vmem:[#allocation23 + $0x374] sm:$0xf0] }
 0x389   :  { %v11862_v32 = vpop.f32.mrf.mxu0  ;;  %10801 = vrsqrt.f32 %v11860_v10  ;;  %4439 = vmatpush.bf16.msra.mxu3 %v8392_v45  ;;  %vm3427_vm10 = vweird.f32 %v11860_v10  ;;  %v8349_v45 = vld [vmem:[#allocation23 + $0x28] sm:$0xf0] }
 0x38a   :  { %v3270_v52 = vrot.slane %v3269_v49, 2  ;;  %v3079_v11 = vpop.f32.mrf.mxu2  ;;  %4403 = vmatpush.bf16.msra.mxu0 %v8684_v60 }
 0x38b   :  { %v3090_v37 = vpop.f32.mrf.mxu3 }
 0x38c   :  { %v3271_v44 = vadd.f32 %v3270_v52, %v3269_v49  ;;  %v3091_v59 = vadd.f32 %v3090_v37, %v1530_v7  ;;  %v10343_v49 = vld [vmem:[#allocation23 + $0x34] sm:$0xf]  ;;  %v3508_v37 = vperm.slane %v11804_v23, 3 }
 0x38d   :  { %4440 = vmatpush.bf16.msra.mxu3 %v8384_v1  ;;  %v8360_v52 = vor.u32 %v10343_v49, %v8357_v30  ;;  %v10365_v49 = vld [vmem:[#allocation23 + $0xe4] sm:$0xf]  ;;  %v8445_v30 = vld [vmem:[#allocation23 + $0xe8] sm:$0xf0] }
 0x38e   :  { %v3272_v48 = vrot.slane %v3271_v44, 1  ;;  %v3104_v38 = vadd.f32 %v11862_v32, %v3091_v59  ;;  %4404 = vmatpush.bf16.msra.mxu0 %v8676_v42  ;;  %v10420_v32 = vld [vmem:[#allocation23 + $0x294] sm:$0xf0] }
 0x38f   :  { %v10802_v22 = vpop.eup %10801 }
 0x390   :  { %v3273_v55 = vadd.f32 %v3272_v48, %v3271_v44  ;;  %v3422_v58 = vmul.f32 %v10802_v22, %v11860_v10  ;;  %vm3428_vm9 = vweird.f32 %v10802_v22  ;;  %v8667_v10 = vld [vmem:[#allocation23 + $0x2a0] sm:$0xf]  ;;  %v10341_v44 = vld [vmem:[#allocation23 + $0x24] sm:$0xf] }
 0x391   :  { %v3105_v28 = vpop.f32.mrf.mxu0  ;;  %4441 = vmatpush.bf16.msra.mxu3 %v8376_v56  ;;  %vm3429_vm11 = vmor %vm3427_vm10, %vm3428_vm9  ;;  %v8668_v43 = vor.u32 %v10422_v47, %v8667_v10  ;;  %v8352_v50 = vor.u32 %v10341_v44, %v8349_v45  ;;  %v8651_v56 = vld [vmem:[#allocation23 + $0x280] sm:$0xf]  ;;  %v10444_v44 = vld [vmem:[#allocation23 + $0x354] sm:$0xf0] }
 0x392   :  { %v3299_v61 = vmul.f32 %v3273_v55, %v11561_v27  ;;  %v3423_v2 = vmul.f32 %v10802_v22, %v3422_v58  ;;  %v8659_v55 = vld [vmem:[#allocation23 + $0x290] sm:$0xf]  ;;  %v10339_v28 = vld [vmem:[#allocation23 + $0x14] sm:$0xf] }
 0x393   :  { %v3092_v46 = vpop.f32.mrf.mxu3  ;;  %4405 = vmatpush.bf16.msra.mxu0 %v8668_v43  ;;  %v8344_v4 = vor.u32 %v10339_v28, %v8341_v3  ;;  %v8755_v43 = vld [vmem:[#allocation23 + $0x350] sm:$0xf]  ;;  %v8747_v28 = vld [vmem:[#allocation23 + $0x340] sm:$0xf]  ;;  %v10442_v3 = vld [vmem:[#allocation23 + $0x344] sm:$0xf0] }
 0x394   :  { %v11869_v5 = vsub.f32 %v11853_v21, %v3299_v61  ;;  %v3424_v54 = vmul.f32 0.5, %v3423_v2  ;;  %v8365_v21 = vld [vmem:[#allocation23 + $0x48] sm:$0xf0]  ;;  %v10418_v2 = vld [vmem:[#allocation23 + $0x284] sm:$0xf0] }
 0x395   :  { %v8368_v19 = vor.u32 %v10345_v18, %v8365_v21  ;;  %v8652_v15 = vor.u32 %v10418_v2, %v8651_v56 }
 0x396   :  { %v3315_v40 = vmul.f32 %v11869_v5, %v11869_v5  ;;  %v3425_v24 = vsub.f32 1.5, %v3424_v54  ;;  %v8333_v54 = vld [vmem:[#allocation23 + $0x8] sm:$0xf0] }
 0x397   :  { %4442 = vmatpush.bf16.msra.mxu3 %v8368_v19  ;;  %v8336_v21 = vor.u32 %v10337_v16, %v8333_v54  ;;  %v8453_v19 = vld [vmem:[#allocation23 + $0xf8] sm:$0xf0] }
 0x398   :  { %v3116_v8 = vpop.f32.mrf.mxu1  ;;  %v3347_v41 = vsel %vm515_vm1, %v3315_v40, 0.0  ;;  %v3426_v14 = vmul.f32 %v10802_v22, %v3425_v24  ;;  %v10367_v40 = vld [vmem:[#allocation23 + $0xf4] sm:$0xf] }
 0x399   :  { %v3348_v36 = vrot.slane %v3347_v41, 4  ;;  %v3117_v48 = vadd.f32 %v3116_v8, %v3104_v38  ;;  %v8456_v59 = vor.u32 %v10367_v40, %v8453_v19  ;;  %v8437_v38 = vld [vmem:[#allocation23 + $0xd8] sm:$0xf0]  ;;  %v3484_v40 = vperm.slane %v11791_v12, 4 }
 0x39a   :  { %v3430_v11 = vsel %vm3429_vm11, %v10802_v22, %v3426_v14  ;;  %v8660_v22 = vor.u32 %v10420_v32, %v8659_v55  ;;  %v8772_v14 = vor.u32 %v10448_v9, %v8771_v57  ;;  %v1531_v55 = vperm.slane %v11874_v6, 6 }
 0x39b   :  { %v3349_v34 = vadd.f32 %v3348_v36, %v3347_v41  ;;  %v3474_v39 = vmul.f32 %v3430_v11, %v11839_v63  ;;  %4443 = vmatpush.bf16.msra.mxu3 %v8360_v52  ;;  %v10446_v52 = vld [vmem:[#allocation23 + $0x364] sm:$0xf0] }
 0x39c   :  { %4406 = vmatpush.bf16.msra.mxu0 %v8660_v22  ;;  %4413 = vmatpush.bf16.msra.mxu1 %v8772_v14 }
 0x39d   :  { %v3350_v31 = vrot.slane %v3349_v34, 2  ;;  %v3499_v20 = vmul.f32 %v3483_v17, %v3474_v39  ;;  %v8448_v17 = vor.u32 %v10365_v49, %v8445_v30  ;;  %v10438_v49 = vld [vmem:[#allocation23 + $0x324] sm:$0xf0] }
 0x39f   :  { %v3351_v25 = vadd.f32 %v3350_v31, %v3349_v34  ;;  %v3524_v13 = vadd.f32 %v3508_v37, %v3499_v20  ;;  %4444 = vmatpush.bf16.msra.mxu3 %v8352_v50  ;;  %v8763_v34 = vld [vmem:[#allocation23 + $0x360] sm:$0xf]  ;;  %v10363_v31 = vld [vmem:[#allocation23 + $0xd4] sm:$0xf] }
 0x3a0   :  { %v3118_v33 = vpop.f32.mrf.mxu1  ;;  %4407 = vmatpush.bf16.msra.mxu0 %v8652_v15  ;;  %v8764_v39 = vor.u32 %v10446_v52, %v8763_v34  ;;  %v8440_v47 = vor.u32 %v10363_v31, %v8437_v38  ;;  %v10440_v15 = vld [vmem:[#allocation23 + $0x334] sm:$0xf0] }
 0x3a1   :  { %v3352_v63 = vrot.slane %v3351_v25, 1  ;;  %vm3532_vm12 = vcmp.ge.f32.partialorder %v3524_v13, 0.0  ;;  %v3540_v61 = vmul.f32 0.2, %v3524_v13  ;;  %v10436_v38 = vld [vmem:[#allocation23 + $0x314] sm:$0xf0] }
 0x3a2   :  { %v3129_v51 = vpop.f32.mrf.mxu2  ;;  %4414 = vmatpush.bf16.msra.mxu1 %v8764_v39 }
 0x3a3   :  { %v11885_v1 = vadd.f32 %v3129_v51, %v3117_v48  ;;  %v3353_v53 = vadd.f32 %v3352_v63, %v3351_v25  ;;  %v3548_v62 = vsel %vm3532_vm12, %v3524_v13, %v3540_v61  ;;  %4445 = vmatpush.bf16.msra.mxu3 %v8344_v4  ;;  %v8756_v48 = vor.u32 %v10444_v44, %v8755_v43  ;;  %v10361_v13 = vld [vmem:[#allocation23 + $0xc4] sm:$0xf]  ;;  %v8429_v63 = vld [vmem:[#allocation23 + $0xc8] sm:$0xf0]  ;;  %v10359_v4 = vld [vmem:[#allocation23 + $0xb4] sm:$0xf] }
 0x3a4   :  { %v11890_v8 = vpack.c.bf16 %v3548_v62, %v3548_v62  ;;  %4452 = vmatpush.bf16.msrb.mxu0 %v8456_v59  ;;  %v8432_v22 = vor.u32 %v10361_v13, %v8429_v63  ;;  %v8748_v61 = vor.u32 %v10442_v3, %v8747_v28  ;;  %v8413_v59 = vld [vmem:[#allocation23 + $0xa8] sm:$0xf0]  ;;  %v8835_v28 = vld [vmem:[#allocation23 + $0x3f0] sm:$0xf] }
 0x3a5   :  { %v3274_v58 = vsel %vm515_vm1, %v11885_v1, 0.0  ;;  %v3379_v26 = vmul.f32 %v3353_v53, %v11561_v27 }
 0x3a6   :  { %v3275_v46 = vrot.slane %v3274_v58, 4  ;;  %4382 = vmatmul.bf16.vlgmr.msrb.gmra.mxu2 %v11890_v8  ;;  %4415 = vmatpush.bf16.msra.mxu1 %v8756_v48  ;;  %v8397_v48 = vld [vmem:[#allocation23 + $0x88] sm:$0xf0] }
 0x3a7   :  { %v11892_v60 = vadd.f32 0.8, %v3379_v26  ;;  %4446 = vmatpush.bf16.msra.mxu3 %v8336_v21  ;;  %v8421_v26 = vld [vmem:[#allocation23 + $0xb8] sm:$0xf0] }
 0x3a8   :  { %v3276_v7 = vadd.f32 %v3275_v46, %v3274_v58  ;;  %4453 = vmatpush.bf16.msrb.mxu0 %v8448_v17  ;;  %v8424_v2 = vor.u32 %v10359_v4, %v8421_v26 }
 0x3a9   :  { %v11894_v18 = vpop.f32.mrf.mxu0  ;;  %10803 = vrsqrt.f32 %v11892_v60  ;;  %vm3437_vm14 = vweird.f32 %v11892_v60 }
 0x3aa   :  { %v3277_v24 = vrot.slane %v3276_v7, 2  ;;  %v3131_v41 = vpop.f32.mrf.mxu2  ;;  %4416 = vmatpush.bf16.msra.mxu1 %v8748_v61  ;;  %v8637_v61 = vld [vmem:[#allocation23 + $0x268] sm:$0xf0] }
 0x3ab   :  { %v3142_v36 = vpop.f32.mrf.mxu3  ;;  %v10357_v41 = vld [vmem:[#allocation23 + $0xa4] sm:$0xf] }
 0x3ac   :  { %v3278_v42 = vadd.f32 %v3277_v24, %v3276_v7  ;;  %4454 = vmatpush.bf16.msrb.mxu0 %v8440_v47  ;;  %v3143_v56 = vadd.f32 %v3142_v36, %v1531_v55  ;;  %v8739_v7 = vld [vmem:[#allocation23 + $0x330] sm:$0xf]  ;;  %v3509_v24 = vperm.slane %v11804_v23, 4  ;;  %v10355_v23 = vld [vmem:[#allocation23 + $0x94] sm:$0xf] }
 0x3ad   :  { %v8740_v54 = vor.u32 %v10440_v15, %v8739_v7  ;;  %v10383_v15 = vld [vmem:[#allocation23 + $0x174] sm:$0xf] }
 0x3ae   :  { %v3279_v11 = vrot.slane %v3278_v42, 1  ;;  %v3156_v9 = vadd.f32 %v11894_v18, %v3143_v56  ;;  %v8723_v18 = vld [vmem:[#allocation23 + $0x310] sm:$0xf] }
 0x3af   :  { %v10804_v33 = vpop.eup %10803  ;;  %4417 = vmatpush.bf16.msra.mxu1 %v8740_v54  ;;  %v8724_v47 = vor.u32 %v10436_v38, %v8723_v18 }
 0x3b0   :  { %v3280_v37 = vadd.f32 %v3279_v11, %v3278_v42  ;;  %v3432_v45 = vmul.f32 %v10804_v33, %v11892_v60  ;;  %vm3438_vm13 = vweird.f32 %v10804_v33  ;;  %4455 = vmatpush.bf16.msrb.mxu0 %v8432_v22  ;;  %v8416_v42 = vor.u32 %v10357_v41, %v8413_v59  ;;  %v8731_v60 = vld [vmem:[#allocation23 + $0x320] sm:$0xf]  ;;  %v8405_v11 = vld [vmem:[#allocation23 + $0x98] sm:$0xf0]  ;;  %v10434_v22 = vld [vmem:[#allocation23 + $0x304] sm:$0xf0] }
 0x3b1   :  { %v3157_v10 = vpop.f32.mrf.mxu0  ;;  %vm3439_vm15 = vmor %vm3437_vm14, %vm3438_vm13  ;;  %v8732_v30 = vor.u32 %v10438_v49, %v8731_v60  ;;  %v8629_v59 = vld [vmem:[#allocation23 + $0x258] sm:$0xf0]  ;;  %v10409_v49 = vld [vmem:[#allocation23 + $0x244] sm:$0xf] }
 0x3b2   :  { %v3300_v20 = vmul.f32 %v3280_v37, %v11561_v27  ;;  %v3433_v50 = vmul.f32 %v10804_v33, %v3432_v45  ;;  %v8645_v10 = vld [vmem:[#allocation23 + $0x278] sm:$0xf0] }
 0x3b3   :  { %v3144_v25 = vpop.f32.mrf.mxu3  ;;  %4418 = vmatpush.bf16.msra.mxu1 %v8732_v30  ;;  %v8819_v30 = vld [vmem:[#allocation23 + $0x3d0] sm:$0xf] }
 0x3b4   :  { %v11901_v51 = vsub.f32 %v11885_v1, %v3300_v20  ;;  %v3434_v53 = vmul.f32 0.5, %v3433_v50  ;;  %4456 = vmatpush.bf16.msrb.mxu0 %v8424_v2  ;;  %v10353_v25 = vld [vmem:[#allocation23 + $0x84] sm:$0xf] }
 0x3b5   :  { %v8400_v55 = vor.u32 %v10353_v25, %v8397_v48  ;;  %v8613_v25 = vld [vmem:[#allocation23 + $0x238] sm:$0xf0] }
 0x3b6   :  { %v3316_v58 = vmul.f32 %v11901_v51, %v11901_v51  ;;  %v3435_v46 = vsub.f32 1.5, %v3434_v53 }
 0x3b7   :  { %4419 = vmatpush.bf16.msra.mxu1 %v8724_v47  ;;  %v8811_v47 = vld [vmem:[#allocation23 + $0x3c0] sm:$0xf] }
 0x3b8   :  { %v3168_v32 = vpop.f32.mrf.mxu1  ;;  %v3354_v1 = vsel %vm515_vm1, %v3316_v58, 0.0  ;;  %v3436_v16 = vmul.f32 %v10804_v33, %v3435_v46  ;;  %4457 = vmatpush.bf16.msrb.mxu0 %v8416_v42  ;;  %v10413_v58 = vld [vmem:[#allocation23 + $0x264] sm:$0xf] }
 0x3b9   :  { %v3355_v62 = vrot.slane %v3354_v1, 4  ;;  %v3169_v34 = vadd.f32 %v3168_v32, %v3156_v9  ;;  %v8715_v32 = vld [vmem:[#allocation23 + $0x300] sm:$0xf]  ;;  %v8640_v54 = vor.u32 %v10413_v58, %v8637_v61  ;;  %v8509_v9 = vld [vmem:[#allocation23 + $0x168] sm:$0xf0] }
 0x3ba   :  { %v3440_v19 = vsel %vm3439_vm15, %v10804_v33, %v3436_v16  ;;  %v10415_v33 = vld [vmem:[#allocation23 + $0x274] sm:$0xf]  ;;  %v8716_v46 = vor.u32 %v10434_v22, %v8715_v32  ;;  %v8517_v16 = vld [vmem:[#allocation23 + $0x178] sm:$0xf0]  ;;  %v10456_v61 = vld [vmem:[#allocation23 + $0x3b4] sm:$0xf0] }
 0x3bb   :  { %v3356_v21 = vadd.f32 %v3355_v62, %v3354_v1  ;;  %v3475_v36 = vmul.f32 %v3440_v19, %v11869_v5  ;;  %v8408_v5 = vor.u32 %v10355_v23, %v8405_v11  ;;  %v8648_v63 = vor.u32 %v10415_v33, %v8645_v10  ;;  %v10464_v1 = vld [vmem:[#allocation23 + $0x3f4] sm:$0xf0]  ;;  %v8827_v19 = vld [vmem:[#allocation23 + $0x3e0] sm:$0xf]  ;;  %v10379_v23 = vld [vmem:[#allocation23 + $0x154] sm:$0xf] }
 0x3bc   :  { %v8836_v62 = vor.u32 %v10464_v1, %v8835_v28  ;;  %4420 = vmatpush.bf16.msra.mxu1 %v8716_v46  ;;  %v8501_v11 = vld [vmem:[#allocation23 + $0x158] sm:$0xf0] }
 0x3bd   :  { %v3357_v57 = vrot.slane %v3356_v21, 2  ;;  %v3500_v17 = vmul.f32 %v3484_v40, %v3475_v36  ;;  %4458 = vmatpush.bf16.msrb.mxu0 %v8408_v5  ;;  %v10411_v40 = vld [vmem:[#allocation23 + $0x254] sm:$0xf]  ;;  %v8504_v5 = vor.u32 %v10379_v23, %v8501_v11 }
 0x3be   :  { %4426 = vmatpush.bf16.msra.mxu2 %v8836_v62  ;;  %v8632_v60 = vor.u32 %v10411_v40, %v8629_v59  ;;  %v8605_v62 = vld [vmem:[#allocation23 + $0x228] sm:$0xf0]  ;;  %v8795_v59 = vld [vmem:[#allocation23 + $0x3a0] sm:$0xf] }
 0x3bf   :  { %v3358_v12 = vadd.f32 %v3357_v57, %v3356_v21  ;;  %v3525_v39 = vadd.f32 %v3509_v24, %v3500_v17  ;;  %v8520_v21 = vor.u32 %v10383_v15, %v8517_v16  ;;  %v10462_v24 = vld [vmem:[#allocation23 + $0x3e4] sm:$0xf0]  ;;  %v10381_v57 = vld [vmem:[#allocation23 + $0x164] sm:$0xf]  ;;  %v10460_v17 = vld [vmem:[#allocation23 + $0x3d4] sm:$0xf0] }
 0x3c0   :  { %v3170_v14 = vpop.f32.mrf.mxu1  ;;  %v8828_v36 = vor.u32 %v10462_v24, %v8827_v19  ;;  %v8485_v16 = vld [vmem:[#allocation23 + $0x138] sm:$0xf0] }
 0x3c1   :  { %v3359_v37 = vrot.slane %v3358_v12, 1  ;;  %vm3533_vm0 = vcmp.ge.f32.partialorder %v3525_v39, 0.0  ;;  %v3541_v45 = vmul.f32 0.2, %v3525_v39  ;;  %4459 = vmatpush.bf16.msrb.mxu0 %v8400_v55  ;;  %4465 = vmatpush.bf16.msrb.mxu1 %v8520_v21  ;;  %v8512_v14 = vor.u32 %v10381_v57, %v8509_v9  ;;  %v8493_v55 = vld [vmem:[#allocation23 + $0x148] sm:$0xf0] }
 0x3c2   :  { %v3181_v52 = vpop.f32.mrf.mxu2  ;;  %4427 = vmatpush.bf16.msra.mxu2 %v8828_v36  ;;  %v11939_v21 = vld [vmem:[#allocation20] sm:$0xff]  ;;  %v10454_v36 = vld [vmem:[#allocation23 + $0x3a4] sm:$0xf0]  ;;  %v8597_v9 = vld [vmem:[#allocation23 + $0x218] sm:$0xf0] }
 0x3c3   :  { %v11912_v31 = vadd.f32 %v3181_v52, %v3169_v34  ;;  %v3360_v43 = vadd.f32 %v3359_v37, %v3358_v12  ;;  %v3549_v13 = vsel %vm3533_vm0, %v3525_v39, %v3541_v45  ;;  %v8621_v34 = vld [vmem:[#allocation23 + $0x248] sm:$0xf0]  ;;  %v8820_v52 = vor.u32 %v10460_v17, %v8819_v30 }
 0x3c4   :  { %v11917_v53 = vpack.c.bf16 %v3549_v13, %v3549_v13  ;;  %v8624_v10 = vor.u32 %v10409_v49, %v8621_v34  ;;  %v1532_v13 = vperm.slane %v11874_v6, 7  ;;  %v3485_v19 = vperm.slane %v11939_v21, 5  ;;  %v10401_v34 = vld [vmem:[#allocation23 + $0x204] sm:$0xf] }
 0x3c5   :  { %v3281_v44 = vsel %vm515_vm1, %v11912_v31, 0.0  ;;  %v3380_v50 = vmul.f32 %v3360_v43, %v11561_v27  ;;  %4466 = vmatpush.bf16.msrb.mxu1 %v8512_v14  ;;  %v10458_v43 = vld [vmem:[#allocation23 + $0x3c4] sm:$0xf0]  ;;  %v8796_v14 = vor.u32 %v10454_v36, %v8795_v59  ;;  %v8581_v59 = vld [vmem:[#allocation23 + $0x1f8] sm:$0xf0] }
 0x3c6   :  { %v3282_v20 = vrot.slane %v3281_v44, 4  ;;  %4395 = vmatmul.bf16.vlgmr.msrb.gmra.mxu3 %v11917_v53  ;;  %4428 = vmatpush.bf16.msra.mxu2 %v8820_v52  ;;  %v8812_v48 = vor.u32 %v10458_v43, %v8811_v47  ;;  %v8469_v47 = vld [vmem:[#allocation23 + $0x118] sm:$0xf0] }
 0x3c7   :  { %v11919_v4 = vadd.f32 0.8, %v3380_v50  ;;  %4491 = vmatpush.bf16.msrb.mxu3 %v8648_v63  ;;  %v10377_v50 = vld [vmem:[#allocation23 + $0x144] sm:$0xf] }
 0x3c8   :  { %v3283_v3 = vadd.f32 %v3282_v20, %v3281_v44  ;;  %v10407_v20 = vld [vmem:[#allocation23 + $0x234] sm:$0xf]  ;;  %v8496_v58 = vor.u32 %v10377_v50, %v8493_v55 }
 0x3c9   :  { %v11921_v26 = vpop.f32.mrf.mxu0  ;;  %10805 = vrsqrt.f32 %v11919_v4  ;;  %4467 = vmatpush.bf16.msrb.mxu1 %v8504_v5  ;;  %v8616_v28 = vor.u32 %v10407_v20, %v8613_v25  ;;  %vm3447_vm3 = vweird.f32 %v11919_v4  ;;  %v8589_v5 = vld [vmem:[#allocation23 + $0x208] sm:$0xf0]  ;;  %v8955_v20 = vld [vmem:[#allocation24 + $0xe0] sm:$0xf]  ;;  %v10495_v25 = vld [vmem:[#allocation24 + $0xec] sm:$0xf0] }
 0x3ca   :  { %v3284_v56 = vrot.slane %v3283_v3, 2  ;;  %v3183_v2 = vpop.f32.mrf.mxu2  ;;  %4429 = vmatpush.bf16.msra.mxu2 %v8812_v48  ;;  %v8592_v48 = vor.u32 %v10401_v34, %v8589_v5  ;;  %v10431_v50 = vld [vmem:[#allocation23 + $0x2f4] sm:$0xf]  ;;  %v8693_v34 = vld [vmem:[#allocation23 + $0x2d8] sm:$0xf0] }
 0x3cb   :  { %v11923_v7 = vpop.f32.mrf.mxu3  ;;  %4492 = vmatpush.bf16.msrb.mxu3 %v8640_v54 }
 0x3cc   :  { %v3285_v41 = vadd.f32 %v3284_v56, %v3283_v3  ;;  %v10405_v3 = vld [vmem:[#allocation23 + $0x224] sm:$0xf]  ;;  %v10375_v56 = vld [vmem:[#allocation23 + $0x134] sm:$0xf]  ;;  %v3195_v15 = vadd.f32 %v11923_v7, %v1532_v13  ;;  %v8709_v13 = vld [vmem:[#allocation23 + $0x2f8] sm:$0xf0] }
 0x3cd   :  { %4468 = vmatpush.bf16.msrb.mxu1 %v8496_v58  ;;  %v8488_v40 = vor.u32 %v10375_v56, %v8485_v16  ;;  %v10403_v7 = vld [vmem:[#allocation23 + $0x214] sm:$0xf]  ;;  %v10429_v58 = vld [vmem:[#allocation23 + $0x2e4] sm:$0xf]  ;;  %v10491_v56 = vld [vmem:[#allocation24 + $0xcc] sm:$0xf0] }
 0x3ce   :  { %v3286_v42 = vrot.slane %v3285_v41, 1  ;;  %v3208_v30 = vadd.f32 %v11921_v26, %v3195_v15  ;;  %v10369_v15 = vld [vmem:[#allocation23 + $0x104] sm:$0xf]  ;;  %v8461_v16 = vld [vmem:[#allocation23 + $0x108] sm:$0xf0] }
 0x3cf   :  { %v10806_v39 = vpop.eup %10805  ;;  %4493 = vmatpush.bf16.msrb.mxu3 %v8632_v60 }
 0x3d0   :  { %v3287_v12 = vadd.f32 %v3286_v42, %v3285_v41  ;;  %v3442_v18 = vmul.f32 %v10806_v39, %v11919_v4  ;;  %vm3448_vm2 = vweird.f32 %v10806_v39  ;;  %v8608_v41 = vor.u32 %v10405_v3, %v8605_v62  ;;  %v10373_v42 = vld [vmem:[#allocation23 + $0x124] sm:$0xf] }
 0x3d1   :  { %v3209_v37 = vpop.f32.mrf.mxu0  ;;  %vm3449_vm4 = vmor %vm3447_vm3, %vm3448_vm2  ;;  %4469 = vmatpush.bf16.msrb.mxu1 %v8488_v40 }
 0x3d2   :  { %v3301_v38 = vmul.f32 %v3287_v12, %v11561_v27  ;;  %v3443_v44 = vmul.f32 %v10806_v39, %v3442_v18  ;;  %v8477_v12 = vld [vmem:[#allocation23 + $0x128] sm:$0xf0]  ;;  %v8600_v37 = vor.u32 %v10403_v7, %v8597_v9  ;;  %v8787_v18 = vld [vmem:[#allocation23 + $0x390] sm:$0xf] }
 0x3d3   :  { %v3196_v33 = vpop.f32.mrf.mxu3  ;;  %4494 = vmatpush.bf16.msrb.mxu3 %v8624_v10  ;;  %v8480_v52 = vor.u32 %v10373_v42, %v8477_v12  ;;  %v10371_v10 = vld [vmem:[#allocation23 + $0x114] sm:$0xf]  ;;  %v8923_v42 = vld [vmem:[#allocation24 + $0xa0] sm:$0xf] }
 0x3d4   :  { %v11930_v45 = vsub.f32 %v11912_v31, %v3301_v38  ;;  %v3444_v32 = vmul.f32 0.5, %v3443_v44  ;;  %v8803_v31 = vld [vmem:[#allocation23 + $0x3b0] sm:$0xf]  ;;  %v10427_v12 = vld [vmem:[#allocation23 + $0x2d4] sm:$0xf] }
 0x3d5   :  { %v8804_v6 = vor.u32 %v10456_v61, %v8803_v31  ;;  %4470 = vmatpush.bf16.msrb.mxu1 %v8480_v52  ;;  %v8956_v31 = vor.u32 %v10495_v25, %v8955_v20  ;;  %v8939_v61 = vld [vmem:[#allocation24 + $0xc0] sm:$0xf]  ;;  %v8696_v5 = vor.u32 %v10427_v12, %v8693_v34 }
 0x3d6   :  { %v3317_v22 = vmul.f32 %v11930_v45, %v11930_v45  ;;  %v3445_v46 = vsub.f32 1.5, %v3444_v32  ;;  %4447 = vmatmul.bf16.vlgmr.msra.gmra.mxu3 %v11823_v35  ;;  %v11943_v35 = vld [vmem:[#allocation21] sm:$0xff] }
 0x3d7   :  { %4495 = vmatpush.bf16.msrb.mxu3 %v8616_v28  ;;  %4430 = vmatpush.bf16.msra.mxu2 %v8804_v6  ;;  %v3510_v60 = vperm.slane %v11943_v35, 5  ;;  %v8779_v28 = vld [vmem:[#allocation23 + $0x380] sm:$0xf]  ;;  %v8712_v6 = vor.u32 %v10431_v50, %v8709_v13  ;;  %v8557_v50 = vld [vmem:[#allocation23 + $0x1c8] sm:$0xf0] }
 0x3d8   :  { %v3220_v63 = vpop.f32.mrf.mxu1  ;;  %v3361_v1 = vsel %vm515_vm1, %v3317_v22, 0.0  ;;  %v3446_v54 = vmul.f32 %v10806_v39, %v3445_v46  ;;  %v10450_v46 = vld [vmem:[#allocation23 + $0x384] sm:$0xf0] }
 0x3d9   :  { %v3362_v2 = vrot.slane %v3361_v1, 4 }
 0x3da   :  { %v3450_v57 = vsel %vm3449_vm4, %v10806_v39, %v3446_v54  ;;  %v3221_v39 = vadd.f32 %v3220_v63, %v3208_v30  ;;  %v8472_v63 = vor.u32 %v10371_v10, %v8469_v47  ;;  %v8573_v30 = vld [vmem:[#allocation23 + $0x1e8] sm:$0xf0] }
 0x3db   :  { %v3363_v24 = vadd.f32 %v3362_v2, %v3361_v1  ;;  %v3476_v4 = vmul.f32 %v3450_v57, %v11901_v51  ;;  %4496 = vmatpush.bf16.msrb.mxu3 %v8608_v41  ;;  %v10452_v51 = vld [vmem:[#allocation23 + $0x394] sm:$0xf0]  ;;  %4431 = vmatpush.bf16.msra.mxu2 %v8796_v14  ;;  %v8780_v2 = vor.u32 %v10450_v46, %v8779_v28  ;;  %v10399_v41 = vld [vmem:[#allocation23 + $0x1f4] sm:$0xf]  ;;  %v8685_v10 = vld [vmem:[#allocation23 + $0x2c8] sm:$0xf0] }
 0x3dc   :  { %v8788_v33 = vor.u32 %v10452_v51, %v8787_v18  ;;  %4471 = vmatpush.bf16.msrb.mxu1 %v8472_v63  ;;  %v8584_v57 = vor.u32 %v10399_v41, %v8581_v59  ;;  %v8940_v14 = vor.u32 %v10491_v56, %v8939_v61  ;;  %v8907_v18 = vld [vmem:[#allocation24 + $0x80] sm:$0xf]  ;;  %v10483_v51 = vld [vmem:[#allocation24 + $0x8c] sm:$0xf0] }
 0x3dd   :  { %v3364_v49 = vrot.slane %v3363_v24, 2  ;;  %v3501_v23 = vmul.f32 %v3485_v19, %v3476_v4  ;;  %v8701_v19 = vld [vmem:[#allocation23 + $0x2e8] sm:$0xf0]  ;;  %v8908_v25 = vor.u32 %v10483_v51, %v8907_v18  ;;  %v8891_v63 = vld [vmem:[#allocation24 + $0x60] sm:$0xf] }
 0x3de   :  { %v8704_v4 = vor.u32 %v10429_v58, %v8701_v19  ;;  %v11967_v28 = vld [vmem:[%s12256_s17] sm:$0x3]  ;;  %v8677_v58 = vld [vmem:[#allocation23 + $0x2b8] sm:$0xf0]  ;;  %v10421_v19 = vld [vmem:[#allocation23 + $0x2a4] sm:$0xf] }
 0x3df   :  { %v3365_v11 = vadd.f32 %v3364_v49, %v3363_v24  ;;  %v3526_v43 = vadd.f32 %v3510_v60, %v3501_v23  ;;  %4497 = vmatpush.bf16.msrb.mxu3 %v8600_v37  ;;  %4432 = vmatpush.bf16.msra.mxu2 %v8788_v33  ;;  %v8464_v24 = vor.u32 %v10369_v15, %v8461_v16  ;;  %v10487_v60 = vld [vmem:[#allocation24 + $0xac] sm:$0xf0]  ;;  %v10397_v49 = vld [vmem:[#allocation23 + $0x1e4] sm:$0xf]  ;;  %v8565_v37 = vld [vmem:[#allocation23 + $0x1d8] sm:$0xf0] }
 0x3e0   :  { %v3222_v17 = vpop.f32.mrf.mxu1  ;;  %v8576_v52 = vor.u32 %v10397_v49, %v8573_v30  ;;  %v10425_v33 = vld [vmem:[#allocation23 + $0x2c4] sm:$0xf]  ;;  %v10475_v15 = vld [vmem:[#allocation24 + $0x4c] sm:$0xf0]  ;;  %v8859_v30 = vld [vmem:[#allocation24 + $0x20] sm:$0xf] }
 0x3e1   :  { %v3233_v38 = vpop.f32.mrf.mxu2  ;;  %v3366_v26 = vrot.slane %v3365_v11, 1  ;;  %vm3534_vm5 = vcmp.ge.f32.partialorder %v3526_v43, 0.0  ;;  %v3542_v55 = vmul.f32 0.2, %v3526_v43  ;;  %4472 = vmatpush.bf16.msrb.mxu1 %v8464_v24  ;;  %v8688_v13 = vor.u32 %v10425_v33, %v8685_v10  ;;  %v8669_v24 = vld [vmem:[#allocation23 + $0x2a8] sm:$0xf0] }
 0x3e2   :  { %v11947_v44 = vadd.f32 %v3233_v38, %v3221_v39  ;;  %v10395_v39 = vld [vmem:[#allocation23 + $0x1d4] sm:$0xf]  ;;  %v8672_v49 = vor.u32 %v10421_v19, %v8669_v24  ;;  %v10417_v18 = vld [vmem:[#allocation23 + $0x284] sm:$0xf]  ;;  %v8533_v33 = vld [vmem:[#allocation23 + $0x198] sm:$0xf0] }
 0x3e3   :  { %v3367_v32 = vadd.f32 %v3366_v26, %v3365_v11  ;;  %v3550_v62 = vsel %vm3534_vm5, %v3526_v43, %v3542_v55  ;;  %4498 = vmatpush.bf16.msrb.mxu3 %v8592_v48  ;;  %4433 = vmatpush.bf16.msra.mxu2 %v8780_v2  ;;  %v8924_v11 = vor.u32 %v10487_v60, %v8923_v42  ;;  %v10393_v48 = vld [vmem:[#allocation23 + $0x1c4] sm:$0xf]  ;;  %v10479_v55 = vld [vmem:[#allocation24 + $0x6c] sm:$0xf0]  ;;  %v8875_v2 = vld [vmem:[#allocation24 + $0x40] sm:$0xf] }
 0x3e4   :  { %v3288_v22 = vsel %vm515_vm1, %v11947_v44, 0.0  ;;  %v11952_v40 = vpack.c.bf16 %v3550_v62, %v3550_v62  ;;  %v10391_v62 = vld [vmem:[#allocation23 + $0x1b4] sm:$0xf]  ;;  %v8541_v42 = vld [vmem:[#allocation23 + $0x1a8] sm:$0xf0] }
 0x3e5   :  { %v3289_v3 = vrot.slane %v3288_v22, 4  ;;  %v3381_v1 = vmul.f32 %v3367_v32, %v11561_v27  ;;  %v9067_v24 = vld [vmem:[#allocation24 + $0x1c0] sm:$0xf] }
 0x3e6   :  { %4408 = vmatmul.bf16.vlgmr.msra.gmra.mxu0 %v11952_v40  ;;  %4499 = vmatmul.bf16.vlgmr.msrb.gmra.mxu3 %v11917_v53  ;;  %v8568_v53 = vor.u32 %v10395_v39, %v8565_v37 }
 0x3e7   :  { %v3290_v54 = vadd.f32 %v3289_v3, %v3288_v22  ;;  %v11954_v36 = vadd.f32 0.8, %v3381_v1  ;;  %4954 = vmatpush.bf16.msra.mxu3 %v8956_v31  ;;  %4504 = vmatpush.bf16.msra.mxu0 %v8712_v6  ;;  %v10423_v3 = vld [vmem:[#allocation23 + $0x2b4] sm:$0xf]  ;;  %v8560_v31 = vor.u32 %v10393_v48, %v8557_v50  ;;  %v8892_v1 = vor.u32 %v10479_v55, %v8891_v63  ;;  %v8549_v6 = vld [vmem:[#allocation23 + $0x1b8] sm:$0xf0] }
 0x3e8   :  { %4478 = vmatpush.bf16.msrb.mxu2 %v8584_v57  ;;  %v8680_v56 = vor.u32 %v10423_v3, %v8677_v58  ;;  %v8552_v59 = vor.u32 %v10391_v62, %v8549_v6  ;;  %v10496_v48 = vld [vmem:[#allocation24 + $0xf4] sm:$0xf0]  ;;  %v10527_v63 = vld [vmem:[#allocation24 + $0x1ec] sm:$0xf0]  ;;  %v10447_v55 = vld [vmem:[#allocation23 + $0x374] sm:$0xf] }
 0x3e9   :  { %v3291_v7 = vrot.slane %v3290_v54, 2  ;;  %v3235_v9 = vpop.f32.mrf.mxu2  ;;  %10807 = vrsqrt.f32 %v11954_v36  ;;  %vm3457_vm7 = vweird.f32 %v11954_v36  ;;  %v8773_v58 = vld [vmem:[#allocation23 + $0x378] sm:$0xf0] }
 0x3ea   :  { %v8876_v9 = vor.u32 %v10475_v15, %v8875_v2  ;;  %v10492_v2 = vld [vmem:[#allocation24 + $0xd4] sm:$0xf0] }
 0x3eb   :  { %v3292_v17 = vadd.f32 %v3291_v7, %v3290_v54  ;;  %4955 = vmatpush.bf16.msra.mxu3 %v8940_v14  ;;  %4505 = vmatpush.bf16.msra.mxu0 %v8704_v4  ;;  %v4344_v20 = vpop.f32.mrf.mxu3  ;;  %v10389_v14 = vld [vmem:[#allocation23 + $0x1a4] sm:$0xf]  ;;  %v3486_v4 = vperm.slane %v11939_v21, 6 }
 0x3ec   :  { %4479 = vmatpush.bf16.msrb.mxu2 %v8576_v52  ;;  %v10419_v52 = vld [vmem:[#allocation23 + $0x294] sm:$0xf]  ;;  %v8544_v37 = vor.u32 %v10389_v14, %v8541_v42  ;;  %v4551_v14 = vld [vmem:[#allocation3] sm:$0xf] }
 0x3ed   :  { %v3293_v23 = vrot.slane %v3292_v17, 1  ;;  %4553 = vst [vmem:[#allocation1] ss:$4 sm:$0xff] %v4551_v14 }
 0x3ef   :  { %v3294_v38 = vadd.f32 %v3293_v23, %v3292_v17  ;;  %v10808_v47 = vpop.eup %10807  ;;  %4956 = vmatpush.bf16.msra.mxu3 %v8924_v11  ;;  %4506 = vmatpush.bf16.msra.mxu0 %v8696_v5  ;;  %v10471_v17 = vld [vmem:[#allocation24 + $0x2c] sm:$0xf0]  ;;  %v3511_v23 = vperm.slane %v11943_v35, 6 }
 0x3f0   :  { %v3452_v43 = vmul.f32 %v10808_v47, %v11954_v36  ;;  %4480 = vmatpush.bf16.msrb.mxu2 %v8568_v53  ;;  %vm3458_vm6 = vweird.f32 %v10808_v47  ;;  %v8661_v36 = vld [vmem:[#allocation23 + $0x298] sm:$0xf0]  ;;  %v8860_v51 = vor.u32 %v10471_v17, %v8859_v30  ;;  %v9051_v17 = vld [vmem:[#allocation24 + $0x1a0] sm:$0xf] }
 0x3f1   :  { %v3302_v26 = vmul.f32 %v3294_v38, %v11561_v27  ;;  %vm3459_vm8 = vmor %vm3457_vm7, %vm3458_vm6  ;;  %v10387_v38 = vld [vmem:[#allocation23 + $0x194] sm:$0xf]  ;;  %v8664_v53 = vor.u32 %v10419_v52, %v8661_v36  ;;  %v8757_v52 = vld [vmem:[#allocation23 + $0x358] sm:$0xf0]  ;;  %vm5738_vm6 = vcmask 1024  }
 0x3f2   :  { %v3453_v32 = vmul.f32 %v10808_v47, %v3452_v43  ;;  %v8653_v43 = vld [vmem:[#allocation23 + $0x288] sm:$0xf0] }
 0x3f3   :  { %v11962_v22 = vsub.f32 %v11947_v44, %v3302_v26  ;;  %4957 = vmatpush.bf16.msra.mxu3 %v8908_v25  ;;  %4507 = vmatpush.bf16.msra.mxu0 %v8688_v13  ;;  %v3691_v44 = vperm.slane %v11967_v28, 0  ;;  %v4346_v7 = vpop.f32.mrf.mxu3  ;;  %v4357_v39 = vpop.f32.mrf.mxu0  ;;  %v8843_v26 = vld [vmem:[#allocation24] sm:$0xf]  ;;  %v8963_v25 = vld [vmem:[#allocation24 + $0xe8] sm:$0xf]  ;;  %v8656_v3 = vor.u32 %v10417_v18, %v8653_v43 }
 0x3f4   :  { %v3454_v61 = vmul.f32 0.5, %v3453_v32  ;;  %4481 = vmatpush.bf16.msrb.mxu2 %v8560_v31  ;;  %v8536_v32 = vor.u32 %v10387_v38, %v8533_v33  ;;  %v8964_v6 = vor.u32 %v10496_v48, %v8963_v25  ;;  %v10445_v7 = vld [vmem:[#allocation23 + $0x364] sm:$0xf]  ;;  %v9035_v18 = vld [vmem:[#allocation24 + $0x180] sm:$0xf] }
 0x3f5   :  { %v3318_v46 = vmul.f32 %v11962_v22, %v11962_v22  ;;  %v4345_v34 = vadd.f32 %v4344_v20, %v3691_v44  ;;  %v9083_v20 = vld [vmem:[#allocation24 + $0x1e0] sm:$0xf]  ;;  %v10441_v38 = vld [vmem:[#allocation23 + $0x344] sm:$0xf]  ;;  %v10480_v25 = vld [vmem:[#allocation24 + $0x74] sm:$0xf0] }
 0x3f6   :  { %v3455_v16 = vsub.f32 1.5, %v3454_v61  ;;  %4460 = vmatmul.bf16.vlgmr.msrb.gmra.mxu0 %v11844_v0  ;;  %v10385_v61 = vld [vmem:[#allocation23 + $0x184] sm:$0xf]  ;;  %v9084_v44 = vor.u32 %v10527_v63, %v9083_v20  ;;  %v8899_v20 = vld [vmem:[#allocation24 + $0x68] sm:$0xf] }
 0x3f7   :  { %v3368_v54 = vsel %vm515_vm1, %v3318_v46, 0.0  ;;  %4958 = vmatpush.bf16.msra.mxu3 %v8892_v1  ;;  %4508 = vmatpush.bf16.msra.mxu0 %v8680_v56  ;;  %v11979_v5 = vadd.f32 %v4357_v39, %v4345_v34  ;;  %v8525_v46 = vld [vmem:[#allocation23 + $0x188] sm:$0xf0]  ;;  %v8947_v56 = vld [vmem:[#allocation24 + $0xc8] sm:$0xf] }
 0x3f8   :  { %v3369_v41 = vrot.slane %v3368_v54, 4  ;;  %v3456_v57 = vmul.f32 %v10808_v47, %v3455_v16  ;;  %4482 = vmatpush.bf16.msrb.mxu2 %v8552_v59  ;;  %v8528_v59 = vor.u32 %v10385_v61, %v8525_v46  ;;  %v10443_v34 = vld [vmem:[#allocation23 + $0x354] sm:$0xf]  ;;  %v10476_v61 = vld [vmem:[#allocation24 + $0x54] sm:$0xf0] }
 0x3f9   :  { %v8760_v39 = vor.u32 %v10443_v34, %v8757_v52  ;;  %v10439_v63 = vld [vmem:[#allocation23 + $0x334] sm:$0xf]  ;;  %v8971_v34 = vld [vmem:[#allocation24 + $0x100] sm:$0xf]  ;;  %v10499_v52 = vld [vmem:[#allocation24 + $0x10c] sm:$0xf0] }
 0x3fa   :  { %v3370_v60 = vadd.f32 %v3369_v41, %v3368_v54  ;;  %v3460_v12 = vsel %vm3459_vm8, %v10808_v47, %v3456_v57  ;;  %v8776_v54 = vor.u32 %v10447_v55, %v8773_v58  ;;  %v10523_v41 = vld [vmem:[#allocation24 + $0x1cc] sm:$0xf0]  ;;  %v8741_v55 = vld [vmem:[#allocation23 + $0x338] sm:$0xf0] }
 0x3fb   :  { %v3477_v0 = vmul.f32 %v3460_v12, %v11930_v45  ;;  %4959 = vmatpush.bf16.msra.mxu3 %v8876_v9  ;;  %4509 = vmatpush.bf16.msra.mxu0 %v8672_v49  ;;  %v10467_v45 = vld [vmem:[#allocation24 + $0xc] sm:$0xf0]  ;;  %v4359_v19 = vpop.f32.mrf.mxu0  ;;  %v8765_v9 = vld [vmem:[#allocation23 + $0x368] sm:$0xf0]  ;;  %v10488_v49 = vld [vmem:[#allocation24 + $0xb4] sm:$0xf0]  ;;  %v8744_v46 = vor.u32 %v10439_v63, %v8741_v55 }
 0x3fc   :  { %v3371_v11 = vrot.slane %v3370_v60, 2  ;;  %4483 = vmatpush.bf16.msrb.mxu2 %v8544_v37  ;;  %v8844_v31 = vor.u32 %v10467_v45, %v8843_v26  ;;  %v8768_v30 = vor.u32 %v10445_v7, %v8765_v9  ;;  %v10519_v12 = vld [vmem:[#allocation24 + $0x1ac] sm:$0xf0]  ;;  %v8867_v19 = vld [vmem:[#allocation24 + $0x28] sm:$0xf] }
 0x3fd   :  { %v3502_v10 = vmul.f32 %v3486_v4, %v3477_v0  ;;  %v8948_v4 = vor.u32 %v10492_v2, %v8947_v56  ;;  %v9052_v0 = vor.u32 %v10519_v12, %v9051_v17  ;;  %v10437_v56 = vld [vmem:[#allocation23 + $0x324] sm:$0xf]  ;;  %v8733_v2 = vld [vmem:[#allocation23 + $0x328] sm:$0xf0]  ;;  %v8987_v7 = vld [vmem:[#allocation24 + $0x120] sm:$0xf] }
 0x3fe   :  { %v3372_v47 = vadd.f32 %v3371_v11, %v3370_v60  ;;  %v8931_v60 = vld [vmem:[#allocation24 + $0xa8] sm:$0xf]  ;;  %v10484_v11 = vld [vmem:[#allocation24 + $0x94] sm:$0xf0]  ;;  %v10503_v9 = vld [vmem:[#allocation24 + $0x12c] sm:$0xf0] }
 0x3ff   :  { %v3527_v50 = vadd.f32 %v3511_v23, %v3502_v10  ;;  %4960 = vmatpush.bf16.msra.mxu3 %v8860_v51  ;;  %4510 = vmatpush.bf16.msra.mxu0 %v8664_v53  ;;  %v8932_v36 = vor.u32 %v10488_v49, %v8931_v60  ;;  %v8915_v23 = vld [vmem:[#allocation24 + $0x88] sm:$0xf]  ;;  %v10515_v51 = vld [vmem:[#allocation24 + $0x18c] sm:$0xf0]  ;;  %v8749_v10 = vld [vmem:[#allocation23 + $0x348] sm:$0xf0]  ;;  %v8988_v49 = vor.u32 %v10503_v9, %v8987_v7 }
 0x400   :  { %v3373_v13 = vrot.slane %v3372_v47, 1  ;;  %4484 = vmatpush.bf16.msrb.mxu2 %v8536_v32  ;;  %v8916_v53 = vor.u32 %v10484_v11, %v8915_v23  ;;  %v9036_v45 = vor.u32 %v10515_v51, %v9035_v18  ;;  %v8752_v48 = vor.u32 %v10441_v38, %v8749_v10  ;;  %v10468_v17 = vld [vmem:[#allocation24 + $0x14] sm:$0xf0]  ;;  %v9091_v23 = vld [vmem:[#allocation24 + $0x1e8] sm:$0xf] }
 0x401   :  { %vm3535_vm9 = vcmp.ge.f32.partialorder %v3527_v50, 0.0  ;;  %v3543_v1 = vmul.f32 0.2, %v3527_v50  ;;  %v8900_v32 = vor.u32 %v10480_v25, %v8899_v20  ;;  %v10528_v11 = vld [vmem:[#allocation24 + $0x1f4] sm:$0xf0] }
 0x402   :  { %v3374_v62 = vadd.f32 %v3373_v13, %v3372_v47  ;;  %v4554_v47 = vld.sshfl [vmem:[#allocation1] sm:$0xff pattern:$0x73625140]  ;;  %v8837_v18 = vld [vmem:[#allocation23 + $0x3f8] sm:$0xf0] }
 0x403   :  { %v3551_v16 = vsel %vm3535_vm9, %v3527_v50, %v3543_v1  ;;  %4961 = vmatpush.bf16.msra.mxu3 %v8844_v31  ;;  %4511 = vmatpush.bf16.msra.mxu0 %v8656_v3  ;;  %v11992_v43 = vpack.c.bf16 %v4554_v47, %v4554_v47  ;;  %v9019_v50 = vld [vmem:[#allocation24 + $0x160] sm:$0xf]  ;;  %v10511_v13 = vld [vmem:[#allocation24 + $0x16c] sm:$0xf0]  ;;  %v8883_v31 = vld [vmem:[#allocation24 + $0x48] sm:$0xf]  ;;  %v9092_v47 = vor.u32 %v10528_v11, %v9091_v23 }
 0x404   :  { %v3382_v15 = vmul.f32 %v3374_v62, %v11561_v27  ;;  %v11982_v57 = vpack.c.bf16 %v3551_v16, %v3551_v16  ;;  %v9068_v27 = vor.u32 %v10523_v41, %v9067_v24  ;;  %4485 = vmatpush.bf16.msrb.mxu2 %v8528_v59  ;;  %v4370_v37 = vpop.f32.mrf.mxu1  ;;  %v9020_v58 = vor.u32 %v10511_v13, %v9019_v50  ;;  %v9003_v62 = vld [vmem:[#allocation24 + $0x140] sm:$0xf]  ;;  %v10472_v24 = vld [vmem:[#allocation24 + $0x34] sm:$0xf0]  ;;  %v10461_v13 = vld [vmem:[#allocation23 + $0x3e4] sm:$0xf] }
 0x405   :  { %v11990_v33 = vadd.f32 %v4370_v37, %v11979_v5  ;;  %v3487_v41 = vperm.slane %v11939_v21, 7  ;;  %v8736_v59 = vor.u32 %v10437_v56, %v8733_v2  ;;  %v10463_v37 = vld [vmem:[#allocation23 + $0x3f4] sm:$0xf]  ;;  %v4555_v51 = vld.sshfl [vmem:[#allocation1 + $0x8] sm:$0xff pattern:$0x73625140] }
 0x406   :  { %v11984_v42 = vadd.f32 0.8, %v3382_v15  ;;  %4421 = vmatmul.bf16.vlgmr.msra.gmra.mxu1 %v11982_v57  ;;  %4512 = vmatmul.bf16.vlgmr.msra.gmra.mxu0 %v11952_v40  ;;  %v8884_v15 = vor.u32 %v10476_v61, %v8883_v31  ;;  %v8840_v25 = vor.u32 %v10463_v37, %v8837_v18  ;;  %v9059_v55 = vld [vmem:[#allocation24 + $0x1a8] sm:$0xf]  ;;  %v8941_v31 = vld [vmem:[#allocation24 + $0xd0] sm:$0xf0] }
 0x407   :  { %5006 = vmatpush.bf16.msrb.mxu3 %v8964_v6  ;;  %4967 = vmatpush.bf16.msrb.mxu0 %v9084_v44  ;;  %v10507_v6 = vld [vmem:[#allocation24 + $0x14c] sm:$0xf0]  ;;  %v10516_v56 = vld [vmem:[#allocation24 + $0x194] sm:$0xf0]  ;;  %v10485_v2 = vld [vmem:[#allocation24 + $0xa4] sm:$0xf] }
 0x408   :  { %10809 = vrsqrt.f32 %v11984_v42  ;;  %4517 = vmatpush.bf16.msra.mxu1 %v8776_v54  ;;  %4962 = vmatmul.bf16.vlgmr.msra.gmra.mxu3 %v11992_v43  ;;  %vm3467_vm11 = vweird.f32 %v11984_v42  ;;  %v9004_v54 = vor.u32 %v10507_v6, %v9003_v62  ;;  %v9043_v6 = vld [vmem:[#allocation24 + $0x188] sm:$0xf]  ;;  %v10481_v7 = vld [vmem:[#allocation24 + $0x84] sm:$0xf]  ;;  %v8909_v9 = vld [vmem:[#allocation24 + $0x90] sm:$0xf0] }
 0x409   :  { %v8995_v23 = vld [vmem:[#allocation24 + $0x128] sm:$0xf]  ;;  %v10473_v37 = vld [vmem:[#allocation24 + $0x44] sm:$0xf]  ;;  %v8789_v18 = vld [vmem:[#allocation23 + $0x398] sm:$0xf0] }
 0x40b   :  { %5007 = vmatpush.bf16.msrb.mxu3 %v8948_v4  ;;  %4968 = vmatpush.bf16.msrb.mxu0 %v9068_v27  ;;  %v10435_v4 = vld [vmem:[#allocation23 + $0x314] sm:$0xf]  ;;  %v8725_v27 = vld [vmem:[#allocation23 + $0x318] sm:$0xf0] }
 0x40c   :  { %4518 = vmatpush.bf16.msra.mxu1 %v8768_v30  ;;  %v4372_v1 = vpop.f32.mrf.mxu1  ;;  %v8851_v30 = vld [vmem:[#allocation24 + $0x8] sm:$0xf]  ;;  %v8728_v21 = vor.u32 %v10435_v4, %v8725_v27  ;;  %v10455_v4 = vld [vmem:[#allocation23 + $0x3b4] sm:$0xf]  ;;  %v8805_v27 = vld [vmem:[#allocation23 + $0x3b8] sm:$0xf0] }
 0x40d   :  { %v8821_v1 = vld [vmem:[#allocation23 + $0x3d8] sm:$0xf0] }
 0x40e   :  { %v10810_v40 = vpop.eup %10809 }
 0x40f   :  { %5008 = vmatpush.bf16.msrb.mxu3 %v8932_v36  ;;  %v3462_v26 = vmul.f32 %v10810_v40, %v11984_v42  ;;  %4969 = vmatpush.bf16.msrb.mxu0 %v9052_v0  ;;  %vm3468_vm10 = vweird.f32 %v10810_v40  ;;  %v3512_v42 = vperm.slane %v11943_v35, 7  ;;  %v10433_v36 = vld [vmem:[#allocation23 + $0x304] sm:$0xf]  ;;  %v8717_v0 = vld [vmem:[#allocation23 + $0x308] sm:$0xf0]  ;;  %v8972_v35 = vor.u32 %v10499_v52, %v8971_v34 }
 0x410   :  { %4519 = vmatpush.bf16.msra.mxu1 %v8760_v39  ;;  %vm3469_vm12 = vmor %vm3467_vm11, %vm3468_vm10  ;;  %v8720_v10 = vor.u32 %v10433_v36, %v8717_v0  ;;  %v8808_v34 = vor.u32 %v10455_v4, %v8805_v27  ;;  %v10453_v52 = vld [vmem:[#allocation23 + $0x3a4] sm:$0xf]  ;;  %v8797_v36 = vld [vmem:[#allocation23 + $0x3a8] sm:$0xf0] }
 0x411   :  { %v3463_v5 = vmul.f32 %v10810_v40, %v3462_v26  ;;  %v10493_v26 = vld [vmem:[#allocation24 + $0xe4] sm:$0xf] }
 0x412   :  { %v10509_v27 = vld [vmem:[#allocation24 + $0x164] sm:$0xf] }
 0x413   :  { %5009 = vmatpush.bf16.msrb.mxu3 %v8916_v53  ;;  %v3464_v3 = vmul.f32 0.5, %v3463_v5  ;;  %4970 = vmatpush.bf16.msrb.mxu0 %v9036_v45  ;;  %v10524_v53 = vld [vmem:[#allocation24 + $0x1d4] sm:$0xf0]  ;;  %v8957_v45 = vld [vmem:[#allocation24 + $0xf0] sm:$0xf0] }
 0x414   :  { %4520 = vmatpush.bf16.msra.mxu1 %v8752_v48  ;;  %v12001_v48 = vpack.c.bf16 %v4555_v51, %v4555_v51  ;;  %v8829_v5 = vld [vmem:[#allocation23 + $0x3e8] sm:$0xf0] }
 0x415   :  { %v3465_v44 = vsub.f32 1.5, %v3464_v3  ;;  %v10520_v3 = vld [vmem:[#allocation24 + $0x1b4] sm:$0xf0]  ;;  %v8832_v61 = vor.u32 %v10461_v13, %v8829_v5  ;;  %v10525_v13 = vld [vmem:[#allocation24 + $0x1e4] sm:$0xf] }
 0x416   :  { %4473 = vmatmul.bf16.vlgmr.msrb.gmra.mxu1 %v11858_v29  ;;  %v8868_v29 = vor.u32 %v10472_v24, %v8867_v19  ;;  %v9060_v62 = vor.u32 %v10520_v3, %v9059_v55  ;;  %v8813_v19 = vld [vmem:[#allocation23 + $0x3c8] sm:$0xf0]  ;;  %v9044_v24 = vor.u32 %v10516_v56, %v9043_v6  ;;  %v9085_v5 = vld [vmem:[#allocation24 + $0x1f0] sm:$0xf0]  ;;  %v10465_v55 = vld [vmem:[#allocation24 + $0x4] sm:$0xf] }
 0x417   :  { %5010 = vmatpush.bf16.msrb.mxu3 %v8900_v32  ;;  %v3466_v16 = vmul.f32 %v10810_v40, %v3465_v44  ;;  %4971 = vmatpush.bf16.msrb.mxu0 %v9020_v58  ;;  %v8960_v32 = vor.u32 %v10493_v26, %v8957_v45  ;;  %v10489_v58 = vld [vmem:[#allocation24 + $0xc4] sm:$0xf]  ;;  %v8861_v26 = vld [vmem:[#allocation24 + $0x30] sm:$0xf0]  ;;  %v8949_v56 = vld [vmem:[#allocation24 + $0xd8] sm:$0xf0] }
 0x418   :  { %4521 = vmatpush.bf16.msra.mxu1 %v8744_v46  ;;  %v10459_v46 = vld [vmem:[#allocation23 + $0x3d4] sm:$0xf]  ;;  %v8944_v44 = vor.u32 %v10489_v58, %v8941_v31  ;;  %v10494_v58 = vld [vmem:[#allocation24 + $0xec] sm:$0xf]  ;;  %v8965_v31 = vld [vmem:[#allocation24 + $0xf8] sm:$0xf0] }
 0x419   :  { %v3470_v14 = vsel %vm3469_vm12, %v10810_v40, %v3466_v16  ;;  %v9075_v40 = vld [vmem:[#allocation24 + $0x1c8] sm:$0xf]  ;;  %v8824_v16 = vor.u32 %v10459_v46, %v8821_v1  ;;  %v10521_v46 = vld [vmem:[#allocation24 + $0x1c4] sm:$0xf]  ;;  %v9069_v1 = vld [vmem:[#allocation24 + $0x1d0] sm:$0xf0]  ;;  %v8968_v6 = vor.u32 %v10494_v58, %v8965_v31 }
 0x41a   :  { %v3478_v60 = vmul.f32 %v3470_v14, %v11962_v22  ;;  %v8852_v22 = vor.u32 %v10468_v17, %v8851_v30  ;;  %v9076_v63 = vor.u32 %v10524_v53, %v9075_v40  ;;  %v10508_v17 = vld [vmem:[#allocation24 + $0x154] sm:$0xf0]  ;;  %v10469_v53 = vld [vmem:[#allocation24 + $0x24] sm:$0xf]  ;;  %v9045_v58 = vld [vmem:[#allocation24 + $0x198] sm:$0xf0] }
 0x41b   :  { %5011 = vmatpush.bf16.msrb.mxu3 %v8884_v15  ;;  %4972 = vmatpush.bf16.msrb.mxu0 %v9004_v54  ;;  %v8925_v15 = vld [vmem:[#allocation24 + $0xb0] sm:$0xf0]  ;;  %v10457_v54 = vld [vmem:[#allocation23 + $0x3c4] sm:$0xf]  ;;  %v10500_v40 = vld [vmem:[#allocation24 + $0x114] sm:$0xf0] }
 0x41c   :  { %v3503_v12 = vmul.f32 %v3487_v41, %v3478_v60  ;;  %4522 = vmatpush.bf16.msra.mxu1 %v8736_v59  ;;  %v9027_v41 = vld [vmem:[#allocation24 + $0x168] sm:$0xf]  ;;  %v8928_v59 = vor.u32 %v10485_v2, %v8925_v15  ;;  %v8816_v14 = vor.u32 %v10457_v54, %v8813_v19  ;;  %v9072_v2 = vor.u32 %v10521_v46, %v9069_v1  ;;  %v10517_v15 = vld [vmem:[#allocation24 + $0x1a4] sm:$0xf]  ;;  %v10486_v19 = vld [vmem:[#allocation24 + $0xac] sm:$0xf] }
 0x41e   :  { %v3528_v39 = vadd.f32 %v3512_v42, %v3503_v12  ;;  %v10477_v12 = vld [vmem:[#allocation24 + $0x64] sm:$0xf] }
 0x41f   :  { %5012 = vmatpush.bf16.msrb.mxu3 %v8868_v29  ;;  %4973 = vmatpush.bf16.msrb.mxu0 %v8988_v49  ;;  %v9011_v29 = vld [vmem:[#allocation24 + $0x148] sm:$0xf]  ;;  %v8912_v49 = vor.u32 %v10481_v7, %v8909_v9  ;;  %v10482_v9 = vld [vmem:[#allocation24 + $0x8c] sm:$0xf] }
 0x420   :  { %vm3536_vm13 = vcmp.ge.f32.partialorder %v3528_v39, 0.0  ;;  %v3544_v38 = vmul.f32 0.2, %v3528_v39  ;;  %4523 = vmatpush.bf16.msra.mxu1 %v8728_v21  ;;  %v8893_v21 = vld [vmem:[#allocation24 + $0x70] sm:$0xf0]  ;;  %v9012_v0 = vor.u32 %v10508_v17, %v9011_v29 }
 0x421   :  { %v8896_v11 = vor.u32 %v10477_v12, %v8893_v21  ;;  %v10478_v29 = vld [vmem:[#allocation24 + $0x6c] sm:$0xf]  ;;  %v10505_v21 = vld [vmem:[#allocation24 + $0x144] sm:$0xf] }
 0x422   :  { %v3552_v20 = vsel %vm3536_vm13, %v3528_v39, %v3544_v38  ;;  %v10504_v39 = vld [vmem:[#allocation24 + $0x134] sm:$0xf0] }
 0x423   :  { %5013 = vmatpush.bf16.msrb.mxu3 %v8852_v22  ;;  %4974 = vmatpush.bf16.msrb.mxu0 %v8972_v35  ;;  %v12003_v50 = vpack.c.bf16 %v3552_v20, %v3552_v20  ;;  %v8877_v22 = vld [vmem:[#allocation24 + $0x50] sm:$0xf0]  ;;  %v8996_v38 = vor.u32 %v10504_v39, %v8995_v23  ;;  %v10449_v20 = vld [vmem:[#allocation23 + $0x384] sm:$0xf] }
 0x424   :  { %4524 = vmatpush.bf16.msra.mxu1 %v8720_v10  ;;  %v10451_v35 = vld [vmem:[#allocation23 + $0x394] sm:$0xf]  ;;  %v8979_v10 = vld [vmem:[#allocation24 + $0x108] sm:$0xf] }
 0x425   :  { %4434 = vmatmul.bf16.vlgmr.msra.gmra.mxu2 %v12003_v50  ;;  %v8792_v45 = vor.u32 %v10451_v35, %v8789_v18  ;;  %v8989_v39 = vld [vmem:[#allocation24 + $0x130] sm:$0xf0]  ;;  %v8869_v35 = vld [vmem:[#allocation24 + $0x38] sm:$0xf0] }
 0x426   :  { %5014 = vmatmul.bf16.vlgmr.msrb.gmra.mxu3 %v11992_v43  ;;  %4530 = vmatpush.bf16.msra.mxu2 %v8840_v25  ;;  %v8980_v25 = vor.u32 %v10500_v40, %v8979_v10  ;;  %v9093_v10 = vld [vmem:[#allocation24 + $0x1f8] sm:$0xf0]  ;;  %v10466_v40 = vld [vmem:[#allocation24 + $0xc] sm:$0xf] }
 0x427   :  { %5019 = vmatpush.bf16.msra.mxu0 %v9092_v47  ;;  %4525 = vmatmul.bf16.vlgmr.msra.gmra.mxu1 %v11982_v57  ;;  %v10512_v57 = vld [vmem:[#allocation24 + $0x174] sm:$0xf0]  ;;  %v8880_v47 = vor.u32 %v10473_v37, %v8877_v22 }
 0x428   :  { %4975 = vmatmul.bf16.vlgmr.msrb.gmra.mxu0 %v12001_v48  ;;  %4980 = vmatpush.bf16.msrb.mxu1 %v8960_v32  ;;  %v9028_v42 = vor.u32 %v10512_v57, %v9027_v41  ;;  %v8845_v32 = vld [vmem:[#allocation24 + $0x10] sm:$0xf0] }
 0x429   :  { %v4383_v60 = vpop.f32.mrf.mxu2  ;;  %v9037_v57 = vld [vmem:[#allocation24 + $0x190] sm:$0xf0] }
 0x42a   :  { %4531 = vmatpush.bf16.msra.mxu2 %v8832_v61  ;;  %v12010_v30 = vadd.f32 %v4383_v60, %v11990_v33  ;;  %v8800_v33 = vor.u32 %v10453_v52, %v8797_v36  ;;  %v9088_v61 = vor.u32 %v10525_v13, %v9085_v5  ;;  %v9021_v60 = vld [vmem:[#allocation24 + $0x170] sm:$0xf0]  ;;  %v10474_v36 = vld [vmem:[#allocation24 + $0x4c] sm:$0xf] }
 0x42b   :  { %5020 = vmatpush.bf16.msra.mxu0 %v9076_v63  ;;  %v8864_v63 = vor.u32 %v10469_v53, %v8861_v26  ;;  %v9024_v12 = vor.u32 %v10509_v27, %v9021_v60  ;;  %v8853_v53 = vld [vmem:[#allocation24 + $0x18] sm:$0xf0]  ;;  %v10498_v27 = vld [vmem:[#allocation24 + $0x10c] sm:$0xf] }
 0x42c   :  { %4981 = vmatpush.bf16.msrb.mxu1 %v8944_v44  ;;  %v10490_v44 = vld [vmem:[#allocation24 + $0xcc] sm:$0xf]  ;;  %v8981_v60 = vld [vmem:[#allocation24 + $0x118] sm:$0xf0] }
 0x42d   :  { %v8952_v54 = vor.u32 %v10490_v44, %v8949_v56  ;;  %v9283_v56 = vld [vmem:[#allocation26 + $0x170] sm:$0xf] }
 0x42e   :  { %4532 = vmatpush.bf16.msra.mxu2 %v8824_v16  ;;  %v9053_v16 = vld [vmem:[#allocation24 + $0x1b0] sm:$0xf0] }
 0x42f   :  { %5021 = vmatpush.bf16.msra.mxu0 %v9060_v62  ;;  %v8848_v62 = vor.u32 %v10465_v55, %v8845_v32  ;;  %v9056_v41 = vor.u32 %v10517_v15, %v9053_v16  ;;  %v9061_v55 = vld [vmem:[#allocation24 + $0x1b8] sm:$0xf0]  ;;  %v10506_v15 = vld [vmem:[#allocation24 + $0x14c] sm:$0xf] }
 0x430   :  { %4982 = vmatpush.bf16.msrb.mxu1 %v8928_v59  ;;  %v10513_v59 = vld [vmem:[#allocation24 + $0x184] sm:$0xf]  ;;  %v9013_v16 = vld [vmem:[#allocation24 + $0x158] sm:$0xf0] }
 0x431   :  { %v4385_v51 = vpop.f32.mrf.mxu2  ;;  %v9040_v4 = vor.u32 %v10513_v59, %v9037_v57  ;;  %v9016_v57 = vor.u32 %v10506_v15, %v9013_v16  ;;  %v10567_v15 = vld [vmem:[#allocation26 + $0x134] sm:$0xf]  ;;  %v9253_v16 = vld [vmem:[#allocation26 + $0x138] sm:$0xf0] }
 0x432   :  { %4533 = vmatpush.bf16.msra.mxu2 %v8816_v14  ;;  %v8917_v14 = vld [vmem:[#allocation24 + $0x98] sm:$0xf0]  ;;  %v10497_v51 = vld [vmem:[#allocation24 + $0x104] sm:$0xf] }
 0x433   :  { %5022 = vmatpush.bf16.msra.mxu0 %v9044_v24  ;;  %v8933_v24 = vld [vmem:[#allocation24 + $0xb8] sm:$0xf0] }
 0x434   :  { %4983 = vmatpush.bf16.msrb.mxu1 %v8912_v49  ;;  %v8936_v7 = vor.u32 %v10486_v19, %v8933_v24  ;;  %v8901_v49 = vld [vmem:[#allocation24 + $0x78] sm:$0xf0] }
 0x435   :  { %4486 = vmatmul.bf16.vlgmr.msrb.gmra.mxu2 %v11890_v8  ;;  %v8781_v8 = vld [vmem:[#allocation23 + $0x388] sm:$0xf0]  ;;  %v8904_v52 = vor.u32 %v10478_v29, %v8901_v49  ;;  %v10572_v29 = vld [vmem:[#allocation26 + $0x154] sm:$0xf0]  ;;  %v9259_v49 = vld [vmem:[#allocation26 + $0x140] sm:$0xf] }
 0x436   :  { %4534 = vmatpush.bf16.msra.mxu2 %v8808_v34  ;;  %v8784_v3 = vor.u32 %v10449_v20, %v8781_v8  ;;  %v9005_v34 = vld [vmem:[#allocation24 + $0x150] sm:$0xf0]  ;;  %v10522_v20 = vld [vmem:[#allocation24 + $0x1cc] sm:$0xf]  ;;  %v9077_v8 = vld [vmem:[#allocation24 + $0x1d8] sm:$0xf0] }
 0x437   :  { %5023 = vmatpush.bf16.msra.mxu0 %v9028_v42  ;;  %v9008_v23 = vor.u32 %v10505_v21, %v9005_v34  ;;  %v9080_v5 = vor.u32 %v10522_v20, %v9077_v8  ;;  %v10570_v34 = vld [vmem:[#allocation26 + $0x144] sm:$0xf0] }
 0x438   :  { %4984 = vmatpush.bf16.msrb.mxu1 %v8896_v11  ;;  %v10501_v11 = vld [vmem:[#allocation24 + $0x124] sm:$0xf] }
 0x439   :  { %v8992_v18 = vor.u32 %v10501_v11, %v8989_v39  ;;  %v9243_v39 = vld [vmem:[#allocation26 + $0x120] sm:$0xf] }
 0x43a   :  { %4535 = vmatpush.bf16.msra.mxu2 %v8800_v33  ;;  %v10470_v33 = vld [vmem:[#allocation24 + $0x2c] sm:$0xf] }
 0x43b   :  { %5024 = vmatpush.bf16.msra.mxu0 %v9012_v0  ;;  %v8885_v0 = vld [vmem:[#allocation24 + $0x58] sm:$0xf0] }
 0x43c   :  { %4985 = vmatpush.bf16.msrb.mxu1 %v8880_v47  ;;  %v8888_v37 = vor.u32 %v10474_v36, %v8885_v0  ;;  %v8872_v47 = vor.u32 %v10470_v33, %v8869_v35  ;;  %v8984_v36 = vor.u32 %v10498_v27, %v8981_v60  ;;  %v9251_v0 = vld [vmem:[#allocation26 + $0x130] sm:$0xf]  ;;  %v9245_v60 = vld [vmem:[#allocation26 + $0x128] sm:$0xf0] }
 0x43e   :  { %4536 = vmatpush.bf16.msra.mxu2 %v8792_v45 }
 0x43f   :  { %5025 = vmatpush.bf16.msra.mxu0 %v8996_v38  ;;  %v10526_v38 = vld [vmem:[#allocation24 + $0x1ec] sm:$0xf] }
 0x440   :  { %4986 = vmatpush.bf16.msrb.mxu1 %v8864_v63  ;;  %v9096_v45 = vor.u32 %v10526_v38, %v9093_v10  ;;  %v10518_v63 = vld [vmem:[#allocation24 + $0x1ac] sm:$0xf] }
 0x441   :  { %v9064_v32 = vor.u32 %v10518_v63, %v9061_v55  ;;  %v10571_v63 = vld [vmem:[#allocation26 + $0x154] sm:$0xf]  ;;  %v9269_v55 = vld [vmem:[#allocation26 + $0x158] sm:$0xf0] }
 0x442   :  { %4537 = vmatpush.bf16.msra.mxu2 %v8784_v3  ;;  %v10514_v3 = vld [vmem:[#allocation24 + $0x18c] sm:$0xf] }
 0x443   :  { %5026 = vmatpush.bf16.msra.mxu0 %v8980_v25  ;;  %v8856_v25 = vor.u32 %v10466_v40, %v8853_v53  ;;  %v9048_v1 = vor.u32 %v10514_v3, %v9045_v58  ;;  %v10562_v40 = vld [vmem:[#allocation26 + $0x104] sm:$0xf0]  ;;  %v9272_v3 = vor.u32 %v10571_v63, %v9269_v55  ;;  %v9155_v58 = vld [vmem:[#allocation26 + $0x70] sm:$0xf] }
 0x444   :  { %4987 = vmatpush.bf16.msrb.mxu1 %v8848_v62  ;;  %v10510_v62 = vld [vmem:[#allocation24 + $0x16c] sm:$0xf] }
 0x445   :  { %4538 = vmatmul.bf16.vlgmr.msra.gmra.mxu2 %v12003_v50  ;;  %v8920_v50 = vor.u32 %v10482_v9, %v8917_v14  ;;  %v10502_v9 = vld [vmem:[#allocation24 + $0x12c] sm:$0xf]  ;;  %v8997_v14 = vld [vmem:[#allocation24 + $0x138] sm:$0xf0] }
 0x446   :  { %4993 = vmatpush.bf16.msrb.mxu2 %v9088_v61  ;;  %5027 = vmatmul.bf16.vlgmr.msra.gmra.mxu0 %v12001_v48 }
 0x447   :  { %4988 = vmatmul.bf16.vlgmr.msrb.gmra.mxu1 %v11992_v43 }
 0x448   :  { %5032 = vmatpush.bf16.msra.mxu1 %v8968_v6  ;;  %v9029_v6 = vld [vmem:[#allocation24 + $0x178] sm:$0xf0] }
 0x449   :  { %v4396_v42 = vpop.f32.mrf.mxu3  ;;  %v9032_v44 = vor.u32 %v10510_v62, %v9029_v6  ;;  %v9261_v62 = vld [vmem:[#allocation26 + $0x148] sm:$0xf0] }
 0x44a   :  { %4994 = vmatpush.bf16.msrb.mxu2 %v9072_v2  ;;  %v4397_v17 = vadd.f32 %v4396_v42, %v12010_v30  ;;  %v8973_v30 = vld [vmem:[#allocation24 + $0x110] sm:$0xf0]  ;;  %v10576_v2 = vld [vmem:[#allocation26 + $0x174] sm:$0xf0]  ;;  %v9267_v42 = vld [vmem:[#allocation26 + $0x150] sm:$0xf] }
 0x44b   :  { %v8976_v26 = vor.u32 %v10497_v51, %v8973_v30  ;;  %v9268_v21 = vor.u32 %v10572_v29, %v9267_v42  ;;  %v10564_v51 = vld [vmem:[#allocation26 + $0x114] sm:$0xf0]  ;;  %v9131_v29 = vld [vmem:[#allocation26 + $0x40] sm:$0xf] }
 0x44c   :  { %5033 = vmatpush.bf16.msra.mxu1 %v8952_v54  ;;  %v9284_v54 = vor.u32 %v10576_v2, %v9283_v56  ;;  %v10542_v56 = vld [vmem:[#allocation26 + $0x64] sm:$0xf0] }
 0x44e   :  { %4995 = vmatpush.bf16.msrb.mxu2 %v9056_v41  ;;  %v10574_v41 = vld [vmem:[#allocation26 + $0x164] sm:$0xf0] }
 0x450   :  { %5034 = vmatpush.bf16.msra.mxu1 %v8936_v7  ;;  %v3692_v7 = vperm.slane %v11967_v28, 1  ;;  %v9260_v28 = vor.u32 %v10570_v34, %v9259_v49  ;;  %v10538_v49 = vld [vmem:[#allocation26 + $0x44] sm:$0xf0]  ;;  %v10563_v34 = vld [vmem:[#allocation26 + $0x114] sm:$0xf] }
 0x451   :  { %v4398_v22 = vpop.f32.mrf.mxu3 }
 0x452   :  { %4996 = vmatpush.bf16.msrb.mxu2 %v9040_v4  ;;  %v9000_v4 = vor.u32 %v10502_v9, %v8997_v14  ;;  %v10560_v9 = vld [vmem:[#allocation26 + $0xf4] sm:$0xf0]  ;;  %v10565_v14 = vld [vmem:[#allocation26 + $0x124] sm:$0xf] }
 0x453   :  { %v9248_v42 = vor.u32 %v10565_v14, %v9245_v60  ;;  %v10543_v60 = vld [vmem:[#allocation26 + $0x74] sm:$0xf] }
 0x454   :  { %5035 = vmatpush.bf16.msra.mxu1 %v8920_v50 }
 0x456   :  { %4997 = vmatpush.bf16.msrb.mxu2 %v9024_v12 }
 0x458   :  { %5036 = vmatpush.bf16.msra.mxu1 %v8904_v52 }
 0x459   :  { %v4448_v13 = vpop.f32.mrf.mxu3 }
 0x45a   :  { %4998 = vmatpush.bf16.msrb.mxu2 %v9008_v23  ;;  %v4449_v50 = vadd.f32 %v4448_v13, %v3692_v7  ;;  %v10568_v23 = vld [vmem:[#allocation26 + $0x134] sm:$0xf0]  ;;  %v9277_v13 = vld [vmem:[#allocation26 + $0x168] sm:$0xf0]  ;;  %v9219_v7 = vld [vmem:[#allocation26 + $0xf0] sm:$0xf] }
 0x45b   :  { %v9252_v11 = vor.u32 %v10568_v23, %v9251_v0  ;;  %v9220_v27 = vor.u32 %v10560_v9, %v9219_v7  ;;  %v9237_v0 = vld [vmem:[#allocation26 + $0x118] sm:$0xf0]  ;;  %v10550_v7 = vld [vmem:[#allocation26 + $0xa4] sm:$0xf0] }
 0x45c   :  { %5037 = vmatpush.bf16.msra.mxu1 %v8888_v37  ;;  %v10566_v37 = vld [vmem:[#allocation26 + $0x124] sm:$0xf0] }
 0x45d   :  { %v9244_v33 = vor.u32 %v10566_v37, %v9243_v39  ;;  %5477 = vmatpush.bf16.msrb.mxu0 %v9220_v27  ;;  %v9240_v39 = vor.u32 %v10563_v34, %v9237_v0  ;;  %v9123_v37 = vld [vmem:[#allocation26 + $0x30] sm:$0xf]  ;;  %v10541_v34 = vld [vmem:[#allocation26 + $0x64] sm:$0xf] }
 0x45e   :  { %4999 = vmatpush.bf16.msrb.mxu2 %v8992_v18  ;;  %v9235_v18 = vld [vmem:[#allocation26 + $0x110] sm:$0xf] }
 0x45f   :  { %v9236_v38 = vor.u32 %v10564_v51, %v9235_v18  ;;  %v10556_v18 = vld [vmem:[#allocation26 + $0xd4] sm:$0xf0]  ;;  %v10561_v51 = vld [vmem:[#allocation26 + $0x104] sm:$0xf] }
 0x460   :  { %5038 = vmatpush.bf16.msra.mxu1 %v8872_v47  ;;  %v9227_v47 = vld [vmem:[#allocation26 + $0x100] sm:$0xf] }
 0x461   :  { %v4450_v61 = vpop.f32.mrf.mxu3  ;;  %v9228_v53 = vor.u32 %v10562_v40, %v9227_v47 }
 0x462   :  { %5000 = vmatpush.bf16.msrb.mxu2 %v8976_v26  ;;  %v10575_v26 = vld [vmem:[#allocation26 + $0x174] sm:$0xf] }
 0x463   :  { %v4409_v31 = vpop.f32.mrf.mxu0 }
 0x464   :  { %5039 = vmatpush.bf16.msra.mxu1 %v8856_v25  ;;  %v4410_v46 = vadd.f32 %v4409_v31, %v4397_v17  ;;  %v10573_v25 = vld [vmem:[#allocation26 + $0x164] sm:$0xf]  ;;  %v10544_v31 = vld [vmem:[#allocation26 + $0x74] sm:$0xf0] }
 0x465   :  { %5001 = vmatmul.bf16.vlgmr.msrb.gmra.mxu2 %v12001_v48 }
 0x466   :  { %5045 = vmatpush.bf16.msra.mxu2 %v9096_v45  ;;  %v9285_v45 = vld [vmem:[#allocation26 + $0x178] sm:$0xf0] }
 0x467   :  { %5040 = vmatmul.bf16.vlgmr.msra.gmra.mxu1 %v11992_v43  ;;  %v9275_v43 = vld [vmem:[#allocation26 + $0x160] sm:$0xf]  ;;  %v9288_v20 = vor.u32 %v10575_v26, %v9285_v45 }
 0x468   :  { %5490 = vmatpush.bf16.msrb.mxu1 %v9284_v54  ;;  %v9276_v59 = vor.u32 %v10574_v41, %v9275_v43  ;;  %v9139_v43 = vld [vmem:[#allocation26 + $0x50] sm:$0xf]  ;;  %v10540_v41 = vld [vmem:[#allocation26 + $0x54] sm:$0xf0] }
 0x469   :  { %v12019_v24 = vpop.f32.mrf.mxu3 }
 0x46a   :  { %5046 = vmatpush.bf16.msra.mxu2 %v9080_v5  ;;  %v9280_v5 = vor.u32 %v10573_v25, %v9277_v13  ;;  %v9195_v25 = vld [vmem:[#allocation26 + $0xc0] sm:$0xf]  ;;  %v10554_v13 = vld [vmem:[#allocation26 + $0xc4] sm:$0xf0] }
 0x46b   :  { %v4411_v19 = vpop.f32.mrf.mxu0  ;;  %v9196_v63 = vor.u32 %v10554_v13, %v9195_v25 }
 0x46c   :  { %5491 = vmatpush.bf16.msrb.mxu1 %v9276_v59  ;;  %v9256_v19 = vor.u32 %v10567_v15, %v9253_v16 }
 0x46e   :  { %5047 = vmatpush.bf16.msra.mxu2 %v9064_v32 }
 0x470   :  { %5492 = vmatpush.bf16.msrb.mxu1 %v9268_v21  ;;  %v10558_v21 = vld [vmem:[#allocation26 + $0xe4] sm:$0xf0] }
 0x471   :  { %v4502_v12 = vpop.f32.mrf.mxu3 }
 0x472   :  { %5048 = vmatpush.bf16.msra.mxu2 %v9048_v1  ;;  %v10569_v1 = vld [vmem:[#allocation26 + $0x144] sm:$0xf]  ;;  %v9211_v12 = vld [vmem:[#allocation26 + $0xe0] sm:$0xf] }
 0x473   :  { %v4461_v17 = vpop.f32.mrf.mxu0  ;;  %v9264_v6 = vor.u32 %v10569_v1, %v9261_v62  ;;  %v10592_v1 = vld [vmem:[#allocation26 + $0x1f4] sm:$0xf0]  ;;  %v9187_v62 = vld [vmem:[#allocation26 + $0xb0] sm:$0xf] }
 0x474   :  { %v12022_v52 = vadd.f32 %v4461_v17, %v4449_v50  ;;  %5493 = vmatpush.bf16.msrb.mxu1 %v9260_v28  ;;  %v9132_v17 = vor.u32 %v10538_v49, %v9131_v29  ;;  %v9212_v28 = vor.u32 %v10558_v21, %v9211_v12  ;;  %v9331_v29 = vld [vmem:[#allocation26 + $0x1d0] sm:$0xf]  ;;  %v10588_v49 = vld [vmem:[#allocation26 + $0x1d4] sm:$0xf0] }
 0x475   :  { %v9332_v12 = vor.u32 %v10588_v49, %v9331_v29  ;;  %v10548_v21 = vld [vmem:[#allocation26 + $0x94] sm:$0xf0] }
 0x476   :  { %5049 = vmatpush.bf16.msra.mxu2 %v9032_v44  ;;  %v9147_v44 = vld [vmem:[#allocation26 + $0x60] sm:$0xf]  ;;  %5478 = vmatpush.bf16.msrb.mxu0 %v9212_v28  ;;  %v10580_v49 = vld [vmem:[#allocation26 + $0x194] sm:$0xf0] }
 0x477   :  { %v9148_v2 = vor.u32 %v10542_v56, %v9147_v44 }
 0x478   :  { %5494 = vmatpush.bf16.msrb.mxu1 %v9252_v11 }
 0x47a   :  { %5050 = vmatpush.bf16.msra.mxu2 %v9016_v57  ;;  %v9140_v57 = vor.u32 %v10540_v41, %v9139_v43  ;;  %v9339_v43 = vld [vmem:[#allocation26 + $0x1e0] sm:$0xf] }
 0x47b   :  { %v4463_v22 = vpop.f32.mrf.mxu0 }
 0x47c   :  { %5495 = vmatpush.bf16.msrb.mxu1 %v9244_v33  ;;  %v10536_v22 = vld [vmem:[#allocation26 + $0x34] sm:$0xf0] }
 0x47d   :  { %v9124_v33 = vor.u32 %v10536_v22, %v9123_v37  ;;  %v9323_v22 = vld [vmem:[#allocation26 + $0x1c0] sm:$0xf] }
 0x47e   :  { %5051 = vmatpush.bf16.msra.mxu2 %v9000_v4  ;;  %v12034_v4 = vld [vmem:[%s12258_s19] sm:$0xf] }
 0x47f   :  { %v4626_v50 = vperm.slane %v12034_v4, 0 }
 0x480   :  { %5496 = vmatpush.bf16.msrb.mxu1 %v9236_v38  ;;  %v9229_v38 = vld [vmem:[#allocation26 + $0x108] sm:$0xf0] }
 0x481   :  { %v9232_v45 = vor.u32 %v10561_v51, %v9229_v38  ;;  %v10546_v51 = vld [vmem:[#allocation26 + $0x84] sm:$0xf0]  ;;  %v10539_v38 = vld [vmem:[#allocation26 + $0x54] sm:$0xf] }
 0x482   :  { %5052 = vmatpush.bf16.msra.mxu2 %v8984_v36 }
 0x483   :  { %v4422_v35 = vpop.f32.mrf.mxu1  ;;  %v12027_v10 = vpop.f32.mrf.mxu0 }
 0x484   :  { %v12025_v30 = vadd.f32 %v4422_v35, %v4410_v46  ;;  %5497 = vmatpush.bf16.msrb.mxu1 %v9228_v53  ;;  %v9156_v46 = vor.u32 %v10544_v31, %v9155_v58  ;;  %v9203_v35 = vld [vmem:[#allocation26 + $0xd0] sm:$0xf]  ;;  %v10532_v58 = vld [vmem:[#allocation26 + $0x14] sm:$0xf0] }
 0x485   :  { %5053 = vmatmul.bf16.vlgmr.msra.gmra.mxu2 %v12001_v48  ;;  %v9204_v26 = vor.u32 %v10556_v18, %v9203_v35  ;;  %v9347_v31 = vld [vmem:[#allocation26 + $0x1f0] sm:$0xf]  ;;  %v9163_v35 = vld [vmem:[#allocation26 + $0x80] sm:$0xf] }
 0x486   :  { %5464 = vmatpush.bf16.msra.mxu3 %v9156_v46  ;;  %v9348_v44 = vor.u32 %v10592_v1, %v9347_v31 }
 0x487   :  { %5479 = vmatpush.bf16.msrb.mxu0 %v9204_v26 }
 0x488   :  { %5542 = vmatpush.bf16.msra.mxu1 %v9288_v20  ;;  %v9115_v20 = vld [vmem:[#allocation26 + $0x20] sm:$0xf]  ;;  %5503 = vmatpush.bf16.msrb.mxu2 %v9348_v44 }
 0x489   :  { %v9531_v44 = vld [vmem:[#allocation24 + $0xe0] sm:$0xf] }
 0x48a   :  { %5465 = vmatpush.bf16.msra.mxu3 %v9148_v2 }
 0x48b   :  { %v4424_v8 = vpop.f32.mrf.mxu1  ;;  %v4515_v48 = vpop.f32.mrf.mxu0  ;;  %5480 = vmatpush.bf16.msrb.mxu0 %v9196_v63 }
 0x48c   :  { %5543 = vmatpush.bf16.msra.mxu1 %v9280_v5  ;;  %v4963_v32 = vpop.f32.mrf.mxu3  ;;  %v10534_v8 = vld [vmem:[#allocation26 + $0x24] sm:$0xf0] }
 0x48d   :  { %v4964_v11 = vadd.f32 %v4963_v32, %v4626_v50  ;;  %v9116_v48 = vor.u32 %v10534_v8, %v9115_v20  ;;  %v9157_v50 = vld [vmem:[#allocation26 + $0x78] sm:$0xf0]  ;;  %v10559_v8 = vld [vmem:[#allocation26 + $0xf4] sm:$0xf] }
 0x48e   :  { %5466 = vmatpush.bf16.msra.mxu3 %v9140_v57  ;;  %v9179_v57 = vld [vmem:[#allocation26 + $0xa0] sm:$0xf] }
 0x48f   :  { %v9180_v27 = vor.u32 %v10550_v7, %v9179_v57  ;;  %v9205_v57 = vld [vmem:[#allocation26 + $0xd8] sm:$0xf0] }
 0x490   :  { %5544 = vmatpush.bf16.msra.mxu1 %v9272_v3  ;;  %v9107_v3 = vld [vmem:[#allocation26 + $0x10] sm:$0xf] }
 0x491   :  { %v9108_v46 = vor.u32 %v10532_v58, %v9107_v3  ;;  %v9213_v3 = vld [vmem:[#allocation26 + $0xe8] sm:$0xf0] }
 0x492   :  { %5467 = vmatpush.bf16.msra.mxu3 %v9132_v17  ;;  %v9171_v17 = vld [vmem:[#allocation26 + $0x90] sm:$0xf] }
 0x493   :  { %v12029_v61 = vpop.f32.mrf.mxu1  ;;  %v9172_v28 = vor.u32 %v10548_v21, %v9171_v17  ;;  %v10533_v17 = vld [vmem:[#allocation26 + $0x24] sm:$0xf] }
 0x494   :  { %5545 = vmatpush.bf16.msra.mxu1 %v9264_v6  ;;  %v4965_v54 = vpop.f32.mrf.mxu3  ;;  %v10552_v6 = vld [vmem:[#allocation26 + $0xb4] sm:$0xf0]  ;;  %v4475_v37 = vadd.f32 %v12029_v61, %v12022_v52  ;;  %v9315_v52 = vld [vmem:[#allocation26 + $0x1b0] sm:$0xf] }
 0x495   :  { %v9188_v56 = vor.u32 %v10552_v6, %v9187_v62  ;;  %v9099_v54 = vld [vmem:[#allocation26] sm:$0xf]  ;;  %v10584_v61 = vld [vmem:[#allocation26 + $0x1b4] sm:$0xf0] }
 0x496   :  { %5468 = vmatpush.bf16.msra.mxu3 %v9124_v33  ;;  %v10586_v33 = vld [vmem:[#allocation26 + $0x1c4] sm:$0xf0]  ;;  %v9316_v63 = vor.u32 %v10584_v61, %v9315_v52  ;;  %v9483_v61 = vld [vmem:[#allocation24 + $0x80] sm:$0xf] }
 0x497   :  { %5481 = vmatpush.bf16.msrb.mxu0 %v9188_v56  ;;  %v9324_v18 = vor.u32 %v10586_v33, %v9323_v22  ;;  %v10582_v56 = vld [vmem:[#allocation26 + $0x1a4] sm:$0xf0] }
 0x498   :  { %5546 = vmatpush.bf16.msra.mxu1 %v9256_v19  ;;  %v10530_v19 = vld [vmem:[#allocation26 + $0x4] sm:$0xf0] }
 0x499   :  { %v9100_v41 = vor.u32 %v10530_v19, %v9099_v54  ;;  %v9125_v54 = vld [vmem:[#allocation26 + $0x38] sm:$0xf0] }
 0x49a   :  { %5469 = vmatpush.bf16.msra.mxu3 %v9116_v48  ;;  %v9221_v48 = vld [vmem:[#allocation26 + $0xf8] sm:$0xf0] }
 0x49b   :  { %v4476_v59 = vpop.f32.mrf.mxu1  ;;  %5482 = vmatpush.bf16.msrb.mxu0 %v9180_v27  ;;  %v9224_v25 = vor.u32 %v10559_v8, %v9221_v48  ;;  %v9515_v27 = vld [vmem:[#allocation24 + $0xc0] sm:$0xf]  ;;  %v9349_v8 = vld [vmem:[#allocation26 + $0x1f8] sm:$0xf0]  ;;  %v10551_v48 = vld [vmem:[#allocation26 + $0xb4] sm:$0xf] }
 0x49c   :  { %5547 = vmatpush.bf16.msra.mxu1 %v9248_v42  ;;  %v10590_v59 = vld [vmem:[#allocation26 + $0x1e4] sm:$0xf0]  ;;  %v9160_v42 = vor.u32 %v10543_v60, %v9157_v50  ;;  %v10635_v60 = vld [vmem:[#allocation24 + $0xcc] sm:$0xf0] }
 0x49d   :  { %v9340_v14 = vor.u32 %v10590_v59, %v9339_v43 }
 0x49e   :  { %5470 = vmatpush.bf16.msra.mxu3 %v9108_v46 }
 0x49f   :  { %5504 = vmatpush.bf16.msrb.mxu2 %v9340_v14  ;;  %5483 = vmatpush.bf16.msrb.mxu0 %v9172_v28  ;;  %v9197_v28 = vld [vmem:[#allocation26 + $0xc8] sm:$0xf0] }
 0x4a0   :  { %5548 = vmatpush.bf16.msra.mxu1 %v9240_v39  ;;  %v4628_v39 = vperm.slane %v12034_v4, 2 }
 0x4a2   :  { %5471 = vmatpush.bf16.msra.mxu3 %v9100_v41  ;;  %v10555_v41 = vld [vmem:[#allocation26 + $0xd4] sm:$0xf] }
 0x4a3   :  { %5505 = vmatpush.bf16.msrb.mxu2 %v9332_v12  ;;  %v9208_v50 = vor.u32 %v10555_v41, %v9205_v57  ;;  %v9117_v12 = vld [vmem:[#allocation26 + $0x28] sm:$0xf0]  ;;  %v9173_v41 = vld [vmem:[#allocation26 + $0x98] sm:$0xf0] }
 0x4a4   :  { %v12037_v23 = vpop.f32.mrf.mxu1  ;;  %5549 = vmatpush.bf16.msra.mxu1 %v9232_v45  ;;  %v9164_v45 = vor.u32 %v10546_v51, %v9163_v35  ;;  %v9516_v35 = vor.u32 %v10635_v60, %v9515_v27  ;;  %v10578_v51 = vld [vmem:[#allocation26 + $0x184] sm:$0xf0]  ;;  %v9451_v27 = vld [vmem:[#allocation24 + $0x40] sm:$0xf]  ;;  %v10619_v60 = vld [vmem:[#allocation24 + $0x4c] sm:$0xf0] }
 0x4a5   :  { %v4976_v36 = vpop.f32.mrf.mxu0 }
 0x4a6   :  { %v4977_v40 = vadd.f32 %v4976_v36, %v4964_v11  ;;  %5516 = vmatpush.bf16.msrb.mxu3 %v9160_v42  ;;  %v9149_v36 = vld [vmem:[#allocation26 + $0x68] sm:$0xf0]  ;;  %5484 = vmatpush.bf16.msrb.mxu0 %v9164_v45  ;;  %v9299_v42 = vld [vmem:[#allocation26 + $0x190] sm:$0xf]  ;;  %v10591_v45 = vld [vmem:[#allocation26 + $0x1f4] sm:$0xf] }
 0x4a7   :  { %v9152_v0 = vor.u32 %v10541_v34, %v9149_v36  ;;  %5506 = vmatpush.bf16.msrb.mxu2 %v9324_v18  ;;  %v9300_v21 = vor.u32 %v10580_v49, %v9299_v42  ;;  %v9120_v34 = vor.u32 %v10533_v17, %v9117_v12  ;;  %v10553_v36 = vld [vmem:[#allocation26 + $0xc4] sm:$0xf]  ;;  %v10631_v18 = vld [vmem:[#allocation24 + $0xac] sm:$0xf0]  ;;  %v9325_v42 = vld [vmem:[#allocation26 + $0x1c8] sm:$0xf0] }
 0x4a8   :  { %v12039_v47 = vpop.f32.mrf.mxu2  ;;  %vm5058_vm14 = vcmp.ge.f32.partialorder %v4977_v40, 0.0  ;;  %v5062_v32 = vmul.f32 0.2, %v4977_v40  ;;  %v10545_v17 = vld [vmem:[#allocation26 + $0x84] sm:$0xf] }
 0x4a9   :  { %v12041_v53 = vpop.f32.mrf.mxu3  ;;  %v4436_v22 = vadd.f32 %v12039_v47, %v12025_v30  ;;  %v9165_v12 = vld [vmem:[#allocation26 + $0x88] sm:$0xf0] }
 0x4aa   :  { %v5066_v15 = vsel %vm5058_vm14, %v4977_v40, %v5062_v32  ;;  %5517 = vmatpush.bf16.msrb.mxu3 %v9152_v0  ;;  %v9141_v40 = vld [vmem:[#allocation26 + $0x58] sm:$0xf0]  ;;  %v5016_v13 = vadd.f32 %v12041_v53, %v4628_v39  ;;  %v10557_v32 = vld [vmem:[#allocation26 + $0xe4] sm:$0xf]  ;;  %5529 = vmatpush.bf16.msra.mxu0 %v9224_v25  ;;  %v9307_v53 = vld [vmem:[#allocation26 + $0x1a0] sm:$0xf]  ;;  %v9200_v39 = vor.u32 %v10553_v36, %v9197_v28 }
 0x4ab   :  { %v12043_v9 = vpack.c.bf16 %v5066_v15, %v5066_v15  ;;  %v9144_v20 = vor.u32 %v10539_v38, %v9141_v40  ;;  %v9216_v46 = vor.u32 %v10557_v32, %v9213_v3  ;;  %5507 = vmatpush.bf16.msrb.mxu2 %v9316_v63  ;;  %v9308_v15 = vor.u32 %v10582_v56, %v9307_v53  ;;  %v10531_v40 = vld [vmem:[#allocation26 + $0x14] sm:$0xf]  ;;  %v9189_v25 = vld [vmem:[#allocation26 + $0xb8] sm:$0xf0]  ;;  %v10529_v63 = vld [vmem:[#allocation26 + $0x4] sm:$0xf] }
 0x4ac   :  { %v4528_v55 = vpop.f32.mrf.mxu1  ;;  %v9192_v30 = vor.u32 %v10551_v48, %v9189_v25  ;;  %v10589_v32 = vld [vmem:[#allocation26 + $0x1e4] sm:$0xf]  ;;  %v9467_v56 = vld [vmem:[#allocation24 + $0x60] sm:$0xf]  ;;  %v10615_v36 = vld [vmem:[#allocation24 + $0x2c] sm:$0xf0] }
 0x4ad   :  { %v4978_v5 = vpop.f32.mrf.mxu0  ;;  %5472 = vmatmul.bf16.vlgmr.msra.gmra.mxu3 %v12043_v9  ;;  %v9133_v55 = vld [vmem:[#allocation26 + $0x48] sm:$0xf0]  ;;  %v10583_v28 = vld [vmem:[#allocation26 + $0x1b4] sm:$0xf]  ;;  %v10636_v48 = vld [vmem:[#allocation24 + $0xd4] sm:$0xf0] }
 0x4ae   :  { %v10537_v5 = vld [vmem:[#allocation26 + $0x44] sm:$0xf]  ;;  %5518 = vmatpush.bf16.msrb.mxu3 %v9144_v20  ;;  %5530 = vmatpush.bf16.msra.mxu0 %v9216_v46  ;;  %v9181_v46 = vld [vmem:[#allocation26 + $0xa8] sm:$0xf0] }
 0x4af   :  { %v9136_v31 = vor.u32 %v10537_v5, %v9133_v55  ;;  %5508 = vmatpush.bf16.msrb.mxu2 %v9308_v15  ;;  %v10627_v5 = vld [vmem:[#allocation24 + $0x8c] sm:$0xf0]  ;;  %v9101_v55 = vld [vmem:[#allocation26 + $0x8] sm:$0xf0] }
 0x4b0   :  { %v4437_v2 = vpop.f32.mrf.mxu2  ;;  %v9104_v3 = vor.u32 %v10529_v63, %v9101_v55  ;;  %v9484_v53 = vor.u32 %v10627_v5, %v9483_v61  ;;  %v10577_v61 = vld [vmem:[#allocation26 + $0x184] sm:$0xf]  ;;  %v9293_v5 = vld [vmem:[#allocation26 + $0x188] sm:$0xf0]  ;;  %v9507_v63 = vld [vmem:[#allocation24 + $0xa8] sm:$0xf] }
 0x4b1   :  { %v5017_v16 = vpop.f32.mrf.mxu3  ;;  %v10639_v2 = vld [vmem:[#allocation24 + $0xec] sm:$0xf0]  ;;  %v10632_v55 = vld [vmem:[#allocation24 + $0xb4] sm:$0xf0] }
 0x4b2   :  { %5519 = vmatpush.bf16.msrb.mxu3 %v9136_v31  ;;  %v10535_v16 = vld [vmem:[#allocation26 + $0x34] sm:$0xf]  ;;  %v9532_v14 = vor.u32 %v10639_v2, %v9531_v44  ;;  %5531 = vmatpush.bf16.msra.mxu0 %v9208_v50  ;;  %v10549_v31 = vld [vmem:[#allocation26 + $0xa4] sm:$0xf]  ;;  %v10623_v2 = vld [vmem:[#allocation24 + $0x6c] sm:$0xf0] }
 0x4b3   :  { %5509 = vmatpush.bf16.msrb.mxu2 %v9300_v21  ;;  %v10585_v50 = vld [vmem:[#allocation26 + $0x1c4] sm:$0xf]  ;;  %v9452_v21 = vor.u32 %v10619_v60, %v9451_v27 }
 0x4b4   :  { %v9328_v49 = vor.u32 %v10585_v50, %v9325_v42 }
 0x4b6   :  { %5532 = vmatpush.bf16.msra.mxu0 %v9200_v39  ;;  %v4627_v39 = vperm.slane %v12034_v4, 1 }
 0x4b8   :  { %v4487_v11 = vpop.f32.mrf.mxu2 }
 0x4b9   :  { %v4488_v26 = vadd.f32 %v4487_v11, %v4475_v37  ;;  %v9499_v11 = vld [vmem:[#allocation24 + $0xa0] sm:$0xf] }
 0x4ba   :  { %v9500_v52 = vor.u32 %v10631_v18, %v9499_v11  ;;  %5533 = vmatpush.bf16.msra.mxu0 %v9192_v30  ;;  %v10640_v18 = vld [vmem:[#allocation24 + $0xf4] sm:$0xf0] }
 0x4bb   :  { %v4501_v58 = vadd.f32 %v12019_v24, %v4488_v26  ;;  %v9128_v24 = vor.u32 %v10535_v16, %v9125_v54  ;;  %v9109_v26 = vld [vmem:[#allocation26 + $0x18] sm:$0xf0]  ;;  %v10587_v16 = vld [vmem:[#allocation26 + $0x1d4] sm:$0xf] }
 0x4bc   :  { %v9112_v20 = vor.u32 %v10531_v40, %v9109_v26  ;;  %v9333_v54 = vld [vmem:[#allocation26 + $0x1d8] sm:$0xf0] }
 0x4bd   :  { %v4514_v43 = vadd.f32 %v12027_v10, %v4501_v58  ;;  %5520 = vmatpush.bf16.msrb.mxu3 %v9128_v24  ;;  %v9341_v58 = vld [vmem:[#allocation26 + $0x1e8] sm:$0xf0]  ;;  %v10547_v24 = vld [vmem:[#allocation26 + $0x94] sm:$0xf] }
 0x4be   :  { %v9176_v57 = vor.u32 %v10547_v24, %v9173_v41  ;;  %v10616_v24 = vld [vmem:[#allocation24 + $0x34] sm:$0xf0] }
 0x4bf   :  { %v4527_v10 = vadd.f32 %v12037_v23, %v4514_v43  ;;  %v9291_v23 = vld [vmem:[#allocation26 + $0x180] sm:$0xf]  ;;  %v9336_v43 = vor.u32 %v10587_v16, %v9333_v54  ;;  %v9459_v16 = vld [vmem:[#allocation24 + $0x48] sm:$0xf]  ;;  %v10620_v54 = vld [vmem:[#allocation24 + $0x54] sm:$0xf0] }
 0x4c0   :  { %v4489_v1 = vpop.f32.mrf.mxu2  ;;  %v9292_v38 = vor.u32 %v10578_v51, %v9291_v23 }
 0x4c1   :  { %5521 = vmatpush.bf16.msrb.mxu3 %v9120_v34  ;;  %v9435_v34 = vld [vmem:[#allocation24 + $0x20] sm:$0xf] }
 0x4c2   :  { %5510 = vmatpush.bf16.msrb.mxu2 %v9292_v38  ;;  %v9436_v11 = vor.u32 %v10615_v36, %v9435_v34  ;;  %v9643_v36 = vld [vmem:[#allocation24 + $0x1c0] sm:$0xf] }
 0x4c3   :  { %v5028_v62 = vpop.f32.mrf.mxu0 }
 0x4c4   :  { %v5029_v6 = vadd.f32 %v5028_v62, %v5016_v13  ;;  %v12052_v59 = vpop.f32.mrf.mxu1  ;;  %v9352_v13 = vor.u32 %v10591_v45, %v9349_v8  ;;  %v9344_v62 = vor.u32 %v10589_v32, %v9341_v58  ;;  %v10579_v45 = vld [vmem:[#allocation26 + $0x194] sm:$0xf]  ;;  %v9523_v8 = vld [vmem:[#allocation24 + $0xc8] sm:$0xf] }
 0x4c5   :  { %5522 = vmatpush.bf16.msrb.mxu3 %v9112_v20  ;;  %v4990_v40 = vadd.f32 %v12052_v59, %v4627_v39  ;;  %v9301_v20 = vld [vmem:[#allocation26 + $0x198] sm:$0xf0]  ;;  %v9296_v59 = vor.u32 %v10577_v61, %v9293_v5  ;;  %v10668_v61 = vld [vmem:[#allocation24 + $0x1d4] sm:$0xf0] }
 0x4c6   :  { %vm5060_vm15 = vcmp.ge.f32.partialorder %v5029_v6, 0.0  ;;  %v5064_v19 = vmul.f32 0.2, %v5029_v6  ;;  %5555 = vmatpush.bf16.msra.mxu2 %v9352_v13  ;;  %v9304_v25 = vor.u32 %v10579_v45, %v9301_v20  ;;  %v9547_v20 = vld [vmem:[#allocation24 + $0x100] sm:$0xf] }
 0x4c8   :  { %v5068_v7 = vsel %vm5060_vm15, %v5029_v6, %v5064_v19  ;;  %v4539_v0 = vpop.f32.mrf.mxu2  ;;  %v9184_v6 = vor.u32 %v10549_v31, %v9181_v46  ;;  %v9508_v31 = vor.u32 %v10632_v55, %v9507_v63  ;;  %v9635_v55 = vld [vmem:[#allocation24 + $0x1a8] sm:$0xf] }
 0x4c9   :  { %v12054_v29 = vpack.c.bf16 %v5068_v7, %v5068_v7  ;;  %v4540_v33 = vadd.f32 %v4539_v0, %v4527_v10  ;;  %5523 = vmatpush.bf16.msrb.mxu3 %v9104_v3  ;;  %v9168_v10 = vor.u32 %v10545_v17, %v9165_v12  ;;  %v9317_v0 = vld [vmem:[#allocation26 + $0x1b8] sm:$0xf0]  ;;  %v10671_v17 = vld [vmem:[#allocation24 + $0x1ec] sm:$0xf0] }
 0x4ca   :  { %5556 = vmatpush.bf16.msra.mxu2 %v9344_v62  ;;  %5534 = vmatpush.bf16.msra.mxu0 %v9184_v6  ;;  %v10628_v62 = vld [vmem:[#allocation24 + $0x94] sm:$0xf0] }
 0x4cb   :  { %5498 = vmatmul.bf16.vlgmr.msrb.gmra.mxu1 %v12054_v29  ;;  %v5030_v37 = vpop.f32.mrf.mxu0  ;;  %10811 = vtanh.f32 %v4540_v33  ;;  %v10581_v33 = vld [vmem:[#allocation26 + $0x1a4] sm:$0xf] }
 0x4cc   :  { %6136 = vmatpush.bf16.msrb.mxu1 %v9532_v14  ;;  %v4991_v47 = vpop.f32.mrf.mxu1  ;;  %10813 = vtanh.f32 %v4436_v22  ;;  %v9468_v14 = vor.u32 %v10623_v2, %v9467_v56  ;;  %5524 = vmatmul.bf16.vlgmr.msrb.gmra.mxu3 %v12043_v9  ;;  %v9320_v9 = vor.u32 %v10583_v28, %v9317_v0  ;;  %v9419_v37 = vld [vmem:[#allocation24] sm:$0xf]  ;;  %v10611_v22 = vld [vmem:[#allocation24 + $0xc] sm:$0xf0]  ;;  %v9475_v56 = vld [vmem:[#allocation24 + $0x68] sm:$0xf] }
 0x4cd   :  { %v9420_v51 = vor.u32 %v10611_v22, %v9419_v37  ;;  %v10624_v2 = vld [vmem:[#allocation24 + $0x74] sm:$0xf0]  ;;  %v9611_v37 = vld [vmem:[#allocation24 + $0x180] sm:$0xf]  ;;  %v10659_v22 = vld [vmem:[#allocation24 + $0x18c] sm:$0xf0] }
 0x4ce   :  { %5557 = vmatpush.bf16.msra.mxu2 %v9336_v43  ;;  %5535 = vmatpush.bf16.msra.mxu0 %v9176_v57  ;;  %v9443_v43 = vld [vmem:[#allocation24 + $0x28] sm:$0xf]  ;;  %v4629_v57 = vperm.slane %v12034_v4, 3  ;;  %v10667_v4 = vld [vmem:[#allocation24 + $0x1cc] sm:$0xf0] }
 0x4cf   :  { %v9444_v41 = vor.u32 %v10616_v24, %v9443_v43  ;;  %v9644_v0 = vor.u32 %v10667_v4, %v9643_v36  ;;  %v10599_v43 = vld [vmem:[%s12261_s22 + $0x30] sm:$0xff]  ;;  %v10593_v36 = vld [vmem:[%s12261_s22] sm:$0xff] }
 0x4d0   :  { %6137 = vmatpush.bf16.msrb.mxu1 %v9516_v35  ;;  %v4541_v1 = vpop.f32.mrf.mxu2  ;;  %v9309_v35 = vld [vmem:[#allocation26 + $0x1a8] sm:$0xf0] }
 0x4d1   :  { %v12060_v44 = vpop.eup %10811  ;;  %v9312_v23 = vor.u32 %v10581_v33, %v9309_v35  ;;  %v9491_v1 = vld [vmem:[#allocation24 + $0x88] sm:$0xf]  ;;  %v9612_v33 = vor.u32 %v10659_v22, %v9611_v37  ;;  %v9595_v35 = vld [vmem:[#allocation24 + $0x160] sm:$0xf] }
 0x4d2   :  { %v4547_v15 = vrot.slane %v12060_v44, 6  ;;  %v10814_v19 = vpop.eup %10813  ;;  %5558 = vmatpush.bf16.msra.mxu2 %v9328_v49  ;;  %5536 = vmatpush.bf16.msra.mxu0 %v9168_v10  ;;  %v9659_v49 = vld [vmem:[#allocation24 + $0x1e0] sm:$0xf]  ;;  %v12075_v5 = vpack.c.bf16 %v12060_v44, %v12060_v44  ;;  %v10600_v44 = vld [vmem:[%s12261_s22 + $0x38] sm:$0xff] }
 0x4d3   :  { %v12068_v30 = vpack.c.bf16 %v10814_v19, %v10814_v19  ;;  %5708 = vmatpush.bf16.msra.mxu3 %v10600_v44  ;;  %v10604_v37 = vld [vmem:[%s12261_s22 + $0x58] sm:$0xff]  ;;  %v9645_v44 = vld [vmem:[#allocation24 + $0x1d0] sm:$0xf0] }
 0x4d4   :  { %6138 = vmatpush.bf16.msrb.mxu1 %v9500_v52  ;;  %v4548_v7 = vsel %vm515_vm1, %v10814_v19, %v4547_v15  ;;  %v9524_v52 = vor.u32 %v10636_v48, %v9523_v8  ;;  %v9476_v15 = vor.u32 %v10624_v2, %v9475_v56  ;;  %v9460_v19 = vor.u32 %v10620_v54, %v9459_v16  ;;  %v10643_v8 = vld [vmem:[#allocation24 + $0x10c] sm:$0xf0]  ;;  %v9667_v48 = vld [vmem:[#allocation24 + $0x1e8] sm:$0xf] }
 0x4d5   :  { %4550 = vst [vmem:[#allocation27] sm:$0xf] %v4548_v7  ;;  %v9427_v7 = vld [vmem:[#allocation24 + $0x8] sm:$0xf] }
 0x4d6   :  { %5559 = vmatpush.bf16.msra.mxu2 %v9320_v9  ;;  %v9627_v9 = vld [vmem:[#allocation24 + $0x1a0] sm:$0xf]  ;;  %v9571_v2 = vld [vmem:[#allocation24 + $0x128] sm:$0xf] }
 0x4d7   :  { %v9555_v54 = vld [vmem:[#allocation24 + $0x108] sm:$0xf]  ;;  %5709 = vmatpush.bf16.msra.mxu3 %v10599_v43  ;;  %v10613_v43 = vld [vmem:[#allocation24 + $0x24] sm:$0xf] }
 0x4d8   :  { %6139 = vmatpush.bf16.msrb.mxu1 %v9484_v53  ;;  %v9492_v53 = vor.u32 %v10628_v62, %v9491_v1  ;;  %v10656_v1 = vld [vmem:[#allocation24 + $0x174] sm:$0xf0] }
 0x4da   :  { %5560 = vmatpush.bf16.msra.mxu2 %v9312_v23  ;;  %v9579_v23 = vld [vmem:[#allocation24 + $0x140] sm:$0xf] }
 0x4db   :  { %5550 = vmatmul.bf16.vlgmr.msra.gmra.mxu1 %v12054_v29  ;;  %v9539_v29 = vld [vmem:[#allocation24 + $0xe8] sm:$0xf] }
 0x4dc   :  { %6140 = vmatpush.bf16.msrb.mxu1 %v9468_v14  ;;  %v9540_v26 = vor.u32 %v10640_v18, %v9539_v29  ;;  %v10612_v14 = vld [vmem:[#allocation24 + $0x14] sm:$0xf0]  ;;  %v10655_v29 = vld [vmem:[#allocation24 + $0x16c] sm:$0xf0] }
 0x4dd   :  { %v9428_v27 = vor.u32 %v10612_v14, %v9427_v7  ;;  %v9596_v18 = vor.u32 %v10655_v29, %v9595_v35  ;;  %v10597_v7 = vld [vmem:[%s12261_s22 + $0x20] sm:$0xff] }
 0x4de   :  { %5561 = vmatpush.bf16.msra.mxu2 %v9304_v25  ;;  %v10672_v25 = vld [vmem:[#allocation24 + $0x1f4] sm:$0xf0]  ;;  %v9501_v35 = vld [vmem:[#allocation24 + $0xb0] sm:$0xf0] }
 0x4e0   :  { %6141 = vmatpush.bf16.msrb.mxu1 %v9452_v21  ;;  %v9660_v21 = vor.u32 %v10671_v17, %v9659_v49  ;;  %v10607_v17 = vld [vmem:[%s12261_s22 + $0x70] sm:$0xff] }
 0x4e2   :  { %5562 = vmatpush.bf16.msra.mxu2 %v9296_v59  ;;  %v10664_v59 = vld [vmem:[#allocation24 + $0x1b4] sm:$0xf0] }
 0x4e4   :  { %6142 = vmatpush.bf16.msrb.mxu1 %v9436_v11  ;;  %v5041_v38 = vpop.f32.mrf.mxu1  ;;  %v10663_v11 = vld [vmem:[#allocation24 + $0x1ac] sm:$0xf0] }
 0x4e5   :  { %v5042_v60 = vadd.f32 %v5041_v38, %v4629_v57  ;;  %v9628_v39 = vor.u32 %v10663_v11, %v9627_v9  ;;  %v10633_v11 = vld [vmem:[#allocation24 + $0xc4] sm:$0xf] }
 0x4e8   :  { %v5002_v13 = vpop.f32.mrf.mxu2  ;;  %6143 = vmatpush.bf16.msrb.mxu1 %v9420_v51  ;;  %v10651_v51 = vld [vmem:[#allocation24 + $0x14c] sm:$0xf0] }
 0x4e9   :  { %v5003_v47 = vadd.f32 %v5002_v13, %v4990_v40  ;;  %v9580_v38 = vor.u32 %v10651_v51, %v9579_v23  ;;  %v9563_v40 = vld [vmem:[#allocation24 + $0x120] sm:$0xf]  ;;  %v9548_v13 = vor.u32 %v10643_v8, %v9547_v20  ;;  %v12132_v51 = vld [vmem:[%s12260_s21] sm:$0x3] }
 0x4ea   :  { %v10602_v20 = vld [vmem:[%s12261_s22 + $0x48] sm:$0xff] }
 0x4eb   :  { %vm5059_vm1 = vcmp.ge.f32.partialorder %v5003_v47, 0.0  ;;  %v5063_v32 = vmul.f32 0.2, %v5003_v47  ;;  %6144 = vmatmul.bf16.vlgmr.msrb.gmra.mxu1 %v12068_v30 }
 0x4ec   :  { %6188 = vmatpush.bf16.msra.mxu1 %v9540_v26  ;;  %v5043_v3 = vpop.f32.mrf.mxu1  ;;  %v10647_v26 = vld [vmem:[#allocation24 + $0x12c] sm:$0xf0] }
 0x4ed   :  { %v5067_v58 = vsel %vm5059_vm1, %v5003_v47, %v5063_v32  ;;  %v9564_v45 = vor.u32 %v10647_v26, %v9563_v40  ;;  %v9668_v47 = vor.u32 %v10672_v25, %v9667_v48  ;;  %v9636_v32 = vor.u32 %v10664_v59, %v9635_v55  ;;  %v9619_v3 = vld [vmem:[#allocation24 + $0x188] sm:$0xf]  ;;  %v10625_v40 = vld [vmem:[#allocation24 + $0x84] sm:$0xf]  ;;  %v9485_v26 = vld [vmem:[#allocation24 + $0x90] sm:$0xf0] }
 0x4ee   :  { %v5071_v46 = vpack.c.bf16 %v5067_v58, %v5067_v58  ;;  %v10660_v58 = vld [vmem:[#allocation24 + $0x194] sm:$0xf0]  ;;  %v9488_v8 = vor.u32 %v10625_v40, %v9485_v26  ;;  %v10621_v48 = vld [vmem:[#allocation24 + $0x64] sm:$0xf]  ;;  %v9469_v25 = vld [vmem:[#allocation24 + $0x70] sm:$0xf0] }
 0x4ef   :  { %v9731_v55 = vld [vmem:[#allocation26 + $0x70] sm:$0xf]  ;;  %v10688_v59 = vld [vmem:[#allocation26 + $0x74] sm:$0xf0]  ;;  %v9691_v40 = vld [vmem:[#allocation26 + $0x20] sm:$0xf] }
 0x4f0   :  { %6189 = vmatpush.bf16.msra.mxu1 %v9524_v52  ;;  %5485 = vmatmul.bf16.vlgmr.msrb.gmra.mxu0 %v5071_v46  ;;  %v5004_v6 = vpop.f32.mrf.mxu2  ;;  %v9651_v52 = vld [vmem:[#allocation24 + $0x1c8] sm:$0xf] }
 0x4f1   :  { %v9652_v63 = vor.u32 %v10668_v61, %v9651_v52  ;;  %v9587_v6 = vld [vmem:[#allocation24 + $0x148] sm:$0xf]  ;;  %v10601_v61 = vld [vmem:[%s12261_s22 + $0x40] sm:$0xff] }
 0x4f2   :  { %v10678_v26 = vld [vmem:[#allocation26 + $0x24] sm:$0xf0] }
 0x4f4   :  { %6190 = vmatpush.bf16.msra.mxu1 %v9508_v31  ;;  %v9620_v31 = vor.u32 %v10660_v58, %v9619_v3  ;;  %v9732_v3 = vor.u32 %v10688_v59, %v9731_v55  ;;  %v10641_v55 = vld [vmem:[#allocation24 + $0x104] sm:$0xf]  ;;  %v9549_v59 = vld [vmem:[#allocation24 + $0x110] sm:$0xf0] }
 0x4f8   :  { %6191 = vmatpush.bf16.msra.mxu1 %v9492_v53  ;;  %v10652_v53 = vld [vmem:[#allocation24 + $0x154] sm:$0xf0] }
 0x4f9   :  { %v9588_v56 = vor.u32 %v10652_v53, %v9587_v6  ;;  %v10665_v53 = vld [vmem:[#allocation24 + $0x1c4] sm:$0xf] }
 0x4fc   :  { %6192 = vmatpush.bf16.msra.mxu1 %v9476_v15  ;;  %v10648_v15 = vld [vmem:[#allocation24 + $0x134] sm:$0xf0] }
 0x4fd   :  { %v9572_v16 = vor.u32 %v10648_v15, %v9571_v2  ;;  %v9648_v2 = vor.u32 %v10665_v53, %v9645_v44  ;;  %v10686_v15 = vld [vmem:[#allocation26 + $0x64] sm:$0xf0]  ;;  %v9725_v53 = vld [vmem:[#allocation26 + $0x68] sm:$0xf0] }
 0x500   :  { %6193 = vmatpush.bf16.msra.mxu1 %v9460_v19  ;;  %5537 = vmatmul.bf16.vlgmr.msra.gmra.mxu0 %v5071_v46  ;;  %v9603_v46 = vld [vmem:[#allocation24 + $0x168] sm:$0xf]  ;;  %v10644_v19 = vld [vmem:[#allocation24 + $0x114] sm:$0xf0] }
 0x501   :  { %v9604_v62 = vor.u32 %v10656_v1, %v9603_v46  ;;  %v9556_v57 = vor.u32 %v10644_v19, %v9555_v54  ;;  %v10617_v46 = vld [vmem:[#allocation24 + $0x44] sm:$0xf]  ;;  %v9453_v1 = vld [vmem:[#allocation24 + $0x50] sm:$0xf0] }
 0x502   :  { %v9456_v6 = vor.u32 %v10617_v46, %v9453_v1  ;;  %v10687_v46 = vld [vmem:[#allocation26 + $0x74] sm:$0xf]  ;;  %v9733_v1 = vld [vmem:[#allocation26 + $0x78] sm:$0xf0] }
 0x504   :  { %6194 = vmatpush.bf16.msra.mxu1 %v9444_v41  ;;  %v10598_v41 = vld [vmem:[%s12261_s22 + $0x28] sm:$0xff] }
 0x505   :  { %5710 = vmatpush.bf16.msra.mxu3 %v10598_v41 }
 0x508   :  { %v5054_v50 = vpop.f32.mrf.mxu2  ;;  %6195 = vmatpush.bf16.msra.mxu1 %v9428_v27 }
 0x509   :  { %v5055_v42 = vadd.f32 %v5054_v50, %v5042_v60  ;;  %5711 = vmatpush.bf16.msra.mxu3 %v10597_v7  ;;  %v10596_v60 = vld [vmem:[%s12261_s22 + $0x18] sm:$0xff]  ;;  %v9629_v7 = vld [vmem:[#allocation24 + $0x1b0] sm:$0xf0] }
 0x50a   :  { %v10608_v50 = vld [vmem:[%s12261_s22 + $0x78] sm:$0xff] }
 0x50b   :  { %vm5061_vm0 = vcmp.ge.f32.partialorder %v5055_v42, 0.0  ;;  %v5065_v12 = vmul.f32 0.2, %v5055_v42  ;;  %6196 = vmatmul.bf16.vlgmr.msra.gmra.mxu1 %v12068_v30  ;;  %5721 = vmatpush.bf16.msrb.mxu0 %v10608_v50  ;;  %v10684_v50 = vld [vmem:[#allocation26 + $0x54] sm:$0xf0] }
 0x50c   :  { %6646 = vmatpush.bf16.msrb.mxu1 %v9732_v3  ;;  %v9675_v3 = vld [vmem:[#allocation26] sm:$0xf] }
 0x50d   :  { %v5069_v10 = vsel %vm5061_vm0, %v5055_v42, %v5065_v12  ;;  %5712 = vmatpush.bf16.msra.mxu3 %v10596_v60  ;;  %v10595_v42 = vld [vmem:[%s12261_s22 + $0x10] sm:$0xff]  ;;  %v10594_v12 = vld [vmem:[%s12261_s22 + $0x8] sm:$0xff] }
 0x50e   :  { %v5073_v34 = vpack.c.bf16 %v5069_v10, %v5069_v10  ;;  %v10606_v10 = vld [vmem:[%s12261_s22 + $0x68] sm:$0xff] }
 0x50f   :  { %5722 = vmatpush.bf16.msrb.mxu0 %v10607_v17  ;;  %v10609_v17 = vld [vmem:[#allocation24 + $0x4] sm:$0xf] }
 0x510   :  { %v5056_v28 = vpop.f32.mrf.mxu2  ;;  %5511 = vmatmul.bf16.vlgmr.msrb.gmra.mxu2 %v5073_v34 }
 0x511   :  { %6149 = vmatpush.bf16.msrb.mxu2 %v9660_v21  ;;  %5713 = vmatpush.bf16.msra.mxu3 %v10595_v42  ;;  %v10637_v21 = vld [vmem:[#allocation24 + $0xe4] sm:$0xf]  ;;  %v10605_v28 = vld [vmem:[%s12261_s22 + $0x60] sm:$0xff] }
 0x513   :  { %5723 = vmatpush.bf16.msrb.mxu0 %v10606_v10  ;;  %v10657_v10 = vld [vmem:[#allocation24 + $0x184] sm:$0xf] }
 0x515   :  { %6150 = vmatpush.bf16.msrb.mxu2 %v9644_v0  ;;  %5714 = vmatpush.bf16.msra.mxu3 %v10594_v12  ;;  %v9421_v12 = vld [vmem:[#allocation24 + $0x10] sm:$0xf0] }
 0x517   :  { %5724 = vmatpush.bf16.msrb.mxu0 %v10605_v28  ;;  %v10682_v28 = vld [vmem:[#allocation26 + $0x44] sm:$0xf0] }
 0x519   :  { %6151 = vmatpush.bf16.msrb.mxu2 %v9628_v39  ;;  %5715 = vmatpush.bf16.msra.mxu3 %v10593_v36  ;;  %v9517_v39 = vld [vmem:[#allocation24 + $0xd0] sm:$0xf0]  ;;  %v9707_v36 = vld [vmem:[#allocation26 + $0x40] sm:$0xf] }
 0x51a   :  { %v9520_v22 = vor.u32 %v10633_v11, %v9517_v39  ;;  %v10653_v11 = vld [vmem:[#allocation24 + $0x164] sm:$0xf]  ;;  %v9597_v39 = vld [vmem:[#allocation24 + $0x170] sm:$0xf0] }
 0x51b   :  { %5725 = vmatpush.bf16.msrb.mxu0 %v10604_v37  ;;  %v9600_v37 = vor.u32 %v10653_v11, %v9597_v39  ;;  %v10677_v39 = vld [vmem:[#allocation26 + $0x24] sm:$0xf] }
 0x51d   :  { %6152 = vmatpush.bf16.msrb.mxu2 %v9612_v33  ;;  %v10629_v33 = vld [vmem:[#allocation24 + $0xa4] sm:$0xf] }
 0x51e   :  { %v9504_v23 = vor.u32 %v10629_v33, %v9501_v35  ;;  %v10680_v33 = vld [vmem:[#allocation26 + $0x34] sm:$0xf0] }
 0x520   :  { %5563 = vmatmul.bf16.vlgmr.msra.gmra.mxu2 %v5073_v34  ;;  %v9533_v34 = vld [vmem:[#allocation24 + $0xf0] sm:$0xf0] }
 0x521   :  { %6153 = vmatpush.bf16.msrb.mxu2 %v9596_v18  ;;  %v9536_v0 = vor.u32 %v10637_v21, %v9533_v34  ;;  %v10603_v18 = vld [vmem:[%s12261_s22 + $0x50] sm:$0xff]  ;;  %v9613_v21 = vld [vmem:[#allocation24 + $0x190] sm:$0xf0] }
 0x522   :  { %5726 = vmatpush.bf16.msrb.mxu0 %v10603_v18  ;;  %v9616_v34 = vor.u32 %v10657_v10, %v9613_v21  ;;  %v10649_v18 = vld [vmem:[#allocation24 + $0x144] sm:$0xf] }
 0x523   :  { %6162 = vmatpush.bf16.msrb.mxu3 %v9536_v0  ;;  %v9708_v0 = vor.u32 %v10682_v28, %v9707_v36  ;;  %v10630_v28 = vld [vmem:[#allocation24 + $0xac] sm:$0xf] }
 0x525   :  { %6154 = vmatpush.bf16.msrb.mxu2 %v9580_v38 }
 0x526   :  { %5727 = vmatpush.bf16.msrb.mxu0 %v10602_v20  ;;  %v10645_v20 = vld [vmem:[#allocation24 + $0x124] sm:$0xf] }
 0x527   :  { %6163 = vmatpush.bf16.msrb.mxu3 %v9520_v22  ;;  %v9699_v22 = vld [vmem:[#allocation26 + $0x30] sm:$0xf] }
 0x528   :  { %v9700_v35 = vor.u32 %v10680_v33, %v9699_v22 }
 0x529   :  { %6155 = vmatpush.bf16.msrb.mxu2 %v9564_v45  ;;  %v5140_v45 = vperm.slane %v12132_v51, 0 }
 0x52a   :  { %5728 = vmatpush.bf16.msrb.mxu0 %v10601_v61 }
 0x52b   :  { %6164 = vmatpush.bf16.msrb.mxu3 %v9504_v23  ;;  %v9581_v23 = vld [vmem:[#allocation24 + $0x150] sm:$0xf0] }
 0x52d   :  { %6156 = vmatpush.bf16.msrb.mxu2 %v9548_v13  ;;  %v10669_v13 = vld [vmem:[#allocation24 + $0x1e4] sm:$0xf] }
 0x52f   :  { %6165 = vmatpush.bf16.msrb.mxu3 %v9488_v8  ;;  %v9565_v8 = vld [vmem:[#allocation24 + $0x130] sm:$0xf0] }
 0x530   :  { %6157 = vmatmul.bf16.vlgmr.msrb.gmra.mxu2 %v12075_v5  ;;  %v12084_v24 = vpop.f32.mrf.mxu3 }
 0x531   :  { %6201 = vmatpush.bf16.msra.mxu2 %v9668_v47  ;;  %v9661_v47 = vld [vmem:[#allocation24 + $0x1f0] sm:$0xf0]  ;;  %v5474_v58 = vadd.f32 %v12084_v24, %v5140_v45  ;;  %v9692_v45 = vor.u32 %v10678_v26, %v9691_v40  ;;  %v9685_v40 = vld [vmem:[#allocation26 + $0x18] sm:$0xf0] }
 0x532   :  { %v9437_v24 = vld [vmem:[#allocation24 + $0x30] sm:$0xf0] }
 0x533   :  { %v9440_v41 = vor.u32 %v10613_v43, %v9437_v24  ;;  %v10638_v24 = vld [vmem:[#allocation24 + $0xec] sm:$0xf] }
 0x535   :  { %6202 = vmatpush.bf16.msra.mxu2 %v9652_v63  ;;  %v9472_v63 = vor.u32 %v10621_v48, %v9469_v25  ;;  %v9568_v48 = vor.u32 %v10645_v20, %v9565_v8  ;;  %v9683_v25 = vld [vmem:[#allocation26 + $0x10] sm:$0xf]  ;;  %v10622_v20 = vld [vmem:[#allocation24 + $0x6c] sm:$0xf] }
 0x537   :  { %6166 = vmatpush.bf16.msrb.mxu3 %v9472_v63 }
 0x538   :  { %v5475_v27 = vpop.f32.mrf.mxu3 }
 0x539   :  { %6203 = vmatpush.bf16.msra.mxu2 %v9636_v32  ;;  %v9664_v32 = vor.u32 %v10669_v13, %v9661_v47  ;;  %v9715_v27 = vld [vmem:[#allocation26 + $0x50] sm:$0xf]  ;;  %v10676_v13 = vld [vmem:[#allocation26 + $0x14] sm:$0xf0] }
 0x53a   :  { %v9716_v42 = vor.u32 %v10684_v50, %v9715_v27  ;;  %v9684_v47 = vor.u32 %v10676_v13, %v9683_v25  ;;  %v10681_v50 = vld [vmem:[#allocation26 + $0x44] sm:$0xf]  ;;  %v9669_v25 = vld [vmem:[#allocation24 + $0x1f8] sm:$0xf0] }
 0x53b   :  { %6175 = vmatpush.bf16.msra.mxu0 %v9664_v32  ;;  %6167 = vmatpush.bf16.msrb.mxu3 %v9456_v6  ;;  %v9552_v32 = vor.u32 %v10641_v55, %v9549_v59  ;;  %v10685_v6 = vld [vmem:[#allocation26 + $0x64] sm:$0xf] }
 0x53d   :  { %6204 = vmatpush.bf16.msra.mxu2 %v9620_v31 }
 0x53f   :  { %6176 = vmatpush.bf16.msra.mxu0 %v9648_v2  ;;  %6168 = vmatpush.bf16.msrb.mxu3 %v9440_v41  ;;  %v10683_v2 = vld [vmem:[#allocation26 + $0x54] sm:$0xf]  ;;  %v9541_v41 = vld [vmem:[#allocation24 + $0xf8] sm:$0xf0] }
 0x541   :  { %6205 = vmatpush.bf16.msra.mxu2 %v9604_v62 }
 0x545   :  { %6206 = vmatpush.bf16.msra.mxu2 %v9588_v56  ;;  %v9723_v56 = vld [vmem:[#allocation26 + $0x60] sm:$0xf] }
 0x546   :  { %v9724_v19 = vor.u32 %v10686_v15, %v9723_v56  ;;  %v9728_v56 = vor.u32 %v10685_v6, %v9725_v53 }
 0x548   :  { %v12092_v14 = vpop.f32.mrf.mxu1  ;;  %6647 = vmatpush.bf16.msrb.mxu1 %v9724_v19 }
 0x549   :  { %6207 = vmatpush.bf16.msra.mxu2 %v9572_v16 }
 0x54c   :  { %6648 = vmatpush.bf16.msrb.mxu1 %v9716_v42  ;;  %v9709_v42 = vld [vmem:[#allocation26 + $0x48] sm:$0xf0] }
 0x54d   :  { %6208 = vmatpush.bf16.msra.mxu2 %v9556_v57  ;;  %v10661_v57 = vld [vmem:[#allocation24 + $0x1a4] sm:$0xf] }
 0x54e   :  { %v9632_v60 = vor.u32 %v10661_v57, %v9629_v7  ;;  %v5141_v57 = vperm.slane %v12132_v51, 1 }
 0x54f   :  { %v12121_v9 = vpop.f32.mrf.mxu3 }
 0x550   :  { %6209 = vmatmul.bf16.vlgmr.msra.gmra.mxu2 %v12075_v5  ;;  %v5501_v49 = vpop.f32.mrf.mxu1  ;;  %6177 = vmatpush.bf16.msra.mxu0 %v9632_v60  ;;  %v9544_v60 = vor.u32 %v10638_v24, %v9541_v41  ;;  %v5526_v10 = vadd.f32 %v12121_v9, %v5141_v57  ;;  %v9493_v9 = vld [vmem:[#allocation24 + $0x98] sm:$0xf0]  ;;  %v10610_v41 = vld [vmem:[#allocation24 + $0xc] sm:$0xf] }
 0x551   :  { %6649 = vmatpush.bf16.msrb.mxu1 %v9708_v0  ;;  %v9509_v0 = vld [vmem:[#allocation24 + $0xb8] sm:$0xf0] }
 0x552   :  { %v9512_v22 = vor.u32 %v10630_v28, %v9509_v0  ;;  %v9429_v57 = vld [vmem:[#allocation24 + $0x18] sm:$0xf0] }
 0x554   :  { %6178 = vmatpush.bf16.msra.mxu0 %v9616_v34  ;;  %v9701_v34 = vld [vmem:[#allocation26 + $0x38] sm:$0xf0] }
 0x555   :  { %6650 = vmatpush.bf16.msrb.mxu1 %v9700_v35  ;;  %v10626_v35 = vld [vmem:[#allocation24 + $0x8c] sm:$0xf] }
 0x557   :  { %v5527_v38 = vpop.f32.mrf.mxu3 }
 0x558   :  { %v12116_v4 = vpop.f32.mrf.mxu1  ;;  %6179 = vmatpush.bf16.msra.mxu0 %v9600_v37  ;;  %v9584_v38 = vor.u32 %v10649_v18, %v9581_v23  ;;  %v9693_v37 = vld [vmem:[#allocation26 + $0x28] sm:$0xf0]  ;;  %v10675_v23 = vld [vmem:[#allocation26 + $0x14] sm:$0xf] }
 0x559   :  { %6651 = vmatpush.bf16.msrb.mxu1 %v9692_v45  ;;  %v9696_v33 = vor.u32 %v10677_v39, %v9693_v37  ;;  %v9496_v45 = vor.u32 %v10626_v35, %v9493_v9  ;;  %v9688_v8 = vor.u32 %v10675_v23, %v9685_v40  ;;  %v10650_v39 = vld [vmem:[#allocation24 + $0x14c] sm:$0xf]  ;;  %v9589_v37 = vld [vmem:[#allocation24 + $0x158] sm:$0xf0]  ;;  %v9835_v40 = vld [vmem:[#allocation26 + $0x140] sm:$0xf] }
 0x55a   :  { %v9592_v9 = vor.u32 %v10650_v39, %v9589_v37  ;;  %v10646_v23 = vld [vmem:[#allocation24 + $0x12c] sm:$0xf]  ;;  %v10707_v39 = vld [vmem:[#allocation26 + $0x114] sm:$0xf]  ;;  %v9813_v37 = vld [vmem:[#allocation26 + $0x118] sm:$0xf0] }
 0x55c   :  { %6180 = vmatpush.bf16.msra.mxu0 %v9584_v38 }
 0x55d   :  { %6652 = vmatpush.bf16.msrb.mxu1 %v9684_v47  ;;  %v10673_v47 = vld [vmem:[#allocation26 + $0x4] sm:$0xf] }
 0x560   :  { %v5553_v29 = vpop.f32.mrf.mxu1  ;;  %6181 = vmatpush.bf16.msra.mxu0 %v9568_v48  ;;  %v10670_v48 = vld [vmem:[#allocation24 + $0x1ec] sm:$0xf] }
 0x561   :  { %v9672_v59 = vor.u32 %v10670_v48, %v9669_v25  ;;  %v9827_v48 = vld [vmem:[#allocation26 + $0x130] sm:$0xf]  ;;  %v10712_v25 = vld [vmem:[#allocation26 + $0x134] sm:$0xf0] }
 0x564   :  { %6182 = vmatpush.bf16.msra.mxu0 %v9552_v32  ;;  %v10618_v32 = vld [vmem:[#allocation24 + $0x4c] sm:$0xf] }
 0x568   :  { %v12138_v52 = vpop.f32.mrf.mxu1 }
 0x56d   :  { %v5486_v31 = vpop.f32.mrf.mxu0 }
 0x56e   :  { %v5487_v62 = vadd.f32 %v5486_v31, %v5474_v58  ;;  %v10674_v58 = vld [vmem:[#allocation26 + $0x4] sm:$0xf0] }
 0x56f   :  { %v9676_v31 = vor.u32 %v10674_v58, %v9675_v3  ;;  %v9461_v58 = vld [vmem:[#allocation24 + $0x58] sm:$0xf0] }
 0x570   :  { %v6147_v16 = vpop.f32.mrf.mxu1  ;;  %v12145_v54 = vadd.f32 %v12092_v14, %v5487_v62  ;;  %v9424_v14 = vor.u32 %v10609_v17, %v9421_v12  ;;  %v9736_v62 = vor.u32 %v10687_v46, %v9733_v1  ;;  %v10634_v17 = vld [vmem:[#allocation24 + $0xcc] sm:$0xf]  ;;  %v9525_v12 = vld [vmem:[#allocation24 + $0xd8] sm:$0xf0]  ;;  %v9464_v53 = vor.u32 %v10618_v32, %v9461_v58  ;;  %v9803_v58 = vld [vmem:[#allocation26 + $0x100] sm:$0xf] }
 0x571   :  { %6653 = vmatpush.bf16.msrb.mxu1 %v9676_v31  ;;  %v9717_v16 = vld [vmem:[#allocation26 + $0x58] sm:$0xf0]  ;;  %v9528_v51 = vor.u32 %v10634_v17, %v9525_v12  ;;  %v10666_v31 = vld [vmem:[#allocation24 + $0x1cc] sm:$0xf]  ;;  %v9432_v12 = vor.u32 %v10610_v41, %v9429_v57  ;;  %v9787_v41 = vld [vmem:[#allocation26 + $0xe0] sm:$0xf] }
 0x572   :  { %6169 = vmatpush.bf16.msrb.mxu3 %v9424_v14  ;;  %v9720_v43 = vor.u32 %v10683_v2, %v9717_v16  ;;  %v9712_v14 = vor.u32 %v10681_v50, %v9709_v42  ;;  %v9653_v46 = vld [vmem:[#allocation24 + $0x1d8] sm:$0xf0]  ;;  %v9859_v50 = vld [vmem:[#allocation26 + $0x170] sm:$0xf]  ;;  %v10720_v42 = vld [vmem:[#allocation26 + $0x174] sm:$0xf0] }
 0x573   :  { %v9445_v2 = vld [vmem:[#allocation24 + $0x38] sm:$0xf0] }
 0x574   :  { %v9637_v16 = vld [vmem:[#allocation24 + $0x1b8] sm:$0xf0] }
 0x575   :  { %v5488_v49 = vpop.f32.mrf.mxu0  ;;  %6698 = vmatpush.bf16.msra.mxu1 %v9736_v62  ;;  %v12159_v62 = vld [vmem:[%s12258_s19] sm:$0xf] }
 0x576   :  { %v5810_v32 = vperm.slane %v12159_v62, 2 }
 0x579   :  { %6699 = vmatpush.bf16.msra.mxu1 %v9728_v56  ;;  %v10614_v56 = vld [vmem:[#allocation24 + $0x2c] sm:$0xf] }
 0x57d   :  { %v12147_v29 = vpop.f32.mrf.mxu0  ;;  %6700 = vmatpush.bf16.msra.mxu1 %v9720_v43  ;;  %v9448_v43 = vor.u32 %v10614_v56, %v9445_v2 }
 0x57e   :  { %v5539_v11 = vadd.f32 %v12147_v29, %v5526_v10  ;;  %v9477_v29 = vld [vmem:[#allocation24 + $0x78] sm:$0xf0]  ;;  %v9860_v10 = vor.u32 %v10720_v42, %v9859_v50 }
 0x57f   :  { %v9845_v50 = vld [vmem:[#allocation26 + $0x158] sm:$0xf0] }
 0x580   :  { %v5552_v18 = vadd.f32 %v12116_v4, %v5539_v11  ;;  %v9480_v4 = vor.u32 %v10622_v20, %v9477_v29  ;;  %v9557_v29 = vld [vmem:[#allocation24 + $0x118] sm:$0xf0] }
 0x581   :  { %6701 = vmatpush.bf16.msra.mxu1 %v9712_v14 }
 0x585   :  { %v5540_v61 = vpop.f32.mrf.mxu0 }
 0x586   :  { %v9677_v61 = vld [vmem:[#allocation26 + $0x8] sm:$0xf0] }
 0x587   :  { %v9680_v1 = vor.u32 %v10673_v47, %v9677_v61  ;;  %v9819_v47 = vld [vmem:[#allocation26 + $0x120] sm:$0xf]  ;;  %v10710_v61 = vld [vmem:[#allocation26 + $0x124] sm:$0xf0] }
 0x588   :  { %v12149_v63 = vpop.f32.mrf.mxu1 }
 0x590   :  { %v6199_v44 = vpop.f32.mrf.mxu1 }
 0x591   :  { %v9656_v44 = vor.u32 %v10666_v31, %v9653_v46  ;;  %v10706_v31 = vld [vmem:[#allocation26 + $0x104] sm:$0xf0]  ;;  %v6198_v46 = vadd.f32 %v12149_v63, %v5810_v32 }
 0x592   :  { %v9804_v56 = vor.u32 %v10706_v31, %v9803_v58  ;;  %v9739_v31 = vld [vmem:[#allocation26 + $0x80] sm:$0xf] }
 0x593   :  { %v5512_v15 = vpop.f32.mrf.mxu2 }
 0x594   :  { %v5513_v19 = vadd.f32 %v5512_v15, %v12145_v54  ;;  %v10679_v54 = vld [vmem:[#allocation26 + $0x34] sm:$0xf]  ;;  %v10662_v15 = vld [vmem:[#allocation24 + $0x1ac] sm:$0xf] }
 0x595   :  { %v9704_v36 = vor.u32 %v10679_v54, %v9701_v34  ;;  %v9640_v24 = vor.u32 %v10662_v15, %v9637_v16  ;;  %v9605_v54 = vld [vmem:[#allocation24 + $0x178] sm:$0xf0]  ;;  %v9851_v34 = vld [vmem:[#allocation26 + $0x160] sm:$0xf]  ;;  %v10717_v15 = vld [vmem:[#allocation26 + $0x164] sm:$0xf] }
 0x596   :  { %vm5568_vm2 = vcmp.ge.f32.partialorder %v5513_v19, 0.0  ;;  %v5570_v7 = vmul.f32 0.2, %v5513_v19 }
 0x597   :  { %6702 = vmatpush.bf16.msra.mxu1 %v9704_v36  ;;  %v10718_v36 = vld [vmem:[#allocation26 + $0x164] sm:$0xf0] }
 0x598   :  { %v5572_v27 = vsel %vm5568_vm2, %v5513_v19, %v5570_v7  ;;  %v5808_v19 = vperm.slane %v12159_v62, 0  ;;  %v10658_v7 = vld [vmem:[#allocation24 + $0x18c] sm:$0xf]  ;;  %v9852_v11 = vor.u32 %v10718_v36, %v9851_v34  ;;  %v9829_v36 = vld [vmem:[#allocation26 + $0x138] sm:$0xf0] }
 0x599   :  { %v5574_v49 = vpack.c.bf16 %v5572_v27, %v5572_v27  ;;  %v9621_v27 = vld [vmem:[#allocation24 + $0x198] sm:$0xf0] }
 0x59a   :  { %v9624_v14 = vor.u32 %v10658_v7, %v9621_v27  ;;  %v10702_v27 = vld [vmem:[#allocation26 + $0xe4] sm:$0xf0] }
 0x59b   :  { %v5514_v21 = vpop.f32.mrf.mxu2  ;;  %5716 = vmatmul.bf16.vlgmr.msra.gmra.mxu3 %v5574_v49  ;;  %6703 = vmatpush.bf16.msra.mxu1 %v9696_v33  ;;  %v10716_v33 = vld [vmem:[#allocation26 + $0x154] sm:$0xf0] }
 0x59c   :  { %6214 = vmatpush.bf16.msra.mxu3 %v9544_v60  ;;  %v6146_v60 = vadd.f32 %v12138_v52, %v5808_v19  ;;  %v10654_v21 = vld [vmem:[#allocation24 + $0x16c] sm:$0xf] }
 0x59d   :  { %v9608_v0 = vor.u32 %v10654_v21, %v9605_v54  ;;  %v9853_v19 = vld [vmem:[#allocation26 + $0x168] sm:$0xf0] }
 0x59e   :  { %v9856_v7 = vor.u32 %v10717_v15, %v9853_v19  ;;  %v9837_v21 = vld [vmem:[#allocation26 + $0x148] sm:$0xf0]  ;;  %v10728_v19 = vld [vmem:[#allocation26 + $0x1b4] sm:$0xf0] }
 0x59f   :  { %6704 = vmatpush.bf16.msra.mxu1 %v9688_v8  ;;  %v10642_v8 = vld [vmem:[#allocation24 + $0x10c] sm:$0xf] }
 0x5a0   :  { %6215 = vmatpush.bf16.msra.mxu3 %v9528_v51 }
 0x5a3   :  { %v5564_v38 = vpop.f32.mrf.mxu2  ;;  %6705 = vmatpush.bf16.msra.mxu1 %v9680_v1  ;;  %v10719_v1 = vld [vmem:[#allocation26 + $0x174] sm:$0xf] }
 0x5a4   :  { %v5565_v26 = vadd.f32 %v5564_v38, %v5552_v18  ;;  %6216 = vmatpush.bf16.msra.mxu3 %v9512_v22  ;;  %v9843_v22 = vld [vmem:[#allocation26 + $0x150] sm:$0xf]  ;;  %v9573_v38 = vld [vmem:[#allocation24 + $0x138] sm:$0xf0] }
 0x5a5   :  { %v9844_v18 = vor.u32 %v10716_v33, %v9843_v22  ;;  %v9816_v22 = vor.u32 %v10707_v39, %v9813_v37  ;;  %v10705_v33 = vld [vmem:[#allocation26 + $0x104] sm:$0xf] }
 0x5a6   :  { %vm5569_vm3 = vcmp.ge.f32.partialorder %v5565_v26, 0.0  ;;  %v5571_v13 = vmul.f32 0.2, %v5565_v26  ;;  %v10693_v37 = vld [vmem:[#allocation26 + $0xa4] sm:$0xf] }
 0x5a8   :  { %v5573_v55 = vsel %vm5569_vm3, %v5565_v26, %v5571_v13  ;;  %6217 = vmatpush.bf16.msra.mxu3 %v9496_v45  ;;  %v10714_v26 = vld [vmem:[#allocation26 + $0x144] sm:$0xf0]  ;;  %v9576_v45 = vor.u32 %v10646_v23, %v9573_v38  ;;  %v9560_v13 = vor.u32 %v10642_v8, %v9557_v29 }
 0x5a9   :  { %v5575_v3 = vpack.c.bf16 %v5573_v55, %v5573_v55  ;;  %v9836_v20 = vor.u32 %v10714_v26, %v9835_v40  ;;  %v9820_v55 = vor.u32 %v10710_v61, %v9819_v47  ;;  %v10698_v23 = vld [vmem:[#allocation26 + $0xc4] sm:$0xf0]  ;;  %v9763_v40 = vld [vmem:[#allocation26 + $0xb0] sm:$0xf]  ;;  %v10696_v26 = vld [vmem:[#allocation26 + $0xb4] sm:$0xf0] }
 0x5aa   :  { %v9764_v8 = vor.u32 %v10696_v26, %v9763_v40  ;;  %v10734_v47 = vld [vmem:[#allocation26 + $0x1e4] sm:$0xf0]  ;;  %v10691_v26 = vld [vmem:[#allocation26 + $0x94] sm:$0xf] }
 0x5ab   :  { %v5566_v6 = vpop.f32.mrf.mxu2  ;;  %5729 = vmatmul.bf16.vlgmr.msrb.gmra.mxu0 %v5575_v3  ;;  %6170 = vmatmul.bf16.vlgmr.msrb.gmra.mxu3 %v12068_v30 }
 0x5ac   :  { %6218 = vmatpush.bf16.msra.mxu3 %v9480_v4  ;;  %6227 = vmatpush.bf16.msrb.mxu0 %v9672_v59  ;;  %v9811_v4 = vld [vmem:[#allocation26 + $0x110] sm:$0xf]  ;;  %v10708_v59 = vld [vmem:[#allocation26 + $0x114] sm:$0xf0]  ;;  %v9861_v6 = vld [vmem:[#allocation26 + $0x178] sm:$0xf0] }
 0x5ad   :  { %v9812_v3 = vor.u32 %v10708_v59, %v9811_v4  ;;  %v9864_v2 = vor.u32 %v10719_v1, %v9861_v6  ;;  %v10692_v4 = vld [vmem:[#allocation26 + $0x94] sm:$0xf0]  ;;  %v9907_v59 = vld [vmem:[#allocation26 + $0x1d0] sm:$0xf]  ;;  %v9899_v6 = vld [vmem:[#allocation26 + $0x1c0] sm:$0xf] }
 0x5b0   :  { %6219 = vmatpush.bf16.msra.mxu3 %v9464_v53  ;;  %6228 = vmatpush.bf16.msrb.mxu0 %v9656_v44 }
 0x5b3   :  { %v6158_v49 = vpop.f32.mrf.mxu2 }
 0x5b4   :  { %v6159_v17 = vadd.f32 %v6158_v49, %v6146_v60  ;;  %6220 = vmatpush.bf16.msra.mxu3 %v9448_v43  ;;  %6229 = vmatpush.bf16.msrb.mxu0 %v9640_v24  ;;  %v10704_v24 = vld [vmem:[#allocation26 + $0xf4] sm:$0xf0]  ;;  %v10715_v60 = vld [vmem:[#allocation26 + $0x154] sm:$0xf]  ;;  %v9788_v49 = vor.u32 %v10702_v27, %v9787_v41 }
 0x5b5   :  { %v10699_v27 = vld [vmem:[#allocation26 + $0xd4] sm:$0xf] }
 0x5b6   :  { %vm6240_vm4 = vcmp.ge.f32.partialorder %v6159_v17, 0.0  ;;  %v6244_v51 = vmul.f32 0.2, %v6159_v17 }
 0x5b8   :  { %v6248_v28 = vsel %vm6240_vm4, %v6159_v17, %v6244_v51  ;;  %6221 = vmatpush.bf16.msra.mxu3 %v9432_v12  ;;  %6230 = vmatpush.bf16.msrb.mxu0 %v9624_v14  ;;  %v9779_v17 = vld [vmem:[#allocation26 + $0xd0] sm:$0xf]  ;;  %v10700_v12 = vld [vmem:[#allocation26 + $0xd4] sm:$0xf0]  ;;  %v9848_v14 = vor.u32 %v10715_v60, %v9845_v50  ;;  %v10711_v51 = vld [vmem:[#allocation26 + $0x134] sm:$0xf] }
 0x5b9   :  { %v6252_v52 = vpack.c.bf16 %v6248_v28, %v6248_v28  ;;  %v9780_v54 = vor.u32 %v10700_v12, %v9779_v17  ;;  %v9832_v28 = vor.u32 %v10711_v51, %v9829_v36  ;;  %v9781_v60 = vld [vmem:[#allocation26 + $0xd8] sm:$0xf0]  ;;  %v10697_v12 = vld [vmem:[#allocation26 + $0xc4] sm:$0xf]  ;;  %v10695_v36 = vld [vmem:[#allocation26 + $0xb4] sm:$0xf] }
 0x5ba   :  { %v9784_v50 = vor.u32 %v10699_v27, %v9781_v60  ;;  %v10721_v60 = vld [vmem:[#allocation26 + $0x184] sm:$0xf] }
 0x5bb   :  { %v6160_v35 = vpop.f32.mrf.mxu2  ;;  %6183 = vmatmul.bf16.vlgmr.msra.gmra.mxu0 %v12075_v5  ;;  %6222 = vmatmul.bf16.vlgmr.msra.gmra.mxu3 %v12068_v30  ;;  %v9828_v30 = vor.u32 %v10712_v25, %v9827_v48  ;;  %v9755_v48 = vld [vmem:[#allocation26 + $0xa0] sm:$0xf]  ;;  %v10694_v25 = vld [vmem:[#allocation26 + $0xa4] sm:$0xf0] }
 0x5bc   :  { %6672 = vmatpush.bf16.msrb.mxu3 %v9860_v10  ;;  %6654 = vmatmul.bf16.vlgmr.msrb.gmra.mxu1 %v6252_v52  ;;  %v10713_v10 = vld [vmem:[#allocation26 + $0x144] sm:$0xf]  ;;  %v9805_v35 = vld [vmem:[#allocation26 + $0x108] sm:$0xf0] }
 0x5bd   :  { %6231 = vmatpush.bf16.msrb.mxu0 %v9608_v0  ;;  %v9840_v34 = vor.u32 %v10713_v10, %v9837_v21  ;;  %v10709_v0 = vld [vmem:[#allocation26 + $0x124] sm:$0xf] }
 0x5c0   :  { %6673 = vmatpush.bf16.msrb.mxu3 %v9852_v11 }
 0x5c1   :  { %6232 = vmatpush.bf16.msrb.mxu0 %v9592_v9  ;;  %v9808_v9 = vor.u32 %v10705_v33, %v9805_v35  ;;  %v10733_v33 = vld [vmem:[#allocation26 + $0x1e4] sm:$0xf]  ;;  %v9917_v35 = vld [vmem:[#allocation26 + $0x1e8] sm:$0xf0] }
 0x5c4   :  { %6674 = vmatpush.bf16.msrb.mxu3 %v9844_v18  ;;  %v9771_v18 = vld [vmem:[#allocation26 + $0xc0] sm:$0xf] }
 0x5c5   :  { %6233 = vmatpush.bf16.msrb.mxu0 %v9576_v45  ;;  %v9772_v38 = vor.u32 %v10698_v23, %v9771_v18  ;;  %v9923_v45 = vld [vmem:[#allocation26 + $0x1f0] sm:$0xf]  ;;  %v9920_v23 = vor.u32 %v10733_v33, %v9917_v35  ;;  %v10743_v33 = vld [vmem:[%s12261_s22 + $0x30] sm:$0xff] }
 0x5c8   :  { %6675 = vmatpush.bf16.msrb.mxu3 %v9836_v20  ;;  %v10736_v20 = vld [vmem:[#allocation26 + $0x1f4] sm:$0xf0] }
 0x5c9   :  { %6234 = vmatpush.bf16.msrb.mxu0 %v9560_v13  ;;  %v9924_v29 = vor.u32 %v10736_v20, %v9923_v45  ;;  %v9915_v13 = vld [vmem:[#allocation26 + $0x1e0] sm:$0xf]  ;;  %v9749_v45 = vld [vmem:[#allocation26 + $0x98] sm:$0xf0]  ;;  %v10731_v20 = vld [vmem:[#allocation26 + $0x1d4] sm:$0xf] }
 0x5ca   :  { %v9916_v61 = vor.u32 %v10734_v47, %v9915_v13  ;;  %v10689_v47 = vld [vmem:[#allocation26 + $0x84] sm:$0xf] }
 0x5cc   :  { %6676 = vmatpush.bf16.msrb.mxu3 %v9828_v30  ;;  %6235 = vmatmul.bf16.vlgmr.msrb.gmra.mxu0 %v12075_v5  ;;  %v9795_v5 = vld [vmem:[#allocation26 + $0xf0] sm:$0xf]  ;;  %v9756_v30 = vor.u32 %v10694_v25, %v9755_v48  ;;  %v9909_v48 = vld [vmem:[#allocation26 + $0x1d8] sm:$0xf0] }
 0x5cd   :  { %6706 = vmatmul.bf16.vlgmr.msra.gmra.mxu1 %v6252_v52  ;;  %v9796_v63 = vor.u32 %v10704_v24, %v9795_v5  ;;  %v9821_v52 = vld [vmem:[#allocation26 + $0x128] sm:$0xf0]  ;;  %6685 = vmatpush.bf16.msra.mxu0 %v9924_v29  ;;  %v10701_v5 = vld [vmem:[#allocation26 + $0xe4] sm:$0xf]  ;;  %v9752_v29 = vor.u32 %v10691_v26, %v9749_v45  ;;  %v9912_v13 = vor.u32 %v10731_v20, %v9909_v48  ;;  %v10737_v48 = vld [vmem:[%s12261_s22] sm:$0xff] }
 0x5ce   :  { %v9824_v11 = vor.u32 %v10709_v0, %v9821_v52  ;;  %v9789_v24 = vld [vmem:[#allocation26 + $0xe8] sm:$0xf0]  ;;  %v10735_v0 = vld [vmem:[#allocation26 + $0x1f4] sm:$0xf]  ;;  %v10739_v45 = vld [vmem:[%s12261_s22 + $0x10] sm:$0xff] }
 0x5cf   :  { %6659 = vmatpush.bf16.msrb.mxu2 %v9796_v63  ;;  %v9792_v41 = vor.u32 %v10701_v5, %v9789_v24  ;;  %v10752_v26 = vld [vmem:[%s12261_s22 + $0x78] sm:$0xff]  ;;  %v10751_v20 = vld [vmem:[%s12261_s22 + $0x70] sm:$0xff] }
 0x5d0   :  { %6677 = vmatpush.bf16.msrb.mxu3 %v9820_v55  ;;  %v9747_v55 = vld [vmem:[#allocation26 + $0x90] sm:$0xf] }
 0x5d1   :  { %6686 = vmatpush.bf16.msra.mxu0 %v9916_v61  ;;  %v9748_v32 = vor.u32 %v10692_v4, %v9747_v55  ;;  %v9741_v61 = vld [vmem:[#allocation26 + $0x88] sm:$0xf0]  ;;  %v10729_v4 = vld [vmem:[#allocation26 + $0x1c4] sm:$0xf] }
 0x5d2   :  { %v9744_v55 = vor.u32 %v10689_v47, %v9741_v61  ;;  %v10746_v47 = vld [vmem:[%s12261_s22 + $0x48] sm:$0xff]  ;;  %v6320_v61 = vld [vmem:[%s12260_s21] sm:$0x3]  ;;  %s11248_s21 = smov [#allocation27]  }
 0x5d3   :  { %v6210_v53 = vpop.f32.mrf.mxu2  ;;  %6660 = vmatpush.bf16.msrb.mxu2 %v9788_v49  ;;  %v10724_v49 = vld [vmem:[#allocation26 + $0x194] sm:$0xf0] }
 0x5d4   :  { %v6211_v44 = vadd.f32 %v6210_v53, %v6198_v46  ;;  %6678 = vmatpush.bf16.msrb.mxu3 %v9812_v3  ;;  %v10732_v3 = vld [vmem:[#allocation26 + $0x1d4] sm:$0xf0]  ;;  %v10690_v46 = vld [vmem:[#allocation26 + $0x84] sm:$0xf0] }
 0x5d5   :  { %v9908_v58 = vor.u32 %v10732_v3, %v9907_v59  ;;  %v9740_v1 = vor.u32 %v10690_v46, %v9739_v31  ;;  %v10730_v53 = vld [vmem:[#allocation26 + $0x1c4] sm:$0xf0]  ;;  %v9901_v59 = vld [vmem:[#allocation26 + $0x1c8] sm:$0xf0]  ;;  %v9893_v31 = vld [vmem:[#allocation26 + $0x1b8] sm:$0xf0] }
 0x5d6   :  { %vm6242_vm5 = vcmp.ge.f32.partialorder %v6211_v44, 0.0  ;;  %v6246_v16 = vmul.f32 0.2, %v6211_v44 }
 0x5d7   :  { %6661 = vmatpush.bf16.msrb.mxu2 %v9780_v54  ;;  %6687 = vmatpush.bf16.msra.mxu0 %v9908_v58  ;;  %v9867_v54 = vld [vmem:[#allocation26 + $0x180] sm:$0xf]  ;;  %v10727_v58 = vld [vmem:[#allocation26 + $0x1b4] sm:$0xf] }
 0x5d8   :  { %v6250_v43 = vsel %vm6242_vm5, %v6211_v44, %v6246_v16  ;;  %6679 = vmatpush.bf16.msrb.mxu3 %v9804_v56  ;;  %v10703_v44 = vld [vmem:[#allocation26 + $0xf4] sm:$0xf]  ;;  %v9900_v56 = vor.u32 %v10730_v53, %v9899_v6  ;;  %v9891_v16 = vld [vmem:[#allocation26 + $0x1b0] sm:$0xf]  ;;  %v10725_v6 = vld [vmem:[#allocation26 + $0x1a4] sm:$0xf] }
 0x5d9   :  { %v6254_v57 = vpack.c.bf16 %v6250_v43, %v6250_v43  ;;  %v9892_v43 = vor.u32 %v10728_v19, %v9891_v16  ;;  %v9885_v53 = vld [vmem:[#allocation26 + $0x1a8] sm:$0xf0]  ;;  %v10723_v16 = vld [vmem:[#allocation26 + $0x194] sm:$0xf]  ;;  %v9877_v19 = vld [vmem:[#allocation26 + $0x198] sm:$0xf0] }
 0x5db   :  { %v6212_v42 = vpop.f32.mrf.mxu2  ;;  %6680 = vmatmul.bf16.vlgmr.msrb.gmra.mxu3 %v6254_v57  ;;  %6662 = vmatpush.bf16.msrb.mxu2 %v9772_v38 }
 0x5dc   :  { %6724 = vmatpush.bf16.msra.mxu3 %v9864_v2  ;;  %v9797_v2 = vld [vmem:[#allocation26 + $0xf8] sm:$0xf0]  ;;  %6688 = vmatpush.bf16.msra.mxu0 %v9900_v56  ;;  %v9875_v42 = vld [vmem:[#allocation26 + $0x190] sm:$0xf]  ;;  %v5809_v56 = vperm.slane %v12159_v62, 1 }
 0x5dd   :  { %v9800_v15 = vor.u32 %v10703_v44, %v9797_v2  ;;  %v9876_v17 = vor.u32 %v10724_v49, %v9875_v42  ;;  %v9888_v2 = vor.u32 %v10725_v6, %v9885_v53  ;;  %v6323_v53 = vperm.slane %v6320_v61, 1 }
 0x5df   :  { %6663 = vmatpush.bf16.msrb.mxu2 %v9764_v8 }
 0x5e0   :  { %6725 = vmatpush.bf16.msra.mxu3 %v9856_v7  ;;  %6689 = vmatpush.bf16.msra.mxu0 %v9892_v43  ;;  %v10726_v7 = vld [vmem:[#allocation26 + $0x1a4] sm:$0xf0] }
 0x5e3   :  { %6664 = vmatpush.bf16.msrb.mxu2 %v9756_v30 }
 0x5e4   :  { %6726 = vmatpush.bf16.msra.mxu3 %v9848_v14  ;;  %v9773_v14 = vld [vmem:[#allocation26 + $0xc8] sm:$0xf0] }
 0x5e5   :  { %v9776_v10 = vor.u32 %v10697_v12, %v9773_v14 }
 0x5e7   :  { %6665 = vmatpush.bf16.msrb.mxu2 %v9748_v32  ;;  %v9904_v32 = vor.u32 %v10729_v4, %v9901_v59  ;;  %v6322_v4 = vperm.slane %v6320_v61, 0 }
 0x5e8   :  { %6727 = vmatpush.bf16.msra.mxu3 %v9840_v34  ;;  %v10722_v34 = vld [vmem:[#allocation26 + $0x184] sm:$0xf0] }
 0x5e9   :  { %v9868_v51 = vor.u32 %v10722_v34, %v9867_v54 }
 0x5eb   :  { %6666 = vmatpush.bf16.msrb.mxu2 %v9740_v1  ;;  %v9896_v1 = vor.u32 %v10727_v58, %v9893_v31 }
 0x5ec   :  { %6728 = vmatpush.bf16.msra.mxu3 %v9832_v28  ;;  %v9765_v28 = vld [vmem:[#allocation26 + $0xb8] sm:$0xf0] }
 0x5ed   :  { %v9768_v52 = vor.u32 %v10695_v36, %v9765_v28 }
 0x5ef   :  { %6711 = vmatpush.bf16.msra.mxu2 %v9800_v15 }
 0x5f0   :  { %6729 = vmatpush.bf16.msra.mxu3 %v9824_v11  ;;  %v9925_v11 = vld [vmem:[#allocation26 + $0x1f8] sm:$0xf0] }
 0x5f1   :  { %v9928_v39 = vor.u32 %v10735_v0, %v9925_v11 }
 0x5f3   :  { %6712 = vmatpush.bf16.msra.mxu2 %v9792_v41  ;;  %v9880_v41 = vor.u32 %v10723_v16, %v9877_v19 }
 0x5f4   :  { %6730 = vmatpush.bf16.msra.mxu3 %v9816_v22  ;;  %v9757_v22 = vld [vmem:[#allocation26 + $0xa8] sm:$0xf0] }
 0x5f5   :  { %v9760_v18 = vor.u32 %v10693_v37, %v9757_v22 }
 0x5f7   :  { %6713 = vmatpush.bf16.msra.mxu2 %v9784_v50  ;;  %v9869_v50 = vld [vmem:[#allocation26 + $0x188] sm:$0xf0] }
 0x5f8   :  { %6731 = vmatpush.bf16.msra.mxu3 %v9808_v9  ;;  %v10779_v9 = vld [vmem:[#allocation2] ss:$0 sm:$0xff]  ;;  %v9872_v49 = vor.u32 %v10721_v60, %v9869_v50 }
 0x5fb   :  { %6732 = vmatmul.bf16.vlgmr.msra.gmra.mxu3 %v6254_v57  ;;  %v9883_v57 = vld [vmem:[#allocation26 + $0x1a0] sm:$0xf]  ;;  %6714 = vmatpush.bf16.msra.mxu2 %v9776_v10 }
 0x5fc   :  { %v9884_v63 = vor.u32 %v10726_v7, %v9883_v57 }
 0x5fe   :  { %6690 = vmatpush.bf16.msra.mxu0 %v9884_v63 }
 0x5ff   :  { %6715 = vmatpush.bf16.msra.mxu2 %v9768_v52 }
 0x602   :  { %6691 = vmatpush.bf16.msra.mxu0 %v9876_v17 }
 0x603   :  { %6716 = vmatpush.bf16.msra.mxu2 %v9760_v18  ;;  %v10741_v18 = vld [vmem:[%s12261_s22 + $0x20] sm:$0xff] }
 0x606   :  { %6692 = vmatpush.bf16.msra.mxu0 %v9868_v51 }
 0x607   :  { %6717 = vmatpush.bf16.msra.mxu2 %v9752_v29  ;;  %v10750_v29 = vld [vmem:[%s12261_s22 + $0x68] sm:$0xff] }
 0x60a   :  { %6737 = vmatpush.bf16.msrb.mxu0 %v9928_v39 }
 0x60b   :  { %6718 = vmatpush.bf16.msra.mxu2 %v9744_v55  ;;  %v10745_v55 = vld [vmem:[%s12261_s22 + $0x40] sm:$0xff] }
 0x60e   :  { %6738 = vmatpush.bf16.msrb.mxu0 %v9920_v23 }
 0x612   :  { %6739 = vmatpush.bf16.msrb.mxu0 %v9912_v13  ;;  %v10748_v13 = vld [vmem:[%s12261_s22 + $0x58] sm:$0xff] }
 0x616   :  { %6740 = vmatpush.bf16.msrb.mxu0 %v9904_v32 }
 0x61a   :  { %6741 = vmatpush.bf16.msrb.mxu0 %v9896_v1 }
 0x61e   :  { %v5717_v21 = vpop.f32.mrf.mxu3  ;;  %6742 = vmatpush.bf16.msrb.mxu0 %v9888_v2 }
 0x61f   :  { %v5718_v40 = vadd.f32 %v10779_v9, %v5717_v21  ;;  %v5811_v21 = vperm.slane %v12159_v62, 3  ;;  %v10744_v62 = vld [vmem:[%s12261_s22 + $0x38] sm:$0xff]  ;;  %v10742_v9 = vld [vmem:[%s12261_s22 + $0x28] sm:$0xff] }
 0x620   :  { %6890 = vmatpush.bf16.msrb.mxu1 %v10744_v62 }
 0x622   :  { %6743 = vmatpush.bf16.msrb.mxu0 %v9880_v41 }
 0x624   :  { %6891 = vmatpush.bf16.msrb.mxu1 %v10743_v33 }
 0x626   :  { %v5719_v38 = vpop.f32.mrf.mxu3  ;;  %6744 = vmatpush.bf16.msrb.mxu0 %v9872_v49 }
 0x628   :  { %v5730_v8 = vpop.f32.mrf.mxu0  ;;  %6892 = vmatpush.bf16.msrb.mxu1 %v10742_v9 }
 0x629   :  { %v5731_v25 = vadd.f32 %v5730_v8, %v5718_v40  ;;  %v10740_v40 = vld [vmem:[%s12261_s22 + $0x18] sm:$0xff]  ;;  %v10738_v8 = vld [vmem:[%s12261_s22 + $0x8] sm:$0xff] }
 0x62b   :  { %v5734_v30 = vmul.f32 0.5, %v5731_v25  ;;  %v10749_v25 = vld [vmem:[%s12261_s22 + $0x60] sm:$0xff] }
 0x62c   :  { %6893 = vmatpush.bf16.msrb.mxu1 %v10741_v18 }
 0x62d   :  { %10815 = vtanh.f32 %v5734_v30  ;;  %v10747_v30 = vld [vmem:[%s12261_s22 + $0x50] sm:$0xff]  ;;  %s6926_s22 = sshll.u32 %s11248_s21, 4  ;;  %s6927_s22 = int_to_ptr.vmem [resolvable:$true] %s6926_s22 }
 0x62e   :  { %v6171_v3 = vpop.f32.mrf.mxu3  ;;  %6931 = dma.vmem_to_hbm [thread:$0]  %s6927_s22, 64, %s6929_s9, [#allocation5]  }
 0x62f   :  { %v6172_v24 = vadd.f32 %v6171_v3, %v5809_v56 }
 0x630   :  { %v5732_v46 = vpop.f32.mrf.mxu0  ;;  %6894 = vmatpush.bf16.msrb.mxu1 %v10740_v40 }
 0x633   :  { %v10816_v44 = vpop.eup %10815 }
 0x634   :  { %v5736_v15 = vadd.f32 1.0, %v10816_v44  ;;  %6895 = vmatpush.bf16.msrb.mxu1 %v10739_v45 }
 0x636   :  { %v5737_v43 = vmul.f32 0.5, %v5736_v15  ;;  %v6173_v5 = vpop.f32.mrf.mxu3 }
 0x638   :  { %5739 = vst.msk [vmem:[%s12292_s18] sm:$0x3] %vm5738_vm6, %v5737_v43  ;;  %v6184_v57 = vpop.f32.mrf.mxu0  ;;  %6896 = vmatpush.bf16.msrb.mxu1 %v10738_v8 }
 0x639   :  { %v6185_v7 = vadd.f32 %v6184_v57, %v6172_v24  ;;  %v12174_v63 = vpop.f32.mrf.mxu1 }
 0x63a   :  { %v6656_v32 = vadd.f32 %v12174_v63, %v6322_v4 }
 0x63b   :  { %vm6241_vm7 = vcmp.ge.f32.partialorder %v6185_v7, 0.0  ;;  %v6245_v27 = vmul.f32 0.2, %v6185_v7 }
 0x63c   :  { %6897 = vmatpush.bf16.msrb.mxu1 %v10737_v48 }
 0x63d   :  { %v6249_v42 = vsel %vm6241_vm7, %v6185_v7, %v6245_v27 }
 0x63e   :  { %v6253_v17 = vpack.c.bf16 %v6249_v42, %v6249_v42  ;;  %v6223_v12 = vpop.f32.mrf.mxu3  ;;  %v10780_v42 = vld [vmem:[#allocation2] ss:$0 sm:$0xff] }
 0x63f   :  { %v6224_v34 = vadd.f32 %v6223_v12, %v5811_v21 }
 0x640   :  { %v6186_v14 = vpop.f32.mrf.mxu0  ;;  %6667 = vmatmul.bf16.vlgmr.msrb.gmra.mxu2 %v6253_v17 }
 0x641   :  { %v6657_v10 = vpop.f32.mrf.mxu1  ;;  %6903 = vmatpush.bf16.msrb.mxu2 %v10752_v26 }
 0x645   :  { %6904 = vmatpush.bf16.msrb.mxu2 %v10751_v20 }
 0x646   :  { %v6225_v54 = vpop.f32.mrf.mxu3 }
 0x649   :  { %v6236_v51 = vpop.f32.mrf.mxu0  ;;  %6905 = vmatpush.bf16.msrb.mxu2 %v10750_v29 }
 0x64a   :  { %v6237_v36 = vadd.f32 %v6236_v51, %v6224_v34  ;;  %v12177_v28 = vpop.f32.mrf.mxu1 }
 0x64b   :  { %v6708_v16 = vadd.f32 %v12177_v28, %v6323_v53 }
 0x64c   :  { %vm6243_vm8 = vcmp.ge.f32.partialorder %v6237_v36, 0.0  ;;  %v6247_v0 = vmul.f32 0.2, %v6237_v36 }
 0x64d   :  { %6906 = vmatpush.bf16.msrb.mxu2 %v10749_v25 }
 0x64e   :  { %v6251_v52 = vsel %vm6243_vm8, %v6237_v36, %v6247_v0 }
 0x64f   :  { %v6255_v11 = vpack.c.bf16 %v6251_v52, %v6251_v52 }
 0x650   :  { %6719 = vmatmul.bf16.vlgmr.msra.gmra.mxu2 %v6253_v17 }
 0x651   :  { %v6238_v39 = vpop.f32.mrf.mxu0  ;;  %6693 = vmatmul.bf16.vlgmr.msra.gmra.mxu0 %v6255_v11  ;;  %6907 = vmatpush.bf16.msrb.mxu2 %v10748_v13 }
 0x652   :  { %v6709_v37 = vpop.f32.mrf.mxu1 }
 0x655   :  { %6908 = vmatpush.bf16.msrb.mxu2 %v10747_v30 }
 0x659   :  { %6909 = vmatpush.bf16.msrb.mxu2 %v10746_v47 }
 0x65d   :  { %6910 = vmatpush.bf16.msrb.mxu2 %v10745_v55 }
 0x65e   :  { %v6681_v22 = vpop.f32.mrf.mxu3 }
 0x661   :  { %6745 = vmatmul.bf16.vlgmr.msrb.gmra.mxu0 %v6255_v11 }
 0x666   :  { %v6683_v35 = vpop.f32.mrf.mxu3 }
 0x67e   :  { %v6733_v23 = vpop.f32.mrf.mxu3 }
 0x686   :  { %v6735_v38 = vpop.f32.mrf.mxu3 }
 0x6c3   :  { %v6668_v59 = vpop.f32.mrf.mxu2 }
 0x6c4   :  { %v6669_v3 = vadd.f32 %v6668_v59, %v6656_v32 }
 0x6c6   :  { %v6682_v31 = vadd.f32 %v6681_v22, %v6669_v3 }
 0x6cb   :  { %v6670_v58 = vpop.f32.mrf.mxu2 }
 0x6ce   :  { %v6694_v46 = vpop.f32.mrf.mxu0 }
 0x6cf   :  { %v6695_v1 = vadd.f32 %v6694_v46, %v6682_v31 }
 0x6d1   :  { %vm6750_vm9 = vcmp.ge.f32.partialorder %v6695_v1, 0.0  ;;  %v6752_v6 = vmul.f32 0.2, %v6695_v1 }
 0x6d3   :  { %v6754_v44 = vsel %vm6750_vm9, %v6695_v1, %v6752_v6  ;;  %v6720_v2 = vpop.f32.mrf.mxu2 }
 0x6d4   :  { %v6756_v56 = vpack.c.bf16 %v6754_v44, %v6754_v44  ;;  %v6721_v19 = vadd.f32 %v6720_v2, %v6708_v16 }
 0x6d6   :  { %v6696_v15 = vpop.f32.mrf.mxu0  ;;  %6898 = vmatmul.bf16.vlgmr.msrb.gmra.mxu1 %v6756_v56  ;;  %v6734_v5 = vadd.f32 %v6733_v23, %v6721_v19 }
 0x6db   :  { %v6722_v43 = vpop.f32.mrf.mxu2 }
 0x6de   :  { %v6746_v24 = vpop.f32.mrf.mxu0 }
 0x6df   :  { %v6747_v41 = vadd.f32 %v6746_v24, %v6734_v5 }
 0x6e1   :  { %vm6751_vm10 = vcmp.ge.f32.partialorder %v6747_v41, 0.0  ;;  %v6753_v57 = vmul.f32 0.2, %v6747_v41 }
 0x6e3   :  { %v6755_v7 = vsel %vm6751_vm10, %v6747_v41, %v6753_v57 }
 0x6e4   :  { %v6757_v63 = vpack.c.bf16 %v6755_v7, %v6755_v7 }
 0x6e6   :  { %v6748_v27 = vpop.f32.mrf.mxu0  ;;  %6911 = vmatmul.bf16.vlgmr.msrb.gmra.mxu2 %v6757_v63 }
 0x753   :  { %v6899_v60 = vpop.f32.mrf.mxu1 }
 0x754   :  { %v6900_v49 = vadd.f32 %v10780_v42, %v6899_v60 }
 0x75b   :  { %v6901_v50 = vpop.f32.mrf.mxu1 }
 0x769   :  { %v6912_v17 = vpop.f32.mrf.mxu2 }
 0x76a   :  { %v6913_v12 = vadd.f32 %v6912_v17, %v6900_v49 }
 0x76c   :  { %v6916_v14 = vmul.f32 0.5, %v6913_v12 }
 0x76e   :  { %10817 = vtanh.f32 %v6916_v14 }
 0x771   :  { %v6914_v10 = vpop.f32.mrf.mxu2 }
 0x774   :  { %v10818_v21 = vpop.eup %10817 }
 0x775   :  { %v6918_v54 = vadd.f32 1.0, %v10818_v21 }
 0x777   :  { %v6919_v34 = vmul.f32 0.5, %v6918_v54 }
 0x779   :  { %6920 = vst.msk [vmem:[%s12294_s30] sm:$0x3] %vm5738_vm6, %v6919_v34 }
 0x77a   :  { %11222 = dma.done.wait [#allocation5], 64  }
 0x77b   :  { %11223 = vsyncadd [#allocation5], 4294967232 }
 0x77c   :  { %6944 = vsyncpa [#allocation4], 1 }
 0x77d   :  { %6945 = vsyncpa [#allocation7], 1 }
 0x77e   :  { %6946 = vsyncpa [#allocation10], 1 }
 0x77f   :  { %6947 = vsyncpa [#allocation13], 1 }
 0x780   :  { %6948 = vsyncpa [#allocation16], 1 }
 0x781   :  { %6949 = vsyncpa [#allocation19], 1 }
 0x782   :  { %6950 = vsyncpa [#allocation22], 1 }
 0x783   :  { %6951 = vsyncpa [#allocation25], 1 }
 0x784   :  { %6952 = vsyncpa [#allocation5], 1 }

</bundles_post_ra>
